<compile_context>
chip_gen: v6e
topology: v6e:2x2x1
jax: 0.10.0
libtpu: 0.0.40
codegen_flags: <defaults>
</compile_context>

<pallas_src>
import math

import jax
import jax.numpy as jnp
from jax.experimental import pallas as pl
from jax.experimental.pallas import tpu as pltpu

# PyTorch-default hyperparameters of Attention_decoder(...)
OUTPUT_SIZE = 2    # feature dim of raw x; becomes the attention sequence length (2 streams)
OUTPUT_LEN = 20    # seq dim of raw x; becomes the attention embed dim F after transpose
HIDDEN = 2         # feed_dim inside Att_decoder_f / Att_decoder_b (hidden_size)
HEADS = 1          # single head
EPS = 1e-5         # nn.LayerNorm default eps

assert HEADS == 1, "kernel implements the default single-head configuration"

F = OUTPUT_LEN       # attention embed dim (sublane axis inside the kernel)
S = OUTPUT_SIZE      # attention sequence length (the two "streams")
H = HIDDEN
O = OUTPUT_SIZE
SUB = 8              # sublane quantum
FP = ((F + SUB - 1) // SUB) * SUB            # 24: F padded to a sublane multiple
INV_SQRT_F = 1.0 / math.sqrt(F // HEADS)
PREC = jax.lax.Precision.HIGHEST             # full-f32 MXU contractions
KB_MAX = 256         # lanes per stream per grid step (packed working width = 2*KB)

# ---------------------------------------------------------------------------
# Static packing layout.
#   Wmat : (MAT_ROWS, F)  -- every matrix with in_dim == F, 8-aligned segments
#   Wlin2: (2, F, H)      -- the two feed Linear(H -> F) matrices
#   Vecs : (F, NUM_VECS)  -- every bias / LayerNorm / PE vector as a column
# ---------------------------------------------------------------------------
_MAT_SEGS = [
    ("f_self_in", 3 * FP),   # fused [Wq|pad|Wk|pad|Wv|pad] of the f self-attention
    ("f_self_out", FP),
    ("f_cross_q", FP),
    ("f_cross_kT", FP),      # stored transposed: used as  m_row @ Wk^T
    ("f_cross_v", FP),
    ("f_cross_out", FP),
    ("f_feed_w1", SUB),
    ("b_self_in", 3 * FP),
    ("b_self_out", FP),
    ("b_feed_w1", SUB),
    ("wl_a", SUB),           # final Linear, stream-0 slice
    ("wl_b", SUB),           # final Linear, stream-1 slice
]
MAT_OFF = {}
_o = 0
for _name, _rows in _MAT_SEGS:
    MAT_OFF[_name] = _o
    _o += _rows
MAT_ROWS = _o                 # 320

_VEC_NAMES = [
    "f_ln1_w", "f_ln1_b", "f_self_bq", "f_self_bv", "f_self_bo",
    "f_ln2_w", "f_ln2_b", "f_cross_bq", "f_cross_bv", "f_cross_bo",
    "f_ln3_w", "f_ln3_b", "f_feed_b1", "f_feed_g", "f_feed_beta", "f_feed_b2",
    "b_ln1_w", "b_ln1_b", "b_self_bq", "b_self_bv", "b_self_bo",
    "b_ln2_w", "b_ln2_b", "b_feed_b1", "b_feed_g", "b_feed_beta", "b_feed_b2",
    "bl", "pe_a", "pe_b",
]
VEC_IDX = {n: i for i, n in enumerate(_VEC_NAMES)}
NUM_VECS = len(_VEC_NAMES)


# ---------------------------------------------------------------------------
# In-kernel helpers
# ---------------------------------------------------------------------------
def _ln_cols(x, g, b):
    """LayerNorm over the sublane (feature) axis of a (features, lanes) tile."""
    mu = jnp.mean(x, axis=0, keepdims=True)
    var = jnp.mean(jnp.square(x - mu), axis=0, keepdims=True)
    return (x - mu) * jax.lax.rsqrt(var + EPS) * g + b


# ---------------------------------------------------------------------------
# Pallas kernel: one Att_decoder_f block + one Att_decoder_b block + final
# Linear (attention_n = attention_n1 = 1, the module defaults).
# Tensors inside the kernel are (features, lanes); the two streams are packed
# onto the lane axis as [stream-a trajectories | stream-b trajectories].
# ---------------------------------------------------------------------------
def _decoder_kernel(x_ref, mcol_ref, mrow_ref, wm_ref, l2_ref, vc_ref, o_ref):
    kb = x_ref.shape[-1]          # static: trajectories (lanes) per stream

    def mat(name, rows):
        return wm_ref[pl.ds(MAT_OFF[name], rows), :]

    def vec(name, rows=F):
        return vc_ref[pl.ds(0, rows), pl.ds(VEC_IDX[name], 1)]

    def ln(x, prefix, rows=F):
        return _ln_cols(x, vec(prefix + "_w", rows), vec(prefix + "_b", rows))

    def dot(a, b):
        return jnp.dot(a, b, preferred_element_type=jnp.float32, precision=PREC)

    def swap(t):
        # Pair every trajectory with the other stream's copy of itself: swap
        # the two kb-wide lane halves (kb is a multiple of 128 -> aligned).
        # pltpu.roll(t, shift=kb, axis=1) is the XLU-offloaded equivalent.
        return jnp.concatenate([t[:, kb:], t[:, :kb]], axis=-1)

    def self_att(x, prefix):
        # fused QKV projection: one (3*FP, F) @ (F, 2*kb) matmul
        qkv = dot(mat(prefix + "_self_in", 3 * FP), x)
        q = qkv[0:F] + vec(prefix + "_self_bq")
        # NOTE: the key-projection bias shifts every score of a softmax row by
        # the same constant, so dropping it leaves the attention weights
        # mathematically unchanged (exact).
        k = qkv[FP:FP + F]
        v = qkv[2 * FP:2 * FP + F] + vec(prefix + "_self_bv")
        k_sw = swap(k)
        v_sw = swap(v)
        # 2x2 scores: elementwise mul + sublane reduce (VPU/XLU, no MXU pass)
        s_self = jnp.sum(q * k, axis=0, keepdims=True) * INV_SQRT_F
        s_cross = jnp.sum(q * k_sw, axis=0, keepdims=True) * INV_SQRT_F
        # softmax over 2 keys == sigmoid of the score difference (exact)
        p_self = 1.0 / (1.0 + jnp.exp(s_cross - s_self))
        ctx = p_self * v + (1.0 - p_self) * v_sw
        return dot(mat(prefix + "_self_out", F), ctx) + vec(prefix + "_self_bo")

    def cross_att(x, kp_rows, vpt):
        q = dot(mat("f_cross_q", F), x) + vec("f_cross_bq")
        s = dot(kp_rows, q) * INV_SQRT_F                 # (mf, 2*kb)
        s = s - jnp.max(s, axis=0, keepdims=True)
        e = jnp.exp(s)
        p = e / jnp.sum(e, axis=0, keepdims=True)        # exact divide
        ctx = dot(vpt, p)                                # (F, 2*kb)
        return dot(mat("f_cross_out", F), ctx) + vec("f_cross_bo")

    def feed_f(x):   # Linear -> LayerNorm -> ReLU -> (Dropout p=0) -> Linear
        h = dot(mat("f_feed_w1", H), x) + vec("f_feed_b1", H)
        h = _ln_cols(h, vec("f_feed_g", H), vec("f_feed_beta", H))
        h = jnp.maximum(h, 0.0)
        return dot(l2_ref[0], h) + vec("f_feed_b2")

    def feed_b(x):   # Linear -> ReLU -> LayerNorm -> (Dropout p=0) -> Linear -> ReLU
        h = dot(mat("b_feed_w1", H), x) + vec("b_feed_b1", H)
        h = jnp.maximum(h, 0.0)
        h = _ln_cols(h, vec("b_feed_g", H), vec("b_feed_beta", H))
        h = dot(l2_ref[1], h) + vec("b_feed_b2")
        return jnp.maximum(h, 0.0)

    # load the two streams, fold in the positional encoding, pack on lanes
    xa = x_ref[0, 0] + vec("pe_a")        # (F, kb): stream 0
    xb = x_ref[0, 1] + vec("pe_b")        # (F, kb): stream 1
    x = jnp.concatenate([xa, xb], axis=-1)            # (F, 2*kb)

    # ------------------------------ Att_decoder_f ---------------------------
    x = ln(x, "f_ln1")
    x = x + self_att(x, "f")
    x = ln(x, "f_ln2")
    # cross-attention K/V projections of the per-batch memory, shared by all lanes
    kp_rows = dot(mrow_ref[0], mat("f_cross_kT", F))                   # (mf, F)
    vpt = dot(mat("f_cross_v", F), mcol_ref[0]) + vec("f_cross_bv")    # (F, mf)
    x = x + cross_att(x, kp_rows, vpt)
    x = ln(x, "f_ln3")
    x = x + feed_f(x)

    # ------------------------------ Att_decoder_b ---------------------------
    x = ln(x, "b_ln1")
    x = x + self_att(x, "b")
    x = ln(x, "b_ln2")
    x = x + feed_b(x)

    # ------- final nn.Linear(OUTPUT_SIZE*OUTPUT_LEN -> OUTPUT_SIZE) ----------
    y = (dot(mat("wl_a", O), x[:, :kb])
         + dot(mat("wl_b", O), x[:, kb:])
         + vec("bl", O))
    o_ref[0] = y                  # (O, kb): lane-dense store


# ---------------------------------------------------------------------------
# pallas_call wrapper
# ---------------------------------------------------------------------------
def _decoder_pallas(x_l, m_col, m_row, wmat, wlin2, vecs, kb):
    b = x_l.shape[0]
    k_pad = x_l.shape[-1]
    mf = m_col.shape[-1]
    grid = (b, k_pad // kb)
    return pl.pallas_call(
        _decoder_kernel,
        out_shape=jax.ShapeDtypeStruct((b, O, k_pad), jnp.float32),
        grid_spec=pltpu.PrefetchScalarGridSpec(
            num_scalar_prefetch=0,
            grid=grid,
            in_specs=[
                pl.BlockSpec((1, S, F, kb), lambda i, j: (i, 0, 0, j)),
                pl.BlockSpec((1, F, mf), lambda i, j: (i, 0, 0)),
                pl.BlockSpec((1, mf, F), lambda i, j: (i, 0, 0)),
                # packed weights: constant block index -> DMA'd once, kept resident
                pl.BlockSpec((MAT_ROWS, F), lambda i, j: (0, 0)),
                pl.BlockSpec((2, F, H), lambda i, j: (0, 0, 0)),
                pl.BlockSpec((F, NUM_VECS), lambda i, j: (0, 0)),
            ],
            out_specs=pl.BlockSpec((1, O, kb), lambda i, j: (i, 0, j)),
        ),
        compiler_params=pltpu.CompilerParams(
            dimension_semantics=("parallel", "parallel")),
    )(x_l, m_col, m_row, wmat, wlin2, vecs)


def _choose_kb(k, b):
    """Pick the per-step lane block (per stream) and the padded k extent."""
    # Always pad the trajectory axis to a multiple of 128 (lane-dense blocks,
    # unmasked stores).  Cap kb so the packed working width 2*kb stays in the
    # 256-512 lane sweet spot, and keep the grid at >= 2 steps when possible
    # so both v7x TensorCores get work (no effect on single-TC v5e/v6e).
    k128 = max(128, ((k + 127) // 128) * 128)
    kb = min(KB_MAX, k128)
    if b * ((k128 + kb - 1) // kb) < 2 and kb % 256 == 0:
        kb //= 2
    k_pad = ((k128 + kb - 1) // kb) * kb
    return kb, k_pad


@jax.jit
def attention_decoder_forward(packed, x, m):
    """x: (b, k, OUTPUT_LEN, OUTPUT_SIZE), m: (b, OUTPUT_LEN, mf)."""
    wmat, wlin2, vecs = packed
    b, k, s, f = x.shape
    assert s == OUTPUT_LEN and f == OUTPUT_SIZE
    kb, k_pad = _choose_kb(k, b)

    # TODO(synk): `e` is an arbitrary encoder module passed to forward() at call
    # time in the PyTorch code; it is treated as the identity mapping here.
    # PositionalEncoding is folded into the kernel (pe_a/pe_b Vec columns).
    # kernel layout: (b, k, s=20, f=2) -> (b, S=2 streams, F=20 features, k on lanes)
    x_l = jnp.transpose(x, (0, 3, 2, 1))
    if k_pad != k:
        x_l = jnp.pad(x_l, ((0, 0), (0, 0), (0, 0), (0, k_pad - k)))

    # memory passed per-batch in both orientations (no k-fold replication in HBM)
    m_col = m                                            # (b, F, mf)
    m_row = jnp.swapaxes(m, -1, -2)                      # (b, mf, F)

    out = _decoder_pallas(x_l, m_col, m_row, wmat, wlin2, vecs, kb)   # (b, O, k_pad)
    return jnp.transpose(out[:, :, :k], (0, 2, 1))       # (b, k, O)


# ---------------------------------------------------------------------------
# Parameter construction (deterministic, synthetic) and one-time packing
# ---------------------------------------------------------------------------
def init_params(key):
    keys = iter(jax.random.split(key, 64))

    def rnd(shape, scale):
        return (scale * jax.random.normal(next(keys), shape)).astype(jnp.float32)

    def mha_p():
        return dict(wq=rnd((F, F), 0.25), wk=rnd((F, F), 0.25), wv=rnd((F, F), 0.25),
                    bq=rnd((F,), 0.1), bk=rnd((F,), 0.1), bv=rnd((F,), 0.1),
                    wo=rnd((F, F), 0.25), bo=rnd((F,), 0.1))

    def ln_p(d):
        return dict(w=1.0 + rnd((d,), 0.1), b=rnd((d,), 0.1))

    def feed_p():
        return dict(lin1_w=rnd((H, F), 0.25), lin1_b=rnd((H,), 0.1),
                    fln_w=1.0 + rnd((H,), 0.1), fln_b=rnd((H,), 0.1),
                    lin2_w=rnd((F, H), 0.5), lin2_b=rnd((F,), 0.1))

    return dict(
        f=dict(ln1=ln_p(F), self_att=mha_p(), ln2=ln_p(F), cross_att=mha_p(),
               ln3=ln_p(F), feed=feed_p()),
        b=dict(ln1=ln_p(F), self_att=mha_p(), ln2=ln_p(F), feed=feed_p()),
        wl=rnd((O, O * F), 0.2), bl=rnd((O,), 0.1),
    )


def positional_encoding(seq_len, d_model):
    position = jnp.arange(seq_len, dtype=jnp.float32)[:, None]
    div_term = jnp.exp(jnp.arange(0, d_model, 2, dtype=jnp.float32)
                       * (-math.log(10000.0) / d_model))
    pe = jnp.zeros((seq_len, d_model), jnp.float32)
    pe = pe.at[:, 0::2].set(jnp.sin(position * div_term))
    pe = pe.at[:, 1::2].set(jnp.cos(position * div_term))
    return pe


def pack_params(p):
    """Pack all weights (and the PE columns) into (Wmat, Wlin2, Vecs). Call once."""
    wmat = jnp.zeros((MAT_ROWS, F), jnp.float32)

    def put(w, name, a):
        off = MAT_OFF[name]
        return w.at[off:off + a.shape[0], :].set(a.astype(jnp.float32))

    fpar, bpar = p['f'], p['b']
    for prefix, att in (("f", fpar['self_att']), ("b", bpar['self_att'])):
        base = MAT_OFF[prefix + "_self_in"]
        wmat = wmat.at[base:base + F, :].set(att['wq'])
        wmat = wmat.at[base + FP:base + FP + F, :].set(att['wk'])
        wmat = wmat.at[base + 2 * FP:base + 2 * FP + F, :].set(att['wv'])
        wmat = put(wmat, prefix + "_self_out", att['wo'])
    ca = fpar['cross_att']
    wmat = put(wmat, "f_cross_q", ca['wq'])
    wmat = put(wmat, "f_cross_kT", ca['wk'].T)
    wmat = put(wmat, "f_cross_v", ca['wv'])
    wmat = put(wmat, "f_cross_out", ca['wo'])
    wmat = put(wmat, "f_feed_w1", fpar['feed']['lin1_w'])
    wmat = put(wmat, "b_feed_w1", bpar['feed']['lin1_w'])
    wl_r = p['wl'].reshape(O, F, O)          # (O, embed j, stream i)
    wmat = put(wmat, "wl_a", wl_r[:, :, 0])
    wmat = put(wmat, "wl_b", wl_r[:, :, 1])

    wlin2 = jnp.stack([fpar['feed']['lin2_w'],
                       bpar['feed']['lin2_w']]).astype(jnp.float32)   # (2, F, H)

    vecs = jnp.zeros((F, NUM_VECS), jnp.float32)

    def putv(v_arr, name, v):
        return v_arr.at[:v.shape[0], VEC_IDX[name]].set(v.astype(jnp.float32))

    vecs = putv(vecs, "f_ln1_w", fpar['ln1']['w'])
    vecs = putv(vecs, "f_ln1_b", fpar['ln1']['b'])
    sa = fpar['self_att']
    vecs = putv(vecs, "f_self_bq", sa['bq'])
    vecs = putv(vecs, "f_self_bv", sa['bv'])
    vecs = putv(vecs, "f_self_bo", sa['bo'])
    vecs = putv(vecs, "f_ln2_w", fpar['ln2']['w'])
    vecs = putv(vecs, "f_ln2_b", fpar['ln2']['b'])
    vecs = putv(vecs, "f_cross_bq", ca['bq'])
    vecs = putv(vecs, "f_cross_bv", ca['bv'])
    vecs = putv(vecs, "f_cross_bo", ca['bo'])
    vecs = putv(vecs, "f_ln3_w", fpar['ln3']['w'])
    vecs = putv(vecs, "f_ln3_b", fpar['ln3']['b'])
    fd = fpar['feed']
    vecs = putv(vecs, "f_feed_b1", fd['lin1_b'])
    vecs = putv(vecs, "f_feed_g", fd['fln_w'])
    vecs = putv(vecs, "f_feed_beta", fd['fln_b'])
    vecs = putv(vecs, "f_feed_b2", fd['lin2_b'])
    vecs = putv(vecs, "b_ln1_w", bpar['ln1']['w'])
    vecs = putv(vecs, "b_ln1_b", bpar['ln1']['b'])
    sb = bpar['self_att']
    vecs = putv(vecs, "b_self_bq", sb['bq'])
    vecs = putv(vecs, "b_self_bv", sb['bv'])
    vecs = putv(vecs, "b_self_bo", sb['bo'])
    vecs = putv(vecs, "b_ln2_w", bpar['ln2']['w'])
    vecs = putv(vecs, "b_ln2_b", bpar['ln2']['b'])
    fdb = bpar['feed']
    vecs = putv(vecs, "b_feed_b1", fdb['lin1_b'])
    vecs = putv(vecs, "b_feed_g", fdb['fln_w'])
    vecs = putv(vecs, "b_feed_beta", fdb['fln_b'])
    vecs = putv(vecs, "b_feed_b2", fdb['lin2_b'])
    vecs = putv(vecs, "bl", p['bl'])
    # positional encoding folded into the kernel: one column per stream
    pe = positional_encoding(OUTPUT_LEN, OUTPUT_SIZE)    # (F, 2) indexed [pos, stream]
    vecs = putv(vecs, "pe_a", pe[:, 0])
    vecs = putv(vecs, "pe_b", pe[:, 1])
    return wmat, wlin2, vecs


# ---------------------------------------------------------------------------
# Pure-JAX reference (mirrors the torch forward) for a sanity check
# ---------------------------------------------------------------------------
def reference_forward(p, x, m):
    def ln(v, w, b):
        mu = v.mean(-1, keepdims=True)
        var = ((v - mu) ** 2).mean(-1, keepdims=True)
        return (v - mu) / jnp.sqrt(var + EPS) * w + b

    def softmax(s):
        s = s - s.max(-1, keepdims=True)
        e = jnp.exp(s)
        return e / e.sum(-1, keepdims=True)

    def mha(q, k, v, a):
        qp = jnp.einsum('nld,ed->nle', q, a['wq']) + a['bq']
        kp = jnp.einsum('nld,ed->nle', k, a['wk']) + a['bk']
        vp = jnp.einsum('nld,ed->nle', v, a['wv']) + a['bv']
        at = softmax(jnp.einsum('nle,nse->nls', qp, kp) / math.sqrt(F // HEADS))
        ctx = jnp.einsum('nls,nse->nle', at, vp)
        return jnp.einsum('nle,fe->nlf', ctx, a['wo']) + a['bo']

    fp, bp = p['f'], p['b']
    x = ln(x, fp['ln1']['w'], fp['ln1']['b'])
    x = x + mha(x, x, x, fp['self_att'])
    x = ln(x, fp['ln2']['w'], fp['ln2']['b'])
    x = x + mha(x, m, m, fp['cross_att'])
    x = ln(x, fp['ln3']['w'], fp['ln3']['b'])
    fd = fp['feed']
    h = jnp.einsum('nsf,hf->nsh', x, fd['lin1_w']) + fd['lin1_b']
    h = ln(h, fd['fln_w'], fd['fln_b'])
    h = jnp.maximum(h, 0.0)
    h = jnp.einsum('nsh,fh->nsf', h, fd['lin2_w']) + fd['lin2_b']
    x = x + h
    x = ln(x, bp['ln1']['w'], bp['ln1']['b'])
    x = x + mha(x, x, x, bp['self_att'])
    x = ln(x, bp['ln2']['w'], bp['ln2']['b'])
    fd = bp['feed']
    h = jnp.einsum('nsf,hf->nsh', x, fd['lin1_w']) + fd['lin1_b']
    h = jnp.maximum(h, 0.0)
    h = ln(h, fd['fln_w'], fd['fln_b'])
    h = jnp.einsum('nsh,fh->nsf', h, fd['lin2_w']) + fd['lin2_b']
    h = jnp.maximum(h, 0.0)
    x = x + h
    flat = jnp.swapaxes(x, -1, -2).reshape(x.shape[0], -1)
    return flat @ p['wl'].T + p['bl']


if __name__ == "__main__":
    key = jax.random.PRNGKey(0)
    kp, kx, km = jax.random.split(key, 3)
    params = init_params(kp)
    packed = pack_params(params)          # hoisted out of the per-call path

    b, k = 2, 300        # k=300 exercises the pad-to-128-multiple path and a 2x2 grid
    mf = 4               # memory sequence length (after the (-1,-2) transpose)
    x = jax.random.normal(kx, (b, k, OUTPUT_LEN, OUTPUT_SIZE), jnp.float32)
    m = jax.random.normal(km, (b, OUTPUT_LEN, mf), jnp.float32)

    out = attention_decoder_forward(packed, x, m)
    out = jax.block_until_ready(out)
    assert out.shape == (b, k, OUTPUT_SIZE)

    # sanity check against the pure-JAX reference of the torch forward
    x_pe = x + positional_encoding(OUTPUT_LEN, OUTPUT_SIZE)[None, None]
    x_t = jnp.swapaxes(x_pe, -1, -2).reshape(b * k, OUTPUT_SIZE, OUTPUT_LEN)
    m_r = jnp.broadcast_to(m[:, None], (b, k, OUTPUT_LEN, mf)).reshape(b * k, OUTPUT_LEN, mf)
    m_t = jnp.swapaxes(m_r, -1, -2)
    with jax.default_matmul_precision("highest"):
        ref = reference_forward(params, x_t, m_t).reshape(b, k, OUTPUT_SIZE)
    # tolerance sized for residual TPU f32 MXU pass-decomposition differences vs
    # the XLA "highest" reference; measured mismatch is typically far smaller.
    if not jnp.allclose(out, ref, atol=3e-2, rtol=3e-2):
        raise AssertionError(
            f"kernel/reference mismatch, max abs diff = {jnp.max(jnp.abs(out - ref))}")
    print("KERNEL_OK")
</pallas_src>

<mosaic_0001>
module attributes {stable_mosaic.version = 11 : i64} {
  func.func @_decoder_kernel(%arg0: i32, %arg1: i32, %arg2: memref<1x2x20x256xf32, #tpu.memory_space<vmem>>, %arg3: memref<1x20x4xf32, #tpu.memory_space<vmem>>, %arg4: memref<1x4x20xf32, #tpu.memory_space<vmem>>, %arg5: memref<320x20xf32, #tpu.memory_space<vmem>>, %arg6: memref<2x20x2xf32, #tpu.memory_space<vmem>>, %arg7: memref<20x30xf32, #tpu.memory_space<vmem>>, %arg8: memref<1x2x256xf32, #tpu.memory_space<vmem>>) attributes {dimension_semantics = [#tpu.dimension_semantics<parallel>, #tpu.dimension_semantics<parallel>], iteration_bounds = array<i64: 2, 2>, scalar_prefetch = 0 : i64, scratch_operands = 0 : i64, tpu.core_type = #tpu.core_type<tc>, window_params = [{transform_indices = @transform_0, window_bounds = array<i64: 1, 2, 20, 256>}, {transform_indices = @transform_1, window_bounds = array<i64: 1, 20, 4>}, {transform_indices = @transform_2, window_bounds = array<i64: 1, 4, 20>}, {pipeline_mode = #tpu.pipeline_mode<synchronous>, transform_indices = @transform_3, window_bounds = array<i64: 320, 20>}, {pipeline_mode = #tpu.pipeline_mode<synchronous>, transform_indices = @transform_4, window_bounds = array<i64: 2, 20, 2>}, {pipeline_mode = #tpu.pipeline_mode<synchronous>, transform_indices = @transform_5, window_bounds = array<i64: 20, 30>}, {transform_indices = @transform_6, window_bounds = array<i64: 1, 2, 256>}]} {
    %c0 = arith.constant 0 : index
    %c0_0 = arith.constant 0 : index
    %c0_1 = arith.constant 0 : index
    %c0_2 = arith.constant 0 : index
    %0 = vector.load %arg2[%c0, %c0_0, %c0_1, %c0_2] : memref<1x2x20x256xf32, #tpu.memory_space<vmem>>, vector<1x1x20x256xf32>
    %1 = vector.shape_cast %0 : vector<1x1x20x256xf32> to vector<20x256xf32>
    %c0_3 = arith.constant 0 : index
    %c28 = arith.constant 28 : index
    %2 = vector.load %arg7[%c0_3, %c28] : memref<20x30xf32, #tpu.memory_space<vmem>>, vector<20x1xf32>
    %3 = vector.broadcast %2 : vector<20x1xf32> to vector<20x256xf32>
    %4 = arith.addf %1, %3 : vector<20x256xf32>
    %c0_4 = arith.constant 0 : index
    %c1 = arith.constant 1 : index
    %c0_5 = arith.constant 0 : index
    %c0_6 = arith.constant 0 : index
    %5 = vector.load %arg2[%c0_4, %c1, %c0_5, %c0_6] : memref<1x2x20x256xf32, #tpu.memory_space<vmem>>, vector<1x1x20x256xf32>
    %6 = vector.shape_cast %5 : vector<1x1x20x256xf32> to vector<20x256xf32>
    %c0_7 = arith.constant 0 : index
    %c29 = arith.constant 29 : index
    %7 = vector.load %arg7[%c0_7, %c29] : memref<20x30xf32, #tpu.memory_space<vmem>>, vector<20x1xf32>
    %8 = vector.broadcast %7 : vector<20x1xf32> to vector<20x256xf32>
    %9 = arith.addf %6, %8 : vector<20x256xf32>
    %10 = tpu.concatenate %4, %9 in 1 : vector<20x256xf32>, vector<20x256xf32> -> vector<20x512xf32>
    %c0_8 = arith.constant 0 : index
    %c0_9 = arith.constant 0 : index
    %11 = vector.load %arg7[%c0_8, %c0_9] : memref<20x30xf32, #tpu.memory_space<vmem>>, vector<20x1xf32>
    %c0_10 = arith.constant 0 : index
    %c1_11 = arith.constant 1 : index
    %12 = vector.load %arg7[%c0_10, %c1_11] : memref<20x30xf32, #tpu.memory_space<vmem>>, vector<20x1xf32>
    %cst = arith.constant dense<0.000000e+00> : vector<512xf32>
    %13 = vector.multi_reduction <add>, %10, %cst [0] : vector<20x512xf32> to vector<512xf32>
    %14 = vector.shape_cast %13 : vector<512xf32> to vector<1x512xf32>
    %cst_12 = arith.constant 2.000000e+01 : f32
    %15 = vector.broadcast %cst_12 : f32 to vector<1x512xf32>
    %16 = arith.divf %14, %15 : vector<1x512xf32>
    %17 = vector.broadcast %16 : vector<1x512xf32> to vector<20x512xf32>
    %18 = arith.subf %10, %17 : vector<20x512xf32>
    %19 = arith.mulf %18, %18 : vector<20x512xf32>
    %cst_13 = arith.constant dense<0.000000e+00> : vector<512xf32>
    %20 = vector.multi_reduction <add>, %19, %cst_13 [0] : vector<20x512xf32> to vector<512xf32>
    %21 = vector.shape_cast %20 : vector<512xf32> to vector<1x512xf32>
    %cst_14 = arith.constant 2.000000e+01 : f32
    %22 = vector.broadcast %cst_14 : f32 to vector<1x512xf32>
    %23 = arith.divf %21, %22 : vector<1x512xf32>
    %24 = vector.broadcast %16 : vector<1x512xf32> to vector<20x512xf32>
    %25 = arith.subf %10, %24 : vector<20x512xf32>
    %cst_15 = arith.constant 9.99999974E-6 : f32
    %26 = vector.broadcast %cst_15 : f32 to vector<1x512xf32>
    %27 = arith.addf %23, %26 : vector<1x512xf32>
    %28 = math.rsqrt %27 : vector<1x512xf32>
    %29 = vector.broadcast %28 : vector<1x512xf32> to vector<20x512xf32>
    %30 = arith.mulf %25, %29 : vector<20x512xf32>
    %31 = vector.broadcast %11 : vector<20x1xf32> to vector<20x512xf32>
    %32 = arith.mulf %30, %31 : vector<20x512xf32>
    %33 = vector.broadcast %12 : vector<20x1xf32> to vector<20x512xf32>
    %34 = arith.addf %32, %33 : vector<20x512xf32>
    %c0_16 = arith.constant 0 : index
    %c0_17 = arith.constant 0 : index
    %35 = vector.load %arg5[%c0_16, %c0_17] : memref<320x20xf32, #tpu.memory_space<vmem>>, vector<72x20xf32>
    %cst_18 = arith.constant dense<0.000000e+00> : vector<72x512xf32>
    %36 = tpu.matmul %35, %34, %cst_18 {dimension_numbers = #tpu.dot_dimension_numbers<[1], [0], [0], [1], [0, 0, 1, 1], [], []>, precision = #tpu.contract_precision<fp32>} : vector<72x20xf32>, vector<20x512xf32>, vector<72x512xf32> -> vector<72x512xf32>
    %37 = vector.extract_strided_slice %36 {offsets = [0, 0], sizes = [20, 512], strides = [1, 1]} : vector<72x512xf32> to vector<20x512xf32>
    %c0_19 = arith.constant 0 : index
    %c2 = arith.constant 2 : index
    %38 = vector.load %arg7[%c0_19, %c2] : memref<20x30xf32, #tpu.memory_space<vmem>>, vector<20x1xf32>
    %39 = vector.broadcast %38 : vector<20x1xf32> to vector<20x512xf32>
    %40 = arith.addf %37, %39 : vector<20x512xf32>
    %41 = vector.extract_strided_slice %36 {offsets = [24, 0], sizes = [20, 512], strides = [1, 1]} : vector<72x512xf32> to vector<20x512xf32>
    %42 = vector.extract_strided_slice %36 {offsets = [48, 0], sizes = [20, 512], strides = [1, 1]} : vector<72x512xf32> to vector<20x512xf32>
    %c0_20 = arith.constant 0 : index
    %c3 = arith.constant 3 : index
    %43 = vector.load %arg7[%c0_20, %c3] : memref<20x30xf32, #tpu.memory_space<vmem>>, vector<20x1xf32>
    %44 = vector.broadcast %43 : vector<20x1xf32> to vector<20x512xf32>
    %45 = arith.addf %42, %44 : vector<20x512xf32>
    %46 = vector.extract_strided_slice %41 {offsets = [0, 256], sizes = [20, 256], strides = [1, 1]} : vector<20x512xf32> to vector<20x256xf32>
    %47 = vector.extract_strided_slice %41 {offsets = [0, 0], sizes = [20, 256], strides = [1, 1]} : vector<20x512xf32> to vector<20x256xf32>
    %48 = tpu.concatenate %46, %47 in 1 : vector<20x256xf32>, vector<20x256xf32> -> vector<20x512xf32>
    %49 = vector.extract_strided_slice %45 {offsets = [0, 256], sizes = [20, 256], strides = [1, 1]} : vector<20x512xf32> to vector<20x256xf32>
    %50 = vector.extract_strided_slice %45 {offsets = [0, 0], sizes = [20, 256], strides = [1, 1]} : vector<20x512xf32> to vector<20x256xf32>
    %51 = tpu.concatenate %49, %50 in 1 : vector<20x256xf32>, vector<20x256xf32> -> vector<20x512xf32>
    %52 = arith.mulf %40, %41 : vector<20x512xf32>
    %cst_21 = arith.constant dense<0.000000e+00> : vector<512xf32>
    %53 = vector.multi_reduction <add>, %52, %cst_21 [0] : vector<20x512xf32> to vector<512xf32>
    %54 = vector.shape_cast %53 : vector<512xf32> to vector<1x512xf32>
    %cst_22 = arith.constant 0.223606795 : f32
    %55 = vector.broadcast %cst_22 : f32 to vector<1x512xf32>
    %56 = arith.mulf %54, %55 : vector<1x512xf32>
    %57 = arith.mulf %40, %48 : vector<20x512xf32>
    %cst_23 = arith.constant dense<0.000000e+00> : vector<512xf32>
    %58 = vector.multi_reduction <add>, %57, %cst_23 [0] : vector<20x512xf32> to vector<512xf32>
    %59 = vector.shape_cast %58 : vector<512xf32> to vector<1x512xf32>
    %cst_24 = arith.constant 0.223606795 : f32
    %60 = vector.broadcast %cst_24 : f32 to vector<1x512xf32>
    %61 = arith.mulf %59, %60 : vector<1x512xf32>
    %62 = arith.subf %61, %56 : vector<1x512xf32>
    %63 = math.exp %62 : vector<1x512xf32>
    %cst_25 = arith.constant 1.000000e+00 : f32
    %64 = vector.broadcast %cst_25 : f32 to vector<1x512xf32>
    %65 = arith.addf %64, %63 : vector<1x512xf32>
    %cst_26 = arith.constant 1.000000e+00 : f32
    %66 = vector.broadcast %cst_26 : f32 to vector<1x512xf32>
    %67 = arith.divf %66, %65 : vector<1x512xf32>
    %68 = vector.broadcast %67 : vector<1x512xf32> to vector<20x512xf32>
    %69 = arith.mulf %68, %45 : vector<20x512xf32>
    %cst_27 = arith.constant 1.000000e+00 : f32
    %70 = vector.broadcast %cst_27 : f32 to vector<1x512xf32>
    %71 = arith.subf %70, %67 : vector<1x512xf32>
    %72 = vector.broadcast %71 : vector<1x512xf32> to vector<20x512xf32>
    %73 = arith.mulf %72, %51 : vector<20x512xf32>
    %74 = arith.addf %69, %73 : vector<20x512xf32>
    %c72 = arith.constant 72 : index
    %c0_28 = arith.constant 0 : index
    %75 = vector.load %arg5[%c72, %c0_28] : memref<320x20xf32, #tpu.memory_space<vmem>>, vector<20x20xf32>
    %cst_29 = arith.constant dense<0.000000e+00> : vector<20x512xf32>
    %76 = tpu.matmul %75, %74, %cst_29 {dimension_numbers = #tpu.dot_dimension_numbers<[1], [0], [0], [1], [0, 0, 1, 1], [], []>, precision = #tpu.contract_precision<fp32>} : vector<20x20xf32>, vector<20x512xf32>, vector<20x512xf32> -> vector<20x512xf32>
    %c0_30 = arith.constant 0 : index
    %c4 = arith.constant 4 : index
    %77 = vector.load %arg7[%c0_30, %c4] : memref<20x30xf32, #tpu.memory_space<vmem>>, vector<20x1xf32>
    %78 = vector.broadcast %77 : vector<20x1xf32> to vector<20x512xf32>
    %79 = arith.addf %76, %78 : vector<20x512xf32>
    %80 = arith.addf %34, %79 : vector<20x512xf32>
    %c0_31 = arith.constant 0 : index
    %c5 = arith.constant 5 : index
    %81 = vector.load %arg7[%c0_31, %c5] : memref<20x30xf32, #tpu.memory_space<vmem>>, vector<20x1xf32>
    %c0_32 = arith.constant 0 : index
    %c6 = arith.constant 6 : index
    %82 = vector.load %arg7[%c0_32, %c6] : memref<20x30xf32, #tpu.memory_space<vmem>>, vector<20x1xf32>
    %cst_33 = arith.constant dense<0.000000e+00> : vector<512xf32>
    %83 = vector.multi_reduction <add>, %80, %cst_33 [0] : vector<20x512xf32> to vector<512xf32>
    %84 = vector.shape_cast %83 : vector<512xf32> to vector<1x512xf32>
    %cst_34 = arith.constant 2.000000e+01 : f32
    %85 = vector.broadcast %cst_34 : f32 to vector<1x512xf32>
    %86 = arith.divf %84, %85 : vector<1x512xf32>
    %87 = vector.broadcast %86 : vector<1x512xf32> to vector<20x512xf32>
    %88 = arith.subf %80, %87 : vector<20x512xf32>
    %89 = arith.mulf %88, %88 : vector<20x512xf32>
    %cst_35 = arith.constant dense<0.000000e+00> : vector<512xf32>
    %90 = vector.multi_reduction <add>, %89, %cst_35 [0] : vector<20x512xf32> to vector<512xf32>
    %91 = vector.shape_cast %90 : vector<512xf32> to vector<1x512xf32>
    %cst_36 = arith.constant 2.000000e+01 : f32
    %92 = vector.broadcast %cst_36 : f32 to vector<1x512xf32>
    %93 = arith.divf %91, %92 : vector<1x512xf32>
    %94 = vector.broadcast %86 : vector<1x512xf32> to vector<20x512xf32>
    %95 = arith.subf %80, %94 : vector<20x512xf32>
    %cst_37 = arith.constant 9.99999974E-6 : f32
    %96 = vector.broadcast %cst_37 : f32 to vector<1x512xf32>
    %97 = arith.addf %93, %96 : vector<1x512xf32>
    %98 = math.rsqrt %97 : vector<1x512xf32>
    %99 = vector.broadcast %98 : vector<1x512xf32> to vector<20x512xf32>
    %100 = arith.mulf %95, %99 : vector<20x512xf32>
    %101 = vector.broadcast %81 : vector<20x1xf32> to vector<20x512xf32>
    %102 = arith.mulf %100, %101 : vector<20x512xf32>
    %103 = vector.broadcast %82 : vector<20x1xf32> to vector<20x512xf32>
    %104 = arith.addf %102, %103 : vector<20x512xf32>
    %c0_38 = arith.constant 0 : index
    %c0_39 = arith.constant 0 : index
    %c0_40 = arith.constant 0 : index
    %105 = vector.load %arg4[%c0_38, %c0_39, %c0_40] : memref<1x4x20xf32, #tpu.memory_space<vmem>>, vector<1x4x20xf32>
    %106 = vector.shape_cast %105 : vector<1x4x20xf32> to vector<4x20xf32>
    %c120 = arith.constant 120 : index
    %c0_41 = arith.constant 0 : index
    %107 = vector.load %arg5[%c120, %c0_41] : memref<320x20xf32, #tpu.memory_space<vmem>>, vector<20x20xf32>
    %cst_42 = arith.constant dense<0.000000e+00> : vector<4x20xf32>
    %108 = tpu.matmul %106, %107, %cst_42 {dimension_numbers = #tpu.dot_dimension_numbers<[1], [0], [0], [1], [0, 0, 1, 1], [], []>, precision = #tpu.contract_precision<fp32>} : vector<4x20xf32>, vector<20x20xf32>, vector<4x20xf32> -> vector<4x20xf32>
    %c144 = arith.constant 144 : index
    %c0_43 = arith.constant 0 : index
    %109 = vector.load %arg5[%c144, %c0_43] : memref<320x20xf32, #tpu.memory_space<vmem>>, vector<20x20xf32>
    %c0_44 = arith.constant 0 : index
    %c0_45 = arith.constant 0 : index
    %c0_46 = arith.constant 0 : index
    %110 = vector.load %arg3[%c0_44, %c0_45, %c0_46] : memref<1x20x4xf32, #tpu.memory_space<vmem>>, vector<1x20x4xf32>
    %111 = vector.shape_cast %110 : vector<1x20x4xf32> to vector<20x4xf32>
    %cst_47 = arith.constant dense<0.000000e+00> : vector<20x4xf32>
    %112 = tpu.matmul %109, %111, %cst_47 {dimension_numbers = #tpu.dot_dimension_numbers<[1], [0], [0], [1], [0, 0, 1, 1], [], []>, precision = #tpu.contract_precision<fp32>} : vector<20x20xf32>, vector<20x4xf32>, vector<20x4xf32> -> vector<20x4xf32>
    %c0_48 = arith.constant 0 : index
    %c8 = arith.constant 8 : index
    %113 = vector.load %arg7[%c0_48, %c8] : memref<20x30xf32, #tpu.memory_space<vmem>>, vector<20x1xf32>
    %114 = vector.broadcast %113 : vector<20x1xf32> to vector<20x4xf32>
    %115 = arith.addf %112, %114 : vector<20x4xf32>
    %c96 = arith.constant 96 : index
    %c0_49 = arith.constant 0 : index
    %116 = vector.load %arg5[%c96, %c0_49] : memref<320x20xf32, #tpu.memory_space<vmem>>, vector<20x20xf32>
    %cst_50 = arith.constant dense<0.000000e+00> : vector<20x512xf32>
    %117 = tpu.matmul %116, %104, %cst_50 {dimension_numbers = #tpu.dot_dimension_numbers<[1], [0], [0], [1], [0, 0, 1, 1], [], []>, precision = #tpu.contract_precision<fp32>} : vector<20x20xf32>, vector<20x512xf32>, vector<20x512xf32> -> vector<20x512xf32>
    %c0_51 = arith.constant 0 : index
    %c7 = arith.constant 7 : index
    %118 = vector.load %arg7[%c0_51, %c7] : memref<20x30xf32, #tpu.memory_space<vmem>>, vector<20x1xf32>
    %119 = vector.broadcast %118 : vector<20x1xf32> to vector<20x512xf32>
    %120 = arith.addf %117, %119 : vector<20x512xf32>
    %cst_52 = arith.constant dense<0.000000e+00> : vector<4x512xf32>
    %121 = tpu.matmul %108, %120, %cst_52 {dimension_numbers = #tpu.dot_dimension_numbers<[1], [0], [0], [1], [0, 0, 1, 1], [], []>, precision = #tpu.contract_precision<fp32>} : vector<4x20xf32>, vector<20x512xf32>, vector<4x512xf32> -> vector<4x512xf32>
    %cst_53 = arith.constant 0.223606795 : f32
    %122 = vector.broadcast %cst_53 : f32 to vector<4x512xf32>
    %123 = arith.mulf %121, %122 : vector<4x512xf32>
    %cst_54 = arith.constant dense<0xFF800000> : vector<512xf32>
    %124 = vector.multi_reduction <maximumf>, %123, %cst_54 [0] : vector<4x512xf32> to vector<512xf32>
    %125 = vector.shape_cast %124 : vector<512xf32> to vector<1x512xf32>
    %126 = vector.broadcast %125 : vector<1x512xf32> to vector<4x512xf32>
    %127 = arith.subf %123, %126 : vector<4x512xf32>
    %128 = math.exp %127 : vector<4x512xf32>
    %cst_55 = arith.constant dense<0.000000e+00> : vector<512xf32>
    %129 = vector.multi_reduction <add>, %128, %cst_55 [0] : vector<4x512xf32> to vector<512xf32>
    %130 = vector.shape_cast %129 : vector<512xf32> to vector<1x512xf32>
    %131 = vector.broadcast %130 : vector<1x512xf32> to vector<4x512xf32>
    %132 = arith.divf %128, %131 : vector<4x512xf32>
    %cst_56 = arith.constant dense<0.000000e+00> : vector<20x512xf32>
    %133 = tpu.matmul %115, %132, %cst_56 {dimension_numbers = #tpu.dot_dimension_numbers<[1], [0], [0], [1], [0, 0, 1, 1], [], []>, precision = #tpu.contract_precision<fp32>} : vector<20x4xf32>, vector<4x512xf32>, vector<20x512xf32> -> vector<20x512xf32>
    %c168 = arith.constant 168 : index
    %c0_57 = arith.constant 0 : index
    %134 = vector.load %arg5[%c168, %c0_57] : memref<320x20xf32, #tpu.memory_space<vmem>>, vector<20x20xf32>
    %cst_58 = arith.constant dense<0.000000e+00> : vector<20x512xf32>
    %135 = tpu.matmul %134, %133, %cst_58 {dimension_numbers = #tpu.dot_dimension_numbers<[1], [0], [0], [1], [0, 0, 1, 1], [], []>, precision = #tpu.contract_precision<fp32>} : vector<20x20xf32>, vector<20x512xf32>, vector<20x512xf32> -> vector<20x512xf32>
    %c0_59 = arith.constant 0 : index
    %c9 = arith.constant 9 : index
    %136 = vector.load %arg7[%c0_59, %c9] : memref<20x30xf32, #tpu.memory_space<vmem>>, vector<20x1xf32>
    %137 = vector.broadcast %136 : vector<20x1xf32> to vector<20x512xf32>
    %138 = arith.addf %135, %137 : vector<20x512xf32>
    %139 = arith.addf %104, %138 : vector<20x512xf32>
    %c0_60 = arith.constant 0 : index
    %c10 = arith.constant 10 : index
    %140 = vector.load %arg7[%c0_60, %c10] : memref<20x30xf32, #tpu.memory_space<vmem>>, vector<20x1xf32>
    %c0_61 = arith.constant 0 : index
    %c11 = arith.constant 11 : index
    %141 = vector.load %arg7[%c0_61, %c11] : memref<20x30xf32, #tpu.memory_space<vmem>>, vector<20x1xf32>
    %cst_62 = arith.constant dense<0.000000e+00> : vector<512xf32>
    %142 = vector.multi_reduction <add>, %139, %cst_62 [0] : vector<20x512xf32> to vector<512xf32>
    %143 = vector.shape_cast %142 : vector<512xf32> to vector<1x512xf32>
    %cst_63 = arith.constant 2.000000e+01 : f32
    %144 = vector.broadcast %cst_63 : f32 to vector<1x512xf32>
    %145 = arith.divf %143, %144 : vector<1x512xf32>
    %146 = vector.broadcast %145 : vector<1x512xf32> to vector<20x512xf32>
    %147 = arith.subf %139, %146 : vector<20x512xf32>
    %148 = arith.mulf %147, %147 : vector<20x512xf32>
    %cst_64 = arith.constant dense<0.000000e+00> : vector<512xf32>
    %149 = vector.multi_reduction <add>, %148, %cst_64 [0] : vector<20x512xf32> to vector<512xf32>
    %150 = vector.shape_cast %149 : vector<512xf32> to vector<1x512xf32>
    %cst_65 = arith.constant 2.000000e+01 : f32
    %151 = vector.broadcast %cst_65 : f32 to vector<1x512xf32>
    %152 = arith.divf %150, %151 : vector<1x512xf32>
    %153 = vector.broadcast %145 : vector<1x512xf32> to vector<20x512xf32>
    %154 = arith.subf %139, %153 : vector<20x512xf32>
    %cst_66 = arith.constant 9.99999974E-6 : f32
    %155 = vector.broadcast %cst_66 : f32 to vector<1x512xf32>
    %156 = arith.addf %152, %155 : vector<1x512xf32>
    %157 = math.rsqrt %156 : vector<1x512xf32>
    %158 = vector.broadcast %157 : vector<1x512xf32> to vector<20x512xf32>
    %159 = arith.mulf %154, %158 : vector<20x512xf32>
    %160 = vector.broadcast %140 : vector<20x1xf32> to vector<20x512xf32>
    %161 = arith.mulf %159, %160 : vector<20x512xf32>
    %162 = vector.broadcast %141 : vector<20x1xf32> to vector<20x512xf32>
    %163 = arith.addf %161, %162 : vector<20x512xf32>
    %c192 = arith.constant 192 : index
    %c0_67 = arith.constant 0 : index
    %164 = vector.load %arg5[%c192, %c0_67] : memref<320x20xf32, #tpu.memory_space<vmem>>, vector<2x20xf32>
    %cst_68 = arith.constant dense<0.000000e+00> : vector<2x512xf32>
    %165 = tpu.matmul %164, %163, %cst_68 {dimension_numbers = #tpu.dot_dimension_numbers<[1], [0], [0], [1], [0, 0, 1, 1], [], []>, precision = #tpu.contract_precision<fp32>} : vector<2x20xf32>, vector<20x512xf32>, vector<2x512xf32> -> vector<2x512xf32>
    %c0_69 = arith.constant 0 : index
    %c12 = arith.constant 12 : index
    %166 = vector.load %arg7[%c0_69, %c12] : memref<20x30xf32, #tpu.memory_space<vmem>>, vector<2x1xf32>
    %167 = vector.broadcast %166 : vector<2x1xf32> to vector<2x512xf32>
    %168 = arith.addf %165, %167 : vector<2x512xf32>
    %c0_70 = arith.constant 0 : index
    %c13 = arith.constant 13 : index
    %169 = vector.load %arg7[%c0_70, %c13] : memref<20x30xf32, #tpu.memory_space<vmem>>, vector<2x1xf32>
    %c0_71 = arith.constant 0 : index
    %c14 = arith.constant 14 : index
    %170 = vector.load %arg7[%c0_71, %c14] : memref<20x30xf32, #tpu.memory_space<vmem>>, vector<2x1xf32>
    %cst_72 = arith.constant dense<0.000000e+00> : vector<512xf32>
    %171 = vector.multi_reduction <add>, %168, %cst_72 [0] : vector<2x512xf32> to vector<512xf32>
    %172 = vector.shape_cast %171 : vector<512xf32> to vector<1x512xf32>
    %cst_73 = arith.constant 2.000000e+00 : f32
    %173 = vector.broadcast %cst_73 : f32 to vector<1x512xf32>
    %174 = arith.divf %172, %173 : vector<1x512xf32>
    %175 = vector.broadcast %174 : vector<1x512xf32> to vector<2x512xf32>
    %176 = arith.subf %168, %175 : vector<2x512xf32>
    %177 = arith.mulf %176, %176 : vector<2x512xf32>
    %cst_74 = arith.constant dense<0.000000e+00> : vector<512xf32>
    %178 = vector.multi_reduction <add>, %177, %cst_74 [0] : vector<2x512xf32> to vector<512xf32>
    %179 = vector.shape_cast %178 : vector<512xf32> to vector<1x512xf32>
    %cst_75 = arith.constant 2.000000e+00 : f32
    %180 = vector.broadcast %cst_75 : f32 to vector<1x512xf32>
    %181 = arith.divf %179, %180 : vector<1x512xf32>
    %182 = vector.broadcast %174 : vector<1x512xf32> to vector<2x512xf32>
    %183 = arith.subf %168, %182 : vector<2x512xf32>
    %cst_76 = arith.constant 9.99999974E-6 : f32
    %184 = vector.broadcast %cst_76 : f32 to vector<1x512xf32>
    %185 = arith.addf %181, %184 : vector<1x512xf32>
    %186 = math.rsqrt %185 : vector<1x512xf32>
    %187 = vector.broadcast %186 : vector<1x512xf32> to vector<2x512xf32>
    %188 = arith.mulf %183, %187 : vector<2x512xf32>
    %189 = vector.broadcast %169 : vector<2x1xf32> to vector<2x512xf32>
    %190 = arith.mulf %188, %189 : vector<2x512xf32>
    %191 = vector.broadcast %170 : vector<2x1xf32> to vector<2x512xf32>
    %192 = arith.addf %190, %191 : vector<2x512xf32>
    %cst_77 = arith.constant 0.000000e+00 : f32
    %193 = vector.broadcast %cst_77 : f32 to vector<2x512xf32>
    %194 = arith.maximumf %192, %193 : vector<2x512xf32>
    %c0_78 = arith.constant 0 : index
    %c0_79 = arith.constant 0 : index
    %c0_80 = arith.constant 0 : index
    %195 = vector.load %arg6[%c0_78, %c0_79, %c0_80] : memref<2x20x2xf32, #tpu.memory_space<vmem>>, vector<1x20x2xf32>
    %196 = vector.shape_cast %195 : vector<1x20x2xf32> to vector<20x2xf32>
    %cst_81 = arith.constant dense<0.000000e+00> : vector<20x512xf32>
    %197 = tpu.matmul %196, %194, %cst_81 {dimension_numbers = #tpu.dot_dimension_numbers<[1], [0], [0], [1], [0, 0, 1, 1], [], []>, precision = #tpu.contract_precision<fp32>} : vector<20x2xf32>, vector<2x512xf32>, vector<20x512xf32> -> vector<20x512xf32>
    %c0_82 = arith.constant 0 : index
    %c15 = arith.constant 15 : index
    %198 = vector.load %arg7[%c0_82, %c15] : memref<20x30xf32, #tpu.memory_space<vmem>>, vector<20x1xf32>
    %199 = vector.broadcast %198 : vector<20x1xf32> to vector<20x512xf32>
    %200 = arith.addf %197, %199 : vector<20x512xf32>
    %201 = arith.addf %163, %200 : vector<20x512xf32>
    %c0_83 = arith.constant 0 : index
    %c16 = arith.constant 16 : index
    %202 = vector.load %arg7[%c0_83, %c16] : memref<20x30xf32, #tpu.memory_space<vmem>>, vector<20x1xf32>
    %c0_84 = arith.constant 0 : index
    %c17 = arith.constant 17 : index
    %203 = vector.load %arg7[%c0_84, %c17] : memref<20x30xf32, #tpu.memory_space<vmem>>, vector<20x1xf32>
    %cst_85 = arith.constant dense<0.000000e+00> : vector<512xf32>
    %204 = vector.multi_reduction <add>, %201, %cst_85 [0] : vector<20x512xf32> to vector<512xf32>
    %205 = vector.shape_cast %204 : vector<512xf32> to vector<1x512xf32>
    %cst_86 = arith.constant 2.000000e+01 : f32
    %206 = vector.broadcast %cst_86 : f32 to vector<1x512xf32>
    %207 = arith.divf %205, %206 : vector<1x512xf32>
    %208 = vector.broadcast %207 : vector<1x512xf32> to vector<20x512xf32>
    %209 = arith.subf %201, %208 : vector<20x512xf32>
    %210 = arith.mulf %209, %209 : vector<20x512xf32>
    %cst_87 = arith.constant dense<0.000000e+00> : vector<512xf32>
    %211 = vector.multi_reduction <add>, %210, %cst_87 [0] : vector<20x512xf32> to vector<512xf32>
    %212 = vector.shape_cast %211 : vector<512xf32> to vector<1x512xf32>
    %cst_88 = arith.constant 2.000000e+01 : f32
    %213 = vector.broadcast %cst_88 : f32 to vector<1x512xf32>
    %214 = arith.divf %212, %213 : vector<1x512xf32>
    %215 = vector.broadcast %207 : vector<1x512xf32> to vector<20x512xf32>
    %216 = arith.subf %201, %215 : vector<20x512xf32>
    %cst_89 = arith.constant 9.99999974E-6 : f32
    %217 = vector.broadcast %cst_89 : f32 to vector<1x512xf32>
    %218 = arith.addf %214, %217 : vector<1x512xf32>
    %219 = math.rsqrt %218 : vector<1x512xf32>
    %220 = vector.broadcast %219 : vector<1x512xf32> to vector<20x512xf32>
    %221 = arith.mulf %216, %220 : vector<20x512xf32>
    %222 = vector.broadcast %202 : vector<20x1xf32> to vector<20x512xf32>
    %223 = arith.mulf %221, %222 : vector<20x512xf32>
    %224 = vector.broadcast %203 : vector<20x1xf32> to vector<20x512xf32>
    %225 = arith.addf %223, %224 : vector<20x512xf32>
    %c200 = arith.constant 200 : index
    %c0_90 = arith.constant 0 : index
    %226 = vector.load %arg5[%c200, %c0_90] : memref<320x20xf32, #tpu.memory_space<vmem>>, vector<72x20xf32>
    %cst_91 = arith.constant dense<0.000000e+00> : vector<72x512xf32>
    %227 = tpu.matmul %226, %225, %cst_91 {dimension_numbers = #tpu.dot_dimension_numbers<[1], [0], [0], [1], [0, 0, 1, 1], [], []>, precision = #tpu.contract_precision<fp32>} : vector<72x20xf32>, vector<20x512xf32>, vector<72x512xf32> -> vector<72x512xf32>
    %228 = vector.extract_strided_slice %227 {offsets = [0, 0], sizes = [20, 512], strides = [1, 1]} : vector<72x512xf32> to vector<20x512xf32>
    %c0_92 = arith.constant 0 : index
    %c18 = arith.constant 18 : index
    %229 = vector.load %arg7[%c0_92, %c18] : memref<20x30xf32, #tpu.memory_space<vmem>>, vector<20x1xf32>
    %230 = vector.broadcast %229 : vector<20x1xf32> to vector<20x512xf32>
    %231 = arith.addf %228, %230 : vector<20x512xf32>
    %232 = vector.extract_strided_slice %227 {offsets = [24, 0], sizes = [20, 512], strides = [1, 1]} : vector<72x512xf32> to vector<20x512xf32>
    %233 = vector.extract_strided_slice %227 {offsets = [48, 0], sizes = [20, 512], strides = [1, 1]} : vector<72x512xf32> to vector<20x512xf32>
    %c0_93 = arith.constant 0 : index
    %c19 = arith.constant 19 : index
    %234 = vector.load %arg7[%c0_93, %c19] : memref<20x30xf32, #tpu.memory_space<vmem>>, vector<20x1xf32>
    %235 = vector.broadcast %234 : vector<20x1xf32> to vector<20x512xf32>
    %236 = arith.addf %233, %235 : vector<20x512xf32>
    %237 = vector.extract_strided_slice %232 {offsets = [0, 256], sizes = [20, 256], strides = [1, 1]} : vector<20x512xf32> to vector<20x256xf32>
    %238 = vector.extract_strided_slice %232 {offsets = [0, 0], sizes = [20, 256], strides = [1, 1]} : vector<20x512xf32> to vector<20x256xf32>
    %239 = tpu.concatenate %237, %238 in 1 : vector<20x256xf32>, vector<20x256xf32> -> vector<20x512xf32>
    %240 = vector.extract_strided_slice %236 {offsets = [0, 256], sizes = [20, 256], strides = [1, 1]} : vector<20x512xf32> to vector<20x256xf32>
    %241 = vector.extract_strided_slice %236 {offsets = [0, 0], sizes = [20, 256], strides = [1, 1]} : vector<20x512xf32> to vector<20x256xf32>
    %242 = tpu.concatenate %240, %241 in 1 : vector<20x256xf32>, vector<20x256xf32> -> vector<20x512xf32>
    %243 = arith.mulf %231, %232 : vector<20x512xf32>
    %cst_94 = arith.constant dense<0.000000e+00> : vector<512xf32>
    %244 = vector.multi_reduction <add>, %243, %cst_94 [0] : vector<20x512xf32> to vector<512xf32>
    %245 = vector.shape_cast %244 : vector<512xf32> to vector<1x512xf32>
    %cst_95 = arith.constant 0.223606795 : f32
    %246 = vector.broadcast %cst_95 : f32 to vector<1x512xf32>
    %247 = arith.mulf %245, %246 : vector<1x512xf32>
    %248 = arith.mulf %231, %239 : vector<20x512xf32>
    %cst_96 = arith.constant dense<0.000000e+00> : vector<512xf32>
    %249 = vector.multi_reduction <add>, %248, %cst_96 [0] : vector<20x512xf32> to vector<512xf32>
    %250 = vector.shape_cast %249 : vector<512xf32> to vector<1x512xf32>
    %cst_97 = arith.constant 0.223606795 : f32
    %251 = vector.broadcast %cst_97 : f32 to vector<1x512xf32>
    %252 = arith.mulf %250, %251 : vector<1x512xf32>
    %253 = arith.subf %252, %247 : vector<1x512xf32>
    %254 = math.exp %253 : vector<1x512xf32>
    %cst_98 = arith.constant 1.000000e+00 : f32
    %255 = vector.broadcast %cst_98 : f32 to vector<1x512xf32>
    %256 = arith.addf %255, %254 : vector<1x512xf32>
    %cst_99 = arith.constant 1.000000e+00 : f32
    %257 = vector.broadcast %cst_99 : f32 to vector<1x512xf32>
    %258 = arith.divf %257, %256 : vector<1x512xf32>
    %259 = vector.broadcast %258 : vector<1x512xf32> to vector<20x512xf32>
    %260 = arith.mulf %259, %236 : vector<20x512xf32>
    %cst_100 = arith.constant 1.000000e+00 : f32
    %261 = vector.broadcast %cst_100 : f32 to vector<1x512xf32>
    %262 = arith.subf %261, %258 : vector<1x512xf32>
    %263 = vector.broadcast %262 : vector<1x512xf32> to vector<20x512xf32>
    %264 = arith.mulf %263, %242 : vector<20x512xf32>
    %265 = arith.addf %260, %264 : vector<20x512xf32>
    %c272 = arith.constant 272 : index
    %c0_101 = arith.constant 0 : index
    %266 = vector.load %arg5[%c272, %c0_101] : memref<320x20xf32, #tpu.memory_space<vmem>>, vector<20x20xf32>
    %cst_102 = arith.constant dense<0.000000e+00> : vector<20x512xf32>
    %267 = tpu.matmul %266, %265, %cst_102 {dimension_numbers = #tpu.dot_dimension_numbers<[1], [0], [0], [1], [0, 0, 1, 1], [], []>, precision = #tpu.contract_precision<fp32>} : vector<20x20xf32>, vector<20x512xf32>, vector<20x512xf32> -> vector<20x512xf32>
    %c0_103 = arith.constant 0 : index
    %c20 = arith.constant 20 : index
    %268 = vector.load %arg7[%c0_103, %c20] : memref<20x30xf32, #tpu.memory_space<vmem>>, vector<20x1xf32>
    %269 = vector.broadcast %268 : vector<20x1xf32> to vector<20x512xf32>
    %270 = arith.addf %267, %269 : vector<20x512xf32>
    %271 = arith.addf %225, %270 : vector<20x512xf32>
    %c0_104 = arith.constant 0 : index
    %c21 = arith.constant 21 : index
    %272 = vector.load %arg7[%c0_104, %c21] : memref<20x30xf32, #tpu.memory_space<vmem>>, vector<20x1xf32>
    %c0_105 = arith.constant 0 : index
    %c22 = arith.constant 22 : index
    %273 = vector.load %arg7[%c0_105, %c22] : memref<20x30xf32, #tpu.memory_space<vmem>>, vector<20x1xf32>
    %cst_106 = arith.constant dense<0.000000e+00> : vector<512xf32>
    %274 = vector.multi_reduction <add>, %271, %cst_106 [0] : vector<20x512xf32> to vector<512xf32>
    %275 = vector.shape_cast %274 : vector<512xf32> to vector<1x512xf32>
    %cst_107 = arith.constant 2.000000e+01 : f32
    %276 = vector.broadcast %cst_107 : f32 to vector<1x512xf32>
    %277 = arith.divf %275, %276 : vector<1x512xf32>
    %278 = vector.broadcast %277 : vector<1x512xf32> to vector<20x512xf32>
    %279 = arith.subf %271, %278 : vector<20x512xf32>
    %280 = arith.mulf %279, %279 : vector<20x512xf32>
    %cst_108 = arith.constant dense<0.000000e+00> : vector<512xf32>
    %281 = vector.multi_reduction <add>, %280, %cst_108 [0] : vector<20x512xf32> to vector<512xf32>
    %282 = vector.shape_cast %281 : vector<512xf32> to vector<1x512xf32>
    %cst_109 = arith.constant 2.000000e+01 : f32
    %283 = vector.broadcast %cst_109 : f32 to vector<1x512xf32>
    %284 = arith.divf %282, %283 : vector<1x512xf32>
    %285 = vector.broadcast %277 : vector<1x512xf32> to vector<20x512xf32>
    %286 = arith.subf %271, %285 : vector<20x512xf32>
    %cst_110 = arith.constant 9.99999974E-6 : f32
    %287 = vector.broadcast %cst_110 : f32 to vector<1x512xf32>
    %288 = arith.addf %284, %287 : vector<1x512xf32>
    %289 = math.rsqrt %288 : vector<1x512xf32>
    %290 = vector.broadcast %289 : vector<1x512xf32> to vector<20x512xf32>
    %291 = arith.mulf %286, %290 : vector<20x512xf32>
    %292 = vector.broadcast %272 : vector<20x1xf32> to vector<20x512xf32>
    %293 = arith.mulf %291, %292 : vector<20x512xf32>
    %294 = vector.broadcast %273 : vector<20x1xf32> to vector<20x512xf32>
    %295 = arith.addf %293, %294 : vector<20x512xf32>
    %c296 = arith.constant 296 : index
    %c0_111 = arith.constant 0 : index
    %296 = vector.load %arg5[%c296, %c0_111] : memref<320x20xf32, #tpu.memory_space<vmem>>, vector<2x20xf32>
    %cst_112 = arith.constant dense<0.000000e+00> : vector<2x512xf32>
    %297 = tpu.matmul %296, %295, %cst_112 {dimension_numbers = #tpu.dot_dimension_numbers<[1], [0], [0], [1], [0, 0, 1, 1], [], []>, precision = #tpu.contract_precision<fp32>} : vector<2x20xf32>, vector<20x512xf32>, vector<2x512xf32> -> vector<2x512xf32>
    %c0_113 = arith.constant 0 : index
    %c23 = arith.constant 23 : index
    %298 = vector.load %arg7[%c0_113, %c23] : memref<20x30xf32, #tpu.memory_space<vmem>>, vector<2x1xf32>
    %299 = vector.broadcast %298 : vector<2x1xf32> to vector<2x512xf32>
    %300 = arith.addf %297, %299 : vector<2x512xf32>
    %cst_114 = arith.constant 0.000000e+00 : f32
    %301 = vector.broadcast %cst_114 : f32 to vector<2x512xf32>
    %302 = arith.maximumf %300, %301 : vector<2x512xf32>
    %c0_115 = arith.constant 0 : index
    %c24 = arith.constant 24 : index
    %303 = vector.load %arg7[%c0_115, %c24] : memref<20x30xf32, #tpu.memory_space<vmem>>, vector<2x1xf32>
    %c0_116 = arith.constant 0 : index
    %c25 = arith.constant 25 : index
    %304 = vector.load %arg7[%c0_116, %c25] : memref<20x30xf32, #tpu.memory_space<vmem>>, vector<2x1xf32>
    %cst_117 = arith.constant dense<0.000000e+00> : vector<512xf32>
    %305 = vector.multi_reduction <add>, %302, %cst_117 [0] : vector<2x512xf32> to vector<512xf32>
    %306 = vector.shape_cast %305 : vector<512xf32> to vector<1x512xf32>
    %cst_118 = arith.constant 2.000000e+00 : f32
    %307 = vector.broadcast %cst_118 : f32 to vector<1x512xf32>
    %308 = arith.divf %306, %307 : vector<1x512xf32>
    %309 = vector.broadcast %308 : vector<1x512xf32> to vector<2x512xf32>
    %310 = arith.subf %302, %309 : vector<2x512xf32>
    %311 = arith.mulf %310, %310 : vector<2x512xf32>
    %cst_119 = arith.constant dense<0.000000e+00> : vector<512xf32>
    %312 = vector.multi_reduction <add>, %311, %cst_119 [0] : vector<2x512xf32> to vector<512xf32>
    %313 = vector.shape_cast %312 : vector<512xf32> to vector<1x512xf32>
    %cst_120 = arith.constant 2.000000e+00 : f32
    %314 = vector.broadcast %cst_120 : f32 to vector<1x512xf32>
    %315 = arith.divf %313, %314 : vector<1x512xf32>
    %316 = vector.broadcast %308 : vector<1x512xf32> to vector<2x512xf32>
    %317 = arith.subf %302, %316 : vector<2x512xf32>
    %cst_121 = arith.constant 9.99999974E-6 : f32
    %318 = vector.broadcast %cst_121 : f32 to vector<1x512xf32>
    %319 = arith.addf %315, %318 : vector<1x512xf32>
    %320 = math.rsqrt %319 : vector<1x512xf32>
    %321 = vector.broadcast %320 : vector<1x512xf32> to vector<2x512xf32>
    %322 = arith.mulf %317, %321 : vector<2x512xf32>
    %323 = vector.broadcast %303 : vector<2x1xf32> to vector<2x512xf32>
    %324 = arith.mulf %322, %323 : vector<2x512xf32>
    %325 = vector.broadcast %304 : vector<2x1xf32> to vector<2x512xf32>
    %326 = arith.addf %324, %325 : vector<2x512xf32>
    %c1_122 = arith.constant 1 : index
    %c0_123 = arith.constant 0 : index
    %c0_124 = arith.constant 0 : index
    %327 = vector.load %arg6[%c1_122, %c0_123, %c0_124] : memref<2x20x2xf32, #tpu.memory_space<vmem>>, vector<1x20x2xf32>
    %328 = vector.shape_cast %327 : vector<1x20x2xf32> to vector<20x2xf32>
    %cst_125 = arith.constant dense<0.000000e+00> : vector<20x512xf32>
    %329 = tpu.matmul %328, %326, %cst_125 {dimension_numbers = #tpu.dot_dimension_numbers<[1], [0], [0], [1], [0, 0, 1, 1], [], []>, precision = #tpu.contract_precision<fp32>} : vector<20x2xf32>, vector<2x512xf32>, vector<20x512xf32> -> vector<20x512xf32>
    %c0_126 = arith.constant 0 : index
    %c26 = arith.constant 26 : index
    %330 = vector.load %arg7[%c0_126, %c26] : memref<20x30xf32, #tpu.memory_space<vmem>>, vector<20x1xf32>
    %331 = vector.broadcast %330 : vector<20x1xf32> to vector<20x512xf32>
    %332 = arith.addf %329, %331 : vector<20x512xf32>
    %cst_127 = arith.constant 0.000000e+00 : f32
    %333 = vector.broadcast %cst_127 : f32 to vector<20x512xf32>
    %334 = arith.maximumf %332, %333 : vector<20x512xf32>
    %335 = arith.addf %295, %334 : vector<20x512xf32>
    %c304 = arith.constant 304 : index
    %c0_128 = arith.constant 0 : index
    %336 = vector.load %arg5[%c304, %c0_128] : memref<320x20xf32, #tpu.memory_space<vmem>>, vector<2x20xf32>
    %337 = vector.extract_strided_slice %335 {offsets = [0, 0], sizes = [20, 256], strides = [1, 1]} : vector<20x512xf32> to vector<20x256xf32>
    %cst_129 = arith.constant dense<0.000000e+00> : vector<2x256xf32>
    %338 = tpu.matmul %336, %337, %cst_129 {dimension_numbers = #tpu.dot_dimension_numbers<[1], [0], [0], [1], [0, 0, 1, 1], [], []>, precision = #tpu.contract_precision<fp32>} : vector<2x20xf32>, vector<20x256xf32>, vector<2x256xf32> -> vector<2x256xf32>
    %c312 = arith.constant 312 : index
    %c0_130 = arith.constant 0 : index
    %339 = vector.load %arg5[%c312, %c0_130] : memref<320x20xf32, #tpu.memory_space<vmem>>, vector<2x20xf32>
    %340 = vector.extract_strided_slice %335 {offsets = [0, 256], sizes = [20, 256], strides = [1, 1]} : vector<20x512xf32> to vector<20x256xf32>
    %cst_131 = arith.constant dense<0.000000e+00> : vector<2x256xf32>
    %341 = tpu.matmul %339, %340, %cst_131 {dimension_numbers = #tpu.dot_dimension_numbers<[1], [0], [0], [1], [0, 0, 1, 1], [], []>, precision = #tpu.contract_precision<fp32>} : vector<2x20xf32>, vector<20x256xf32>, vector<2x256xf32> -> vector<2x256xf32>
    %342 = arith.addf %338, %341 : vector<2x256xf32>
    %c0_132 = arith.constant 0 : index
    %c27 = arith.constant 27 : index
    %343 = vector.load %arg7[%c0_132, %c27] : memref<20x30xf32, #tpu.memory_space<vmem>>, vector<2x1xf32>
    %344 = vector.broadcast %343 : vector<2x1xf32> to vector<2x256xf32>
    %345 = arith.addf %342, %344 : vector<2x256xf32>
    %c0_133 = arith.constant 0 : index
    %c0_134 = arith.constant 0 : index
    %c0_135 = arith.constant 0 : index
    %346 = vector.load %arg8[%c0_133, %c0_134, %c0_135] : memref<1x2x256xf32, #tpu.memory_space<vmem>>, vector<1x2x256xf32>
    %347 = vector.shape_cast %346 : vector<1x2x256xf32> to vector<2x256xf32>
    %348 = vector.shape_cast %345 : vector<2x256xf32> to vector<1x2x256xf32>
    tpu.vector_store %arg8[%c0_133, %c0_134, %c0_135], %348 {strides = array<i32>} : memref<1x2x256xf32, #tpu.memory_space<vmem>>, vector<1x2x256xf32>,
    return
  }
  func.func @transform_0(%arg0: i32, %arg1: i32) -> (i32, i32, i32, i32) {
    %c0_i32 = arith.constant 0 : i32
    %c0_i32_0 = arith.constant 0 : i32
    %c0_i32_1 = arith.constant 0 : i32
    return %arg0, %c0_i32, %c0_i32_0, %arg1 : i32, i32, i32, i32
  }
  func.func @transform_1(%arg0: i32, %arg1: i32) -> (i32, i32, i32) {
    %c0_i32 = arith.constant 0 : i32
    %c0_i32_0 = arith.constant 0 : i32
    %c0_i32_1 = arith.constant 0 : i32
    return %arg0, %c0_i32, %c0_i32_0 : i32, i32, i32
  }
  func.func @transform_2(%arg0: i32, %arg1: i32) -> (i32, i32, i32) {
    %c0_i32 = arith.constant 0 : i32
    %c0_i32_0 = arith.constant 0 : i32
    %c0_i32_1 = arith.constant 0 : i32
    return %arg0, %c0_i32, %c0_i32_0 : i32, i32, i32
  }
  func.func @transform_3(%arg0: i32, %arg1: i32) -> (i32, i32) {
    %c0_i32 = arith.constant 0 : i32
    %c0_i32_0 = arith.constant 0 : i32
    %c0_i32_1 = arith.constant 0 : i32
    return %c0_i32, %c0_i32_0 : i32, i32
  }
  func.func @transform_4(%arg0: i32, %arg1: i32) -> (i32, i32, i32) {
    %c0_i32 = arith.constant 0 : i32
    %c0_i32_0 = arith.constant 0 : i32
    %c0_i32_1 = arith.constant 0 : i32
    %c0_i32_2 = arith.constant 0 : i32
    return %c0_i32, %c0_i32_0, %c0_i32_1 : i32, i32, i32
  }
  func.func @transform_5(%arg0: i32, %arg1: i32) -> (i32, i32) {
    %c0_i32 = arith.constant 0 : i32
    %c0_i32_0 = arith.constant 0 : i32
    %c0_i32_1 = arith.constant 0 : i32
    return %c0_i32, %c0_i32_0 : i32, i32
  }
  func.func @transform_6(%arg0: i32, %arg1: i32) -> (i32, i32, i32) {
    %c0_i32 = arith.constant 0 : i32
    %c0_i32_0 = arith.constant 0 : i32
    return %arg0, %c0_i32, %arg1 : i32, i32, i32
  }
}

</mosaic_0001>

<bundles_post_ra>
// kernel: attention_decoder_forward.1
= control target key start
LH: loop header
LB: loop body
LE: loop exit
PB: predicated region body
PF: predicated region fallthrough
CT: control target
= control target key end

     0   :  { %s20389_s21 = smov 0   ;;  %s20391_s22 = smov 0   ;;  %s26208_s0 = inlined_call_operand.vmem [shape: f32[2,2,20,512], index: 0, kind: input, shape index: {}]   ;;  %s26209_s1 = inlined_call_operand.vmem [shape: f32[2,20,4], index: 1, kind: input, shape index: {}]   ;;  %s26210_s2 = inlined_call_operand.vmem [shape: f32[2,4,20], index: 2, kind: input, shape index: {}]   ;;  %s26211_s3 = inlined_call_operand.vmem [shape: f32[320,20], index: 3, kind: input, shape index: {}]   ;;  %s26212_s4 = inlined_call_operand.vmem [shape: f32[2,20,2], index: 4, kind: input, shape index: {}]   ;;  %s26213_s5 = inlined_call_operand.vmem [shape: f32[20,30], index: 5, kind: input, shape index: {}]   ;;  %s26214_s6 = inlined_call_operand.vmem [shape: f32[2,2,512], index: 6, kind: output, shape index: {}]  }
   0x1   :  { %s20393_s23 = smov 0   ;;  %s20395_s24 = smov 0  }
   0x2   :  { %s20397_s25 = smov 0   ;;  %s20399_s26 = smov 0  }
   0x3   :  { %s20401_s27 = smov 0  }
   0x4 LB: > { %s25_s28 = sadd.s32 1, %s20312_s25  ;;  %s28_s29 = sadd.s32 1, %s20316_s26  ;;  %s20320_s27 = sphi %s20401_s27, %s16_s27   ;;  %s20316_s26 = sphi %s20399_s26, %s26630_s26   ;;  %s20312_s25 = sphi %s20397_s25, %s26629_s25   ;;  %s20308_s24 = sphi %s20395_s24, %s26628_s24   ;;  %s20304_s23 = sphi %s20393_s23, %s26627_s23   ;;  %s20300_s22 = sphi %s20391_s22, %s26626_s22   ;;  %s20296_s21 = sphi %s20389_s21, %s26625_s21  }
   0x5   : > { %p26_p0 = scmp.ge.s32.totalorder %s25_s28, 2  ;;  %p44_p1 = scmp.ne.s32.totalorder %s20300_s22, %s20296_s21 }
   0x6   : > { %p45_p2 = scmp.eq.s32.totalorder %s20320_s27, 0  ;;  %s37_s9 = sadd.s32 1, %s20300_s22 }
   0x7   : > { %s26632_s28 = smov (%p26_p0, %s25_s28), 0  ;;  %s26634_s29 = smov (!%p26_p0, %s28_s29), %s20316_s26 }
   0x8   : > { %p46_p3 = por %p45_p2, %p44_p1  ;;  %p30_p4 = scmp.ge.s32.totalorder %s26634_s29, 2 }
   0x9   : > { %s33_s30 = ssub.s32 %s20312_s25, %s26632_s28  ;;  %p19762_p6 = scmp.ge.s32.totalorder %s20320_s27, 4 }
   0xa   : > { %s26636_s29 = smov (%p30_p4, %s26634_s29), 0 }
   0xb   : > { %s32_s7 = ssub.s32 %s20316_s26, %s26636_s29  ;;  %222 = sbr.rel (%p19762_p6) target bundleno = 30 (0x1e), region = 28 }
   0xc   : > { %s34_s8 = sor.u32 %s33_s30, %s32_s7 }
   0xd   : > { %p35_p5 = scmp.eq.s32.totalorder %s34_s8, 0 }
   0xf   : > { %s20440_s10 = scalar_select %p35_p5, %s20300_s22, %s37_s9  }
  0x10   : > { %225 = sbr.rel (!%p46_p3) target bundleno = 30 (0x1e), region = 32  ;;  %s227_s11 = sand.u32 (%p46_p3), 1, %s20300_s22  }
  0x11   : > { %s19987_s12 = smul.u32 (%p46_p3), 96, %s227_s11  ;;  %s19763_s13 = sshll.u32 (%p46_p3), %s20312_s25, 1 }
  0x12   : > { %s19988_s14 = smul.u32 (%p46_p3), 24, %s20316_s26 }
  0x13   : > { %s229_s20 = scalar_lea.vmem (%p46_p3), [#allocation2], %s19987_s12 }
  0x14   : > { %s232_s15 = sadd.s32 (%p46_p3), %s19988_s14, %s19763_s13 }
  0x15   : > { %s19764_s16 = sshll.u32 %s232_s15, 3 }
  0x16   : > { %s234_s19 = scalar_lea.vmem %s26208_s0, %s19764_s16 }
  0x17   : > { %v247_v0 = vld [vmem:[%s234_s19] sm:$0xff]  ;;  %v249_v1 = vld [vmem:[%s234_s19 + $0x8] sm:$0xff] }
  0x18   : > { %v251_v2 = vld [vmem:[%s234_s19 + $0x20] sm:$0xff]  ;;  %248 = vst [vmem:[%s229_s20] sm:$0xff] %v247_v0  ;;  %250 = vst [vmem:[%s229_s20 + $0x8] sm:$0xff] %v249_v1  ;;  %v253_v3 = vld [vmem:[%s234_s19 + $0x28] sm:$0xff] }
  0x19   : > { %252 = vst [vmem:[%s229_s20 + $0x10] sm:$0xff] %v251_v2  ;;  %v255_v4 = vld [vmem:[%s234_s19 + $0x40] sm:$0xff]  ;;  %v257_v5 = vld [vmem:[%s234_s19 + $0x48] sm:$0xff]  ;;  %254 = vst [vmem:[%s229_s20 + $0x18] sm:$0xff] %v253_v3 }
  0x1a   : > { %256 = vst [vmem:[%s229_s20 + $0x20] sm:$0xff] %v255_v4  ;;  %258 = vst [vmem:[%s229_s20 + $0x28] sm:$0xff] %v257_v5  ;;  %v259_v6 = vld [vmem:[%s234_s19 + $0x60] sm:$0xff]  ;;  %v261_v7 = vld [vmem:[%s234_s19 + $0x68] sm:$0xff] }
  0x1b   : > { %v263_v8 = vld [vmem:[%s234_s19 + $0x80] sm:$0xff]  ;;  %260 = vst [vmem:[%s229_s20 + $0x30] sm:$0xff] %v259_v6  ;;  %262 = vst [vmem:[%s229_s20 + $0x38] sm:$0xff] %v261_v7  ;;  %v265_v9 = vld [vmem:[%s234_s19 + $0x88] sm:$0xff] }
  0x1c   : > { %264 = vst [vmem:[%s229_s20 + $0x40] sm:$0xff] %v263_v8  ;;  %v267_v10 = vld [vmem:[%s234_s19 + $0xa0] sm:$0xff]  ;;  %v269_v11 = vld [vmem:[%s234_s19 + $0xa8] sm:$0xff]  ;;  %266 = vst [vmem:[%s229_s20 + $0x48] sm:$0xff] %v265_v9 }
  0x1d   : > { %268 = vst [vmem:[%s229_s20 + $0x50] sm:$0xff] %v267_v10  ;;  %270 = vst [vmem:[%s229_s20 + $0x58] sm:$0xff] %v269_v11 }
  0x1e PF: > { %p19765_p7 = scmp.ge.s32.totalorder %s20320_s27, 1  ;;  %p290_p8 = scmp.lt.s32.totalorder %s20320_s27, 5 }
  0x20   : > { %p291_p9 = pnand %p19765_p7, %p290_p8 }
  0x22   : > { %294 = sbr.rel (%p291_p9) target bundleno = 4329 (0x10e9), region = 63 }
  0x27   : > { %v20454_v12 = vld [vmem:[%s26213_s5 + $0x10] sm:$0xf]  ;;  %v20459_v13 = vld [vmem:[%s26213_s5] sm:$0xff]  ;;  %v20322_v14 = vmov 28   ;;  %v20466_v15 = vld [vmem:[%s26213_s5 + $0x8] sm:$0xff]  ;;  %v20323_v16 = vmov 0  }
  0x28   : > { %20080 = vset.pattern.permute.xlu1 %v20322_v14  ;;  %20079 = vset.pattern.permute.xlu0 %v20322_v14  ;;  %v20324_v17 = vmov 1   ;;  %v20325_v18 = vmov 29   ;;  %v26216_v19 = vmov 0.0   ;;  %s297_s13 = sand.u32 1, %s20296_s21   ;;  %vm415_vm0 = vcmask 1043456   ;;  %p340_p10 = scmp.lt.s32.totalorder %s20308_s24, 1 }
  0x29   : > { %380 = vperm.xlu1 %20080, %v20454_v12   ;;  %370 = vperm.xlu0 %20079, %v20459_v13   ;;  %s19989_s14 = smul.u32 96, %s297_s13  ;;  %vm597_vm1 = vcmask 162816   ;;  %vm20332_vm2 = vmmov 0   ;;  %vm7586_vm3 = vcmask 31744   ;;  %vm11240_vm4 = vcmask 1041408   ;;  %s19768_s30 = sshll.u32 %s20304_s23, 1 }
  0x2a   : > { %707 = vmatprep.mubr.f32.mxu0 %v26216_v19  ;;  %901 = vmatprep.mubr.f32.mxu1 %v26216_v19  ;;  %s26638_s24 = smov (!%p340_p10, %s20308_s24), 1  ;;  %vm11361_vm5 = vcmask 15360   ;;  %p352_p11 = scmp.lt.s32.totalorder %s19768_s30, 3 }
  0x2b   : > { %s20481_s15 = scalar_lea.vmem [#allocation2], %s19989_s14  ;;  %s19767_s17 = sshll.u32 %s26638_s24, 2 }
  0x2c   : > { %v363_v20 = vld [vmem:[%s20481_s15 + $0x20] sm:$0xf]  ;;  %v364_v21 = vld [vmem:[%s20481_s15 + $0x28] sm:$0xf]  ;;  %v361_v28 = vld [vmem:[%s20481_s15 + $0x10] sm:$0xff]  ;;  %s348_s7 = scalar_lea.vmem %s26210_s2, %s19767_s17  ;;  %s19990_s11 = smul.u32 24, %s26638_s24 }
  0x2d   : > { %20081 = vset.pattern.permute.xlu1 %v20323_v16  ;;  %375 = vperm.xlu0 %20079, %v20466_v15   ;;  %v359_v24 = vld [vmem:[%s20481_s15] sm:$0xff]  ;;  %v360_v25 = vld [vmem:[%s20481_s15 + $0x8] sm:$0xff]  ;;  %v362_v29 = vld [vmem:[%s20481_s15 + $0x18] sm:$0xff]  ;;  %s26640_s30 = smov (!%p352_p11, %s19768_s30), 3 }
  0x2e   : > { %549 = vperm.xlu1 %20081, %v20454_v12   ;;  %v19771_v58 = vld [vmem:[%s20481_s15 + $0x30] sm:$0xff]  ;;  %v19772_v59 = vld [vmem:[%s20481_s15 + $0x38] sm:$0xff]  ;;  %v19773_v62 = vld [vmem:[%s20481_s15 + $0x40] sm:$0xff]  ;;  %s344_s14 = scalar_lea.vmem %s26209_s1, %s19990_s11 }
  0x2f   : > { %v19774_v63 = vld [vmem:[%s20481_s15 + $0x48] sm:$0xff]  ;;  %v19775_v11 = vld [vmem:[%s20481_s15 + $0x50] sm:$0xf]  ;;  %v19776_v14 = vld [vmem:[%s20481_s15 + $0x58] sm:$0xf] }
  0x31   : > { %20082 = vset.pattern.permute.xlu0 %v20324_v17 }
  0x32   : > { %545 = vperm.xlu1 %20081, %v20466_v15   ;;  %573 = vperm.xlu0 %20082, %v20454_v12  }
  0x36   : > { %541 = vperm.xlu1 %20081, %v20459_v13   ;;  %569 = vperm.xlu0 %20082, %v20466_v15  }
  0x3a   : > { %20083 = vset.pattern.permute.xlu1 %v20324_v17  ;;  %20084 = vset.pattern.permute.xlu0 %v20325_v18 }
  0x3b   : > { %565 = vperm.xlu1 %20083, %v20459_v13   ;;  %397 = vperm.xlu0 %20084, %v20459_v13  }
  0x3f   : > { %20085 = vset.pattern.permute.xlu1 %v20325_v18 }
  0x40   : > { %401 = vperm.xlu1 %20085, %v20466_v15  }
  0x44   : > { %405 = vperm.xlu1 %20085, %v20454_v12  }
  0xa4   : > { %v371_v22 = vpop.permute.xlu0 %370  ;;  %v381_v23 = vpop.permute.xlu1 %380 }
  0xa5   : > { %v387_v26 = vadd.f32 %v381_v23, %v363_v20  ;;  %v388_v27 = vadd.f32 %v381_v23, %v364_v21  ;;  %v383_v31 = vadd.f32 %v371_v22, %v359_v24  ;;  %v384_v32 = vadd.f32 %v371_v22, %v360_v25 }
  0xa7   : > { %v416_v36 = vsel %vm415_vm0, %v387_v26, 0.0  ;;  %v425_v37 = vsel %vm415_vm0, %v388_v27, 0.0 }
  0xa8   : > { %v376_v30 = vpop.permute.xlu0 %375 }
  0xa9   : > { %v385_v33 = vadd.f32 %v376_v30, %v361_v28  ;;  %v386_v34 = vadd.f32 %v376_v30, %v362_v29  ;;  %v20489_v35 = vpop.permute.xlu1 %549 }
  0xab   : > { %v414_v38 = vadd.f32 %v385_v33, %v383_v31  ;;  %v424_v39 = vadd.f32 %v386_v34, %v384_v32 }
  0xad   : > { %v417_v40 = vadd.f32 %v416_v36, %v414_v38  ;;  %v426_v41 = vadd.f32 %v425_v37, %v424_v39  ;;  %v20493_v42 = vpop.permute.xlu1 %545  ;;  %v20495_v43 = vpop.permute.xlu0 %573 }
  0xaf   : > { %v418_v44 = vrot.slane %v417_v40, 4  ;;  %v427_v45 = vrot.slane %v426_v41, 4 }
  0xb1   : > { %v419_v46 = vadd.f32 %v418_v44, %v417_v40  ;;  %v428_v47 = vadd.f32 %v427_v45, %v426_v41  ;;  %v20497_v48 = vpop.permute.xlu1 %541  ;;  %v20499_v49 = vpop.permute.xlu0 %569 }
  0xb3   : > { %v420_v50 = vrot.slane %v419_v46, 2  ;;  %v429_v51 = vrot.slane %v428_v47, 2 }
  0xb5   : > { %v421_v52 = vadd.f32 %v420_v50, %v419_v46  ;;  %v430_v53 = vadd.f32 %v429_v51, %v428_v47 }
  0xb6   : > { %v20501_v54 = vpop.permute.xlu1 %565  ;;  %v398_v57 = vpop.permute.xlu0 %397 }
  0xb7   : > { %v422_v55 = vrot.slane %v421_v52, 1  ;;  %v431_v56 = vrot.slane %v430_v53, 1  ;;  %v20507_v0 = vadd.f32 %v19771_v58, %v398_v57  ;;  %v20509_v1 = vadd.f32 %v19772_v59, %v398_v57 }
  0xb9   : > { %v423_v60 = vadd.f32 %v422_v55, %v421_v52  ;;  %v432_v61 = vadd.f32 %v431_v56, %v430_v53 }
  0xbb   : > { %v452_v2 = vmul.f32 0.05, %v423_v60  ;;  %v453_v3 = vmul.f32 0.05, %v432_v61  ;;  %v402_v4 = vpop.permute.xlu1 %401 }
  0xbc   : > { %v20511_v5 = vadd.f32 %v19773_v62, %v402_v4  ;;  %v20513_v6 = vadd.f32 %v19774_v63, %v402_v4 }
  0xbd   : > { %v20515_v7 = vsub.f32 %v383_v31, %v452_v2  ;;  %v20517_v8 = vsub.f32 %v384_v32, %v453_v3  ;;  %v20519_v9 = vsub.f32 %v385_v33, %v452_v2  ;;  %v20521_v10 = vsub.f32 %v386_v34, %v453_v3 }
  0xbe   : > { %v20525_v16 = vsub.f32 %v387_v26, %v452_v2  ;;  %v20527_v17 = vsub.f32 %v388_v27, %v453_v3  ;;  %v433_v18 = vadd.f32 %v20511_v5, %v20507_v0  ;;  %v442_v20 = vadd.f32 %v20513_v6, %v20509_v1 }
  0xbf   : > { %v468_v21 = vmul.f32 %v20515_v7, %v20515_v7  ;;  %v469_v22 = vmul.f32 %v20517_v8, %v20517_v8  ;;  %v472_v23 = vmul.f32 %v20519_v9, %v20519_v9  ;;  %v473_v24 = vmul.f32 %v20521_v10, %v20521_v10  ;;  %v406_v25 = vpop.permute.xlu1 %405 }
  0xc0   : > { %v476_v26 = vmul.f32 %v20525_v16, %v20525_v16  ;;  %v477_v27 = vmul.f32 %v20527_v17, %v20527_v17  ;;  %v20545_v28 = vadd.f32 %v19775_v11, %v406_v25  ;;  %v413_v29 = vadd.f32 %v19776_v14, %v406_v25  ;;  %v588_v11 = vld [vmem:[%s26211_s3] sm:$0xff]  ;;  %v589_v14 = vld [vmem:[%s26211_s3 + $0x8] sm:$0xff] }
  0xc1   : > { %v480_v30 = vadd.f32 %v472_v23, %v468_v21  ;;  %v489_v31 = vadd.f32 %v473_v24, %v469_v22  ;;  %v599_v23 = vsel %vm597_vm1, %v588_v11, 0  ;;  %v602_v24 = vsel %vm597_vm1, %v589_v14, 0 }
  0xc2   : > { %v481_v32 = vsel %vm415_vm0, %v476_v26, 0.0  ;;  %v490_v33 = vsel %vm415_vm0, %v477_v27, 0.0  ;;  %v434_v34 = vsel %vm415_vm0, %v20545_v28, 0.0  ;;  %v443_v36 = vsel %vm415_vm0, %v413_v29, 0.0 }
  0xc3   : > { %v482_v37 = vadd.f32 %v481_v32, %v480_v30  ;;  %v491_v38 = vadd.f32 %v490_v33, %v489_v31  ;;  %v435_v39 = vadd.f32 %v434_v34, %v433_v18  ;;  %v444_v40 = vadd.f32 %v443_v36, %v442_v20  ;;  %v590_v32 = vld [vmem:[%s26211_s3 + $0x10] sm:$0xff] }
  0xc4   : > { %v20571_v33 = vand.u32 4294901760, %v599_v23  ;;  %v20573_v34 = vand.u32 4294901760, %v602_v24 }
  0xc5   : > { %v483_v41 = vrot.slane %v482_v37, 4  ;;  %v492_v44 = vrot.slane %v491_v38, 4  ;;  %v445_v45 = vrot.slane %v444_v40, 4  ;;  %v436_v46 = vrot.slane %v435_v39, 4 }
  0xc7   : > { %v484_v47 = vadd.f32 %v483_v41, %v482_v37  ;;  %v493_v50 = vadd.f32 %v492_v44, %v491_v38  ;;  %v446_v51 = vadd.f32 %v445_v45, %v444_v40  ;;  %v437_v56 = vadd.f32 %v436_v46, %v435_v39 }
  0xc8   : > { %v605_v37 = vsel %vm597_vm1, %v590_v32, 0  ;;  %v20584_v40 = vsub.f32 %v599_v23, %v20571_v33  ;;  %v20587_v41 = vsub.f32 %v602_v24, %v20573_v34 }
  0xc9   : > { %v485_v52 = vrot.slane %v484_v47, 2  ;;  %v494_v53 = vrot.slane %v493_v50, 2  ;;  %v447_v55 = vrot.slane %v446_v51, 2  ;;  %v438_v63 = vrot.slane %v437_v56, 2 }
  0xca   : > { %26291 = vst [vmem:[#allocation3_spill] sm:$0xff] %v20584_v40  ;;  %v20589_v46 = vand.u32 4294901760, %v605_v37 }
  0xcb   : > { %v486_v57 = vadd.f32 %v485_v52, %v484_v47  ;;  %v495_v58 = vadd.f32 %v494_v53, %v493_v50  ;;  %v448_v59 = vadd.f32 %v447_v55, %v446_v51  ;;  %v439_v21 = vadd.f32 %v438_v63, %v437_v56  ;;  %v591_v56 = vld [vmem:[%s26211_s3 + $0x18] sm:$0xff] }
  0xcc   : > { %v20592_v50 = vand.u32 4294901760, %v20584_v40  ;;  %v20595_v51 = vand.u32 4294901760, %v20587_v41  ;;  %v20598_v55 = vsub.f32 %v605_v37, %v20589_v46 }
  0xcd   : > { %v487_v60 = vrot.slane %v486_v57, 1  ;;  %v496_v61 = vrot.slane %v495_v58, 1  ;;  %v449_v62 = vrot.slane %v448_v59, 1  ;;  %v440_v36 = vrot.slane %v439_v21, 1 }
  0xce   : > { %v20611_v63 = vand.u32 4294901760, %v20598_v55 }
  0xcf   : > { %v488_v2 = vadd.f32 %v487_v60, %v486_v57  ;;  %v497_v3 = vadd.f32 %v496_v61, %v495_v58  ;;  %v450_v4 = vadd.f32 %v449_v62, %v448_v59  ;;  %v441_v44 = vadd.f32 %v440_v36, %v439_v21 }
  0xd0   : > { %v711_v58 = vsub.f32 %v20584_v40, %v20592_v50  ;;  %v722_v59 = vsub.f32 %v20587_v41, %v20595_v51 }
  0xd1   : > { %v516_v18 = vmul.f32 0.05, %v488_v2  ;;  %v517_v20 = vmul.f32 0.05, %v497_v3  ;;  %v455_v22 = vmul.f32 0.05, %v450_v4 }
  0xd2   : > { %v454_v52 = vmul.f32 0.05, %v441_v44  ;;  %v608_v2 = vsel %vm597_vm1, %v591_v56, 0 }
  0xd3   : > { %v520_v25 = vadd.f32 1e-05, %v516_v18  ;;  %v521_v26 = vadd.f32 1e-05, %v517_v20  ;;  %v20561_v27 = vsub.f32 %v20509_v1, %v455_v22  ;;  %v20564_v30 = vsub.f32 %v20513_v6, %v455_v22 }
  0xd4   : > { %v20566_v31 = vsub.f32 %v413_v29, %v455_v22  ;;  %v20608_v61 = vsub.f32 %v20507_v0, %v454_v52  ;;  %v20618_v18 = vsub.f32 %v20511_v5, %v454_v52  ;;  %v20624_v22 = vsub.f32 %v20545_v28, %v454_v52 }
  0xd5   : > { %20139 = vrsqrt.f32 %v520_v25  ;;  %v471_v1 = vmul.f32 %v20561_v27, %v20561_v27  ;;  %v475_v6 = vmul.f32 %v20564_v30, %v20564_v30 }
  0xd6   : > { %20141 = vrsqrt.f32 %v521_v26  ;;  %v479_v29 = vmul.f32 %v20566_v31, %v20566_v31  ;;  %v474_v26 = vmul.f32 %v20618_v18, %v20618_v18 }
  0xd7   : > { %v507_v38 = vadd.f32 %v475_v6, %v471_v1  ;;  %v478_v6 = vmul.f32 %v20624_v22, %v20624_v22 }
  0xd8   : > { %v508_v39 = vsel %vm415_vm0, %v479_v29, 0.0  ;;  %v592_v29 = vld [vmem:[%s26211_s3 + $0x20] sm:$0xff] }
  0xd9   : > { %v509_v45 = vadd.f32 %v508_v39, %v507_v38 }
  0xdb   : > { %v510_v47 = vrot.slane %v509_v45, 4 }
  0xdd   : > { %v511_v53 = vadd.f32 %v510_v47, %v509_v45 }
  0xdf   : > { %v512_v57 = vrot.slane %v511_v53, 2 }
  0xe1   : > { %v513_v62 = vadd.f32 %v512_v57, %v511_v53  ;;  %v20674_v53 = vand.u32 4294901760, %v608_v2 }
  0xe2   : > { %v20140_v60 = vpop.eup %20139 }
  0xe3   : > { %v20142_v3 = vpop.eup %20141  ;;  %v532_v4 = vmul.f32 %v20140_v60, %v20519_v9  ;;  %v536_v11 = vmul.f32 %v20140_v60, %v20525_v16  ;;  %v528_v14 = vmul.f32 %v20140_v60, %v20515_v7  ;;  %v514_v24 = vrot.slane %v513_v62, 1 }
  0xe4   : > { %v533_v20 = vmul.f32 %v20142_v3, %v20521_v10  ;;  %v537_v0 = vmul.f32 %v20142_v3, %v20527_v17  ;;  %v529_v21 = vmul.f32 %v20142_v3, %v20517_v8  ;;  %v470_v17 = vmul.f32 %v20608_v61, %v20608_v61 }
  0xe5   : > { %v560_v23 = vmul.f32 %v20489_v35, %v536_v11  ;;  %v556_v9 = vmul.f32 %v20493_v42, %v532_v4  ;;  %v552_v16 = vmul.f32 %v20497_v48, %v528_v14  ;;  %v515_v38 = vadd.f32 %v514_v24, %v513_v62 }
  0xe6   : > { %v561_v7 = vmul.f32 %v20489_v35, %v537_v0  ;;  %v557_v5 = vmul.f32 %v20493_v42, %v533_v20  ;;  %v553_v10 = vmul.f32 %v20497_v48, %v529_v21  ;;  %v611_v62 = vsel %vm597_vm1, %v592_v29, 0 }
  0xe7   : > { %v20635_v8 = vadd.f32 %v20495_v43, %v560_v23  ;;  %v20638_v28 = vadd.f32 %v20501_v54, %v552_v16  ;;  %v20641_v25 = vadd.f32 %v20499_v49, %v556_v9  ;;  %v498_v3 = vadd.f32 %v474_v26, %v470_v17  ;;  %v593_v9 = vld [vmem:[%s26211_s3 + $0x28] sm:$0xff] }
  0xe8   : > { %v20646_v32 = vadd.f32 %v20495_v43, %v561_v7  ;;  %v20649_v36 = vadd.f32 %v20501_v54, %v553_v10  ;;  %v20652_v1 = vadd.f32 %v20499_v49, %v557_v5  ;;  %v499_v4 = vsel %vm415_vm0, %v478_v6, 0.0 }
  0xe9   : > { %26292 = vst [vmem:[#allocation4_spill] sm:$0xff] %v20635_v8  ;;  %26293 = vst [vmem:[#allocation5_spill] sm:$0xff] %v20638_v28  ;;  %v626_v37 = vsel %vm415_vm0, %v20635_v8, 0  ;;  %v20662_v39 = vand.u32 4294901760, %v20641_v25  ;;  %v20665_v44 = vand.u32 4294901760, %v20638_v28  ;;  %v20713_v5 = vand.u32 4294901760, %v611_v62 }
  0xea   : > { %26294 = vst [vmem:[#allocation6_spill] sm:$0xff] %v20641_v25  ;;  %26295 = vst [vmem:[#allocation7_spill] sm:$0xff] %v20646_v32  ;;  %v629_v45 = vsel %vm415_vm0, %v20646_v32, 0  ;;  %v20669_v47 = vand.u32 4294901760, %v626_v37  ;;  %v20672_v52 = vand.u32 4294901760, %v20652_v1  ;;  %v20679_v57 = vand.u32 4294901760, %v20649_v36 }
  0xeb   : > { %26296 = vst [vmem:[#allocation8_spill] sm:$0xff] %v20649_v36  ;;  %26297 = vst [vmem:[#allocation9_spill] sm:$0xff] %v20652_v1  ;;  %v20676_v56 = vand.u32 4294901760, %v629_v45  ;;  %v20683_v60 = vsub.f32 %v20641_v25, %v20662_v39  ;;  %v519_v20 = vmul.f32 0.05, %v515_v38  ;;  %v20704_v23 = vsub.f32 %v20638_v28, %v20665_v44  ;;  %v595_v8 = vld [vmem:[%s26211_s3 + $0x38] sm:$0xff] }
  0xec   : > { %v20688_v11 = vsub.f32 %v626_v37, %v20669_v47  ;;  %v20692_v14 = vsub.f32 %v20652_v1, %v20672_v52  ;;  %v20700_v21 = vsub.f32 %v20649_v36, %v20679_v57  ;;  %v20716_v10 = vand.u32 4294901760, %v711_v58 }
  0xed   : > { %664 = vmatprep.subr.mxu0 %v20676_v56  ;;  %v20696_v0 = vsub.f32 %v629_v45, %v20676_v56  ;;  %v26220_v7 = vand.u32 4294901760, %v20683_v60  ;;  %v20721_v6 = vsub.f32 %v608_v2, %v20674_v53  ;;  %v500_v29 = vadd.f32 %v499_v4, %v498_v3 }
  0xee   : > { %666 = vmatpush1.msra.mxu0 %v20669_v47  ;;  %v26215_v16 = vand.u32 4294901760, %v20688_v11  ;;  %v26218_v24 = vand.u32 4294901760, %v20692_v14  ;;  %v26222_v26 = vand.u32 4294901760, %v20700_v21  ;;  %v20730_v38 = vand.u32 4294901760, %v722_v59 }
  0xef   : > { %668 = vmatprep.subr.mxu0 %v20672_v52  ;;  %v835_v17 = vand.u32 4294901760, %v20696_v0  ;;  %v614_v58 = vsel %vm597_vm1, %v593_v9, 0  ;;  %v523_v45 = vadd.f32 1e-05, %v519_v20  ;;  %v854_v20 = vsub.f32 %v20683_v60, %v26220_v7 }
  0xf0   : > { %670 = vmatpush1.msra.mxu0 %v20662_v39  ;;  %v842_v37 = vsub.f32 %v20688_v11, %v26215_v16  ;;  %26298 = vst [vmem:[#allocation10_spill] sm:$0xff] %v20730_v38  ;;  %v848_v3 = vsub.f32 %v20692_v14, %v26218_v24  ;;  %v594_v16 = vld [vmem:[%s26211_s3 + $0x30] sm:$0xff]  ;;  %v733_v9 = vsub.f32 %v20598_v55, %v20611_v63  ;;  %v20759_v32 = vand.u32 4294901760, %v614_v58 }
  0xf1   : > { %672 = vmatprep.subr.mxu0 %v20679_v57  ;;  %v836_v2 = vsub.f32 %v20696_v0, %v835_v17  ;;  %v20749_v19 = vsub.f32 %v611_v62, %v20713_v5  ;;  %v860_v4 = vsub.f32 %v20700_v21, %v26222_v26  ;;  %v501_v7 = vrot.slane %v500_v29, 4 }
  0xf2   : > { %674 = vmatpush1.msra.mxu0 %v20665_v44  ;;  %v843_v59 = vand.u32 4294901760, %v842_v37  ;;  %v20757_v37 = vand.u32 4294901760, %v20721_v6  ;;  %v26299_v36 = vmov 0.0   ;;  %v617_v62 = vsel %vm597_vm1, %v594_v16, 0 }
  0xf3   : > { %713 = vmatmul.mubr.f32.vlgmr.msra.gmra.mxu0 %v20716_v10  ;;  %993 = vmatprep.subr.mxu0 %v20696_v0  ;;  %v837_v24 = vand.u32 4294901760, %v836_v2  ;;  %20143 = vrsqrt.f32 %v523_v45  ;;  %v849_v0 = vand.u32 4294901760, %v848_v3  ;;  %v26300_v2 = vand.u32 4294901760, %v20704_v23 }
  0xf4   : > { %996 = vmatpush1.msra.mxu0 %v20688_v11  ;;  %718 = vmatprep.mubr.f32.mxu0 %v26299_v36  ;;  %v855_v1 = vand.u32 4294901760, %v854_v20  ;;  %v20772_v28 = vand.u32 4294901760, %v733_v9  ;;  %v20775_v16 = vand.u32 4294901760, %v20749_v19  ;;  %v744_v45 = vsub.f32 %v20721_v6, %v20757_v37 }
  0xf5   : > { %838 = vmatprep.subr.mxu1 %v837_v24  ;;  %999 = vmatprep.subr.mxu0 %v20692_v14  ;;  %v866_v26 = vsub.f32 %v20704_v23, %v26300_v2  ;;  %v861_v24 = vand.u32 4294901760, %v860_v4  ;;  %v20781_v3 = vsub.f32 %v614_v58, %v20759_v32  ;;  %v20783_v2 = vand.u32 4294901760, %v617_v62  ;;  %v596_v4 = vld [vmem:[%s26211_s3 + $0x40] sm:$0xff] }
  0xf6   : > { %844 = vmatpush1.msra.mxu1 %v843_v59  ;;  %1002 = vmatpush1.msra.mxu0 %v20683_v60  ;;  %26301 = vst [vmem:[#allocation11_spill] sm:$0xff] %v20772_v28  ;;  %v502_v59 = vadd.f32 %v501_v7, %v500_v29  ;;  %v620_v20 = vsel %vm597_vm1, %v595_v8, 0  ;;  %v755_v58 = vsub.f32 %v20749_v19, %v20775_v16 }
  0xf7   : > { %724 = vmatmul.mubr.f32.gmra.mxu0 %v20730_v38  ;;  %850 = vmatprep.subr.mxu1 %v849_v0  ;;  %v867_v9 = vand.u32 4294901760, %v866_v26  ;;  %v20798_v8 = vand.u32 4294901760, %v20781_v3  ;;  %v20801_v7 = vsub.f32 %v617_v62, %v20783_v2  ;;  %v20803_v26 = vand.u32 4294901760, %v620_v20 }
  0xf8   : > { %1005 = vmatprep.subr.mxu0 %v20700_v21  ;;  %856 = vmatpush1.msra.mxu1 %v855_v1  ;;  %v20795_v1 = vand.u32 4294901760, %v744_v45  ;;  %v503_v29 = vrot.slane %v502_v59, 2  ;;  %v20812_v0 = vand.u32 4294901760, %v755_v58 }
  0xf9   : > { %1008 = vmatpush1.msra.mxu0 %v20704_v23  ;;  %862 = vmatprep.subr.mxu1 %v861_v24  ;;  %v766_v62 = vsub.f32 %v20781_v3, %v20798_v8  ;;  %v20819_v24 = vand.u32 4294901760, %v20801_v7  ;;  %v20822_v45 = vsub.f32 %v620_v20, %v20803_v26 }
  0xfa   : > { %1295 = vmatprep.subr.mxu0 %v835_v17  ;;  %729 = vmatprep.mubr.f32.mxu0 %v26299_v36  ;;  %26302 = vst [vmem:[#allocation12_spill] sm:$0xff] %v20795_v1  ;;  %v623_v17 = vsel %vm597_vm1, %v596_v4, 0  ;;  %26303 = vst [vmem:[#allocation13_spill] sm:$0xff] %v20812_v0  ;;  %v504_v4 = vadd.f32 %v503_v29, %v502_v59 }
  0xfb   : > { %868 = vmatpush1.msra.mxu1 %v867_v9  ;;  %735 = vmatmul.mubr.f32.gmra.mxu0 %v20772_v28  ;;  %v20824_v9 = vand.u32 4294901760, %v623_v17  ;;  %v20835_v20 = vand.u32 4294901760, %v766_v62  ;;  %v777_v59 = vsub.f32 %v20801_v7, %v20819_v24  ;;  %v20840_v29 = vand.u32 4294901760, %v20822_v45 }
  0xfc   : > { %903 = vmatmul.mubr.f32.vlgmr.msra.gmra.mxu1 %v20571_v33  ;;  %1141 = vmatprep.subr.mxu1 %v20676_v56 }
  0xfd   : > { %1143 = vmatpush1.msra.mxu1 %v20669_v47  ;;  %740 = vmatprep.mubr.f32.mxu0 %v26299_v36  ;;  %v20843_v25 = vsub.f32 %v623_v17, %v20824_v9  ;;  %v20851_v62 = vand.u32 4294901760, %v777_v59 }
  0xfe   : > { %1145 = vmatprep.subr.mxu1 %v20672_v52  ;;  %908 = vmatprep.mubr.f32.mxu1 %v26299_v36 }
  0xff   : > { %1147 = vmatpush1.msra.mxu1 %v20662_v39  ;;  %746 = vmatmul.mubr.f32.gmra.mxu0 %v20795_v1  ;;  %v505_v1 = vrot.slane %v504_v4, 1  ;;  %v20856_v17 = vand.u32 4294901760, %v20843_v25 }
 0x100   : > { %910 = vmatmul.mubr.f32.gmra.mxu1 %v20573_v34  ;;  %1149 = vmatprep.subr.mxu1 %v20679_v57  ;;  %v20830_v58 = vpop.eup %20143 }
 0x101   : > { %1151 = vmatpush1.msra.mxu1 %v20665_v44  ;;  %751 = vmatprep.mubr.f32.mxu0 %v26299_v36  ;;  %v506_v28 = vadd.f32 %v505_v1, %v504_v4  ;;  %v799_v1 = vsub.f32 %v20843_v25, %v20856_v17 }
 0x102   : > { %1439 = vmatprep.subr.mxu1 %v20676_v56  ;;  %915 = vmatprep.mubr.f32.mxu1 %v26299_v36  ;;  %v539_v56 = vmul.f32 %v20830_v58, %v20566_v31  ;;  %v20327_v31 = vmov 2  }
 0x103   : > { %757 = vmatmul.mubr.f32.gmra.mxu0 %v20812_v0  ;;  %v788_v0 = vsub.f32 %v20822_v45, %v20840_v29  ;;  %20086 = vset.pattern.permute.xlu0 %v20327_v31  ;;  %v518_v4 = vmul.f32 0.05, %v506_v28 }
 0x104   : > { %917 = vmatmul.mubr.f32.gmra.mxu1 %v20589_v46  ;;  %762 = vmatprep.mubr.f32.mxu0 %v26299_v36  ;;  %v563_v38 = vmul.f32 %v20489_v35, %v539_v56 }
 0x105   : > { %922 = vmatprep.mubr.f32.mxu1 %v26299_v36  ;;  %2456 = vperm.xlu0 %20086, %v20459_v13   ;;  %v20864_v59 = vand.u32 4294901760, %v788_v0  ;;  %v522_v0 = vadd.f32 1e-05, %v518_v4 }
 0x106   : > { %20087 = vset.pattern.permute.xlu1 %v20327_v31  ;;  %v20872_v56 = vadd.f32 %v20495_v43, %v563_v38  ;;  %v20876_v31 = vand.u32 4294901760, %v799_v1  ;;  %v26305_v1 = vand.u32 4294901760, %v20688_v11  ;;  %v26309_v11 = vand.u32 4294901760, %v20704_v23 }
 0x107   : > { %768 = vmatmul.mubr.f32.gmra.mxu0 %v20835_v20  ;;  %2460 = vperm.xlu1 %20087, %v20466_v15   ;;  %20145 = vrsqrt.f32 %v522_v0  ;;  %v26306_v0 = vand.u32 4294901760, %v20692_v14 }
 0x108   : > { %924 = vmatmul.mubr.f32.gmra.mxu1 %v20674_v53  ;;  %773 = vmatprep.mubr.f32.mxu0 %v26299_v36  ;;  %26304 = vst [vmem:[#allocation14_spill] sm:$0xff] %v20872_v56  ;;  %v635_v28 = vsel %vm415_vm0, %v20872_v56, 0  ;;  %v26307_v56 = vand.u32 4294901760, %v20683_v60  ;;  %v20328_v60 = vmov 3  }
 0x109   : > { %929 = vmatprep.mubr.f32.mxu1 %v26299_v36  ;;  %v20887_v38 = vand.u32 4294901760, %v635_v28  ;;  %20088 = vset.pattern.permute.xlu0 %v20328_v60 }
 0x10a   : > { %2488 = vperm.xlu0 %20088, %v20454_v12  }
 0x10b   : > { %779 = vmatmul.mubr.f32.gmra.mxu0 %v20851_v62  ;;  %2464 = vperm.xlu1 %20087, %v20454_v12   ;;  %v20895_v4 = vsub.f32 %v635_v28, %v20887_v38 }
 0x10c   : > { %931 = vmatmul.mubr.f32.gmra.mxu1 %v20713_v5  ;;  %784 = vmatprep.mubr.f32.mxu0 %v26299_v36 }
 0x10d   : > { %936 = vmatprep.mubr.f32.mxu1 %v26299_v36  ;;  %v1744_v14 = vand.u32 4294901760, %v20895_v4 }
 0x10f   : > { %790 = vmatmul.mubr.f32.gmra.mxu0 %v20864_v59  ;;  %20089 = vset.pattern.permute.xlu1 %v20328_v60 }
 0x110   : > { %938 = vmatmul.mubr.f32.gmra.mxu1 %v20759_v32  ;;  %795 = vmatprep.mubr.f32.mxu0 %v26299_v36 }
 0x111   : > { %943 = vmatprep.mubr.f32.mxu1 %v26299_v36  ;;  %2484 = vperm.xlu1 %20089, %v20466_v15  }
 0x113   : > { %801 = vmatmul.mubr.f32.gmra.mxu0 %v20876_v31 }
 0x114   : > { %945 = vmatmul.mubr.f32.gmra.mxu1 %v20783_v2  ;;  %1041 = vmatprep.mubr.f32.mxu0 %v26299_v36 }
 0x115   : > { %950 = vmatprep.mubr.f32.mxu1 %v26299_v36  ;;  %2480 = vperm.xlu1 %20089, %v20459_v13  }
 0x117   : > { %1044 = vmatmul.mubr.f32.vlgmr.msra.gmra.mxu0 %v20584_v40  ;;  %v26308_v40 = vand.u32 4294901760, %v20700_v21  ;;  %v20146_v21 = vpop.eup %20145 }
 0x118   : > { %952 = vmatmul.mubr.f32.gmra.mxu1 %v20803_v26  ;;  %1299 = vmatpush1.msra.mxu0 %v26305_v1  ;;  %v538_v15 = vmul.f32 %v20146_v21, %v20624_v22  ;;  %v530_v13 = vmul.f32 %v20146_v21, %v20608_v61 }
 0x119   : > { %1303 = vmatprep.subr.mxu0 %v26306_v0  ;;  %957 = vmatprep.mubr.f32.mxu1 %v26299_v36 }
 0x11a   : > { %1307 = vmatpush1.msra.mxu0 %v26307_v56  ;;  %1049 = vmatprep.mubr.f32.mxu0 %v26299_v36  ;;  %v562_v22 = vmul.f32 %v20489_v35, %v538_v15 }
 0x11b   : > { %1311 = vmatprep.subr.mxu0 %v26308_v40  ;;  %1052 = vmatmul.mubr.f32.gmra.mxu0 %v20587_v41  ;;  %v1745_v40 = vsub.f32 %v20895_v4, %v1744_v14 }
 0x11c   : > { %959 = vmatmul.mubr.f32.gmra.mxu1 %v20824_v9  ;;  %1315 = vmatpush1.msra.mxu0 %v26309_v11 }
 0x11d   : > { %1573 = vmatprep.subr.mxu0 %v20887_v38  ;;  %1057 = vmatprep.mubr.f32.mxu0 %v26299_v36  ;;  %v1746_v23 = vand.u32 4294901760, %v1745_v40 }
 0x11e   : > { %1184 = vmatprep.mubr.f32.mxu1 %v26299_v36 }
 0x11f   : > { %1060 = vmatmul.mubr.f32.gmra.mxu0 %v20598_v55 }
 0x120   : > { %1188 = vmatmul.mubr.f32.vlgmr.msra.gmra.mxu1 %v20592_v50  ;;  %1065 = vmatprep.mubr.f32.mxu0 %v26299_v36 }
 0x121   : > { %1441 = vmatpush1.msra.mxu1 %v20669_v47  ;;  %1193 = vmatprep.mubr.f32.mxu1 %v26299_v36  ;;  %v531_v47 = vmul.f32 %v20830_v58, %v20561_v27  ;;  %v554_v27 = vmul.f32 %v20497_v48, %v530_v13 }
 0x122   : > { %1443 = vmatprep.subr.mxu1 %v20672_v52 }
 0x123   : > { %1445 = vmatpush1.msra.mxu1 %v20662_v39  ;;  %1068 = vmatmul.mubr.f32.gmra.mxu0 %v20721_v6  ;;  %v535_v39 = vmul.f32 %v20830_v58, %v20564_v30  ;;  %v20946_v30 = vadd.f32 %v20495_v43, %v562_v22 }
 0x124   : > { %1447 = vmatprep.subr.mxu1 %v20679_v57  ;;  %1197 = vmatmul.mubr.f32.gmra.mxu1 %v20595_v51  ;;  %v20974_v57 = vadd.f32 %v20501_v54, %v554_v27 }
 0x125   : > { %1449 = vmatpush1.msra.mxu1 %v20665_v44  ;;  %1073 = vmatprep.mubr.f32.mxu0 %v26299_v36  ;;  %v534_v44 = vmul.f32 %v20146_v21, %v20618_v18  ;;  %26310 = vst [vmem:[#allocation15_spill] sm:$0xff] %v20946_v30  ;;  %v559_v35 = vmul.f32 %v20493_v42, %v535_v39  ;;  %v632_v43 = vsel %vm415_vm0, %v20946_v30, 0 }
 0x126   : > { %1747 = vmatprep.subr.mxu1 %v1746_v23  ;;  %1202 = vmatprep.mubr.f32.mxu1 %v26299_v36  ;;  %v555_v18 = vmul.f32 %v20497_v48, %v531_v47  ;;  %v20971_v48 = vand.u32 4294901760, %v632_v43  ;;  %26314 = vst [vmem:[#allocation19_spill] sm:$0xff] %v20974_v57  ;;  %v20993_v28 = vand.u32 4294901760, %v20974_v57 }
 0x127   : > { %1076 = vmatmul.mubr.f32.gmra.mxu0 %v20749_v19  ;;  %v558_v12 = vmul.f32 %v20493_v42, %v534_v44  ;;  %v20961_v61 = vadd.f32 %v20499_v49, %v559_v35 }
 0x128   : > { %1206 = vmatmul.mubr.f32.gmra.mxu1 %v20611_v63  ;;  %1081 = vmatprep.mubr.f32.mxu0 %v26299_v36  ;;  %v20968_v52 = vadd.f32 %v20501_v54, %v555_v18  ;;  %v20990_v54 = vsub.f32 %v632_v43, %v20971_v48  ;;  %v21014_v40 = vsub.f32 %v20974_v57, %v20993_v28 }
 0x129   : > { %1211 = vmatprep.mubr.f32.mxu1 %v26299_v36  ;;  %26311 = vst [vmem:[#allocation16_spill] sm:$0xff] %v20961_v61  ;;  %v20965_v42 = vadd.f32 %v20499_v49, %v558_v12  ;;  %v20979_v58 = vand.u32 4294901760, %v20961_v61 }
 0x12a   : > { %26313 = vst [vmem:[#allocation18_spill] sm:$0xff] %v20968_v52  ;;  %v20986_v56 = vand.u32 4294901760, %v20968_v52  ;;  %v1750_v60 = vand.u32 4294901760, %v20990_v54  ;;  %v1774_v22 = vand.u32 4294901760, %v21014_v40 }
 0x12b   : > { %1084 = vmatmul.mubr.f32.gmra.mxu0 %v20781_v3  ;;  %26312 = vst [vmem:[#allocation17_spill] sm:$0xff] %v20965_v42  ;;  %v20983_v49 = vand.u32 4294901760, %v20965_v42  ;;  %v20999_v1 = vsub.f32 %v20961_v61, %v20979_v58 }
 0x12c   : > { %1215 = vmatmul.mubr.f32.gmra.mxu1 %v20757_v37  ;;  %1089 = vmatprep.mubr.f32.mxu0 %v26299_v36  ;;  %v21008_v11 = vsub.f32 %v20968_v52, %v20986_v56  ;;  %v1751_v39 = vsub.f32 %v20990_v54, %v1750_v60  ;;  %v1775_v12 = vsub.f32 %v21014_v40, %v1774_v22 }
 0x12d   : > { %1220 = vmatprep.mubr.f32.mxu1 %v26299_v36  ;;  %v21004_v0 = vsub.f32 %v20965_v42, %v20983_v49  ;;  %v1756_v21 = vand.u32 4294901760, %v20999_v1 }
 0x12e   : > { %v26233_v23 = vand.u32 4294901760, %v21008_v11  ;;  %v1752_v35 = vand.u32 4294901760, %v1751_v39 }
 0x12f   : > { %1092 = vmatmul.mubr.f32.gmra.mxu0 %v20801_v7  ;;  %v1762_v15 = vand.u32 4294901760, %v21004_v0  ;;  %v1757_v44 = vsub.f32 %v20999_v1, %v1756_v21 }
 0x130   : > { %1224 = vmatmul.mubr.f32.gmra.mxu1 %v20775_v16  ;;  %1097 = vmatprep.mubr.f32.mxu0 %v26299_v36  ;;  %v1769_v13 = vsub.f32 %v21008_v11, %v26233_v23  ;;  %v1776_v23 = vand.u32 4294901760, %v1775_v12 }
 0x131   : > { %1229 = vmatprep.mubr.f32.mxu1 %v26299_v36  ;;  %v1763_v47 = vsub.f32 %v21004_v0, %v1762_v15  ;;  %v1758_v18 = vand.u32 4294901760, %v1757_v44 }
 0x132   : > { %v1770_v43 = vand.u32 4294901760, %v1769_v13 }
 0x133   : > { %1100 = vmatmul.mubr.f32.gmra.mxu0 %v20822_v45  ;;  %v1764_v27 = vand.u32 4294901760, %v1763_v47 }
 0x134   : > { %1233 = vmatmul.mubr.f32.gmra.mxu1 %v20798_v8  ;;  %1105 = vmatprep.mubr.f32.mxu0 %v26299_v36 }
 0x135   : > { %1238 = vmatprep.mubr.f32.mxu1 %v26299_v36 }
 0x137   : > { %1108 = vmatmul.mubr.f32.gmra.mxu0 %v20843_v25 }
 0x138   : > { %1242 = vmatmul.mubr.f32.gmra.mxu1 %v20819_v24  ;;  %1348 = vmatprep.mubr.f32.mxu0 %v26299_v36 }
 0x139   : > { %1247 = vmatprep.mubr.f32.mxu1 %v26299_v36 }
 0x13b   : > { %1350 = vmatmul.mubr.f32.vlgmr.msra.gmra.mxu0 %v20571_v33 }
 0x13c   : > { %1251 = vmatmul.mubr.f32.gmra.mxu1 %v20840_v29  ;;  %1575 = vmatpush1.msra.mxu0 %v20971_v48 }
 0x13d   : > { %1577 = vmatprep.subr.mxu0 %v20979_v58  ;;  %1256 = vmatprep.mubr.f32.mxu1 %v26299_v36 }
 0x13e   : > { %1579 = vmatpush1.msra.mxu0 %v20983_v49  ;;  %1355 = vmatprep.mubr.f32.mxu0 %v26299_v36 }
 0x13f   : > { %1581 = vmatprep.subr.mxu0 %v20986_v56  ;;  %1357 = vmatmul.mubr.f32.gmra.mxu0 %v20573_v34 }
 0x140   : > { %1260 = vmatmul.mubr.f32.gmra.mxu1 %v20856_v17  ;;  %1583 = vmatpush1.msra.mxu0 %v20993_v28 }
 0x141   : > { %1902 = vmatprep.subr.mxu0 %v20895_v4  ;;  %1362 = vmatprep.mubr.f32.mxu0 %v26299_v36  ;;  %v26317_v4 = vld [vmem:[#allocation12_spill] sm:$0xff] }
 0x142   : > { %1482 = vmatprep.mubr.f32.mxu1 %v26299_v36 }
 0x143   : > { %1364 = vmatmul.mubr.f32.gmra.mxu0 %v20589_v46 }
 0x144   : > { %1484 = vmatmul.mubr.f32.vlgmr.msra.gmra.mxu1 %v20571_v33  ;;  %1369 = vmatprep.mubr.f32.mxu0 %v26299_v36 }
 0x145   : > { %1753 = vmatpush1.msra.mxu1 %v1752_v35  ;;  %1489 = vmatprep.mubr.f32.mxu1 %v26299_v36 }
 0x146   : > { %1759 = vmatprep.subr.mxu1 %v1758_v18 }
 0x147   : > { %1765 = vmatpush1.msra.mxu1 %v1764_v27  ;;  %1371 = vmatmul.mubr.f32.gmra.mxu0 %v20674_v53 }
 0x148   : > { %1771 = vmatprep.subr.mxu1 %v1770_v43  ;;  %1491 = vmatmul.mubr.f32.gmra.mxu1 %v20573_v34 }
 0x149   : > { %1777 = vmatpush1.msra.mxu1 %v1776_v23  ;;  %1376 = vmatprep.mubr.f32.mxu0 %v26299_v36  ;;  %v26315_v23 = vld [vmem:[#allocation10_spill] sm:$0xff] }
 0x14a   : > { %2050 = vmatprep.subr.mxu1 %v20887_v38  ;;  %1496 = vmatprep.mubr.f32.mxu1 %v26299_v36 }
 0x14b   : > { %1378 = vmatmul.mubr.f32.gmra.mxu0 %v20713_v5 }
 0x14c   : > { %1498 = vmatmul.mubr.f32.gmra.mxu1 %v20589_v46  ;;  %1383 = vmatprep.mubr.f32.mxu0 %v26299_v36 }
 0x14d   : > { %1503 = vmatprep.mubr.f32.mxu1 %v26299_v36 }
 0x14f   : > { %1385 = vmatmul.mubr.f32.gmra.mxu0 %v20759_v32 }
 0x150   : > { %1505 = vmatmul.mubr.f32.gmra.mxu1 %v20674_v53  ;;  %1390 = vmatprep.mubr.f32.mxu0 %v26299_v36 }
 0x151   : > { %1510 = vmatprep.mubr.f32.mxu1 %v26299_v36 }
 0x153   : > { %1392 = vmatmul.mubr.f32.gmra.mxu0 %v20783_v2 }
 0x154   : > { %1512 = vmatmul.mubr.f32.gmra.mxu1 %v20713_v5  ;;  %1397 = vmatprep.mubr.f32.mxu0 %v26299_v36 }
 0x155   : > { %1517 = vmatprep.mubr.f32.mxu1 %v26299_v36 }
 0x157   : > { %1399 = vmatmul.mubr.f32.gmra.mxu0 %v20803_v26 }
 0x158   : > { %1519 = vmatmul.mubr.f32.gmra.mxu1 %v20759_v32  ;;  %1404 = vmatprep.mubr.f32.mxu0 %v26299_v36 }
 0x159   : > { %1524 = vmatprep.mubr.f32.mxu1 %v26299_v36 }
 0x15b   : > { %1406 = vmatmul.mubr.f32.gmra.mxu0 %v20824_v9 }
 0x15c   : > { %1526 = vmatmul.mubr.f32.gmra.mxu1 %v20783_v2  ;;  %1616 = vmatprep.mubr.f32.mxu0 %v26299_v36 }
 0x15d   : > { %1531 = vmatprep.mubr.f32.mxu1 %v26299_v36 }
 0x15f   : > { %1622 = vmatmul.mubr.f32.vlgmr.msra.gmra.mxu0 %v20716_v10  ;;  %v26316_v10 = vld [vmem:[#allocation11_spill] sm:$0xff] }
 0x160   : > { %1533 = vmatmul.mubr.f32.gmra.mxu1 %v20803_v26  ;;  %1905 = vmatpush1.msra.mxu0 %v20990_v54 }
 0x161   : > { %1908 = vmatprep.subr.mxu0 %v20999_v1  ;;  %1538 = vmatprep.mubr.f32.mxu1 %v26299_v36 }
 0x162   : > { %1911 = vmatpush1.msra.mxu0 %v21004_v0  ;;  %1627 = vmatprep.mubr.f32.mxu0 %v26299_v36 }
 0x163   : > { %1914 = vmatprep.subr.mxu0 %v21008_v11  ;;  %1633 = vmatmul.mubr.f32.gmra.mxu0 %v26315_v23 }
 0x164   : > { %1540 = vmatmul.mubr.f32.gmra.mxu1 %v20824_v9  ;;  %1917 = vmatpush1.msra.mxu0 %v21014_v40 }
 0x165   : > { %2204 = vmatprep.subr.mxu0 %v1744_v14  ;;  %1638 = vmatprep.mubr.f32.mxu0 %v26299_v36  ;;  %v26318_v14 = vld [vmem:[#allocation13_spill] sm:$0xff] }
 0x166   : > { %1810 = vmatprep.mubr.f32.mxu1 %v26299_v36 }
 0x167   : > { %1644 = vmatmul.mubr.f32.gmra.mxu0 %v26316_v10 }
 0x168   : > { %1812 = vmatmul.mubr.f32.vlgmr.msra.gmra.mxu1 %v20571_v33  ;;  %1649 = vmatprep.mubr.f32.mxu0 %v26299_v36 }
 0x169   : > { %2052 = vmatpush1.msra.mxu1 %v20971_v48  ;;  %1817 = vmatprep.mubr.f32.mxu1 %v26299_v36 }
 0x16a   : > { %2054 = vmatprep.subr.mxu1 %v20979_v58 }
 0x16b   : > { %2056 = vmatpush1.msra.mxu1 %v20983_v49  ;;  %1655 = vmatmul.mubr.f32.gmra.mxu0 %v26317_v4 }
 0x16c   : > { %2058 = vmatprep.subr.mxu1 %v20986_v56  ;;  %1819 = vmatmul.mubr.f32.gmra.mxu1 %v20573_v34 }
 0x16d   : > { %2060 = vmatpush1.msra.mxu1 %v20993_v28  ;;  %1660 = vmatprep.mubr.f32.mxu0 %v26299_v36 }
 0x16e   : > { %2348 = vmatprep.subr.mxu1 %v20887_v38  ;;  %1824 = vmatprep.mubr.f32.mxu1 %v26299_v36 }
 0x16f   : > { %1666 = vmatmul.mubr.f32.gmra.mxu0 %v26318_v14 }
 0x170   : > { %1826 = vmatmul.mubr.f32.gmra.mxu1 %v20589_v46  ;;  %1671 = vmatprep.mubr.f32.mxu0 %v26299_v36 }
 0x171   : > { %1831 = vmatprep.mubr.f32.mxu1 %v26299_v36 }
 0x173   : > { %1677 = vmatmul.mubr.f32.gmra.mxu0 %v20835_v20  ;;  %v26319_v20 = vld [vmem:[#allocation3_spill] sm:$0xff] }
 0x174   : > { %1833 = vmatmul.mubr.f32.gmra.mxu1 %v20674_v53  ;;  %1682 = vmatprep.mubr.f32.mxu0 %v26299_v36 }
 0x175   : > { %1838 = vmatprep.mubr.f32.mxu1 %v26299_v36 }
 0x177   : > { %1688 = vmatmul.mubr.f32.gmra.mxu0 %v20851_v62  ;;  %v26320_v62 = vand.u32 4294901760, %v21008_v11 }
 0x178   : > { %1840 = vmatmul.mubr.f32.gmra.mxu1 %v20713_v5  ;;  %1693 = vmatprep.mubr.f32.mxu0 %v26299_v36 }
 0x179   : > { %1845 = vmatprep.mubr.f32.mxu1 %v26299_v36 }
 0x17b   : > { %1699 = vmatmul.mubr.f32.gmra.mxu0 %v20864_v59 }
 0x17c   : > { %1847 = vmatmul.mubr.f32.gmra.mxu1 %v20759_v32  ;;  %1704 = vmatprep.mubr.f32.mxu0 %v26299_v36 }
 0x17d   : > { %1852 = vmatprep.mubr.f32.mxu1 %v26299_v36 }
 0x17f   : > { %1710 = vmatmul.mubr.f32.gmra.mxu0 %v20876_v31 }
 0x180   : > { %1854 = vmatmul.mubr.f32.gmra.mxu1 %v20783_v2  ;;  %1950 = vmatprep.mubr.f32.mxu0 %v26299_v36 }
 0x181   : > { %1859 = vmatprep.mubr.f32.mxu1 %v26299_v36 }
 0x183   : > { %1953 = vmatmul.mubr.f32.vlgmr.msra.gmra.mxu0 %v26319_v20 }
 0x184   : > { %1861 = vmatmul.mubr.f32.gmra.mxu1 %v20803_v26  ;;  %2208 = vmatpush1.msra.mxu0 %v1750_v60 }
 0x185   : > { %2212 = vmatprep.subr.mxu0 %v1756_v21  ;;  %1866 = vmatprep.mubr.f32.mxu1 %v26299_v36 }
 0x186   : > { %2216 = vmatpush1.msra.mxu0 %v1762_v15  ;;  %1958 = vmatprep.mubr.f32.mxu0 %v26299_v36 }
 0x187   : > { %2220 = vmatprep.subr.mxu0 %v26320_v62  ;;  %1961 = vmatmul.mubr.f32.gmra.mxu0 %v20587_v41 }
 0x188   : > { %1868 = vmatmul.mubr.f32.gmra.mxu1 %v20824_v9  ;;  %2224 = vmatpush1.msra.mxu0 %v1774_v22 }
 0x189   : > { %1966 = vmatprep.mubr.f32.mxu0 %v26299_v36  ;;  %2093 = vmatprep.mubr.f32.mxu1 %v26299_v36 }
 0x18b   : > { %1969 = vmatmul.mubr.f32.gmra.mxu0 %v20598_v55 }
 0x18c   : > { %2097 = vmatmul.mubr.f32.vlgmr.msra.gmra.mxu1 %v20592_v50  ;;  %1974 = vmatprep.mubr.f32.mxu0 %v26299_v36 }
 0x18d   : > { %2350 = vmatpush1.msra.mxu1 %v20971_v48  ;;  %2102 = vmatprep.mubr.f32.mxu1 %v26299_v36 }
 0x18e   : > { %2352 = vmatprep.subr.mxu1 %v20979_v58 }
 0x18f   : > { %2354 = vmatpush1.msra.mxu1 %v20983_v49  ;;  %1977 = vmatmul.mubr.f32.gmra.mxu0 %v20721_v6 }
 0x190   : > { %2356 = vmatprep.subr.mxu1 %v20986_v56  ;;  %2106 = vmatmul.mubr.f32.gmra.mxu1 %v20595_v51 }
 0x191   : > { %2358 = vmatpush1.msra.mxu1 %v20993_v28  ;;  %1982 = vmatprep.mubr.f32.mxu0 %v26299_v36 }
 0x192   : > { %2111 = vmatprep.mubr.f32.mxu1 %v26299_v36 }
 0x193   : > { %1985 = vmatmul.mubr.f32.gmra.mxu0 %v20749_v19 }
 0x194   : > { %2115 = vmatmul.mubr.f32.gmra.mxu1 %v20611_v63  ;;  %1990 = vmatprep.mubr.f32.mxu0 %v26299_v36 }
 0x195   : > { %2120 = vmatprep.mubr.f32.mxu1 %v26299_v36 }
 0x197   : > { %1993 = vmatmul.mubr.f32.gmra.mxu0 %v20781_v3 }
 0x198   : > { %2124 = vmatmul.mubr.f32.gmra.mxu1 %v20757_v37  ;;  %1998 = vmatprep.mubr.f32.mxu0 %v26299_v36 }
 0x199   : > { %2129 = vmatprep.mubr.f32.mxu1 %v26299_v36 }
 0x19b   : > { %2001 = vmatmul.mubr.f32.gmra.mxu0 %v20801_v7 }
 0x19c   : > { %2133 = vmatmul.mubr.f32.gmra.mxu1 %v20775_v16  ;;  %2006 = vmatprep.mubr.f32.mxu0 %v26299_v36 }
 0x19d   : > { %2138 = vmatprep.mubr.f32.mxu1 %v26299_v36 }
 0x19f   : > { %2009 = vmatmul.mubr.f32.gmra.mxu0 %v20822_v45 }
 0x1a0   : > { %2142 = vmatmul.mubr.f32.gmra.mxu1 %v20798_v8  ;;  %2014 = vmatprep.mubr.f32.mxu0 %v26299_v36 }
 0x1a1   : > { %2147 = vmatprep.mubr.f32.mxu1 %v26299_v36 }
 0x1a3   : > { %2017 = vmatmul.mubr.f32.gmra.mxu0 %v20843_v25 }
 0x1a4   : > { %2151 = vmatmul.mubr.f32.gmra.mxu1 %v20819_v24  ;;  %2257 = vmatprep.mubr.f32.mxu0 %v26299_v36 }
 0x1a5   : > { %2156 = vmatprep.mubr.f32.mxu1 %v26299_v36 }
 0x1a7   : > { %2259 = vmatmul.mubr.f32.vlgmr.msra.gmra.mxu0 %v20571_v33 }
 0x1a8   : > { %2160 = vmatmul.mubr.f32.gmra.mxu1 %v20840_v29  ;;  %2264 = vmatprep.mubr.f32.mxu0 %v26299_v36 }
 0x1a9   : > { %2165 = vmatprep.mubr.f32.mxu1 %v26299_v36 }
 0x1ab   : > { %2266 = vmatmul.mubr.f32.gmra.mxu0 %v20573_v34 }
 0x1ac   : > { %2169 = vmatmul.mubr.f32.gmra.mxu1 %v20856_v17  ;;  %2271 = vmatprep.mubr.f32.mxu0 %v26299_v36 }
 0x1ad   : > { %2391 = vmatprep.mubr.f32.mxu1 %v26299_v36 }
 0x1af   : > { %2273 = vmatmul.mubr.f32.gmra.mxu0 %v20589_v46 }
 0x1b0   : > { %2393 = vmatmul.mubr.f32.vlgmr.msra.gmra.mxu1 %v20571_v33  ;;  %2278 = vmatprep.mubr.f32.mxu0 %v26299_v36 }
 0x1b1   : > { %2398 = vmatprep.mubr.f32.mxu1 %v26299_v36 }
 0x1b3   : > { %v714_v19 = vpop.f32.mrf.mxu0  ;;  %2280 = vmatmul.mubr.f32.gmra.mxu0 %v20674_v53 }
 0x1b4   : > { %2400 = vmatmul.mubr.f32.gmra.mxu1 %v20573_v34  ;;  %2285 = vmatprep.mubr.f32.mxu0 %v26299_v36 }
 0x1b5   : > { %v21192_v41 = vpop.f32.mrf.mxu0  ;;  %2405 = vmatprep.mubr.f32.mxu1 %v26299_v36 }
 0x1b7   : > { %v725_v50 = vpop.f32.mrf.mxu0  ;;  %2287 = vmatmul.mubr.f32.gmra.mxu0 %v20713_v5 }
 0x1b8   : > { %2407 = vmatmul.mubr.f32.gmra.mxu1 %v20589_v46  ;;  %2292 = vmatprep.mubr.f32.mxu0 %v26299_v36 }
 0x1b9   : > { %v21198_v33 = vpop.f32.mrf.mxu0  ;;  %2412 = vmatprep.mubr.f32.mxu1 %v26299_v36 }
 0x1bb   : > { %v736_v51 = vpop.f32.mrf.mxu0  ;;  %2294 = vmatmul.mubr.f32.gmra.mxu0 %v20759_v32 }
 0x1bc   : > { %v904_v34 = vpop.f32.mrf.mxu1  ;;  %2414 = vmatmul.mubr.f32.gmra.mxu1 %v20674_v53  ;;  %2299 = vmatprep.mubr.f32.mxu0 %v26299_v36 }
 0x1bd   : > { %v905_v55 = vadd.f32 %v904_v34, %v714_v19  ;;  %v21204_v63 = vpop.f32.mrf.mxu0  ;;  %2419 = vmatprep.mubr.f32.mxu1 %v26299_v36 }
 0x1be   : > { %v21207_v46 = vpop.f32.mrf.mxu1 }
 0x1bf   : > { %v747_v25 = vpop.f32.mrf.mxu0  ;;  %2301 = vmatmul.mubr.f32.gmra.mxu0 %v20783_v2 }
 0x1c0   : > { %v911_v6 = vpop.f32.mrf.mxu1  ;;  %2421 = vmatmul.mubr.f32.gmra.mxu1 %v20713_v5  ;;  %2306 = vmatprep.mubr.f32.mxu0 %v26299_v36 }
 0x1c1   : > { %v912_v37 = vadd.f32 %v911_v6, %v725_v50  ;;  %v21212_v16 = vpop.f32.mrf.mxu0  ;;  %2426 = vmatprep.mubr.f32.mxu1 %v26299_v36 }
 0x1c2   : > { %v21215_v53 = vpop.f32.mrf.mxu1 }
 0x1c3   : > { %v758_v3 = vpop.f32.mrf.mxu0  ;;  %2308 = vmatmul.mubr.f32.gmra.mxu0 %v20803_v26 }
 0x1c4   : > { %v918_v8 = vpop.f32.mrf.mxu1  ;;  %2428 = vmatmul.mubr.f32.gmra.mxu1 %v20759_v32  ;;  %2313 = vmatprep.mubr.f32.mxu0 %v26299_v36 }
 0x1c5   : > { %v919_v7 = vadd.f32 %v918_v8, %v736_v51  ;;  %v21220_v24 = vpop.f32.mrf.mxu0  ;;  %2433 = vmatprep.mubr.f32.mxu1 %v26299_v36 }
 0x1c6   : > { %v21223_v5 = vpop.f32.mrf.mxu1 }
 0x1c7   : > { %v769_v45 = vpop.f32.mrf.mxu0  ;;  %2315 = vmatmul.mubr.f32.gmra.mxu0 %v20824_v9 }
 0x1c8   : > { %v925_v29 = vpop.f32.mrf.mxu1  ;;  %2435 = vmatmul.mubr.f32.gmra.mxu1 %v20783_v2  ;;  %2777 = vmatprep.mubr.f32.mxu0 %v26299_v36 }
 0x1c9   : > { %v926_v17 = vadd.f32 %v925_v29, %v747_v25  ;;  %v21228_v59 = vpop.f32.mrf.mxu0  ;;  %2440 = vmatprep.mubr.f32.mxu1 %v26299_v36 }
 0x1ca   : > { %v21231_v32 = vpop.f32.mrf.mxu1 }
 0x1cb   : > { %v780_v31 = vpop.f32.mrf.mxu0 }
 0x1cc   : > { %v932_v38 = vpop.f32.mrf.mxu1  ;;  %2442 = vmatmul.mubr.f32.gmra.mxu1 %v20803_v26 }
 0x1cd   : > { %v933_v48 = vadd.f32 %v932_v38, %v758_v3  ;;  %v21234_v58 = vpop.f32.mrf.mxu0  ;;  %2447 = vmatprep.mubr.f32.mxu1 %v26299_v36 }
 0x1ce   : > { %26321 = vst [vmem:[#allocation10_spill] sm:$0xff] %v21234_v58  ;;  %v21237_v49 = vpop.f32.mrf.mxu1 }
 0x1cf   : > { %v791_v2 = vpop.f32.mrf.mxu0 }
 0x1d0   : > { %v939_v56 = vpop.f32.mrf.mxu1  ;;  %2449 = vmatmul.mubr.f32.gmra.mxu1 %v20824_v9 }
 0x1d1   : > { %v940_v54 = vadd.f32 %v939_v56, %v769_v45  ;;  %v21240_v28 = vpop.f32.mrf.mxu0  ;;  %2905 = vmatprep.mubr.f32.mxu1 %v26299_v36 }
 0x1d2   : > { %26322 = vst [vmem:[#allocation11_spill] sm:$0xff] %v21240_v28  ;;  %v21243_v1 = vpop.f32.mrf.mxu1 }
 0x1d3   : > { %v802_v0 = vpop.f32.mrf.mxu0 }
 0x1d4   : > { %v946_v26 = vpop.f32.mrf.mxu1 }
 0x1d5   : > { %v947_v11 = vadd.f32 %v946_v26, %v780_v31  ;;  %v21245_v60 = vpop.f32.mrf.mxu0 }
 0x1d6   : > { %26323 = vst [vmem:[#allocation12_spill] sm:$0xff] %v21245_v60  ;;  %v21247_v40 = vpop.f32.mrf.mxu1 }
 0x1d7   : > { %26324 = vst [vmem:[#allocation13_spill] sm:$0xff] %v21247_v40  ;;  %v1045_v21 = vpop.f32.mrf.mxu0 }
 0x1d8   : > { %v953_v15 = vpop.f32.mrf.mxu1  ;;  %v1046_v39 = vadd.f32 %v1045_v21, %v905_v55 }
 0x1d9   : > { %v954_v22 = vadd.f32 %v953_v15, %v791_v2  ;;  %v21249_v44 = vpop.f32.mrf.mxu0 }
 0x1da   : > { %v21251_v9 = vpop.f32.mrf.mxu1 }
 0x1db   : > { %26325 = vst [vmem:[#allocation3_spill] sm:$0xff] %v21251_v9  ;;  %v1053_v47 = vpop.f32.mrf.mxu0 }
 0x1dc   : > { %v960_v13 = vpop.f32.mrf.mxu1  ;;  %v1054_v35 = vadd.f32 %v1053_v47, %v912_v37 }
 0x1dd   : > { %v961_v12 = vadd.f32 %v960_v13, %v802_v0  ;;  %v21253_v18 = vpop.f32.mrf.mxu0 }
 0x1de   : > { %v21255_v27 = vpop.f32.mrf.mxu1 }
 0x1df   : > { %26326 = vst [vmem:[#allocation20_spill] sm:$0xff] %v21255_v27  ;;  %v1061_v43 = vpop.f32.mrf.mxu0 }
 0x1e0   : > { %v1062_v23 = vadd.f32 %v1061_v43, %v919_v7  ;;  %v1189_v10 = vpop.f32.mrf.mxu1 }
 0x1e1   : > { %v1190_v4 = vadd.f32 %v1189_v10, %v1046_v39  ;;  %v21257_v14 = vpop.f32.mrf.mxu0 }
 0x1e2   : > { %v21259_v20 = vpop.f32.mrf.mxu1 }
 0x1e3   : > { %v1069_v62 = vpop.f32.mrf.mxu0 }
 0x1e4   : > { %v1070_v19 = vadd.f32 %v1069_v62, %v926_v17  ;;  %v1198_v50 = vpop.f32.mrf.mxu1 }
 0x1e5   : > { %v1199_v51 = vadd.f32 %v1198_v50, %v1054_v35  ;;  %v21261_v34 = vpop.f32.mrf.mxu0 }
 0x1e6   : > { %v21263_v55 = vpop.f32.mrf.mxu1 }
 0x1e7   : > { %v1077_v25 = vpop.f32.mrf.mxu0 }
 0x1e8   : > { %v1078_v6 = vadd.f32 %v1077_v25, %v933_v48  ;;  %v1207_v37 = vpop.f32.mrf.mxu1 }
 0x1e9   : > { %v1208_v3 = vadd.f32 %v1207_v37, %v1062_v23  ;;  %v21265_v8 = vpop.f32.mrf.mxu0 }
 0x1ea   : > { %v21267_v7 = vpop.f32.mrf.mxu1 }
 0x1eb   : > { %v1085_v45 = vpop.f32.mrf.mxu0 }
 0x1ec   : > { %v1086_v29 = vadd.f32 %v1085_v45, %v940_v54  ;;  %v1216_v31 = vpop.f32.mrf.mxu1 }
 0x1ed   : > { %v1217_v38 = vadd.f32 %v1216_v31, %v1070_v19  ;;  %v21269_v2 = vpop.f32.mrf.mxu0 }
 0x1ee   : > { %v21271_v17 = vpop.f32.mrf.mxu1 }
 0x1ef   : > { %v1093_v56 = vpop.f32.mrf.mxu0 }
 0x1f0   : > { %v1094_v0 = vadd.f32 %v1093_v56, %v947_v11  ;;  %v1225_v26 = vpop.f32.mrf.mxu1 }
 0x1f1   : > { %v1226_v21 = vadd.f32 %v1225_v26, %v1078_v6  ;;  %v21273_v15 = vpop.f32.mrf.mxu0 }
 0x1f2   : > { %26327 = vst [vmem:[#allocation21_spill] sm:$0xff] %v21273_v15  ;;  %v21275_v48 = vpop.f32.mrf.mxu1 }
 0x1f3   : > { %v1101_v39 = vpop.f32.mrf.mxu0 }
 0x1f4   : > { %v1102_v47 = vadd.f32 %v1101_v39, %v954_v22  ;;  %v1234_v13 = vpop.f32.mrf.mxu1 }
 0x1f5   : > { %v1235_v35 = vadd.f32 %v1234_v13, %v1086_v29  ;;  %v21277_v43 = vpop.f32.mrf.mxu0 }
 0x1f6   : > { %26328 = vst [vmem:[#allocation22_spill] sm:$0xff] %v21277_v43  ;;  %v21279_v54 = vpop.f32.mrf.mxu1 }
 0x1f7   : > { %v1109_v23 = vpop.f32.mrf.mxu0 }
 0x1f8   : > { %v1110_v10 = vadd.f32 %v1109_v23, %v961_v12  ;;  %v1243_v62 = vpop.f32.mrf.mxu1 }
 0x1f9   : > { %v1244_v19 = vadd.f32 %v1243_v62, %v1094_v0  ;;  %v21281_v50 = vpop.f32.mrf.mxu0 }
 0x1fa   : > { %26329 = vst [vmem:[#allocation23_spill] sm:$0xff] %v21281_v50  ;;  %v21283_v11 = vpop.f32.mrf.mxu1 }
 0x1fb   : > { %26330 = vst [vmem:[#allocation24_spill] sm:$0xff] %v21283_v11  ;;  %v1351_v25 = vpop.f32.mrf.mxu0 }
 0x1fc   : > { %v1252_v6 = vpop.f32.mrf.mxu1  ;;  %v1352_v37 = vadd.f32 %v1351_v25, %v1190_v4 }
 0x1fd   : > { %v1253_v45 = vadd.f32 %v1252_v6, %v1102_v47  ;;  %v21285_v31 = vpop.f32.mrf.mxu0 }
 0x1fe   : > { %v21287_v22 = vpop.f32.mrf.mxu1 }
 0x1ff   : > { %26331 = vst [vmem:[#allocation25_spill] sm:$0xff] %v21287_v22  ;;  %v1358_v29 = vpop.f32.mrf.mxu0 }
 0x200   : > { %v1261_v56 = vpop.f32.mrf.mxu1  ;;  %v1359_v26 = vadd.f32 %v1358_v29, %v1199_v51 }
 0x201   : > { %v1262_v39 = vadd.f32 %v1261_v56, %v1110_v10  ;;  %v21289_v13 = vpop.f32.mrf.mxu0 }
 0x202   : > { %v21291_v12 = vpop.f32.mrf.mxu1 }
 0x203   : > { %26332 = vst [vmem:[#allocation26_spill] sm:$0xff] %v21291_v12  ;;  %v1365_v0 = vpop.f32.mrf.mxu0 }
 0x204   : > { %v1366_v23 = vadd.f32 %v1365_v0, %v1208_v3  ;;  %v1485_v62 = vpop.f32.mrf.mxu1  ;;  %v21303_v3 = vpop.permute.xlu0 %2456 }
 0x205   : > { %v1486_v52 = vadd.f32 %v1485_v62, %v1352_v37  ;;  %v21293_v30 = vpop.f32.mrf.mxu0  ;;  %v21307_v62 = vpop.permute.xlu1 %2460 }
 0x206   : > { %v21295_v4 = vpop.f32.mrf.mxu1 }
 0x207   : > { %v1372_v47 = vpop.f32.mrf.mxu0 }
 0x208   : > { %v1373_v25 = vadd.f32 %v1372_v47, %v1217_v38  ;;  %v1492_v6 = vpop.f32.mrf.mxu1 }
 0x209   : > { %v1493_v61 = vadd.f32 %v1492_v6, %v1359_v26  ;;  %v21297_v57 = vpop.f32.mrf.mxu0  ;;  %v21312_v6 = vadd.f32 %v21303_v3, %v1486_v52 }
 0x20a   : > { %v21299_v51 = vpop.f32.mrf.mxu1 }
 0x20b   : > { %v1379_v10 = vpop.f32.mrf.mxu0  ;;  %26334 = vst [vmem:[#allocation28_spill] sm:$0xff] %v21312_v6 }
 0x20c   : > { %v1380_v29 = vadd.f32 %v1379_v10, %v1226_v21  ;;  %v1499_v56 = vpop.f32.mrf.mxu1 }
 0x20d   : > { %v1500_v42 = vadd.f32 %v1499_v56, %v1366_v23  ;;  %v21301_v36 = vpop.f32.mrf.mxu0 }
 0x20e   : > { %v21305_v37 = vpop.f32.mrf.mxu1 }
 0x20f   : > { %v1386_v0 = vpop.f32.mrf.mxu0 }
 0x210   : > { %v1387_v38 = vadd.f32 %v1386_v0, %v1235_v35  ;;  %v1506_v47 = vpop.f32.mrf.mxu1  ;;  %v21323_v35 = vadd.f32 %v21307_v62, %v1493_v61  ;;  %v21327_v0 = vpop.permute.xlu1 %2464 }
 0x211   : > { %v21309_v26 = vadd.f32 %v1506_v47, %v1373_v25  ;;  %v21314_v12 = vpop.f32.mrf.mxu0 }
 0x212   : > { %v21316_v21 = vpop.f32.mrf.mxu1  ;;  %26336 = vst [vmem:[#allocation30_spill] sm:$0xff] %v21323_v35 }
 0x213   : > { %26333 = vst [vmem:[#allocation27_spill] sm:$0xff] %v21309_v26  ;;  %v2503_v23 = vmul.f32 %v21312_v6, %v21309_v26  ;;  %v1393_v10 = vpop.f32.mrf.mxu0 }
 0x214   : > { %v1394_v56 = vadd.f32 %v1393_v10, %v1244_v19  ;;  %v1513_v22 = vpop.f32.mrf.mxu1 }
 0x215   : > { %v21320_v11 = vadd.f32 %v1513_v22, %v1380_v29  ;;  %v21325_v25 = vpop.f32.mrf.mxu0  ;;  %v21336_v22 = vadd.f32 %v21327_v0, %v1500_v42 }
 0x216   : > { %26337 = vst [vmem:[#allocation31_spill] sm:$0xff] %v21325_v25  ;;  %v21329_v52 = vpop.f32.mrf.mxu1 }
 0x217   : > { %26335 = vst [vmem:[#allocation29_spill] sm:$0xff] %v21320_v11  ;;  %v2507_v47 = vmul.f32 %v21323_v35, %v21320_v11  ;;  %v1400_v50 = vpop.f32.mrf.mxu0  ;;  %26339 = vst [vmem:[#allocation33_spill] sm:$0xff] %v21336_v22 }
 0x218   : > { %v1401_v43 = vadd.f32 %v1400_v50, %v1253_v45  ;;  %v1520_v15 = vpop.f32.mrf.mxu1 }
 0x219   : > { %v2515_v27 = vadd.f32 %v2507_v47, %v2503_v23  ;;  %v21333_v19 = vadd.f32 %v1520_v15, %v1387_v38  ;;  %v21338_v61 = vpop.f32.mrf.mxu0 }
 0x21a   : > { %26340 = vst [vmem:[#allocation34_spill] sm:$0xff] %v21338_v61  ;;  %v21340_v29 = vpop.f32.mrf.mxu1 }
 0x21b   : > { %26338 = vst [vmem:[#allocation32_spill] sm:$0xff] %v21333_v19  ;;  %v2511_v10 = vmul.f32 %v21336_v22, %v21333_v19  ;;  %v1407_v25 = vpop.f32.mrf.mxu0 }
 0x21c   : > { %v1408_v60 = vadd.f32 %v1407_v25, %v1262_v39  ;;  %v1527_v9 = vpop.f32.mrf.mxu1 }
 0x21d   : > { %v2516_v28 = vsel %vm415_vm0, %v2511_v10, 0.0  ;;  %v21345_v50 = vadd.f32 %v1527_v9, %v1394_v56  ;;  %v21347_v45 = vpop.f32.mrf.mxu0 }
 0x21e   : > { %26342 = vst [vmem:[#allocation36_spill] sm:$0xff] %v21347_v45  ;;  %v21349_v15 = vadd.f32 %v2516_v28, %v2515_v27  ;;  %v21351_v42 = vpop.f32.mrf.mxu1 }
 0x21f   : > { %26341 = vst [vmem:[#allocation35_spill] sm:$0xff] %v21345_v50  ;;  %26344 = vst [vmem:[#allocation38_spill] sm:$0xff] %v21351_v42  ;;  %v1623_v38 = vpop.f32.mrf.mxu0 }
 0x220   : > { %26343 = vst [vmem:[#allocation37_spill] sm:$0xff] %v21349_v15  ;;  %v1534_v23 = vpop.f32.mrf.mxu1 }
 0x221   : > { %v21353_v47 = vadd.f32 %v1534_v23, %v1401_v43  ;;  %v21355_v61 = vpop.f32.mrf.mxu0 }
 0x222   : > { %v21357_v40 = vpop.f32.mrf.mxu1 }
 0x223   : > { %26345 = vst [vmem:[#allocation39_spill] sm:$0xff] %v21353_v47  ;;  %26346 = vst [vmem:[#allocation40_spill] sm:$0xff] %v21357_v40  ;;  %v1634_v39 = vpop.f32.mrf.mxu0 }
 0x224   : > { %v1541_v25 = vpop.f32.mrf.mxu1 }
 0x225   : > { %v21359_v58 = vadd.f32 %v1541_v25, %v1408_v60  ;;  %v21361_v9 = vpop.f32.mrf.mxu0 }
 0x226   : > { %26348 = vst [vmem:[#allocation42_spill] sm:$0xff] %v21361_v9  ;;  %v21363_v56 = vpop.f32.mrf.mxu1 }
 0x227   : > { %26347 = vst [vmem:[#allocation41_spill] sm:$0xff] %v21359_v58  ;;  %26349 = vst [vmem:[#allocation43_spill] sm:$0xff] %v21363_v56  ;;  %v1645_v28 = vpop.f32.mrf.mxu0 }
 0x228   : > { %v1813_v27 = vpop.f32.mrf.mxu1 }
 0x229   : > { %v1814_v10 = vadd.f32 %v1813_v27, %v1623_v38  ;;  %v21365_v50 = vpop.f32.mrf.mxu0 }
 0x22a   : > { %26350 = vst [vmem:[#allocation44_spill] sm:$0xff] %v21365_v50  ;;  %v21367_v42 = vpop.f32.mrf.mxu1 }
 0x22b   : > { %v1656_v43 = vpop.f32.mrf.mxu0 }
 0x22c   : > { %v1820_v23 = vpop.f32.mrf.mxu1 }
 0x22d   : > { %v1821_v47 = vadd.f32 %v1820_v23, %v1634_v39  ;;  %v21369_v45 = vpop.f32.mrf.mxu0 }
 0x22e   : > { %26351 = vst [vmem:[#allocation45_spill] sm:$0xff] %v21369_v45  ;;  %v21371_v40 = vpop.f32.mrf.mxu1 }
 0x22f   : > { %26352 = vst [vmem:[#allocation46_spill] sm:$0xff] %v21371_v40  ;;  %v1667_v60 = vpop.f32.mrf.mxu0 }
 0x230   : > { %v1827_v25 = vpop.f32.mrf.mxu1 }
 0x231   : > { %v1828_v58 = vadd.f32 %v1827_v25, %v1645_v28  ;;  %v21373_v22 = vpop.f32.mrf.mxu0 }
 0x232   : > { %26353 = vst [vmem:[#allocation47_spill] sm:$0xff] %v21373_v22  ;;  %v21375_v56 = vpop.f32.mrf.mxu1 }
 0x233   : > { %26354 = vst [vmem:[#allocation48_spill] sm:$0xff] %v21375_v56  ;;  %v1678_v35 = vpop.f32.mrf.mxu0 }
 0x234   : > { %v1834_v38 = vpop.f32.mrf.mxu1 }
 0x235   : > { %v21377_v27 = vadd.f32 %v1834_v38, %v1656_v43  ;;  %v21379_v6 = vpop.f32.mrf.mxu0 }
 0x236   : > { %26356 = vst [vmem:[#allocation50_spill] sm:$0xff] %v21379_v6  ;;  %v21381_v19 = vpop.f32.mrf.mxu1 }
 0x237   : > { %26355 = vst [vmem:[#allocation49_spill] sm:$0xff] %v21377_v27  ;;  %26357 = vst [vmem:[#allocation51_spill] sm:$0xff] %v21381_v19  ;;  %v1689_v39 = vpop.f32.mrf.mxu0 }
 0x238   : > { %v1841_v23 = vpop.f32.mrf.mxu1 }
 0x239   : > { %v21383_v45 = vadd.f32 %v1841_v23, %v1667_v60  ;;  %v21385_v11 = vpop.f32.mrf.mxu0 }
 0x23a   : > { %26359 = vst [vmem:[#allocation53_spill] sm:$0xff] %v21385_v11  ;;  %v21387_v26 = vpop.f32.mrf.mxu1 }
 0x23b   : > { %26358 = vst [vmem:[#allocation52_spill] sm:$0xff] %v21383_v45  ;;  %26360 = vst [vmem:[#allocation54_spill] sm:$0xff] %v21387_v26  ;;  %v1700_v28 = vpop.f32.mrf.mxu0 }
 0x23c   : > { %v1848_v25 = vpop.f32.mrf.mxu1 }
 0x23d   : > { %v21389_v22 = vadd.f32 %v1848_v25, %v1678_v35  ;;  %v21391_v15 = vpop.f32.mrf.mxu0 }
 0x23e   : > { %26362 = vst [vmem:[#allocation56_spill] sm:$0xff] %v21391_v15  ;;  %v21393_v43 = vpop.f32.mrf.mxu1 }
 0x23f   : > { %26361 = vst [vmem:[#allocation55_spill] sm:$0xff] %v21389_v22  ;;  %26363 = vst [vmem:[#allocation57_spill] sm:$0xff] %v21393_v43  ;;  %v1711_v38 = vpop.f32.mrf.mxu0 }
 0x240   : > { %v1855_v6 = vpop.f32.mrf.mxu1 }
 0x241   : > { %v1856_v27 = vadd.f32 %v1855_v6, %v1689_v39  ;;  %v21395_v19 = vpop.f32.mrf.mxu0 }
 0x242   : > { %26364 = vst [vmem:[#allocation58_spill] sm:$0xff] %v21395_v19  ;;  %v21397_v56 = vpop.f32.mrf.mxu1 }
 0x243   : > { %26365 = vst [vmem:[#allocation59_spill] sm:$0xff] %v21397_v56  ;;  %v1954_v60 = vpop.f32.mrf.mxu0 }
 0x244   : > { %v1862_v23 = vpop.f32.mrf.mxu1  ;;  %v1955_v11 = vadd.f32 %v1954_v60, %v1814_v10 }
 0x245   : > { %v1863_v45 = vadd.f32 %v1862_v23, %v1700_v28  ;;  %v21399_v26 = vpop.f32.mrf.mxu0 }
 0x246   : > { %v21401_v50 = vpop.f32.mrf.mxu1 }
 0x247   : > { %26366 = vst [vmem:[#allocation60_spill] sm:$0xff] %v21401_v50  ;;  %v1962_v35 = vpop.f32.mrf.mxu0 }
 0x248   : > { %v1869_v25 = vpop.f32.mrf.mxu1  ;;  %v1963_v15 = vadd.f32 %v1962_v35, %v1821_v47 }
 0x249   : > { %v1870_v22 = vadd.f32 %v1869_v25, %v1711_v38  ;;  %v21403_v43 = vpop.f32.mrf.mxu0 }
 0x24a   : > { %v21405_v40 = vpop.f32.mrf.mxu1 }
 0x24b   : > { %26367 = vst [vmem:[#allocation61_spill] sm:$0xff] %v21405_v40  ;;  %v1970_v6 = vpop.f32.mrf.mxu0 }
 0x24c   : > { %v1971_v39 = vadd.f32 %v1970_v6, %v1828_v58  ;;  %v2098_v19 = vpop.f32.mrf.mxu1 }
 0x24d   : > { %v21407_v56 = vadd.f32 %v2098_v19, %v1955_v11  ;;  %v21409_v9 = vpop.f32.mrf.mxu0 }
 0x24e   : > { %v21411_v10 = vpop.f32.mrf.mxu1 }
 0x24f   : > { %v21413_v28 = vpop.f32.mrf.mxu0 }
 0x250   : > { %26368 = vst [vmem:[#allocation62_spill] sm:$0xff] %v21413_v28  ;;  %v2107_v60 = vpop.f32.mrf.mxu1 }
 0x251   : > { %v21415_v23 = vadd.f32 %v2107_v60, %v1963_v15  ;;  %v21417_v47 = vpop.f32.mrf.mxu0 }
 0x252   : > { %26369 = vst [vmem:[#allocation63_spill] sm:$0xff] %v21417_v47  ;;  %v21419_v38 = vpop.f32.mrf.mxu1 }
 0x253   : > { %v21421_v35 = vpop.f32.mrf.mxu0 }
 0x254   : > { %26370 = vst [vmem:[#allocation64_spill] sm:$0xff] %v21421_v35  ;;  %v2116_v25 = vpop.f32.mrf.mxu1 }
 0x255   : > { %v21423_v58 = vadd.f32 %v2116_v25, %v1971_v39  ;;  %v21425_v11 = vpop.f32.mrf.mxu0  ;;  %v921_v25 = vadd.f32 %v21223_v5, %v21204_v63  ;;  %v935_v63 = vadd.f32 %v21237_v49, %v21220_v24 }
 0x256   : > { %26372 = vst [vmem:[#allocation66_spill] sm:$0xff] %v21425_v11  ;;  %v21427_v19 = vpop.f32.mrf.mxu1 }
 0x257   : > { %26371 = vst [vmem:[#allocation65_spill] sm:$0xff] %v21423_v58  ;;  %v21429_v6 = vpop.f32.mrf.mxu0 }
 0x258   : > { %26373 = vst [vmem:[#allocation67_spill] sm:$0xff] %v21429_v6  ;;  %v21431_v40 = vpop.f32.mrf.mxu1  ;;  %v914_v6 = vadd.f32 %v21215_v53, %v21198_v33  ;;  %v928_v33 = vadd.f32 %v21231_v32, %v21212_v16 }
 0x259   : > { %26374 = vst [vmem:[#allocation68_spill] sm:$0xff] %v21431_v40  ;;  %v21433_v50 = vpop.f32.mrf.mxu0 }
 0x25a   : > { %26375 = vst [vmem:[#allocation69_spill] sm:$0xff] %v21433_v50  ;;  %v21435_v15 = vpop.f32.mrf.mxu1  ;;  %v1056_v5 = vadd.f32 %v21253_v18, %v914_v6 }
 0x25b   : > { %26376 = vst [vmem:[#allocation70_spill] sm:$0xff] %v21435_v15  ;;  %v2002_v60 = vpop.f32.mrf.mxu0  ;;  %v942_v15 = vadd.f32 %v21243_v1, %v21228_v59 }
 0x25c   : > { %v2003_v47 = vadd.f32 %v2002_v60, %v1856_v27  ;;  %v21437_v28 = vpop.f32.mrf.mxu1  ;;  %v1064_v27 = vadd.f32 %v21257_v14, %v921_v25 }
 0x25d   : > { %v21439_v35 = vpop.f32.mrf.mxu0  ;;  %v1088_v59 = vadd.f32 %v21269_v2, %v942_v15 }
 0x25e   : > { %26377 = vst [vmem:[#allocation71_spill] sm:$0xff] %v21439_v35  ;;  %v21441_v39 = vpop.f32.mrf.mxu1  ;;  %v907_v35 = vadd.f32 %v21207_v46, %v21192_v41  ;;  %v1210_v53 = vadd.f32 %v21267_v7, %v1064_v27  ;;  %v1080_v41 = vadd.f32 %v21265_v8, %v935_v63  ;;  %v1072_v7 = vadd.f32 %v21261_v34, %v928_v33  ;;  %v26379_v33 = vld [vmem:[#allocation46_spill] sm:$0xff] }
 0x25f   : > { %v2010_v11 = vpop.f32.mrf.mxu0  ;;  %v1237_v49 = vadd.f32 %v21279_v54, %v1088_v59  ;;  %v1816_v63 = vadd.f32 %v21367_v42, %v21355_v61 }
 0x260   : > { %v2011_v40 = vadd.f32 %v2010_v11, %v1863_v45  ;;  %v21447_v58 = vpop.f32.mrf.mxu1  ;;  %v1048_v14 = vadd.f32 %v21249_v44, %v907_v35  ;;  %v1201_v45 = vadd.f32 %v21263_v55, %v1056_v5  ;;  %v1368_v18 = vadd.f32 %v21293_v30, %v1210_v53 }
 0x261   : > { %v21452_v60 = vpop.f32.mrf.mxu0  ;;  %v1228_v44 = vadd.f32 %v21275_v48, %v1080_v41  ;;  %v1389_v54 = vadd.f32 %v21314_v12, %v1237_v49  ;;  %v1219_v30 = vadd.f32 %v21271_v17, %v1072_v7  ;;  %v26380_v7 = vld [vmem:[#allocation44_spill] sm:$0xff] }
 0x262   : > { %v21459_v50 = vpop.f32.mrf.mxu1  ;;  %v1192_v32 = vadd.f32 %v21259_v20, %v1048_v14  ;;  %v1361_v55 = vadd.f32 %v21289_v13, %v1201_v45  ;;  %v1502_v8 = vadd.f32 %v21305_v37, %v1368_v18  ;;  %v1957_v45 = vadd.f32 %v21399_v26, %v1816_v63 }
 0x263   : > { %v2018_v1 = vpop.f32.mrf.mxu0  ;;  %v1382_v20 = vadd.f32 %v21301_v36, %v1228_v44  ;;  %v21487_v48 = vadd.f32 %v21340_v29, %v1389_v54  ;;  %v1375_v12 = vadd.f32 %v21297_v57, %v1219_v30  ;;  %v26381_v44 = vld [vmem:[#allocation48_spill] sm:$0xff] }
 0x264   : > { %v2019_v46 = vadd.f32 %v2018_v1, %v1870_v22  ;;  %v2152_v24 = vpop.f32.mrf.mxu1  ;;  %v1495_v35 = vadd.f32 %v21299_v51, %v1361_v55  ;;  %v2101_v18 = vadd.f32 %v21411_v10, %v1957_v45 }
 0x265   : > { %v21470_v11 = vadd.f32 %v2152_v24, %v2003_v47  ;;  %v21472_v16 = vpop.f32.mrf.mxu0  ;;  %v1354_v47 = vadd.f32 %v21285_v31, %v1192_v32  ;;  %v21494_v15 = vadd.f32 %v21329_v52, %v1382_v20  ;;  %v21499_v31 = vadd.f32 %v21327_v0, %v1502_v8 }
 0x266   : > { %v21478_v2 = vpop.f32.mrf.mxu1  ;;  %v21502_v51 = vadd.f32 %v21307_v62, %v1495_v35 }
 0x267   : > { %v2260_v22 = vpop.f32.mrf.mxu0  ;;  %v1488_v37 = vadd.f32 %v21295_v4, %v1354_v47  ;;  %v2512_v4 = vmul.f32 %v21499_v31, %v21487_v48 }
 0x268   : > { %v2161_v34 = vpop.f32.mrf.mxu1  ;;  %v2508_v27 = vmul.f32 %v21502_v51, %v21494_v15  ;;  %v2261_v59 = vadd.f32 %v2260_v22, %v21407_v56  ;;  %v1830_v56 = vadd.f32 %v26381_v44, %v26380_v7  ;;  %v26382_v22 = vld [vmem:[#allocation37_spill] sm:$0xff]  ;;  %v26391_v44 = vld [vmem:[#allocation47_spill] sm:$0xff] }
 0x269   : > { %v21489_v13 = vadd.f32 %v2161_v34, %v2011_v40  ;;  %v2262_v6 = vpop.f32.mrf.mxu0  ;;  %v21505_v40 = vadd.f32 %v21316_v21, %v1375_v12  ;;  %v21512_v25 = vadd.f32 %v21303_v3, %v1488_v37  ;;  %v26378_v21 = vld [vmem:[#allocation42_spill] sm:$0xff]  ;;  %v2518_v30 = vrot.slane %v26382_v22, 4  ;;  %v26383_v34 = vld [vmem:[#allocation27_spill] sm:$0xff] }
 0x26a   : > { %v21496_v17 = vpop.f32.mrf.mxu1  ;;  %v1823_v53 = vadd.f32 %v26379_v33, %v26378_v21  ;;  %v1973_v20 = vadd.f32 %v21409_v9, %v1830_v56  ;;  %v26386_v21 = vld [vmem:[#allocation65_spill] sm:$0xff]  ;;  %v26392_v56 = vld [vmem:[#allocation54_spill] sm:$0xff] }
 0x26b   : > { %v2267_v36 = vpop.f32.mrf.mxu0  ;;  %v2504_v14 = vmul.f32 %v21512_v25, %v21505_v40  ;;  %v21545_v9 = vadd.f32 %v2518_v30, %v26382_v22  ;;  %v26394_v22 = vld [vmem:[#allocation64_spill] sm:$0xff] }
 0x26c   : > { %v2170_v29 = vpop.f32.mrf.mxu1  ;;  %v1965_v24 = vadd.f32 %v21403_v43, %v1823_v53  ;;  %v2268_v8 = vadd.f32 %v2267_v36, %v21415_v23  ;;  %v2263_v43 = vadd.f32 %v2262_v6, %v2101_v18  ;;  %v2119_v63 = vadd.f32 %v21427_v19, %v1973_v20 }
 0x26d   : > { %v21509_v57 = vadd.f32 %v2170_v29, %v2019_v46  ;;  %v2269_v52 = vpop.f32.mrf.mxu0  ;;  %v2525_v46 = vsel %vm415_vm0, %v2512_v4, 0.0  ;;  %v2524_v42 = vadd.f32 %v2508_v27, %v2504_v14  ;;  %v26384_v4 = vld [vmem:[#allocation49_spill] sm:$0xff]  ;;  %v26387_v14 = vld [vmem:[#allocation68_spill] sm:$0xff] }
 0x26e   : > { %v21518_v5 = vpop.f32.mrf.mxu1  ;;  %v2110_v55 = vadd.f32 %v21419_v38, %v1965_v24  ;;  %v26385_v38 = vld [vmem:[#allocation62_spill] sm:$0xff]  ;;  %v26388_v24 = vld [vmem:[#allocation29_spill] sm:$0xff] }
 0x26f   : > { %v2274_v1 = vpop.f32.mrf.mxu0  ;;  %v21535_v47 = vadd.f32 %v2525_v46, %v2524_v42  ;;  %v1979_v27 = vadd.f32 %v26385_v38, %v26384_v4  ;;  %v26397_v38 = vld [vmem:[#allocation66_spill] sm:$0xff] }
 0x270   : > { %v2394_v41 = vpop.f32.mrf.mxu1  ;;  %v2270_v10 = vadd.f32 %v2269_v52, %v2110_v55  ;;  %v2275_v33 = vadd.f32 %v2274_v1, %v26386_v21  ;;  %v26389_v1 = vld [vmem:[#allocation45_spill] sm:$0xff]  ;;  %v1844_v55 = vadd.f32 %v26392_v56, %v26391_v44 }
 0x271   : > { %v2395_v49 = vadd.f32 %v2394_v41, %v2261_v59  ;;  %v2276_v61 = vpop.f32.mrf.mxu0  ;;  %v2527_v52 = vrot.slane %v21535_v47, 4  ;;  %v2126_v45 = vadd.f32 %v26387_v14, %v1979_v27  ;;  %v26399_v14 = vld [vmem:[#allocation32_spill] sm:$0xff]  ;;  %v26403_v56 = vld [vmem:[#allocation69_spill] sm:$0xff] }
 0x272   : > { %v2396_v32 = vpop.f32.mrf.mxu1  ;;  %v2277_v46 = vadd.f32 %v2276_v61, %v2119_v63  ;;  %v1989_v27 = vadd.f32 %v26397_v38, %v1844_v55  ;;  %v26404_v55 = vld [vmem:[#allocation70_spill] sm:$0xff] }
 0x273   : > { %v2469_v26 = vadd.f32 %v21303_v3, %v2395_v49  ;;  %v2281_v54 = vpop.f32.mrf.mxu0  ;;  %v2397_v23 = vadd.f32 %v2396_v32, %v2263_v43  ;;  %v26390_v32 = vld [vmem:[#allocation51_spill] sm:$0xff] }
 0x274   : > { %v2401_v35 = vpop.f32.mrf.mxu1  ;;  %v1837_v7 = vadd.f32 %v26390_v32, %v26389_v1  ;;  %v2282_v20 = vadd.f32 %v2281_v54, %v2126_v45  ;;  %v26400_v45 = vld [vmem:[#allocation55_spill] sm:$0xff] }
 0x275   : > { %v2557_v37 = vmul.f32 %v2469_v26, %v26383_v34  ;;  %v2402_v12 = vadd.f32 %v2401_v35, %v2268_v8  ;;  %v2283_v29 = vpop.f32.mrf.mxu0  ;;  %v26393_v8 = vld [vmem:[#allocation52_spill] sm:$0xff]  ;;  %v2470_v43 = vadd.f32 %v21303_v3, %v2397_v23 }
 0x276   : > { %v2403_v36 = vpop.f32.mrf.mxu1  ;;  %v1987_v30 = vadd.f32 %v26394_v22, %v26393_v8 }
 0x277   : > { %v2473_v53 = vadd.f32 %v21307_v62, %v2402_v12  ;;  %v2404_v6 = vadd.f32 %v2403_v36, %v2270_v10  ;;  %v2288_v59 = vpop.f32.mrf.mxu0  ;;  %v26396_v12 = vld [vmem:[#allocation57_spill] sm:$0xff] }
 0x278   : > { %v2408_v41 = vpop.f32.mrf.mxu1  ;;  %v2135_v36 = vadd.f32 %v21437_v28, %v1987_v30 }
 0x279   : > { %v2561_v49 = vmul.f32 %v2473_v53, %v26388_v24  ;;  %v2474_v42 = vadd.f32 %v21307_v62, %v2404_v6  ;;  %v2409_v19 = vadd.f32 %v2408_v41, %v2275_v33  ;;  %v2290_v18 = vpop.f32.mrf.mxu0  ;;  %v26395_v62 = vld [vmem:[#allocation50_spill] sm:$0xff]  ;;  %v26398_v33 = vld [vmem:[#allocation63_spill] sm:$0xff]  ;;  %v2137_v24 = vadd.f32 %v21441_v39, %v1989_v27 }
 0x27a   : > { %v2410_v35 = vpop.f32.mrf.mxu1  ;;  %v1851_v4 = vadd.f32 %v26396_v12, %v26395_v62  ;;  %v1981_v6 = vadd.f32 %v26398_v33, %v1837_v7  ;;  %v26401_v41 = vld [vmem:[#allocation67_spill] sm:$0xff]  ;;  %v26402_v7 = vld [vmem:[#allocation28_spill] sm:$0xff] }
 0x27b   : > { %v2585_v61 = vadd.f32 %v2561_v49, %v2557_v37  ;;  %v2477_v10 = vadd.f32 %v21327_v0, %v2409_v19  ;;  %v2411_v34 = vadd.f32 %v2410_v35, %v2277_v46  ;;  %v2562_v63 = vmul.f32 %v2474_v42, %v21494_v15  ;;  %v2295_v37 = vpop.f32.mrf.mxu0 }
 0x27c   : > { %v2415_v21 = vpop.f32.mrf.mxu1  ;;  %v1995_v46 = vadd.f32 %v26401_v41, %v26400_v45  ;;  %v2558_v49 = vmul.f32 %v2470_v43, %v21505_v40  ;;  %v2289_v19 = vadd.f32 %v2288_v59, %v2135_v36  ;;  %v2128_v8 = vadd.f32 %v26404_v55, %v1981_v6  ;;  %v26405_v36 = vld [vmem:[#allocation30_spill] sm:$0xff] }
 0x27d   : > { %v2565_v3 = vmul.f32 %v2477_v10, %v26399_v14  ;;  %v2478_v54 = vadd.f32 %v21327_v0, %v2411_v34  ;;  %v2416_v23 = vadd.f32 %v2415_v21, %v2282_v20  ;;  %v1997_v0 = vadd.f32 %v26403_v56, %v1851_v4  ;;  %v2297_v59 = vpop.f32.mrf.mxu0 }
 0x27e   : > { %v2417_v28 = vpop.f32.mrf.mxu1  ;;  %v2594_v22 = vadd.f32 %v2562_v63, %v2558_v49  ;;  %v2144_v39 = vadd.f32 %v21447_v58, %v1995_v46  ;;  %v2291_v20 = vadd.f32 %v2290_v18, %v2137_v24  ;;  %v2528_v4 = vadd.f32 %v2527_v52, %v21535_v47  ;;  %v26406_v49 = vld [vmem:[#allocation33_spill] sm:$0xff] }
 0x27f   : > { %v2586_v15 = vsel %vm415_vm0, %v2565_v3, 0.0  ;;  %v2566_v1 = vmul.f32 %v2478_v54, %v21487_v48  ;;  %v2505_v32 = vmul.f32 %v2469_v26, %v2416_v23  ;;  %v2555_v44 = vmul.f32 %v26402_v7, %v2416_v23 }
 0x280   : > { %v2587_v30 = vadd.f32 %v2586_v15, %v2585_v61  ;;  %v2422_v35 = vpop.f32.mrf.mxu1  ;;  %v2146_v62 = vadd.f32 %v21459_v50, %v1997_v0  ;;  %v2284_v48 = vadd.f32 %v2283_v29, %v2128_v8  ;;  %v2296_v21 = vadd.f32 %v2295_v37, %v2144_v39 }
 0x281   : > { %v2595_v40 = vsel %vm415_vm0, %v2566_v1, 0.0  ;;  %v2423_v34 = vadd.f32 %v2422_v35, %v2289_v19  ;;  %v2520_v46 = vrot.slane %v21545_v9, 2  ;;  %v2529_v47 = vrot.slane %v2528_v4, 2 }
 0x282   : > { %v2588_v26 = vrot.slane %v2587_v30, 4  ;;  %v2596_v12 = vadd.f32 %v2595_v40, %v2594_v22  ;;  %v2424_v38 = vpop.f32.mrf.mxu1  ;;  %v2298_v33 = vadd.f32 %v2297_v59, %v2146_v62  ;;  %v2418_v58 = vadd.f32 %v2417_v28, %v2284_v48 }
 0x283   : > { %v2509_v27 = vmul.f32 %v2473_v53, %v2423_v34  ;;  %v2559_v63 = vmul.f32 %v26405_v36, %v2423_v34  ;;  %v2425_v61 = vadd.f32 %v2424_v38, %v2291_v20 }
 0x284   : > { %v2429_v18 = vpop.f32.mrf.mxu1  ;;  %v2589_v6 = vadd.f32 %v2588_v26, %v2587_v30  ;;  %v2597_v14 = vrot.slane %v2596_v12, 4  ;;  %v2506_v52 = vmul.f32 %v2470_v43, %v2418_v58  ;;  %v2556_v24 = vmul.f32 %v21512_v25, %v2418_v58 }
 0x285   : > { %v2533_v3 = vadd.f32 %v2509_v27, %v2505_v32  ;;  %v2567_v23 = vadd.f32 %v2559_v63, %v2555_v44  ;;  %v2510_v45 = vmul.f32 %v2474_v42, %v2425_v61  ;;  %v2560_v50 = vmul.f32 %v21502_v51, %v2425_v61 }
 0x286   : > { %v2430_v29 = vadd.f32 %v2429_v18, %v2296_v21  ;;  %v2431_v41 = vpop.f32.mrf.mxu1  ;;  %v2590_v28 = vrot.slane %v2589_v6, 2  ;;  %v2598_v15 = vadd.f32 %v2597_v14, %v2596_v12 }
 0x287   : > { %v2432_v53 = vadd.f32 %v2431_v41, %v2298_v33  ;;  %v2542_v42 = vadd.f32 %v2510_v45, %v2506_v52  ;;  %v2576_v7 = vadd.f32 %v2560_v50, %v2556_v24 }
 0x288   : > { %v2513_v37 = vmul.f32 %v2477_v10, %v2430_v29  ;;  %v2563_v19 = vmul.f32 %v26406_v49, %v2430_v29  ;;  %v2521_v10 = vadd.f32 %v2520_v46, %v21545_v9  ;;  %v2591_v22 = vadd.f32 %v2590_v28, %v2589_v6 }
 0x289   : > { %v2514_v1 = vmul.f32 %v2478_v54, %v2432_v53  ;;  %v2564_v32 = vmul.f32 %v21499_v31, %v2432_v53  ;;  %v2530_v31 = vadd.f32 %v2529_v47, %v2528_v4  ;;  %v2599_v35 = vrot.slane %v2598_v15, 2 }
 0x28a   : > { %v2534_v51 = vsel %vm415_vm0, %v2513_v37, 0.0  ;;  %v2568_v44 = vsel %vm415_vm0, %v2563_v19, 0.0  ;;  %v2522_v34 = vrot.slane %v2521_v10, 1  ;;  %v2592_v26 = vrot.slane %v2591_v22, 1 }
 0x28b   : > { %v2535_v56 = vadd.f32 %v2534_v51, %v2533_v3  ;;  %v2569_v0 = vadd.f32 %v2568_v44, %v2567_v23  ;;  %v2543_v43 = vsel %vm415_vm0, %v2514_v1, 0.0  ;;  %v2577_v25 = vsel %vm415_vm0, %v2564_v32, 0.0 }
 0x28c   : > { %v2544_v55 = vadd.f32 %v2543_v43, %v2542_v42  ;;  %v2578_v8 = vadd.f32 %v2577_v25, %v2576_v7  ;;  %v2531_v27 = vrot.slane %v2530_v31, 1  ;;  %v2600_v36 = vadd.f32 %v2599_v35, %v2598_v15  ;;  %v20243_v25 = vld [vmem:[%s26213_s5] sm:$0xff] }
 0x28d   : > { %v2536_v54 = vrot.slane %v2535_v56, 4  ;;  %v2570_v30 = vrot.slane %v2569_v0, 4  ;;  %v2523_v33 = vadd.f32 %v2522_v34, %v2521_v10  ;;  %v2593_v18 = vadd.f32 %v2592_v26, %v2591_v22  ;;  %v20244_v10 = vld [vmem:[%s26213_s5 + $0x8] sm:$0xff]  ;;  %v21597_v22 = vpop.f32.mrf.mxu1  ;;  %v21608_v34 = vpop.permute.xlu1 %2484  ;;  %v26409_v26 = vld [vmem:[#allocation11_spill] sm:$0xff] }
 0x28e   : > { %v2545_v39 = vrot.slane %v2544_v55, 4  ;;  %v2579_v20 = vrot.slane %v2578_v8, 4  ;;  %v2532_v3 = vadd.f32 %v2531_v27, %v2530_v31  ;;  %v2601_v23 = vrot.slane %v2600_v36, 1  ;;  %v26411_v27 = vld [vmem:[#allocation12_spill] sm:$0xff] }
 0x28f   : > { %v2537_v40 = vadd.f32 %v2536_v54, %v2535_v56  ;;  %v2571_v59 = vadd.f32 %v2570_v30, %v2569_v0  ;;  %v2551_v46 = vmul.f32 0.2236068, %v2523_v33  ;;  %v2605_v52 = vmul.f32 0.2236068, %v2593_v18  ;;  %v20245_v54 = vld [vmem:[%s26213_s5 + $0x10] sm:$0xf]  ;;  %v21604_v35 = vpop.f32.mrf.mxu1 }
 0x290   : > { %v2546_v62 = vadd.f32 %v2545_v39, %v2544_v55  ;;  %v2580_v48 = vadd.f32 %v2579_v20, %v2578_v8  ;;  %v2552_v49 = vmul.f32 0.2236068, %v2532_v3  ;;  %v2602_v19 = vadd.f32 %v2601_v23, %v2600_v36  ;;  %v2302_v55 = vpop.f32.mrf.mxu0  ;;  %v26407_v20 = vld [vmem:[#allocation10_spill] sm:$0xff]  ;;  %v26412_v36 = vld [vmem:[#allocation20_spill] sm:$0xff] }
 0x291   : > { %v2538_v12 = vrot.slane %v2537_v40, 2  ;;  %v2572_v38 = vrot.slane %v2571_v59, 2  ;;  %v20329_v43 = vmov 4   ;;  %v20330_v30 = vmov 5   ;;  %v26414_v18 = vld [vmem:[#allocation22_spill] sm:$0xff] }
 0x292   : > { %v2547_v9 = vrot.slane %v2546_v62, 2  ;;  %v2581_v63 = vrot.slane %v2580_v48, 2  ;;  %v2606_v44 = vmul.f32 0.2236068, %v2602_v19  ;;  %20090 = vset.pattern.permute.xlu0 %v20329_v43  ;;  %20091 = vset.pattern.permute.xlu1 %v20329_v43  ;;  %v21602_v31 = vpop.f32.mrf.mxu0  ;;  %v20331_v39 = vmov 6   ;;  %v21624_v19 = vpop.permute.xlu1 %2480  ;;  %v26425_v43 = vld [vmem:[#allocation56_spill] sm:$0xff] }
 0x293   : > { %v2539_v61 = vadd.f32 %v2538_v12, %v2537_v40  ;;  %v2573_v21 = vadd.f32 %v2572_v38, %v2571_v59  ;;  %2675 = vperm.xlu0 %20090, %v20243_v25   ;;  %2679 = vperm.xlu1 %20091, %v20244_v10   ;;  %v26408_v40 = vld [vmem:[#allocation13_spill] sm:$0xff]  ;;  %v26410_v12 = vld [vmem:[#allocation3_spill] sm:$0xff] }
 0x294   : > { %v2548_v58 = vadd.f32 %v2547_v9, %v2546_v62  ;;  %v2582_v4 = vadd.f32 %v2581_v63, %v2580_v48  ;;  %v949_v59 = vadd.f32 %v26408_v40, %v26407_v20  ;;  %v2309_v62 = vpop.f32.mrf.mxu0  ;;  %v956_v38 = vadd.f32 %v26410_v12, %v26409_v26  ;;  %v26427_v20 = vld [vmem:[#allocation35_spill] sm:$0xff]  ;;  %v26429_v26 = vld [vmem:[#allocation58_spill] sm:$0xff]  ;;  %v26430_v12 = vld [vmem:[#allocation61_spill] sm:$0xff] }
 0x295   : > { %v2540_v6 = vrot.slane %v2539_v61, 1  ;;  %v2574_v14 = vrot.slane %v2573_v21, 1  ;;  %v963_v9 = vadd.f32 %v26412_v36, %v26411_v27  ;;  %v2491_v40 = vadd.f32 %v21624_v19, %v26427_v20  ;;  %v26431_v36 = vld [vmem:[#allocation43_spill] sm:$0xff] }
 0x296   : > { %v2549_v45 = vrot.slane %v2548_v58, 1  ;;  %v2583_v50 = vrot.slane %v2582_v4, 1 }
 0x297   : > { %v2541_v29 = vadd.f32 %v2540_v6, %v2539_v61  ;;  %v2575_v41 = vadd.f32 %v2574_v14, %v2573_v21  ;;  %2683 = vperm.xlu1 %20091, %v20245_v54   ;;  %20092 = vset.pattern.permute.xlu0 %v20330_v30  ;;  %v26413_v61 = vld [vmem:[#allocation21_spill] sm:$0xff]  ;;  %v1104_v6 = vadd.f32 %v26414_v18, %v956_v38  ;;  %v26415_v14 = vld [vmem:[#allocation23_spill] sm:$0xff] }
 0x298   : > { %v2550_v47 = vadd.f32 %v2549_v45, %v2548_v58  ;;  %v2584_v53 = vadd.f32 %v2583_v50, %v2582_v4  ;;  %4082 = vperm.xlu0 %20092, %v20245_v54   ;;  %v1096_v21 = vadd.f32 %v26413_v61, %v949_v59  ;;  %v2443_v58 = vpop.f32.mrf.mxu1  ;;  %v1112_v3 = vadd.f32 %v26415_v14, %v963_v9  ;;  %v26416_v45 = vld [vmem:[#allocation24_spill] sm:$0xff] }
 0x299   : > { %v2553_v24 = vmul.f32 0.2236068, %v2541_v29  ;;  %v2603_v37 = vmul.f32 0.2236068, %v2575_v41  ;;  %v2311_v29 = vpop.f32.mrf.mxu0  ;;  %v26428_v59 = vld [vmem:[#allocation40_spill] sm:$0xff]  ;;  %v1872_v38 = vadd.f32 %v26430_v12, %v26429_v26  ;;  %v2310_v18 = vadd.f32 %v2309_v62, %v21489_v13  ;;  %v26433_v62 = vld [vmem:[#allocation39_spill] sm:$0xff] }
 0x29a   : > { %v2604_v28 = vmul.f32 0.2236068, %v2584_v53  ;;  %v2554_v32 = vmul.f32 0.2236068, %v2550_v47  ;;  %v1246_v50 = vadd.f32 %v26416_v45, %v1096_v21  ;;  %v26418_v53 = vld [vmem:[#allocation26_spill] sm:$0xff] }
 0x29b   : > { %v2607_v15 = vsub.f32 %v2603_v37, %v2551_v46  ;;  %v2609_v1 = vsub.f32 %v2605_v52, %v2553_v24  ;;  %20093 = vset.pattern.permute.xlu1 %v20331_v39  ;;  %v26417_v46 = vld [vmem:[#allocation25_spill] sm:$0xff]  ;;  %v1264_v52 = vadd.f32 %v26418_v53, %v1112_v3  ;;  %v2671_v24 = vld [vmem:[%s26211_s3 + $0x48] sm:$0xff]  ;;  %v26419_v37 = vld [vmem:[#allocation31_spill] sm:$0xff]  ;;  %v2489_v3 = vpop.permute.xlu0 %2488 }
 0x29c   : > { %v2608_v42 = vsub.f32 %v2604_v28, %v2552_v49  ;;  %v2610_v0 = vsub.f32 %v2606_v44, %v2554_v32  ;;  %4106 = vperm.xlu1 %20093, %v20245_v54   ;;  %4074 = vperm.xlu0 %20092, %v20243_v25   ;;  %v1255_v47 = vadd.f32 %v26417_v46, %v1104_v6  ;;  %v2445_v28 = vpop.f32.mrf.mxu1  ;;  %v26421_v32 = vld [vmem:[#allocation36_spill] sm:$0xff]  ;;  %v26423_v44 = vld [vmem:[#allocation53_spill] sm:$0xff]  ;;  %v2316_v54 = vpop.f32.mrf.mxu0 }
 0x29d   : > { %v2611_v7 = vmul.f32 1.442695, %v2607_v15  ;;  %v2615_v51 = vmul.f32 1.442695, %v2609_v1  ;;  %v1396_v49 = vadd.f32 %v26419_v37, %v1246_v50  ;;  %v26420_v15 = vld [vmem:[#allocation34_spill] sm:$0xff]  ;;  %v2317_v6 = vadd.f32 %v2316_v54, %v21509_v57  ;;  %v2672_v57 = vld [vmem:[%s26211_s3 + $0x50] sm:$0xff] }
 0x29e   : > { %v2613_v56 = vmul.f32 1.442695, %v2608_v42  ;;  %v2617_v8 = vmul.f32 1.442695, %v2610_v0  ;;  %v1403_v1 = vadd.f32 %v26420_v15, %v1255_v47  ;;  %v1410_v42 = vadd.f32 %v26421_v32, %v1264_v52  ;;  %v26434_v47 = vld [vmem:[#allocation41_spill] sm:$0xff] }
 0x29f   : > { %20147 = vpow2.f32 %v2611_v7  ;;  %v26422_v7 = vld [vmem:[#allocation38_spill] sm:$0xff]  ;;  %v2444_v50 = vadd.f32 %v2443_v58, %v2310_v18  ;;  %v2499_v53 = vadd.f32 %v2489_v3, %v26434_v47  ;;  %v2690_v15 = vsel %vm597_vm1, %v2672_v57, 0 }
 0x2a0   : > { %20149 = vpow2.f32 %v2615_v51  ;;  %20094 = vset.pattern.permute.xlu1 %v20330_v30  ;;  %20096 = vset.pattern.permute.xlu0 %v20331_v39  ;;  %v1530_v51 = vadd.f32 %v26422_v7, %v1396_v49  ;;  %v2687_v30 = vsel %vm597_vm1, %v2671_v24, 0  ;;  %v1544_v9 = vadd.f32 %v26431_v36, %v1410_v42 }
 0x2a1   : > { %20151 = vpow2.f32 %v2613_v56  ;;  %4078 = vperm.xlu1 %20094, %v20244_v10   ;;  %4098 = vperm.xlu0 %20096, %v20243_v25   ;;  %v26424_v56 = vld [vmem:[#allocation59_spill] sm:$0xff]  ;;  %v26426_v25 = vld [vmem:[#allocation60_spill] sm:$0xff]  ;;  %v21646_v14 = vand.u32 4294901760, %v2687_v30 }
 0x2a2   : > { %20153 = vpow2.f32 %v2617_v8  ;;  %v1858_v0 = vadd.f32 %v26424_v56, %v26423_v44  ;;  %v1865_v8 = vadd.f32 %v26426_v25, %v26425_v43 }
 0x2a3   : > { %v21668_v52 = vsub.f32 %v2687_v30, %v21646_v14 }
 0x2a4   : > { %v2013_v21 = vadd.f32 %v21452_v60, %v1865_v8 }
 0x2a5   : > { %20095 = vset.pattern.permute.xlu1 %v20331_v39  ;;  %v2021_v39 = vadd.f32 %v21472_v16, %v1872_v38  ;;  %v21683_v38 = vand.u32 4294901760, %v2690_v15 }
 0x2a6   : > { %4102 = vperm.xlu1 %20095, %v20244_v10   ;;  %v21649_v10 = vadd.f32 %v21624_v19, %v1530_v51  ;;  %v2164_v45 = vadd.f32 %v21496_v17, %v2013_v21 }
 0x2a8   : > { %v2312_v17 = vadd.f32 %v2311_v29, %v2164_v45 }
 0x2aa   : > { %v2446_v49 = vadd.f32 %v2445_v28, %v2312_v17 }
 0x2ac   : > { %v20148_v48 = vpop.eup %20147  ;;  %v21681_v12 = vadd.f32 %v21608_v34, %v2446_v49 }
 0x2ad   : > { %v20150_v63 = vpop.eup %20149  ;;  %v2619_v33 = vadd.f32 1.0, %v20148_v48  ;;  %v1537_v48 = vadd.f32 %v26428_v59, %v1403_v1  ;;  %v2673_v59 = vld [vmem:[%s26211_s3 + $0x58] sm:$0xf] }
 0x2ae   : > { %v20152_v4 = vpop.eup %20151  ;;  %v2621_v23 = vadd.f32 1.0, %v20150_v63  ;;  %v26432_v63 = vld [vmem:[#allocation71_spill] sm:$0xff] }
 0x2af   : > { %20155 = vrcp.f32 %v2619_v33  ;;  %v2620_v41 = vadd.f32 1.0, %v20152_v4  ;;  %v20154_v27 = vpop.eup %20153  ;;  %v2005_v61 = vadd.f32 %v26432_v63, %v1858_v0  ;;  %v2303_v33 = vadd.f32 %v2302_v55, %v21470_v11  ;;  %v2450_v4 = vpop.f32.mrf.mxu1 }
 0x2b0   : > { %20157 = vrcp.f32 %v2621_v23  ;;  %v2318_v11 = vpop.f32.mrf.mxu0  ;;  %v2173_v55 = vadd.f32 %v21518_v5, %v2021_v39  ;;  %v2622_v16 = vadd.f32 1.0, %v20154_v27  ;;  %v2451_v13 = vadd.f32 %v2450_v4, %v2317_v6 }
 0x2b1   : > { %20159 = vrcp.f32 %v2620_v41  ;;  %v2155_v23 = vadd.f32 %v21478_v2, %v2005_v61  ;;  %v2437_v60 = vadd.f32 %v21597_v22, %v2303_v33  ;;  %v2495_v41 = vadd.f32 %v21608_v34, %v26433_v62  ;;  %v2452_v22 = vpop.f32.mrf.mxu1 }
 0x2b2   : > { %v21661_v46 = vadd.f32 %v21608_v34, %v1537_v48  ;;  %v21665_v5 = vadd.f32 %v2489_v3, %v1544_v9  ;;  %v2319_v58 = vadd.f32 %v2318_v11, %v2173_v55  ;;  %20161 = vrcp.f32 %v2622_v16 }
 0x2b3   : > { %v2305_v2 = vadd.f32 %v21602_v31, %v2155_v23  ;;  %v2493_v24 = vadd.f32 %v21624_v19, %v2437_v60  ;;  %v2497_v31 = vadd.f32 %v21608_v34, %v2444_v50  ;;  %v2501_v29 = vadd.f32 %v2489_v3, %v2451_v13 }
 0x2b4   : > { %v2453_v32 = vadd.f32 %v2452_v22, %v2319_v58  ;;  %v2693_v33 = vsel %vm597_vm1, %v2673_v59, 0  ;;  %v21695_v6 = vand.u32 4294901760, %v21668_v52  ;;  %v21698_v23 = vsub.f32 %v2690_v15, %v21683_v38 }
 0x2b5   : > { %v2439_v37 = vadd.f32 %v21604_v35, %v2305_v2  ;;  %v21707_v13 = vand.u32 4294901760, %v2693_v33 }
 0x2b6   : > { %v2502_v21 = vadd.f32 %v2489_v3, %v2453_v32  ;;  %v2781_v22 = vsub.f32 %v21668_v52, %v21695_v6 }
 0x2b7   : > { %v21675_v28 = vadd.f32 %v21624_v19, %v2439_v37  ;;  %v21728_v37 = vand.u32 4294901760, %v21698_v23 }
 0x2bc   : > { %v20156_v1 = vpop.eup %20155 }
 0x2bd   : > { %v20158_v42 = vpop.eup %20157  ;;  %v2631_v7 = vmul.f32 %v20156_v1, %v2491_v40  ;;  %v2643_v51 = vsub.f32 1.0, %v20156_v1  ;;  %v2635_v44 = vmul.f32 %v20156_v1, %v2495_v41  ;;  %v2639_v56 = vmul.f32 %v20156_v1, %v2499_v53 }
 0x2be   : > { %v20160_v0 = vpop.eup %20159  ;;  %v2633_v43 = vmul.f32 %v20158_v42, %v2493_v24  ;;  %v2645_v25 = vsub.f32 1.0, %v20158_v42  ;;  %v2637_v8 = vmul.f32 %v20158_v42, %v2497_v31  ;;  %v2641_v54 = vmul.f32 %v20158_v42, %v2501_v29 }
 0x2bf   : > { %v2647_v35 = vmul.f32 %v2643_v51, %v2493_v24  ;;  %v2644_v30 = vsub.f32 1.0, %v20160_v0  ;;  %v2651_v20 = vmul.f32 %v2643_v51, %v2497_v31  ;;  %v2632_v36 = vmul.f32 %v20160_v0, %v21649_v10  ;;  %v21718_v47 = vpop.eup %20161 }
 0x2c0   : > { %v2649_v48 = vmul.f32 %v2645_v25, %v2491_v40  ;;  %v2653_v26 = vmul.f32 %v2645_v25, %v2495_v41  ;;  %v2636_v4 = vmul.f32 %v20160_v0, %v21661_v46  ;;  %v2655_v39 = vmul.f32 %v2643_v51, %v2501_v29 }
 0x2c1   : > { %v2659_v27 = vadd.f32 %v2647_v35, %v2631_v7  ;;  %v2648_v9 = vmul.f32 %v2644_v30, %v21675_v28  ;;  %v2663_v19 = vadd.f32 %v2651_v20, %v2635_v44  ;;  %v2652_v34 = vmul.f32 %v2644_v30, %v21681_v12 }
 0x2c2   : > { %v21687_v63 = vadd.f32 %v2649_v48, %v2633_v43  ;;  %v21689_v61 = vadd.f32 %v2653_v26, %v2637_v8  ;;  %v2657_v18 = vmul.f32 %v2645_v25, %v2499_v53  ;;  %v2667_v60 = vadd.f32 %v2655_v39, %v2639_v56 }
 0x2c3   : > { %v2660_v40 = vadd.f32 %v2648_v9, %v2632_v36  ;;  %v2664_v45 = vadd.f32 %v2652_v34, %v2636_v4  ;;  %v2640_v11 = vmul.f32 %v20160_v0, %v21665_v5  ;;  %v2656_v3 = vmul.f32 %v2644_v30, %v2502_v21 }
 0x2c4   : > { %v21701_v55 = vadd.f32 %v2657_v18, %v2641_v54  ;;  %v21703_v16 = vand.u32 4294901760, %v2663_v19  ;;  %v2696_v62 = vsel %vm415_vm0, %v2667_v60, 0  ;;  %v21714_v17 = vand.u32 4294901760, %v2659_v27 }
 0x2c5   : > { %v21705_v50 = vand.u32 4294901760, %v2660_v40  ;;  %v2668_v57 = vadd.f32 %v2656_v3, %v2640_v11  ;;  %v21710_v41 = vand.u32 4294901760, %v2664_v45  ;;  %v21712_v2 = vand.u32 4294901760, %v2696_v62 }
 0x2c6   : > { %v21725_v24 = vsub.f32 %v2663_v19, %v21703_v16  ;;  %v21739_v31 = vsub.f32 %v2693_v33, %v21707_v13  ;;  %v21746_v7 = vsub.f32 %v2659_v27, %v21714_v17  ;;  %v2646_v51 = vsub.f32 1.0, %v21718_v47 }
 0x2c7   : > { %v2699_v53 = vsel %vm415_vm0, %v2668_v57, 0  ;;  %v21722_v58 = vsub.f32 %v2664_v45, %v21710_v41  ;;  %v21733_v15 = vsub.f32 %v2696_v62, %v21712_v2  ;;  %v21736_v1 = vsub.f32 %v2660_v40, %v21705_v50 }
 0x2c8   : > { %v21730_v49 = vand.u32 4294901760, %v2699_v53  ;;  %v21750_v44 = vand.u32 4294901760, %v2781_v22  ;;  %v2857_v56 = vand.u32 4294901760, %v21725_v24  ;;  %v2792_v43 = vsub.f32 %v21698_v23, %v21728_v37 }
 0x2c9   : > { %v2845_v32 = vand.u32 4294901760, %v21733_v15  ;;  %v2851_v42 = vand.u32 4294901760, %v21722_v58  ;;  %v2863_v25 = vand.u32 4294901760, %v21736_v1  ;;  %v21758_v8 = vand.u32 4294901760, %v21739_v31 }
 0x2ca   : > { %2734 = vmatprep.subr.mxu0 %v21730_v49  ;;  %v2838_v29 = vsub.f32 %v2699_v53, %v21730_v49  ;;  %v2869_v20 = vand.u32 4294901760, %v21746_v7  ;;  %v2658_v59 = vmul.f32 %v2646_v51, %v21665_v5  ;;  %v2858_v48 = vsub.f32 %v21725_v24, %v2857_v56 }
 0x2cb   : > { %2736 = vmatpush1.msra.mxu0 %v21712_v2  ;;  %v2846_v54 = vsub.f32 %v21733_v15, %v2845_v32  ;;  %v2852_v30 = vsub.f32 %v21722_v58, %v2851_v42  ;;  %v21775_v27 = vand.u32 4294901760, %v2792_v43  ;;  %v2864_v36 = vsub.f32 %v21736_v1, %v2863_v25 }
 0x2cc   : > { %2738 = vmatprep.subr.mxu0 %v21710_v41  ;;  %v2839_v0 = vand.u32 4294901760, %v2838_v29  ;;  %v2803_v9 = vsub.f32 %v21739_v31, %v21758_v8  ;;  %v2642_v5 = vmul.f32 %v21718_v47, %v2502_v21  ;;  %v26435_v19 = vmov 0.0  }
 0x2cd   : > { %2740 = vmatpush1.msra.mxu0 %v21703_v16  ;;  %v2847_v33 = vand.u32 4294901760, %v2846_v54  ;;  %v2853_v40 = vand.u32 4294901760, %v2852_v30  ;;  %v2870_v4 = vsub.f32 %v21746_v7, %v2869_v20  ;;  %v2859_v39 = vand.u32 4294901760, %v2858_v48 }
 0x2ce   : > { %2742 = vmatprep.subr.mxu0 %v21705_v50  ;;  %v2840_v35 = vsub.f32 %v2838_v29, %v2839_v0  ;;  %v2670_v34 = vadd.f32 %v2658_v59, %v2642_v5  ;;  %v2865_v21 = vand.u32 4294901760, %v2864_v36  ;;  %v21791_v18 = vand.u32 4294901760, %v2803_v9 }
 0x2cf   : > { %2744 = vmatpush1.msra.mxu0 %v21714_v17  ;;  %v2871_v45 = vand.u32 4294901760, %v2870_v4  ;;  %v2654_v3 = vmul.f32 %v2646_v51, %v21661_v46  ;;  %v2650_v57 = vmul.f32 %v2646_v51, %v21649_v10  ;;  %v2638_v62 = vmul.f32 %v21718_v47, %v21681_v12 }
 0x2d0   : > { %2783 = vmatmul.mubr.f32.vlgmr.msra.gmra.mxu0 %v21750_v44  ;;  %2955 = vmatprep.subr.mxu0 %v2838_v29  ;;  %v2841_v26 = vand.u32 4294901760, %v2840_v35  ;;  %v2705_v60 = vsel %vm415_vm0, %v2670_v34, 0  ;;  %v2634_v22 = vmul.f32 %v21718_v47, %v21675_v28  ;;  %v2702_v10 = vsel %vm415_vm0, %v21701_v55, 0 }
 0x2d1   : > { %2958 = vmatpush1.msra.mxu0 %v21733_v15  ;;  %2788 = vmatprep.mubr.f32.mxu0 %v26435_v19  ;;  %v21802_v11 = vand.u32 4294901760, %v2705_v60  ;;  %v2666_v53 = vadd.f32 %v2654_v3, %v2638_v62  ;;  %v21835_v28 = vand.u32 4294901760, %v2702_v10  ;;  %v4607_v62 = vld [vmem:[%s344_s14 + $0x8] sm:$0xff] }
 0x2d2   : > { %2842 = vmatprep.subr.mxu1 %v2841_v26  ;;  %2961 = vmatprep.subr.mxu0 %v21722_v58  ;;  %v2662_v12 = vadd.f32 %v2650_v57, %v2634_v22  ;;  %v21846_v58 = vand.u32 4294901760, %v21689_v61 }
 0x2d3   : > { %2848 = vmatpush1.msra.mxu1 %v2847_v33  ;;  %2964 = vmatpush1.msra.mxu0 %v21725_v24  ;;  %v21818_v46 = vsub.f32 %v2705_v60, %v21802_v11  ;;  %v21841_v55 = vand.u32 4294901760, %v2666_v53 }
 0x2d4   : > { %2794 = vmatmul.mubr.f32.gmra.mxu0 %v21775_v27  ;;  %2854 = vmatprep.subr.mxu1 %v2853_v40  ;;  %v21848_v24 = vand.u32 4294901760, %v2662_v12 }
 0x2d5   : > { %2967 = vmatprep.subr.mxu0 %v21736_v1  ;;  %2860 = vmatpush1.msra.mxu1 %v2859_v39  ;;  %v3454_v47 = vand.u32 4294901760, %v21818_v46  ;;  %v21859_v1 = vand.u32 4294901760, %v21687_v63  ;;  %v21864_v29 = vsub.f32 %v2666_v53, %v21841_v55  ;;  %v22059_v53 = vand.u32 4294901760, %v4607_v62 }
 0x2d6   : > { %2970 = vmatpush1.msra.mxu0 %v21746_v7  ;;  %2866 = vmatprep.subr.mxu1 %v2865_v21 }
 0x2d7   : > { %3155 = vmatprep.subr.mxu0 %v2839_v0  ;;  %2799 = vmatprep.mubr.f32.mxu0 %v26435_v19  ;;  %v3455_v15 = vsub.f32 %v21818_v46, %v3454_v47 }
 0x2d8   : > { %2872 = vmatpush1.msra.mxu1 %v2871_v45  ;;  %2805 = vmatmul.mubr.f32.gmra.mxu0 %v21791_v18 }
 0x2d9   : > { %2907 = vmatmul.mubr.f32.vlgmr.msra.gmra.mxu1 %v21646_v14  ;;  %3055 = vmatprep.subr.mxu1 %v21730_v49 }
 0x2da   : > { %3057 = vmatpush1.msra.mxu1 %v21712_v2  ;;  %2912 = vmatprep.mubr.f32.mxu1 %v26435_v19 }
 0x2db   : > { %3059 = vmatprep.subr.mxu1 %v21710_v41  ;;  %3003 = vmatprep.mubr.f32.mxu0 %v26435_v19 }
 0x2dc   : > { %3061 = vmatpush1.msra.mxu1 %v21703_v16  ;;  %3006 = vmatmul.mubr.f32.vlgmr.msra.gmra.mxu0 %v21668_v52 }
 0x2dd   : > { %2914 = vmatmul.mubr.f32.gmra.mxu1 %v21683_v38  ;;  %3063 = vmatprep.subr.mxu1 %v21705_v50 }
 0x2de   : > { %3159 = vmatpush1.msra.mxu0 %v2845_v32  ;;  %3065 = vmatpush1.msra.mxu1 %v21714_v17  ;;  %v21870_v32 = vsub.f32 %v21689_v61, %v21846_v58  ;;  %v3466_v61 = vand.u32 4294901760, %v21864_v29 }
 0x2df   : > { %3163 = vmatprep.subr.mxu0 %v2851_v42  ;;  %3257 = vmatprep.subr.mxu1 %v21730_v49  ;;  %v21853_v49 = vsub.f32 %v2702_v10, %v21835_v28  ;;  %v21874_v42 = vsub.f32 %v2662_v12, %v21848_v24  ;;  %v4606_v12 = vld [vmem:[%s344_s14] sm:$0xff] }
 0x2e0   : > { %3167 = vmatpush1.msra.mxu0 %v2857_v56  ;;  %2919 = vmatprep.mubr.f32.mxu1 %v26435_v19  ;;  %v3467_v51 = vsub.f32 %v21864_v29, %v3466_v61 }
 0x2e1   : > { %3011 = vmatprep.mubr.f32.mxu0 %v26435_v19  ;;  %3171 = vmatprep.subr.mxu0 %v2863_v25  ;;  %v3460_v7 = vand.u32 4294901760, %v21853_v49 }
 0x2e2   : > { %2921 = vmatmul.mubr.f32.gmra.mxu1 %v21707_v13  ;;  %3014 = vmatmul.mubr.f32.gmra.mxu0 %v21698_v23  ;;  %v3468_v54 = vand.u32 4294901760, %v3467_v51 }
 0x2e3   : > { %3175 = vmatpush1.msra.mxu0 %v2869_v20  ;;  %3019 = vmatprep.mubr.f32.mxu0 %v26435_v19 }
 0x2e4   : > { %3349 = vmatprep.subr.mxu0 %v21802_v11  ;;  %3098 = vmatprep.mubr.f32.mxu1 %v26435_v19 }
 0x2e6   : > { %3022 = vmatmul.mubr.f32.gmra.mxu0 %v21739_v31  ;;  %3102 = vmatmul.mubr.f32.vlgmr.msra.gmra.mxu1 %v21695_v6 }
 0x2e7   : > { %3259 = vmatpush1.msra.mxu1 %v21712_v2  ;;  %3107 = vmatprep.mubr.f32.mxu1 %v26435_v19  ;;  %v3456_v2 = vand.u32 4294901760, %v3455_v15 }
 0x2e8   : > { %3261 = vmatprep.subr.mxu1 %v21710_v41  ;;  %3208 = vmatprep.mubr.f32.mxu0 %v26435_v19  ;;  %v21881_v41 = vsub.f32 %v21687_v63, %v21859_v1  ;;  %v3461_v63 = vsub.f32 %v21853_v49, %v3460_v7 }
 0x2e9   : > { %3263 = vmatpush1.msra.mxu1 %v21703_v16  ;;  %v3472_v16 = vand.u32 4294901760, %v21870_v32 }
 0x2ea   : > { %3265 = vmatprep.subr.mxu1 %v21705_v50  ;;  %3111 = vmatmul.mubr.f32.gmra.mxu1 %v21728_v37  ;;  %v3478_v50 = vand.u32 4294901760, %v21874_v42  ;;  %v3462_v43 = vand.u32 4294901760, %v3461_v63 }
 0x2eb   : > { %3210 = vmatmul.mubr.f32.vlgmr.msra.gmra.mxu0 %v21646_v14  ;;  %3267 = vmatpush1.msra.mxu1 %v21714_v17  ;;  %v3484_v17 = vand.u32 4294901760, %v21881_v41  ;;  %v3473_v56 = vsub.f32 %v21870_v32, %v3472_v16 }
 0x2ec   : > { %3351 = vmatpush1.msra.mxu0 %v21835_v28  ;;  %3457 = vmatprep.subr.mxu1 %v3456_v2  ;;  %v3479_v0 = vsub.f32 %v21874_v42, %v3478_v50 }
 0x2ed   : > { %3353 = vmatprep.subr.mxu0 %v21841_v55  ;;  %3116 = vmatprep.mubr.f32.mxu1 %v26435_v19  ;;  %v3485_v25 = vsub.f32 %v21881_v41, %v3484_v17  ;;  %v3474_v35 = vand.u32 4294901760, %v3473_v56 }
 0x2ee   : > { %3355 = vmatpush1.msra.mxu0 %v21846_v58  ;;  %3215 = vmatprep.mubr.f32.mxu0 %v26435_v19  ;;  %v3480_v30 = vand.u32 4294901760, %v3479_v0 }
 0x2ef   : > { %3357 = vmatprep.subr.mxu0 %v21848_v24  ;;  %3120 = vmatmul.mubr.f32.gmra.mxu1 %v21758_v8  ;;  %v3486_v20 = vand.u32 4294901760, %v3485_v25 }
 0x2f0   : > { %3217 = vmatmul.mubr.f32.gmra.mxu0 %v21683_v38  ;;  %3300 = vmatprep.mubr.f32.mxu1 %v26435_v19 }
 0x2f1   : > { %3359 = vmatpush1.msra.mxu0 %v21859_v1  ;;  %3222 = vmatprep.mubr.f32.mxu0 %v26435_v19 }
 0x2f2   : > { %3570 = vmatprep.subr.mxu0 %v21818_v46  ;;  %v4603_v46 = vld [vmem:[%s26211_s3 + $0x90] sm:$0xff] }
 0x2f3   : > { %3302 = vmatmul.mubr.f32.vlgmr.msra.gmra.mxu1 %v21646_v14  ;;  %v4622_v10 = vsel %vm597_vm1, %v4603_v46, 0  ;;  %v20248_v46 = vld [vmem:[%s26213_s5 + $0x8] sm:$0xff] }
 0x2f4   : > { %3224 = vmatmul.mubr.f32.gmra.mxu0 %v21707_v13  ;;  %3463 = vmatpush1.msra.mxu1 %v3462_v43 }
 0x2f5   : > { %3469 = vmatprep.subr.mxu1 %v3468_v54  ;;  %3307 = vmatprep.mubr.f32.mxu1 %v26435_v19 }
 0x2f6   : > { %3475 = vmatpush1.msra.mxu1 %v3474_v35  ;;  %3392 = vmatprep.mubr.f32.mxu0 %v26435_v19 }
 0x2f7   : > { %3481 = vmatprep.subr.mxu1 %v3480_v30  ;;  %3309 = vmatmul.mubr.f32.gmra.mxu1 %v21683_v38 }
 0x2f8   : > { %3398 = vmatmul.mubr.f32.vlgmr.msra.gmra.mxu0 %v21750_v44  ;;  %3487 = vmatpush1.msra.mxu1 %v3486_v20 }
 0x2f9   : > { %3573 = vmatpush1.msra.mxu0 %v21853_v49  ;;  %3670 = vmatprep.subr.mxu1 %v21802_v11  ;;  %v4604_v49 = vld [vmem:[%s26211_s3 + $0x98] sm:$0xff] }
 0x2fa   : > { %3576 = vmatprep.subr.mxu0 %v21864_v29  ;;  %3314 = vmatprep.mubr.f32.mxu1 %v26435_v19  ;;  %v4625_v29 = vsel %vm597_vm1, %v4604_v49, 0 }
 0x2fb   : > { %3579 = vmatpush1.msra.mxu0 %v21870_v32  ;;  %3403 = vmatprep.mubr.f32.mxu0 %v26435_v19 }
 0x2fc   : > { %3582 = vmatprep.subr.mxu0 %v21874_v42  ;;  %3316 = vmatmul.mubr.f32.gmra.mxu1 %v21707_v13  ;;  %v22089_v42 = vand.u32 4294901760, %v4625_v29 }
 0x2fd   : > { %3409 = vmatmul.mubr.f32.gmra.mxu0 %v21775_v27  ;;  %3520 = vmatprep.mubr.f32.mxu1 %v26435_v19 }
 0x2fe   : > { %3585 = vmatpush1.msra.mxu0 %v21881_v41  ;;  %3414 = vmatprep.mubr.f32.mxu0 %v26435_v19  ;;  %v22099_v41 = vsub.f32 %v4625_v29, %v22089_v42 }
 0x2ff   : > { %3770 = vmatprep.subr.mxu0 %v3454_v47  ;;  %v22068_v47 = vsub.f32 %v4607_v62, %v22059_v53 }
 0x300   : > { %3522 = vmatmul.mubr.f32.vlgmr.msra.gmra.mxu1 %v21646_v14 }
 0x301   : > { %3420 = vmatmul.mubr.f32.gmra.mxu0 %v21791_v18  ;;  %3672 = vmatpush1.msra.mxu1 %v21835_v28 }
 0x302   : > { %3674 = vmatprep.subr.mxu1 %v21841_v55  ;;  %3527 = vmatprep.mubr.f32.mxu1 %v26435_v19 }
 0x303   : > { %3676 = vmatpush1.msra.mxu1 %v21846_v58  ;;  %3618 = vmatprep.mubr.f32.mxu0 %v26435_v19 }
 0x304   : > { %3678 = vmatprep.subr.mxu1 %v21848_v24  ;;  %3529 = vmatmul.mubr.f32.gmra.mxu1 %v21683_v38 }
 0x305   : > { %3621 = vmatmul.mubr.f32.vlgmr.msra.gmra.mxu0 %v21668_v52  ;;  %3680 = vmatpush1.msra.mxu1 %v21859_v1  ;;  %v4124_v52 = vld [vmem:[%s26211_s3 + $0x88] sm:$0xf] }
 0x306   : > { %3774 = vmatpush1.msra.mxu0 %v3460_v7  ;;  %3872 = vmatprep.subr.mxu1 %v21802_v11  ;;  %v4608_v11 = vld [vmem:[%s344_s14 + $0x10] sm:$0xf] }
 0x307   : > { %3778 = vmatprep.subr.mxu0 %v3466_v61  ;;  %3534 = vmatprep.mubr.f32.mxu1 %v26435_v19  ;;  %v4631_v3 = vsel %vm415_vm0, %v4608_v11, 0  ;;  %v4605_v61 = vld [vmem:[%s26211_s3 + $0xa0] sm:$0xf] }
 0x308   : > { %3782 = vmatpush1.msra.mxu0 %v3472_v16  ;;  %3626 = vmatprep.mubr.f32.mxu0 %v26435_v19  ;;  %v22046_v57 = vand.u32 4294901760, %v4631_v3 }
 0x309   : > { %3786 = vmatprep.subr.mxu0 %v3478_v50  ;;  %3536 = vmatmul.mubr.f32.gmra.mxu1 %v21707_v13  ;;  %v4628_v50 = vsel %vm597_vm1, %v4605_v61, 0 }
 0x30a   : > { %3629 = vmatmul.mubr.f32.gmra.mxu0 %v21698_v23  ;;  %3713 = vmatprep.mubr.f32.mxu1 %v26435_v19  ;;  %v22057_v22 = vsub.f32 %v4631_v3, %v22046_v57  ;;  %v22117_v51 = vand.u32 4294901760, %v4628_v50 }
 0x30b   : > { %3790 = vmatpush1.msra.mxu0 %v3484_v17  ;;  %3634 = vmatprep.mubr.f32.mxu0 %v26435_v19  ;;  %v4713_v17 = vand.u32 4294901760, %v22099_v41 }
 0x30c   : > { %19843 = vmatprep.subr.mxu0 %v26435_v19  ;;  %v22128_v43 = vsub.f32 %v4628_v50, %v22117_v51 }
 0x30d   : > { %3717 = vmatmul.mubr.f32.vlgmr.msra.gmra.mxu1 %v21695_v6  ;;  %v4714_v35 = vsub.f32 %v22099_v41, %v4713_v17 }
 0x30e   : > { %3637 = vmatmul.mubr.f32.gmra.mxu0 %v21739_v31  ;;  %3874 = vmatpush1.msra.mxu1 %v21835_v28  ;;  %v4122_v31 = vld [vmem:[%s26211_s3 + $0x78] sm:$0xff]  ;;  %v22064_v28 = vand.u32 4294901760, %v4622_v10  ;;  %v4723_v30 = vand.u32 4294901760, %v22128_v43 }
 0x30f   : > { %3876 = vmatprep.subr.mxu1 %v21841_v55  ;;  %3722 = vmatprep.mubr.f32.mxu1 %v26435_v19  ;;  %v22012_v48 = vand.u32 4294901760, %v4122_v31  ;;  %v4760_v55 = vand.u32 4294901760, %v22057_v22 }
 0x310   : > { %3878 = vmatpush1.msra.mxu1 %v21846_v58  ;;  %3823 = vmatprep.mubr.f32.mxu0 %v26435_v19  ;;  %v22071_v58 = vand.u32 4294901760, %v4606_v12 }
 0x311   : > { %3880 = vmatprep.subr.mxu1 %v21848_v24  ;;  %3726 = vmatmul.mubr.f32.gmra.mxu1 %v21728_v37  ;;  %v4121_v37 = vld [vmem:[%s348_s7] sm:$0xf]  ;;  %v22020_v36 = vsub.f32 %v4122_v31, %v22012_v48  ;;  %v22076_v24 = vsub.f32 %v4622_v10, %v22064_v28  ;;  %v4761_v2 = vsub.f32 %v22057_v22, %v4760_v55  ;;  %s355_s7 = sadd.s32 %s19767_s17, %s26640_s30 }
 0x312   : > { %3825 = vmatmul.mubr.f32.vlgmr.msra.gmra.mxu0 %v21646_v14  ;;  %3882 = vmatpush1.msra.mxu1 %v21859_v1  ;;  %v4126_v44 = vsel %vm597_vm1, %v4121_v37, 0  ;;  %v22084_v15 = vsub.f32 %v4606_v12, %v22071_v58  ;;  %v4767_v1 = vand.u32 4294901760, %v22068_v47  ;;  %s19770_s23 = sshll.u32 %s355_s7, 1 }
 0x313   : > { %3731 = vmatprep.mubr.f32.mxu1 %v26435_v19  ;;  %3830 = vmatprep.mubr.f32.mxu0 %v26435_v19  ;;  %v22014_v26 = vand.u32 4294901760, %v4126_v44  ;;  %v4252_v34 = vand.u32 4294901760, %v22020_v36  ;;  %v4703_v32 = vand.u32 4294901760, %v22076_v24  ;;  %v4762_v56 = vand.u32 4294901760, %v4761_v2  ;;  %s357_s11 = scalar_lea.vmem %s26214_s6, %s19770_s23 }
 0x314   : > { %19852 = vmatprep.subr.mxu1 %v26435_v19  ;;  %v4774_v7 = vand.u32 4294901760, %v22084_v15  ;;  %v4768_v16 = vsub.f32 %v22068_v47, %v4767_v1 }
 0x315   : > { %3735 = vmatmul.mubr.f32.gmra.mxu1 %v21758_v8  ;;  %v4200_v5 = vsub.f32 %v4126_v44, %v22014_v26  ;;  %v4253_v18 = vsub.f32 %v22020_v36, %v4252_v34  ;;  %v4704_v63 = vsub.f32 %v22076_v24, %v4703_v32 }
 0x316   : > { %3832 = vmatmul.mubr.f32.gmra.mxu0 %v21683_v38  ;;  %3915 = vmatprep.mubr.f32.mxu1 %v26435_v19  ;;  %v4775_v0 = vsub.f32 %v22084_v15, %v4774_v7  ;;  %v4769_v25 = vand.u32 4294901760, %v4768_v16 }
 0x317   : > { %3837 = vmatprep.mubr.f32.mxu0 %v26435_v19  ;;  %v4201_v4 = vand.u32 4294901760, %v4200_v5  ;;  %v4254_v60 = vand.u32 4294901760, %v4253_v18  ;;  %v4705_v54 = vand.u32 4294901760, %v4704_v63  ;;  %v20246_v18 = vld [vmem:[%s26213_s5 + $0x10] sm:$0xf] }
 0x318   : > { %v4776_v20 = vand.u32 4294901760, %v4775_v0 }
 0x319   : > { %3917 = vmatmul.mubr.f32.vlgmr.msra.gmra.mxu1 %v21646_v14  ;;  %v4129_v14 = vsel %vm415_vm0, %v4124_v52, 0  ;;  %v4202_v21 = vsub.f32 %v4200_v5, %v4201_v4  ;;  %v4715_v52 = vand.u32 4294901760, %v4714_v35 }
 0x31a   : > { %3839 = vmatmul.mubr.f32.gmra.mxu0 %v21707_v13  ;;  %3922 = vmatprep.mubr.f32.mxu1 %v26435_v19  ;;  %v21985_v6 = vand.u32 4294901760, %v4129_v14 }
 0x31b   : > { %v4203_v45 = vand.u32 4294901760, %v4202_v21  ;;  %19849 = vmatprep.mubr.msk.f32.mxu0 %vm20332_vm2, %v26435_v19  ;;  %v22220_v21 = vpop.permute.xlu1 %2679 }
 0x31c   : > { %19844 = vmatpush3.msra.mxu0 %v21985_v6  ;;  %v21998_v23 = vsub.f32 %v4129_v14, %v21985_v6  ;;  %v4724_v14 = vsub.f32 %v22128_v43, %v4723_v30 }
 0x31d   : > { %3924 = vmatmul.mubr.f32.gmra.mxu1 %v21683_v38  ;;  %v4123_v38 = vld [vmem:[%s26211_s3 + $0x80] sm:$0xff]  ;;  %19845 = vmatprep.subr.mxu0 %v26435_v19 }
 0x31e   : > { %3929 = vmatprep.mubr.f32.mxu1 %v26435_v19  ;;  %v4238_v59 = vand.u32 4294901760, %v21998_v23 }
 0x320   : > { %v4239_v27 = vsub.f32 %v21998_v23, %v4238_v59 }
 0x321   : > { %3931 = vmatmul.mubr.f32.gmra.mxu1 %v21707_v13  ;;  %v22000_v13 = vand.u32 4294901760, %v4123_v38 }
 0x322   : > { %v4240_v33 = vand.u32 4294901760, %v4239_v27  ;;  %19858 = vmatprep.mubr.msk.f32.mxu1 %vm20332_vm2, %v26435_v19 }
 0x323   : > { %19846 = vmatpush3.msra.mxu0 %v22000_v13  ;;  %v22009_v8 = vsub.f32 %v4123_v38, %v22000_v13 }
 0x324   : > { %19847 = vmatprep.subr.mxu0 %v26435_v19  ;;  %19853 = vmatpush3.msra.mxu1 %v4240_v33 }
 0x325   : > { %19848 = vmatpush3.msra.mxu0 %v22012_v48  ;;  %v4245_v9 = vand.u32 4294901760, %v22009_v8  ;;  %19854 = vmatprep.subr.mxu1 %v26435_v19 }
 0x326   : > { %19861 = vmatprep.subr.mxu0 %v26435_v19  ;;  %19850 = vmatmul.mubr.f32.vlgmr.msra.gmra.mxu0 %v4203_v45  ;;  %v20247_v45 = vld [vmem:[%s26213_s5] sm:$0xff] }
 0x327   : > { %v4246_v40 = vsub.f32 %v22009_v8, %v4245_v9  ;;  %19862 = vmatpush3.msra.mxu0 %v21998_v23  ;;  %19867 = vmatprep.mubr.msk.f32.mxu0 %vm20332_vm2, %v26435_v19 }
 0x328   : > { %19863 = vmatprep.subr.mxu0 %v26435_v19 }
 0x329   : > { %v4247_v39 = vand.u32 4294901760, %v4246_v40  ;;  %19864 = vmatpush3.msra.mxu0 %v22009_v8 }
 0x32a   : > { %19865 = vmatprep.subr.mxu0 %v26435_v19 }
 0x32b   : > { %19855 = vmatpush3.msra.mxu1 %v4247_v39  ;;  %19866 = vmatpush3.msra.mxu0 %v22020_v36  ;;  %v20333_v39 = vmov 7  }
 0x32c   : > { %19856 = vmatprep.subr.mxu1 %v26435_v19  ;;  %19879 = vmatprep.subr.mxu0 %v26435_v19 }
 0x32d   : > { %19857 = vmatpush3.msra.mxu1 %v4254_v60  ;;  %19868 = vmatmul.mubr.f32.vlgmr.msra.gmra.mxu0 %v4200_v5 }
 0x32e   : > { %19870 = vmatprep.subr.mxu1 %v26435_v19  ;;  %19859 = vmatmul.mubr.f32.vlgmr.msra.gmra.mxu1 %v22014_v26 }
 0x32f   : > { %19871 = vmatpush3.msra.mxu1 %v21985_v6  ;;  %19880 = vmatpush3.msra.mxu0 %v4238_v59 }
 0x330   : > { %19872 = vmatprep.subr.mxu1 %v26435_v19  ;;  %19876 = vmatprep.mubr.msk.f32.mxu1 %vm20332_vm2, %v26435_v19 }
 0x331   : > { %19873 = vmatpush3.msra.mxu1 %v22000_v13  ;;  %19881 = vmatprep.subr.mxu0 %v26435_v19 }
 0x332   : > { %19874 = vmatprep.subr.mxu1 %v26435_v19  ;;  %19882 = vmatpush3.msra.mxu0 %v4245_v9 }
 0x333   : > { %19875 = vmatpush3.msra.mxu1 %v22012_v48  ;;  %19883 = vmatprep.subr.mxu0 %v26435_v19 }
 0x334   : > { %19888 = vmatprep.subr.mxu1 %v26435_v19  ;;  %19877 = vmatmul.mubr.f32.vlgmr.msra.gmra.mxu1 %v4201_v4 }
 0x335   : > { %19889 = vmatpush3.msra.mxu1 %v21985_v6  ;;  %19884 = vmatpush3.msra.mxu0 %v4252_v34  ;;  %v4725_v6 = vand.u32 4294901760, %v4724_v14 }
 0x336   : > { %19890 = vmatprep.subr.mxu1 %v26435_v19  ;;  %19885 = vmatprep.mubr.msk.f32.mxu0 %vm20332_vm2, %v26435_v19 }
 0x337   : > { %19891 = vmatpush3.msra.mxu1 %v22000_v13  ;;  %19897 = vmatprep.subr.mxu0 %v26435_v19 }
 0x338   : > { %19892 = vmatprep.subr.mxu1 %v26435_v19  ;;  %19886 = vmatmul.mubr.f32.vlgmr.msra.gmra.mxu0 %v22014_v26 }
 0x339   : > { %19893 = vmatpush3.msra.mxu1 %v22012_v48  ;;  %19898 = vmatpush3.msra.mxu0 %v22046_v57 }
 0x33a   : > { %19894 = vmatprep.mubr.msk.f32.mxu1 %vm20332_vm2, %v26435_v19  ;;  %19899 = vmatprep.subr.mxu0 %v26435_v19 }
 0x33b   : > { %19912 = vmatprep.subr.mxu1 %v26435_v19  ;;  %19895 = vmatmul.mubr.f32.vlgmr.msra.gmra.mxu1 %v22014_v26 }
 0x33c   : > { %19900 = vmatpush3.msra.mxu0 %v22059_v53  ;;  %19913 = vmatpush3.msra.mxu1 %v4762_v56 }
 0x33d   : > { %19901 = vmatprep.subr.mxu0 %v26435_v19  ;;  %19914 = vmatprep.subr.mxu1 %v26435_v19 }
 0x33e   : > { %19902 = vmatpush3.msra.mxu0 %v22071_v58  ;;  %19903 = vmatprep.mubr.msk.f32.mxu0 %vm20332_vm2, %v26435_v19 }
 0x33f   : > { %19915 = vmatpush3.msra.mxu1 %v4769_v25  ;;  %19904 = vmatmul.mubr.f32.vlgmr.msra.gmra.mxu0 %v4705_v54 }
 0x340   : > { %19916 = vmatprep.subr.mxu1 %v26435_v19  ;;  %19918 = vmatprep.mubr.msk.f32.mxu1 %vm20332_vm2, %v26435_v19 }
 0x341   : > { %19917 = vmatpush3.msra.mxu1 %v4776_v20  ;;  %19906 = vmatprep.mubr.msk.f32.mxu0 %vm20332_vm2, %v26435_v19 }
 0x342   : > { %19919 = vmatmul.mubr.f32.vlgmr.msra.gmra.mxu1 %v22064_v28  ;;  %19927 = vmatprep.subr.mxu0 %v26435_v19 }
 0x343   : > { %19921 = vmatprep.mubr.msk.f32.mxu1 %vm20332_vm2, %v26435_v19  ;;  %19907 = vmatmul.mubr.f32.gmra.mxu0 %v4715_v52 }
 0x344   : > { %19942 = vmatprep.subr.mxu1 %v26435_v19  ;;  %19909 = vmatprep.mubr.msk.f32.mxu0 %vm20332_vm2, %v26435_v19 }
 0x345   : > { %19928 = vmatpush3.msra.mxu0 %v22057_v22  ;;  %19943 = vmatpush3.msra.mxu1 %v22046_v57 }
 0x346   : > { %19922 = vmatmul.mubr.f32.gmra.mxu1 %v22089_v42  ;;  %19929 = vmatprep.subr.mxu0 %v26435_v19 }
 0x347   : > { %19924 = vmatprep.mubr.msk.f32.mxu1 %vm20332_vm2, %v26435_v19  ;;  %19930 = vmatpush3.msra.mxu0 %v22068_v47 }
 0x348   : > { %19910 = vmatmul.mubr.f32.gmra.mxu0 %v4725_v6  ;;  %19931 = vmatprep.subr.mxu0 %v26435_v19 }
 0x349   : > { %19944 = vmatprep.subr.mxu1 %v26435_v19  ;;  %19932 = vmatpush3.msra.mxu0 %v22084_v15 }
 0x34a   : > { %19925 = vmatmul.mubr.f32.gmra.mxu1 %v22117_v51  ;;  %19933 = vmatprep.mubr.msk.f32.mxu0 %vm20332_vm2, %v26435_v19 }
 0x34b   : > { %19945 = vmatpush3.msra.mxu1 %v22059_v53  ;;  %19948 = vmatprep.mubr.msk.f32.mxu1 %vm20332_vm2, %v26435_v19 }
 0x34c   : > { %19934 = vmatmul.mubr.f32.vlgmr.msra.gmra.mxu0 %v22076_v24  ;;  %19946 = vmatprep.subr.mxu1 %v26435_v19 }
 0x34d   : > { %19947 = vmatpush3.msra.mxu1 %v22071_v58  ;;  %19936 = vmatprep.mubr.msk.f32.mxu0 %vm20332_vm2, %v26435_v19 }
 0x34e   : > { %19949 = vmatmul.mubr.f32.vlgmr.msra.gmra.mxu1 %v4703_v32  ;;  %19957 = vmatprep.subr.mxu0 %v26435_v19 }
 0x34f   : > { %19951 = vmatprep.mubr.msk.f32.mxu1 %vm20332_vm2, %v26435_v19  ;;  %19972 = vmatprep.subr.mxu1 %v26435_v19 }
 0x350   : > { %19937 = vmatmul.mubr.f32.gmra.mxu0 %v22099_v41  ;;  %19973 = vmatpush3.msra.mxu1 %v22046_v57  ;;  %v22228_v57 = vpop.permute.xlu0 %2675 }
 0x351   : > { %19939 = vmatprep.mubr.msk.f32.mxu0 %vm20332_vm2, %v26435_v19  ;;  %19958 = vmatpush3.msra.mxu0 %v4760_v55  ;;  %v20334_v55 = vmov 8  }
 0x352   : > { %19952 = vmatmul.mubr.f32.gmra.mxu1 %v4713_v17  ;;  %19959 = vmatprep.subr.mxu0 %v26435_v19 }
 0x353   : > { %19954 = vmatprep.mubr.msk.f32.mxu1 %vm20332_vm2, %v26435_v19  ;;  %19960 = vmatpush3.msra.mxu0 %v4767_v1 }
 0x354   : > { %19940 = vmatmul.mubr.f32.gmra.mxu0 %v22128_v43  ;;  %19961 = vmatprep.subr.mxu0 %v26435_v19 }
 0x355   : > { %19974 = vmatprep.subr.mxu1 %v26435_v19  ;;  %19962 = vmatpush3.msra.mxu0 %v4774_v7 }
 0x356   : > { %19955 = vmatmul.mubr.f32.gmra.mxu1 %v4723_v30  ;;  %19963 = vmatprep.mubr.msk.f32.mxu0 %vm20332_vm2, %v26435_v19 }
 0x357   : > { %19975 = vmatpush3.msra.mxu1 %v22059_v53  ;;  %19978 = vmatprep.mubr.msk.f32.mxu1 %vm20332_vm2, %v26435_v19 }
 0x358   : > { %19964 = vmatmul.mubr.f32.vlgmr.msra.gmra.mxu0 %v22064_v28  ;;  %19976 = vmatprep.subr.mxu1 %v26435_v19 }
 0x359   : > { %19977 = vmatpush3.msra.mxu1 %v22071_v58  ;;  %19966 = vmatprep.mubr.msk.f32.mxu0 %vm20332_vm2, %v26435_v19 }
 0x35a   : > { %19979 = vmatmul.mubr.f32.vlgmr.msra.gmra.mxu1 %v22064_v28  ;;  %20097 = vset.pattern.permute.xlu1 %v20333_v39  ;;  %v22235_v28 = vpop.permute.xlu1 %2683 }
 0x35b   : > { %19981 = vmatprep.mubr.msk.f32.mxu1 %vm20332_vm2, %v26435_v19  ;;  %20098 = vset.pattern.permute.xlu0 %v20333_v39 }
 0x35c   : > { %19967 = vmatmul.mubr.f32.gmra.mxu0 %v22089_v42  ;;  %5203 = vperm.xlu1 %20097, %v20246_v18  }
 0x35d   : > { %19969 = vmatprep.mubr.msk.f32.mxu0 %vm20332_vm2, %v26435_v19  ;;  %5195 = vperm.xlu0 %20098, %v20247_v45  }
 0x35e   : > { %19982 = vmatmul.mubr.f32.gmra.mxu1 %v22089_v42 }
 0x35f   : > { %19984 = vmatprep.mubr.msk.f32.mxu1 %vm20332_vm2, %v26435_v19 }
 0x360   : > { %19970 = vmatmul.mubr.f32.gmra.mxu0 %v22117_v51  ;;  %5199 = vperm.xlu1 %20097, %v20248_v46  }
 0x361   : > { %5297 = vmatprep.mubr.f32.mxu0 %v26435_v19  ;;  %20100 = vset.pattern.permute.xlu0 %v20334_v55 }
 0x362   : > { %19985 = vmatmul.mubr.f32.gmra.mxu1 %v22117_v51  ;;  %4618 = vperm.xlu0 %20100, %v20246_v18  }
 0x363   : > { %5425 = vmatprep.mubr.f32.mxu1 %v26435_v19 }
 0x364   : > { %20099 = vset.pattern.permute.xlu1 %v20334_v55 }
 0x365   : > { %4610 = vperm.xlu1 %20099, %v20247_v45   ;;  %v26437_v45 = vld [vmem:[#allocation5_spill] sm:$0xff] }
 0x369   : > { %4614 = vperm.xlu1 %20099, %v20248_v46   ;;  %v26439_v46 = vld [vmem:[#allocation4_spill] sm:$0xff] }
 0x390   : > { %v2784_v38 = vpop.f32.mrf.mxu0 }
 0x391   : > { %v2785_v12 = vadd.f32 %v2784_v38, %v22228_v57 }
 0x392   : > { %v2786_v23 = vpop.f32.mrf.mxu0 }
 0x393   : > { %v2787_v32 = vadd.f32 %v2786_v23, %v22228_v57 }
 0x394   : > { %v2795_v13 = vpop.f32.mrf.mxu0 }
 0x395   : > { %v2796_v22 = vadd.f32 %v2795_v13, %v22220_v21 }
 0x396   : > { %v2797_v37 = vpop.f32.mrf.mxu0 }
 0x397   : > { %v2798_v24 = vadd.f32 %v2797_v37, %v22220_v21 }
 0x398   : > { %v2806_v31 = vpop.f32.mrf.mxu0 }
 0x399   : > { %v2908_v44 = vpop.f32.mrf.mxu1  ;;  %v2807_v15 = vadd.f32 %v2806_v31, %v22235_v28 }
 0x39a   : > { %v2808_v8 = vpop.f32.mrf.mxu0  ;;  %v2909_v29 = vadd.f32 %v2908_v44, %v2785_v12  ;;  %v26440_v12 = vld [vmem:[#allocation8_spill] sm:$0xff] }
 0x39b   : > { %v2910_v59 = vpop.f32.mrf.mxu1  ;;  %v2809_v56 = vadd.f32 %v2808_v8, %v22235_v28 }
 0x39c   : > { %v3007_v48 = vpop.f32.mrf.mxu0  ;;  %v2911_v61 = vadd.f32 %v2910_v59, %v2787_v32 }
 0x39d   : > { %v2915_v26 = vpop.f32.mrf.mxu1  ;;  %v3008_v16 = vadd.f32 %v3007_v48, %v2909_v29 }
 0x39e   : > { %v3009_v27 = vpop.f32.mrf.mxu0  ;;  %v2916_v58 = vadd.f32 %v2915_v26, %v2796_v22 }
 0x39f   : > { %v2917_v36 = vpop.f32.mrf.mxu1  ;;  %v3010_v43 = vadd.f32 %v3009_v27, %v2911_v61 }
 0x3a0   : > { %v2918_v42 = vadd.f32 %v2917_v36, %v2798_v24 }
 0x3a2   : > { %v2922_v9 = vpop.f32.mrf.mxu1  ;;  %v3015_v5 = vpop.f32.mrf.mxu0 }
 0x3a3   : > { %v3016_v2 = vadd.f32 %v3015_v5, %v2916_v58  ;;  %v2923_v51 = vadd.f32 %v2922_v9, %v2807_v15 }
 0x3a4   : > { %v2924_v33 = vpop.f32.mrf.mxu1  ;;  %v3017_v40 = vpop.f32.mrf.mxu0 }
 0x3a5   : > { %v3018_v50 = vadd.f32 %v3017_v40, %v2918_v42  ;;  %v2925_v20 = vadd.f32 %v2924_v33, %v2809_v56  ;;  %v26436_v33 = vld [vmem:[#allocation6_spill] sm:$0xff] }
 0x3a6   : > { %v3023_v4 = vpop.f32.mrf.mxu0  ;;  %v3103_v34 = vpop.f32.mrf.mxu1 }
 0x3a7   : > { %v3104_v25 = vadd.f32 %v3103_v34, %v3008_v16  ;;  %v3024_v52 = vadd.f32 %v3023_v4, %v2923_v51 }
 0x3a8   : > { %v3025_v60 = vpop.f32.mrf.mxu0  ;;  %v3105_v11 = vpop.f32.mrf.mxu1 }
 0x3a9   : > { %v3106_v6 = vadd.f32 %v3105_v11, %v3010_v43  ;;  %v3026_v31 = vadd.f32 %v3025_v60, %v2925_v20 }
 0x3aa   : > { %v3112_v3 = vpop.f32.mrf.mxu1 }
 0x3ab   : > { %v3211_v62 = vpop.f32.mrf.mxu0  ;;  %v3113_v63 = vadd.f32 %v3112_v3, %v3016_v2  ;;  %v26438_v3 = vld [vmem:[#allocation9_spill] sm:$0xff] }
 0x3ac   : > { %v3114_v53 = vpop.f32.mrf.mxu1  ;;  %v3212_v38 = vadd.f32 %v3211_v62, %v3104_v25 }
 0x3ad   : > { %v3213_v10 = vpop.f32.mrf.mxu0  ;;  %v3115_v54 = vadd.f32 %v3114_v53, %v3018_v50 }
 0x3ae   : > { %v3214_v48 = vadd.f32 %v3213_v10, %v3106_v6 }
 0x3af   : > { %v3121_v47 = vpop.f32.mrf.mxu1 }
 0x3b0   : > { %v3218_v49 = vpop.f32.mrf.mxu0  ;;  %v3122_v44 = vadd.f32 %v3121_v47, %v3024_v52 }
 0x3b1   : > { %v3123_v1 = vpop.f32.mrf.mxu1  ;;  %v3219_v35 = vadd.f32 %v3218_v49, %v3113_v63  ;;  %v26441_v49 = vld [vmem:[#allocation7_spill] sm:$0xff] }
 0x3b2   : > { %v3220_v7 = vpop.f32.mrf.mxu0  ;;  %v3124_v36 = vadd.f32 %v3123_v1, %v3026_v31 }
 0x3b3   : > { %v3303_v41 = vpop.f32.mrf.mxu1  ;;  %v3221_v23 = vadd.f32 %v3220_v7, %v3115_v54 }
 0x3b4   : > { %v3225_v17 = vpop.f32.mrf.mxu0  ;;  %v3304_v8 = vadd.f32 %v3303_v41, %v3212_v38 }
 0x3b5   : > { %v3305_v0 = vpop.f32.mrf.mxu1  ;;  %v3226_v9 = vadd.f32 %v3225_v17, %v3122_v44 }
 0x3b6   : > { %v3227_v30 = vpop.f32.mrf.mxu0  ;;  %v3306_v5 = vadd.f32 %v3305_v0, %v3214_v48  ;;  %v3937_v11 = vadd.f32 %v3304_v8, %v26437_v45 }
 0x3b7   : > { %v3310_v14 = vpop.f32.mrf.mxu1  ;;  %v3228_v34 = vadd.f32 %v3227_v30, %v3124_v36 }
 0x3b8   : > { %v3311_v13 = vadd.f32 %v3310_v14, %v3219_v35  ;;  %v22241_v37 = vpop.f32.mrf.mxu0  ;;  %v3938_v47 = vadd.f32 %v3306_v5, %v26440_v12 }
 0x3b9   : > { %v3312_v59 = vpop.f32.mrf.mxu1 }
 0x3ba   : > { %v3313_v26 = vadd.f32 %v3312_v59, %v3221_v23  ;;  %v22243_v27 = vpop.f32.mrf.mxu0  ;;  %v3941_v40 = vadd.f32 %v3311_v13, %v26436_v33 }
 0x3bc   : > { %v3317_v4 = vpop.f32.mrf.mxu1  ;;  %v3942_v60 = vadd.f32 %v3313_v26, %v26438_v3  ;;  %v3949_v55 = vadd.f32 %v3941_v40, %v3937_v11 }
 0x3bd   : > { %v3318_v39 = vadd.f32 %v3317_v4, %v3226_v9  ;;  %v3410_v18 = vpop.f32.mrf.mxu0 }
 0x3be   : > { %v3319_v62 = vpop.f32.mrf.mxu1  ;;  %v3958_v29 = vadd.f32 %v3942_v60, %v3938_v47 }
 0x3bf   : > { %v3945_v22 = vadd.f32 %v3318_v39, %v26439_v46  ;;  %v3320_v53 = vadd.f32 %v3319_v62, %v3228_v34  ;;  %v3412_v10 = vpop.f32.mrf.mxu0  ;;  %v3400_v34 = vadd.f32 %v22241_v37, %v22228_v57  ;;  %v3411_v39 = vadd.f32 %v3410_v18, %v22220_v21 }
 0x3c0   : > { %v3523_v58 = vpop.f32.mrf.mxu1  ;;  %v3413_v18 = vadd.f32 %v3412_v10, %v22220_v21 }
 0x3c1   : > { %v3950_v24 = vsel %vm415_vm0, %v3945_v22, 0.0  ;;  %v3946_v15 = vadd.f32 %v3320_v53, %v26441_v49  ;;  %v3421_v1 = vpop.f32.mrf.mxu0 }
 0x3c2   : > { %v3951_v32 = vadd.f32 %v3950_v24, %v3949_v55  ;;  %v3525_v42 = vpop.f32.mrf.mxu1 }
 0x3c3   : > { %v3959_v2 = vsel %vm415_vm0, %v3946_v15, 0.0  ;;  %v22253_v7 = vpop.f32.mrf.mxu0 }
 0x3c4   : > { %v3952_v41 = vrot.slane %v3951_v32, 4  ;;  %v3960_v61 = vadd.f32 %v3959_v2, %v3958_v29  ;;  %v3530_v16 = vpop.f32.mrf.mxu1 }
 0x3c5   : > { %v3622_v50 = vpop.f32.mrf.mxu0  ;;  %v3531_v29 = vadd.f32 %v3530_v16, %v3411_v39  ;;  %v3424_v16 = vadd.f32 %v22253_v7, %v22235_v28 }
 0x3c6   : > { %v3953_v63 = vadd.f32 %v3952_v41, %v3951_v32  ;;  %v3961_v17 = vrot.slane %v3960_v61, 4  ;;  %v3532_v51 = vpop.f32.mrf.mxu1 }
 0x3c7   : > { %v22255_v56 = vpop.f32.mrf.mxu0  ;;  %v3533_v2 = vadd.f32 %v3532_v51, %v3413_v18 }
 0x3c8   : > { %v3954_v0 = vrot.slane %v3953_v63, 2  ;;  %v3962_v43 = vadd.f32 %v3961_v17, %v3960_v61 }
 0x3c9   : > { %v3537_v25 = vpop.f32.mrf.mxu1 }
 0x3ca   : > { %v3955_v54 = vadd.f32 %v3954_v0, %v3953_v63  ;;  %v3963_v35 = vrot.slane %v3962_v43, 2  ;;  %v3630_v30 = vpop.f32.mrf.mxu0 }
 0x3cb   : > { %v3539_v20 = vpop.f32.mrf.mxu1  ;;  %v3631_v41 = vadd.f32 %v3630_v30, %v3531_v29 }
 0x3cc   : > { %v3956_v52 = vrot.slane %v3955_v54, 1  ;;  %v3964_v14 = vadd.f32 %v3963_v35, %v3962_v43  ;;  %v3632_v6 = vpop.f32.mrf.mxu0 }
 0x3cd   : > { %v3718_v38 = vpop.f32.mrf.mxu1 }
 0x3ce   : > { %v3957_v23 = vadd.f32 %v3956_v52, %v3955_v54  ;;  %v3965_v13 = vrot.slane %v3964_v14, 1  ;;  %v3638_v31 = vpop.f32.mrf.mxu0  ;;  %v3633_v52 = vadd.f32 %v3632_v6, %v3533_v2  ;;  %v26445_v2 = vld [vmem:[#allocation15_spill] sm:$0xff] }
 0x3cf   : > { %v3720_v44 = vpop.f32.mrf.mxu1 }
 0x3d0   : > { %v3985_v59 = vmul.f32 0.05, %v3957_v23  ;;  %v3966_v48 = vadd.f32 %v3965_v13, %v3964_v14  ;;  %v3640_v8 = vpop.f32.mrf.mxu0  ;;  %v3540_v23 = vadd.f32 %v3539_v20, %v3424_v16  ;;  %v26446_v16 = vld [vmem:[#allocation18_spill] sm:$0xff] }
 0x3d1   : > { %v3727_v26 = vpop.f32.mrf.mxu1 }
 0x3d2   : > { %v22257_v36 = vsub.f32 %v3937_v11, %v3985_v59  ;;  %v22259_v9 = vsub.f32 %v3941_v40, %v3985_v59  ;;  %v22261_v5 = vsub.f32 %v3945_v22, %v3985_v59  ;;  %v3986_v33 = vmul.f32 0.05, %v3966_v48  ;;  %v3826_v4 = vpop.f32.mrf.mxu0 }
 0x3d3   : > { %v3729_v45 = vpop.f32.mrf.mxu1  ;;  %v3402_v22 = vadd.f32 %v22243_v27, %v22228_v57  ;;  %v3422_v27 = vadd.f32 %v3421_v1, %v22235_v28  ;;  %v3728_v14 = vadd.f32 %v3727_v26, %v3631_v41  ;;  %v3641_v39 = vadd.f32 %v3640_v8, %v3540_v23  ;;  %v5191_v8 = vld [vmem:[%s26211_s3 + $0x60] sm:$0xff] }
 0x3d4   : > { %v4001_v3 = vmul.f32 %v22257_v36, %v22257_v36  ;;  %v4005_v62 = vmul.f32 %v22259_v9, %v22259_v9  ;;  %v4009_v40 = vmul.f32 %v22261_v5, %v22261_v5  ;;  %v22272_v11 = vsub.f32 %v3938_v47, %v3986_v33  ;;  %v3828_v46 = vpop.f32.mrf.mxu0 }
 0x3d5   : > { %v22276_v53 = vsub.f32 %v3942_v60, %v3986_v33  ;;  %v22278_v37 = vsub.f32 %v3946_v15, %v3986_v33  ;;  %v3736_v12 = vpop.f32.mrf.mxu1  ;;  %v3524_v60 = vadd.f32 %v3523_v58, %v3400_v34  ;;  %v3526_v10 = vadd.f32 %v3525_v42, %v3402_v22 }
 0x3d6   : > { %v4013_v55 = vadd.f32 %v4005_v62, %v4001_v3  ;;  %v4014_v24 = vsel %vm415_vm0, %v4009_v40, 0.0  ;;  %v4002_v49 = vmul.f32 %v22272_v11, %v22272_v11  ;;  %v3833_v47 = vpop.f32.mrf.mxu0  ;;  %v3538_v35 = vadd.f32 %v3537_v25, %v3422_v27  ;;  %v26444_v27 = vld [vmem:[#allocation16_spill] sm:$0xff] }
 0x3d7   : > { %v4006_v32 = vmul.f32 %v22276_v53, %v22276_v53  ;;  %v4010_v57 = vmul.f32 %v22278_v37, %v22278_v37  ;;  %v3738_v15 = vpop.f32.mrf.mxu1  ;;  %v3623_v0 = vadd.f32 %v3622_v50, %v3524_v60  ;;  %v3625_v58 = vadd.f32 %v22255_v56, %v3526_v10 }
 0x3d8   : > { %v4015_v21 = vadd.f32 %v4014_v24, %v4013_v55  ;;  %v3835_v61 = vpop.f32.mrf.mxu0  ;;  %v3639_v59 = vadd.f32 %v3638_v31, %v3538_v35  ;;  %v3730_v48 = vadd.f32 %v3729_v45, %v3633_v52  ;;  %v3834_v33 = vadd.f32 %v3833_v47, %v3728_v14  ;;  %v26442_v45 = vld [vmem:[#allocation17_spill] sm:$0xff]  ;;  %v26447_v52 = vld [vmem:[#allocation14_spill] sm:$0xff] }
 0x3d9   : > { %v4022_v63 = vadd.f32 %v4006_v32, %v4002_v49  ;;  %v4023_v17 = vsel %vm415_vm0, %v4010_v57, 0.0  ;;  %v3918_v43 = vpop.f32.mrf.mxu1  ;;  %v3719_v42 = vadd.f32 %v3718_v38, %v3623_v0  ;;  %v3721_v28 = vadd.f32 %v3720_v44, %v3625_v58  ;;  %v26443_v32 = vld [vmem:[#allocation19_spill] sm:$0xff] }
 0x3da   : > { %v4016_v54 = vrot.slane %v4015_v21, 4  ;;  %v3840_v51 = vpop.f32.mrf.mxu0  ;;  %v3737_v25 = vadd.f32 %v3736_v12, %v3639_v59  ;;  %v3836_v6 = vadd.f32 %v3835_v61, %v3730_v48  ;;  %v3739_v18 = vadd.f32 %v3738_v15, %v3641_v39 }
 0x3db   : > { %v4024_v1 = vadd.f32 %v4023_v17, %v4022_v63  ;;  %v3920_v30 = vpop.f32.mrf.mxu1  ;;  %v3827_v7 = vadd.f32 %v3826_v4, %v3719_v42  ;;  %v3829_v40 = vadd.f32 %v3828_v46, %v3721_v28  ;;  %v5192_v63 = vld [vmem:[%s26211_s3 + $0x68] sm:$0xff] }
 0x3dc   : > { %v4017_v13 = vadd.f32 %v4016_v54, %v4015_v21  ;;  %v3842_v20 = vpop.f32.mrf.mxu0  ;;  %v3841_v55 = vadd.f32 %v3840_v51, %v3737_v25  ;;  %v5207_v21 = vsel %vm597_vm1, %v5191_v8, 0  ;;  %v5210_v51 = vsel %vm597_vm1, %v5192_v63, 0 }
 0x3dd   : > { %v4025_v34 = vrot.slane %v4024_v1, 4  ;;  %v3925_v50 = vpop.f32.mrf.mxu1  ;;  %v3919_v56 = vadd.f32 %v3918_v43, %v3827_v7  ;;  %v3921_v4 = vadd.f32 %v3920_v30, %v3829_v40  ;;  %v3843_v29 = vadd.f32 %v3842_v20, %v3739_v18  ;;  %v22328_v20 = vpop.permute.xlu1 %4106 }
 0x3de   : > { %v4018_v3 = vrot.slane %v4017_v13, 2  ;;  %v3926_v26 = vadd.f32 %v3925_v50, %v3834_v33  ;;  %v22317_v39 = vand.u32 4294901760, %v5210_v51 }
 0x3df   : > { %v4026_v62 = vadd.f32 %v4025_v34, %v4024_v1  ;;  %v3927_v38 = vpop.f32.mrf.mxu1  ;;  %v3939_v57 = vadd.f32 %v3919_v56, %v26443_v32  ;;  %v3940_v0 = vadd.f32 %v3921_v4, %v26446_v16  ;;  %v22309_v1 = vand.u32 4294901760, %v5207_v21 }
 0x3e0   : > { %v4019_v22 = vadd.f32 %v4018_v3, %v4017_v13  ;;  %v3928_v31 = vadd.f32 %v3927_v38, %v3836_v6  ;;  %v3943_v24 = vadd.f32 %v3926_v26, %v26442_v45  ;;  %v22323_v26 = vsub.f32 %v5210_v51, %v22317_v39  ;;  %v22330_v38 = vpop.permute.xlu0 %4082 }
 0x3e1   : > { %v4027_v44 = vrot.slane %v4026_v62, 2  ;;  %v3932_v12 = vpop.f32.mrf.mxu1  ;;  %v22315_v34 = vsub.f32 %v5207_v21, %v22309_v1 }
 0x3e2   : > { %v4020_v49 = vrot.slane %v4019_v22, 1  ;;  %v3933_v47 = vadd.f32 %v3932_v12, %v3841_v55  ;;  %v22299_v60 = vadd.f32 %v3928_v31, %v26444_v27  ;;  %v3967_v43 = vadd.f32 %v3943_v24, %v3939_v57 }
 0x3e3   : > { %v4028_v46 = vadd.f32 %v4027_v44, %v4026_v62  ;;  %v3934_v15 = vpop.f32.mrf.mxu1  ;;  %v22320_v6 = vand.u32 4294901760, %v22315_v34  ;;  %v5193_v62 = vld [vmem:[%s26211_s3 + $0x70] sm:$0xf]  ;;  %v22336_v8 = vand.u32 4294901760, %v22323_v26 }
 0x3e4   : > { %v4021_v10 = vadd.f32 %v4020_v49, %v4019_v22  ;;  %v3947_v41 = vadd.f32 %v3933_v47, %v26445_v2  ;;  %v3935_v61 = vadd.f32 %v3934_v15, %v3843_v29  ;;  %v3976_v23 = vadd.f32 %v22299_v60, %v3940_v0  ;;  %v22340_v29 = vpop.permute.xlu1 %4078  ;;  %v22342_v47 = vpop.permute.xlu0 %4074 }
 0x3e5   : > { %v4029_v17 = vrot.slane %v4028_v46, 1  ;;  %v5213_v55 = vsel %vm597_vm1, %v5193_v62, 0  ;;  %v5301_v31 = vsub.f32 %v22315_v34, %v22320_v6  ;;  %v5312_v32 = vsub.f32 %v22323_v26, %v22336_v8 }
 0x3e6   : > { %v4049_v54 = vmul.f32 0.05, %v4021_v10  ;;  %v3968_v35 = vsel %vm415_vm0, %v3947_v41, 0.0  ;;  %v3948_v14 = vadd.f32 %v3935_v61, %v26447_v52  ;;  %v22338_v45 = vand.u32 4294901760, %v5213_v55 }
 0x3e7   : > { %v4030_v58 = vadd.f32 %v4029_v17, %v4028_v46  ;;  %v3969_v42 = vadd.f32 %v3968_v35, %v3967_v43  ;;  %v22344_v46 = vand.u32 4294901760, %v5301_v31 }
 0x3e8   : > { %v4053_v30 = vadd.f32 1e-05, %v4049_v54  ;;  %v3977_v13 = vsel %vm415_vm0, %v3948_v14, 0.0  ;;  %v22358_v16 = vsub.f32 %v5213_v55, %v22338_v45 }
 0x3e9   : > { %v4050_v59 = vmul.f32 0.05, %v4030_v58  ;;  %v3970_v48 = vrot.slane %v3969_v42, 4  ;;  %v3978_v33 = vadd.f32 %v3977_v13, %v3976_v23  ;;  %v22389_v13 = vpop.permute.xlu0 %4098 }
 0x3ea   : > { %20163 = vrsqrt.f32 %v4053_v30 }
 0x3eb   : > { %v4054_v28 = vadd.f32 1e-05, %v4050_v59  ;;  %v3971_v7 = vadd.f32 %v3970_v48, %v3969_v42  ;;  %v3979_v50 = vrot.slane %v3978_v33, 4 }
 0x3ed   : > { %20165 = vrsqrt.f32 %v4054_v28  ;;  %v3972_v3 = vrot.slane %v3971_v7, 2  ;;  %v3980_v25 = vadd.f32 %v3979_v50, %v3978_v33 }
 0x3ef   : > { %v3973_v40 = vadd.f32 %v3972_v3, %v3971_v7  ;;  %v3981_v56 = vrot.slane %v3980_v25, 2 }
 0x3f1   : > { %v3974_v22 = vrot.slane %v3973_v40, 1  ;;  %v3982_v18 = vadd.f32 %v3981_v56, %v3980_v25 }
 0x3f3   : > { %v3975_v44 = vadd.f32 %v3974_v22, %v3973_v40  ;;  %v3983_v4 = vrot.slane %v3982_v18, 1 }
 0x3f5   : > { %v3987_v12 = vmul.f32 0.05, %v3975_v44  ;;  %v3984_v49 = vadd.f32 %v3983_v4, %v3982_v18 }
 0x3f7   : > { %v20164_v27 = vpop.eup %20163  ;;  %v22348_v15 = vsub.f32 %v3939_v57, %v3987_v12  ;;  %v22350_v21 = vsub.f32 %v3943_v24, %v3987_v12  ;;  %v22352_v10 = vsub.f32 %v3947_v41, %v3987_v12  ;;  %v3988_v2 = vmul.f32 0.05, %v3984_v49 }
 0x3f8   : > { %v4069_v61 = vmul.f32 %v20164_v27, %v22261_v5  ;;  %v4065_v63 = vmul.f32 %v20164_v27, %v22259_v9  ;;  %v4061_v17 = vmul.f32 %v20164_v27, %v22257_v36 }
 0x3f9   : > { %v4003_v43 = vmul.f32 %v22348_v15, %v22348_v15  ;;  %v4007_v57 = vmul.f32 %v22350_v21, %v22350_v21  ;;  %v4011_v24 = vmul.f32 %v22352_v10, %v22352_v10  ;;  %v22366_v41 = vsub.f32 %v3940_v0, %v3988_v2  ;;  %v22379_v0 = vpop.permute.xlu1 %4102 }
 0x3fa   : > { %v20166_v54 = vpop.eup %20165  ;;  %v22369_v5 = vsub.f32 %v22299_v60, %v3988_v2  ;;  %v22371_v9 = vsub.f32 %v3948_v14, %v3988_v2  ;;  %v4093_v36 = vmul.f32 %v22330_v38, %v4069_v61  ;;  %v4089_v35 = vmul.f32 %v22340_v29, %v4065_v63 }
 0x3fb   : > { %v4031_v52 = vadd.f32 %v4007_v57, %v4003_v43  ;;  %v4032_v58 = vsel %vm415_vm0, %v4011_v24, 0.0  ;;  %v4004_v23 = vmul.f32 %v22366_v41, %v22366_v41  ;;  %v4070_v42 = vmul.f32 %v20166_v54, %v22278_v37 }
 0x3fc   : > { %v4008_v60 = vmul.f32 %v22369_v5, %v22369_v5  ;;  %v4012_v14 = vmul.f32 %v22371_v9, %v22371_v9  ;;  %v22386_v51 = vadd.f32 %v22328_v20, %v4093_v36  ;;  %v4066_v30 = vmul.f32 %v20166_v54, %v22276_v53 }
 0x3fd   : > { %v4033_v59 = vadd.f32 %v4032_v58, %v4031_v52  ;;  %v4094_v48 = vmul.f32 %v22330_v38, %v4070_v42  ;;  %v4062_v37 = vmul.f32 %v20166_v54, %v22272_v11  ;;  %v4085_v33 = vmul.f32 %v22342_v47, %v4061_v17 }
 0x3fe   : > { %v4040_v28 = vadd.f32 %v4008_v60, %v4004_v23  ;;  %v4041_v7 = vsel %vm415_vm0, %v4012_v14, 0.0  ;;  %v4090_v50 = vmul.f32 %v22340_v29, %v4066_v30  ;;  %v22397_v3 = vadd.f32 %v22379_v0, %v4089_v35 }
 0x3ff   : > { %v4034_v25 = vrot.slane %v4033_v59, 4  ;;  %v22400_v53 = vadd.f32 %v22328_v20, %v4094_v48  ;;  %v4086_v62 = vmul.f32 %v22342_v47, %v4062_v37  ;;  %v22404_v40 = vadd.f32 %v22389_v13, %v4085_v33 }
 0x400   : > { %v4042_v11 = vadd.f32 %v4041_v7, %v4040_v28  ;;  %v22407_v56 = vadd.f32 %v22379_v0, %v4090_v50  ;;  %v5216_v22 = vsel %vm415_vm0, %v22386_v51, 0  ;;  %v22412_v18 = vand.u32 4294901760, %v22397_v3 }
 0x401   : > { %v4035_v55 = vadd.f32 %v4034_v25, %v4033_v59  ;;  %v22415_v31 = vadd.f32 %v22389_v13, %v4086_v62  ;;  %v5219_v44 = vsel %vm415_vm0, %v22400_v53, 0  ;;  %v22419_v4 = vand.u32 4294901760, %v5216_v22 }
 0x402   : > { %v4043_v12 = vrot.slane %v4042_v11, 4  ;;  %v22421_v49 = vand.u32 4294901760, %v5219_v44  ;;  %v22424_v27 = vand.u32 4294901760, %v22407_v56  ;;  %v22427_v2 = vand.u32 4294901760, %v22404_v40 }
 0x403   : > { %v4036_v61 = vrot.slane %v4035_v55, 2  ;;  %v22430_v63 = vand.u32 4294901760, %v22415_v31  ;;  %v22433_v17 = vsub.f32 %v5216_v22, %v22419_v4  ;;  %v22437_v43 = vsub.f32 %v22397_v3, %v22412_v18 }
 0x404   : > { %v4044_v57 = vadd.f32 %v4043_v12, %v4042_v11  ;;  %5254 = vmatprep.subr.mxu0 %v22421_v49  ;;  %v5358_v24 = vsub.f32 %v5219_v44, %v22421_v49  ;;  %v22443_v54 = vsub.f32 %v22407_v56, %v22424_v27  ;;  %v22447_v36 = vsub.f32 %v22404_v40, %v22427_v2 }
 0x405   : > { %v4037_v35 = vadd.f32 %v4036_v61, %v4035_v55  ;;  %5256 = vmatpush1.msra.mxu0 %v22419_v4  ;;  %v5365_v52 = vand.u32 4294901760, %v22433_v17  ;;  %v22453_v58 = vsub.f32 %v22415_v31, %v22430_v63  ;;  %v5377_v23 = vand.u32 4294901760, %v22437_v43 }
 0x406   : > { %v4045_v42 = vrot.slane %v4044_v57, 2  ;;  %5258 = vmatprep.subr.mxu0 %v22424_v27  ;;  %v5359_v60 = vand.u32 4294901760, %v5358_v24  ;;  %v5371_v14 = vand.u32 4294901760, %v22443_v54  ;;  %v22459_v30 = vand.u32 4294901760, %v22358_v16 }
 0x407   : > { %v4038_v59 = vrot.slane %v4037_v35, 1  ;;  %5260 = vmatpush1.msra.mxu0 %v22412_v18  ;;  %v5366_v48 = vsub.f32 %v22433_v17, %v5365_v52  ;;  %v5383_v37 = vand.u32 4294901760, %v22453_v58  ;;  %v5389_v50 = vand.u32 4294901760, %v22447_v36 }
 0x408   : > { %v4046_v33 = vadd.f32 %v4045_v42, %v4044_v57  ;;  %5262 = vmatprep.subr.mxu0 %v22430_v63  ;;  %v5360_v28 = vsub.f32 %v5358_v24, %v5359_v60  ;;  %v5372_v7 = vsub.f32 %v22443_v54, %v5371_v14  ;;  %v22475_v62 = vand.u32 4294901760, %v5312_v32  ;;  %v4205_v42 = vpop.f32.mrf.mxu0 }
 0x409   : > { %v4039_v25 = vadd.f32 %v4038_v59, %v4037_v35  ;;  %5264 = vmatpush1.msra.mxu0 %v22427_v2  ;;  %v5378_v11 = vsub.f32 %v22437_v43, %v5377_v23  ;;  %v5384_v44 = vsub.f32 %v22453_v58, %v5383_v37  ;;  %v5323_v12 = vsub.f32 %v22358_v16, %v22459_v30 }
 0x40a   : > { %v4047_v22 = vrot.slane %v4046_v33, 1  ;;  %5303 = vmatmul.mubr.f32.vlgmr.msra.gmra.mxu0 %v22344_v46  ;;  %5475 = vmatprep.subr.mxu0 %v5358_v24  ;;  %v5361_v55 = vand.u32 4294901760, %v5360_v28  ;;  %v5367_v32 = vand.u32 4294901760, %v5366_v48  ;;  %v5373_v35 = vand.u32 4294901760, %v5372_v7  ;;  %v4291_v7 = vpop.f32.mrf.mxu1 }
 0x40b   : > { %v4051_v61 = vmul.f32 0.05, %v4039_v25  ;;  %5478 = vmatpush1.msra.mxu0 %v22433_v17  ;;  %5308 = vmatprep.mubr.f32.mxu0 %v26435_v19  ;;  %v5390_v24 = vsub.f32 %v22447_v36, %v5389_v50  ;;  %v5379_v28 = vand.u32 4294901760, %v5378_v11  ;;  %v5385_v48 = vand.u32 4294901760, %v5384_v44 }
 0x40c   : > { %v4048_v57 = vadd.f32 %v4047_v22, %v4046_v33  ;;  %5362 = vmatprep.subr.mxu1 %v5361_v55  ;;  %5481 = vmatprep.subr.mxu0 %v22443_v54  ;;  %v22494_v33 = vand.u32 4294901760, %v5323_v12  ;;  %v19851_v22 = vpop.f32.mrf.mxu0  ;;  %v19860_v11 = vpop.f32.mrf.mxu1 }
 0x40d   : > { %v4055_v59 = vadd.f32 1e-05, %v4051_v61  ;;  %5368 = vmatpush1.msra.mxu1 %v5367_v32  ;;  %5484 = vmatpush1.msra.mxu0 %v22437_v43  ;;  %v5391_v61 = vand.u32 4294901760, %v5390_v24  ;;  %v4292_v32 = vadd.f32 %v4291_v7, %v4205_v42  ;;  %v22595_v11 = vpop.permute.xlu0 %5195 }
 0x40e   : > { %v4052_v25 = vmul.f32 0.05, %v4048_v57  ;;  %5314 = vmatmul.mubr.f32.gmra.mxu0 %v22475_v62  ;;  %5374 = vmatprep.subr.mxu1 %v5373_v35  ;;  %v4369_v44 = vpop.f32.mrf.mxu0  ;;  %v4445_v57 = vpop.f32.mrf.mxu1 }
 0x40f   : > { %20167 = vrsqrt.f32 %v4055_v59  ;;  %5487 = vmatprep.subr.mxu0 %v22453_v58  ;;  %5380 = vmatpush1.msra.mxu1 %v5379_v28 }
 0x410   : > { %v4056_v55 = vadd.f32 1e-05, %v4052_v25  ;;  %5490 = vmatpush1.msra.mxu0 %v22447_v36  ;;  %5386 = vmatprep.subr.mxu1 %v5385_v48  ;;  %v19869_v12 = vpop.f32.mrf.mxu0  ;;  %v19878_v24 = vpop.f32.mrf.mxu1 }
 0x411   : > { %5675 = vmatprep.subr.mxu0 %v5359_v60  ;;  %5319 = vmatprep.mubr.f32.mxu0 %v26435_v19  ;;  %v4370_v60 = vadd.f32 %v4369_v44, %v4292_v32  ;;  %v22552_v48 = vpop.permute.xlu1 %5203 }
 0x412   : > { %20169 = vrsqrt.f32 %v4056_v55  ;;  %5392 = vmatpush1.msra.mxu1 %v5391_v61  ;;  %5325 = vmatmul.mubr.f32.gmra.mxu0 %v22494_v33  ;;  %v4525_v54 = vpop.f32.mrf.mxu0  ;;  %v4599_v59 = vpop.f32.mrf.mxu1 }
 0x413   : > { %5427 = vmatmul.mubr.f32.vlgmr.msra.gmra.mxu1 %v22309_v1  ;;  %5575 = vmatprep.subr.mxu1 %v22421_v49  ;;  %v4446_v35 = vadd.f32 %v4445_v57, %v4370_v60 }
 0x414   : > { %5577 = vmatpush1.msra.mxu1 %v22419_v4  ;;  %5432 = vmatprep.mubr.f32.mxu1 %v26435_v19  ;;  %v19896_v25 = vpop.f32.mrf.mxu1 }
 0x415   : > { %5579 = vmatprep.subr.mxu1 %v22424_v27  ;;  %5523 = vmatprep.mubr.f32.mxu0 %v26435_v19  ;;  %v4526_v58 = vadd.f32 %v4525_v54, %v4446_v35  ;;  %v22593_v32 = vpop.permute.xlu1 %5199 }
 0x416   : > { %5581 = vmatpush1.msra.mxu1 %v22412_v18  ;;  %5526 = vmatmul.mubr.f32.vlgmr.msra.gmra.mxu0 %v22315_v34  ;;  %v4813_v61 = vpop.f32.mrf.mxu1 }
 0x417   : > { %5434 = vmatmul.mubr.f32.gmra.mxu1 %v22317_v39  ;;  %5583 = vmatprep.subr.mxu1 %v22430_v63  ;;  %v22560_v7 = vadd.f32 %v4599_v59, %v4526_v58  ;;  %v4619_v59 = vpop.permute.xlu0 %4618 }
 0x418   : > { %5679 = vmatpush1.msra.mxu0 %v5365_v52  ;;  %5585 = vmatpush1.msra.mxu1 %v22427_v2  ;;  %v19920_v12 = vpop.f32.mrf.mxu1 }
 0x419   : > { %5683 = vmatprep.subr.mxu0 %v5371_v14  ;;  %5777 = vmatprep.subr.mxu1 %v22421_v49 }
 0x41a   : > { %5687 = vmatpush1.msra.mxu0 %v5377_v23  ;;  %5439 = vmatprep.mubr.f32.mxu1 %v26435_v19  ;;  %v19887_v23 = vpop.f32.mrf.mxu0 }
 0x41b   : > { %5531 = vmatprep.mubr.f32.mxu0 %v26435_v19  ;;  %5691 = vmatprep.subr.mxu0 %v5383_v37 }
 0x41c   : > { %v20168_v17 = vpop.eup %20167  ;;  %5441 = vmatmul.mubr.f32.gmra.mxu1 %v22338_v45  ;;  %5534 = vmatmul.mubr.f32.gmra.mxu0 %v22323_v26 }
 0x41d   : > { %v4071_v52 = vmul.f32 %v20168_v17, %v22352_v10  ;;  %v4067_v49 = vmul.f32 %v20168_v17, %v22350_v21  ;;  %v4063_v43 = vmul.f32 %v20168_v17, %v22348_v15  ;;  %5695 = vmatpush1.msra.mxu0 %v5389_v50  ;;  %5539 = vmatprep.mubr.f32.mxu0 %v26435_v19 }
 0x41e   : > { %5618 = vmatprep.mubr.f32.mxu1 %v26435_v19 }
 0x41f   : > { %v20170_v14 = vpop.eup %20169  ;;  %v4095_v37 = vmul.f32 %v22330_v38, %v4071_v52  ;;  %v4091_v42 = vmul.f32 %v22340_v29, %v4067_v49  ;;  %v4087_v10 = vmul.f32 %v22342_v47, %v4063_v43  ;;  %v4819_v52 = vpop.f32.mrf.mxu1 }
 0x420   : > { %v4072_v21 = vmul.f32 %v20170_v14, %v22371_v9  ;;  %v4068_v15 = vmul.f32 %v20170_v14, %v22369_v5  ;;  %v4064_v36 = vmul.f32 %v20170_v14, %v22366_v41  ;;  %5542 = vmatmul.mubr.f32.gmra.mxu0 %v22358_v16  ;;  %5622 = vmatmul.mubr.f32.vlgmr.msra.gmra.mxu1 %v22320_v6 }
 0x421   : > { %v22540_v50 = vadd.f32 %v22328_v20, %v4095_v37  ;;  %v22543_v28 = vadd.f32 %v22379_v0, %v4091_v42  ;;  %5779 = vmatpush1.msra.mxu1 %v22419_v4  ;;  %5627 = vmatprep.mubr.f32.mxu1 %v26435_v19  ;;  %v22555_v22 = vadd.f32 %v22389_v13, %v4087_v10  ;;  %v19923_v14 = vpop.f32.mrf.mxu1  ;;  %v4611_v10 = vpop.permute.xlu1 %4610 }
 0x422   : > { %v4096_v9 = vmul.f32 %v22330_v38, %v4072_v21  ;;  %v4092_v5 = vmul.f32 %v22340_v29, %v4068_v15  ;;  %v4088_v41 = vmul.f32 %v22342_v47, %v4064_v36  ;;  %5781 = vmatprep.subr.mxu1 %v22424_v27  ;;  %5728 = vmatprep.mubr.f32.mxu0 %v26435_v19  ;;  %v4707_v38 = vpop.f32.mrf.mxu0 }
 0x423   : > { %26448 = vst [vmem:[#allocation42_spill] sm:$0xff] %v22540_v50  ;;  %26449 = vst [vmem:[#allocation46_spill] sm:$0xff] %v22543_v28  ;;  %5783 = vmatpush1.msra.mxu1 %v22412_v18  ;;  %v5222_v4 = vsel %vm415_vm0, %v22540_v50, 0  ;;  %v22578_v55 = vand.u32 4294901760, %v22543_v28  ;;  %v22601_v57 = vand.u32 4294901760, %v22555_v22  ;;  %v4825_v25 = vpop.f32.mrf.mxu1 }
 0x424   : > { %26450 = vst [vmem:[#allocation44_spill] sm:$0xff] %v22555_v22  ;;  %v22563_v29 = vadd.f32 %v22328_v20, %v4096_v9  ;;  %v22566_v47 = vadd.f32 %v22379_v0, %v4092_v5  ;;  %v22569_v27 = vadd.f32 %v22389_v13, %v4088_v41  ;;  %5785 = vmatprep.subr.mxu1 %v22430_v63  ;;  %v22573_v18 = vand.u32 4294901760, %v5222_v4  ;;  %v19905_v20 = vpop.f32.mrf.mxu0 }
 0x425   : > { %5631 = vmatmul.mubr.f32.gmra.mxu1 %v22336_v8  ;;  %5730 = vmatmul.mubr.f32.vlgmr.msra.gmra.mxu0 %v22309_v1  ;;  %v22614_v17 = vsub.f32 %v22543_v28, %v22578_v55  ;;  %v22630_v42 = vsub.f32 %v22555_v22, %v22601_v57  ;;  %v4708_v9 = vadd.f32 %v4707_v38, %v4611_v10  ;;  %v4615_v10 = vpop.permute.xlu1 %4614 }
 0x426   : > { %26451 = vst [vmem:[#allocation48_spill] sm:$0xff] %v22563_v29  ;;  %26452 = vst [vmem:[#allocation37_spill] sm:$0xff] %v22566_v47  ;;  %5787 = vmatpush1.msra.mxu1 %v22427_v2  ;;  %5636 = vmatprep.mubr.f32.mxu1 %v26435_v19  ;;  %v5225_v0 = vsel %vm415_vm0, %v22563_v29, 0  ;;  %v22585_v13 = vand.u32 4294901760, %v22566_v47  ;;  %v22588_v63 = vand.u32 4294901760, %v22569_v27  ;;  %v22591_v2 = vsub.f32 %v5222_v4, %v22573_v18  ;;  %v4717_v60 = vpop.f32.mrf.mxu0 }
 0x427   : > { %26453 = vst [vmem:[#allocation27_spill] sm:$0xff] %v22569_v27  ;;  %5735 = vmatprep.mubr.f32.mxu0 %v26435_v19  ;;  %v22597_v44 = vand.u32 4294901760, %v5225_v0  ;;  %v26248_v15 = vand.u32 4294901760, %v22614_v17 }
 0x428   : > { %v22605_v35 = vsub.f32 %v22566_v47, %v22585_v13  ;;  %v19908_v54 = vpop.f32.mrf.mxu0  ;;  %v5980_v49 = vand.u32 4294901760, %v22591_v2  ;;  %v22621_v43 = vsub.f32 %v22569_v27, %v22588_v63 }
 0x429   : > { %5640 = vmatmul.mubr.f32.gmra.mxu1 %v22459_v30  ;;  %5737 = vmatmul.mubr.f32.gmra.mxu0 %v22317_v39  ;;  %v22610_v24 = vsub.f32 %v5225_v0, %v22597_v44  ;;  %v19926_v0 = vpop.f32.mrf.mxu1  ;;  %v4814_v54 = vadd.f32 %v4813_v61, %v4708_v9  ;;  %v5993_v61 = vsub.f32 %v22614_v17, %v26248_v15 }
 0x42a   : > { %5869 = vmatprep.subr.mxu0 %v22597_v44  ;;  %5742 = vmatprep.mubr.f32.mxu0 %v26435_v19  ;;  %v4727_v23 = vpop.f32.mrf.mxu0  ;;  %v26247_v37 = vand.u32 4294901760, %v22605_v35  ;;  %v5981_v41 = vsub.f32 %v22591_v2, %v5980_v49  ;;  %v5998_v4 = vand.u32 4294901760, %v22621_v43 }
 0x42b   : > { %5820 = vmatprep.mubr.f32.mxu1 %v26435_v19  ;;  %5871 = vmatpush1.msra.mxu0 %v22573_v18  ;;  %v5974_v58 = vand.u32 4294901760, %v22610_v24  ;;  %v4728_v5 = vadd.f32 %v4727_v23, %v4619_v59  ;;  %v6004_v23 = vand.u32 4294901760, %v22630_v42 }
 0x42c   : > { %5873 = vmatprep.subr.mxu0 %v22585_v13  ;;  %v19911_v36 = vpop.f32.mrf.mxu0  ;;  %v5987_v38 = vsub.f32 %v22605_v35, %v26247_v37  ;;  %v5982_v9 = vand.u32 4294901760, %v5981_v41 }
 0x42d   : > { %5822 = vmatmul.mubr.f32.vlgmr.msra.gmra.mxu1 %v22309_v1  ;;  %5744 = vmatmul.mubr.f32.gmra.mxu0 %v22338_v45  ;;  %v5975_v21 = vsub.f32 %v22610_v24, %v5974_v58  ;;  %v4826_v14 = vadd.f32 %v4825_v25, %v4728_v5  ;;  %v4718_v36 = vadd.f32 %v4717_v60, %v4615_v10 }
 0x42e   : > { %5827 = vmatprep.mubr.f32.mxu1 %v26435_v19  ;;  %5875 = vmatpush1.msra.mxu0 %v22578_v55  ;;  %v4903_v12 = vpop.f32.mrf.mxu0  ;;  %v5999_v5 = vsub.f32 %v22621_v43, %v5998_v4  ;;  %v5988_v60 = vand.u32 4294901760, %v5987_v38  ;;  %v6005_v41 = vsub.f32 %v22630_v42, %v6004_v23 }
 0x42f   : > { %5912 = vmatprep.mubr.f32.mxu0 %v26435_v19  ;;  %5877 = vmatprep.subr.mxu0 %v22588_v63  ;;  %v5976_v20 = vand.u32 4294901760, %v5975_v21  ;;  %v4993_v21 = vpop.f32.mrf.mxu1  ;;  %v4904_v25 = vadd.f32 %v4903_v12, %v4814_v54  ;;  %v4820_v37 = vadd.f32 %v4819_v52, %v4718_v36 }
 0x430   : > { %5879 = vmatpush1.msra.mxu0 %v22601_v57  ;;  %v19935_v59 = vpop.f32.mrf.mxu0  ;;  %v6000_v52 = vand.u32 4294901760, %v5999_v5  ;;  %v6006_v36 = vand.u32 4294901760, %v6005_v41 }
 0x431   : > { %5829 = vmatmul.mubr.f32.gmra.mxu1 %v22317_v39  ;;  %5918 = vmatmul.mubr.f32.vlgmr.msra.gmra.mxu0 %v22344_v46  ;;  %v19950_v0 = vpop.f32.mrf.mxu1  ;;  %v4994_v15 = vadd.f32 %v4993_v21, %v4904_v25 }
 0x432   : > { %6090 = vmatprep.subr.mxu0 %v22610_v24  ;;  %5977 = vmatprep.subr.mxu1 %v5976_v20  ;;  %v4910_v46 = vpop.f32.mrf.mxu0  ;;  %v5994_v20 = vand.u32 4294901760, %v5993_v61 }
 0x433   : > { %6093 = vmatpush1.msra.mxu0 %v22591_v2  ;;  %5834 = vmatprep.mubr.f32.mxu1 %v26435_v19  ;;  %v5001_v54 = vpop.f32.mrf.mxu1  ;;  %v4911_v10 = vadd.f32 %v4910_v46, %v4820_v37 }
 0x434   : > { %6096 = vmatprep.subr.mxu0 %v22605_v35  ;;  %5923 = vmatprep.mubr.f32.mxu0 %v26435_v19  ;;  %v19938_v12 = vpop.f32.mrf.mxu0 }
 0x435   : > { %5983 = vmatpush1.msra.mxu1 %v5982_v9  ;;  %6099 = vmatpush1.msra.mxu0 %v22614_v17  ;;  %v19953_v59 = vpop.f32.mrf.mxu1  ;;  %v5002_v21 = vadd.f32 %v5001_v54, %v4911_v10  ;;  %v26455_v12 = vand.u32 4294901760, %v22614_v17 }
 0x436   : > { %5836 = vmatmul.mubr.f32.gmra.mxu1 %v22338_v45  ;;  %5929 = vmatmul.mubr.f32.gmra.mxu0 %v22475_v62  ;;  %v4917_v38 = vpop.f32.mrf.mxu0 }
 0x437   : > { %5989 = vmatprep.subr.mxu1 %v5988_v60  ;;  %6102 = vmatprep.subr.mxu0 %v22621_v43  ;;  %v4918_v25 = vadd.f32 %v4917_v38, %v4826_v14  ;;  %v5009_v62 = vpop.f32.mrf.mxu1 }
 0x438   : > { %5995 = vmatpush1.msra.mxu1 %v5994_v20  ;;  %6105 = vmatpush1.msra.mxu0 %v22630_v42  ;;  %v19941_v37 = vpop.f32.mrf.mxu0  ;;  %v26454_v20 = vand.u32 4294901760, %v22605_v35 }
 0x439   : > { %6001 = vmatprep.subr.mxu1 %v6000_v52  ;;  %6290 = vmatprep.subr.mxu0 %v5974_v58  ;;  %v5010_v61 = vadd.f32 %v5009_v62, %v4918_v25  ;;  %v19956_v9 = vpop.f32.mrf.mxu1 }
 0x43a   : > { %5934 = vmatprep.mubr.f32.mxu0 %v26435_v19  ;;  %6007 = vmatpush1.msra.mxu1 %v6006_v36  ;;  %v5089_v5 = vpop.f32.mrf.mxu0 }
 0x43b   : > { %6040 = vmatprep.mubr.f32.mxu1 %v26435_v19  ;;  %5940 = vmatmul.mubr.f32.gmra.mxu0 %v22494_v33  ;;  %v5090_v24 = vadd.f32 %v5089_v5, %v4994_v15  ;;  %v5175_v14 = vpop.f32.mrf.mxu1 }
 0x43c   : > { %6042 = vmatmul.mubr.f32.vlgmr.msra.gmra.mxu1 %v22309_v1  ;;  %6190 = vmatprep.subr.mxu1 %v22597_v44  ;;  %v19965_v58 = vpop.f32.mrf.mxu0 }
 0x43d   : > { %6047 = vmatprep.mubr.f32.mxu1 %v26435_v19  ;;  %6192 = vmatpush1.msra.mxu1 %v22573_v18  ;;  %v22682_v46 = vadd.f32 %v5175_v14, %v5090_v24  ;;  %v19980_v0 = vpop.f32.mrf.mxu1 }
 0x43e   : > { %6138 = vmatprep.mubr.f32.mxu0 %v26435_v19  ;;  %6194 = vmatprep.subr.mxu1 %v22585_v13  ;;  %v5095_v33 = vpop.f32.mrf.mxu0 }
 0x43f   : > { %6196 = vmatpush1.msra.mxu1 %v22578_v55  ;;  %6141 = vmatmul.mubr.f32.vlgmr.msra.gmra.mxu0 %v22315_v34  ;;  %v5096_v15 = vadd.f32 %v5095_v33, %v5002_v21  ;;  %v5181_v41 = vpop.f32.mrf.mxu1 }
 0x440   : > { %6049 = vmatmul.mubr.f32.gmra.mxu1 %v22317_v39  ;;  %6198 = vmatprep.subr.mxu1 %v22588_v63  ;;  %v19968_v60 = vpop.f32.mrf.mxu0 }
 0x441   : > { %6294 = vmatpush1.msra.mxu0 %v5980_v49  ;;  %6200 = vmatpush1.msra.mxu1 %v22601_v57  ;;  %v22694_v34 = vadd.f32 %v5181_v41, %v5096_v15  ;;  %v19983_v10 = vpop.f32.mrf.mxu1 }
 0x442   : > { %6298 = vmatprep.subr.mxu0 %v26454_v20  ;;  %6392 = vmatprep.subr.mxu1 %v22597_v44  ;;  %v5101_v54 = vpop.f32.mrf.mxu0  ;;  %v6458_v10 = vsel %vm597_vm1, %v22560_v7, 0 }
 0x443   : > { %6302 = vmatpush1.msra.mxu0 %v26455_v12  ;;  %6054 = vmatprep.mubr.f32.mxu1 %v26435_v19  ;;  %v5102_v2 = vadd.f32 %v5101_v54, %v5010_v61  ;;  %v5187_v44 = vpop.f32.mrf.mxu1 }
 0x444   : > { %6146 = vmatprep.mubr.f32.mxu0 %v26435_v19  ;;  %6306 = vmatprep.subr.mxu0 %v5998_v4  ;;  %v19971_v35 = vpop.f32.mrf.mxu0 }
 0x445   : > { %6056 = vmatmul.mubr.f32.gmra.mxu1 %v22338_v45  ;;  %6149 = vmatmul.mubr.f32.gmra.mxu0 %v22323_v26  ;;  %v22707_v17 = vadd.f32 %v5187_v44, %v5102_v2  ;;  %v19986_v49 = vpop.f32.mrf.mxu1 }
 0x446   : > { %6310 = vmatpush1.msra.mxu0 %v6004_v23  ;;  %6154 = vmatprep.mubr.f32.mxu0 %v26435_v19 }
 0x447   : > { %6233 = vmatprep.mubr.f32.mxu1 %v26435_v19 }
 0x449   : > { %6157 = vmatmul.mubr.f32.gmra.mxu0 %v22358_v16  ;;  %6237 = vmatmul.mubr.f32.vlgmr.msra.gmra.mxu1 %v22320_v6 }
 0x44a   : > { %6394 = vmatpush1.msra.mxu1 %v22573_v18  ;;  %6242 = vmatprep.mubr.f32.mxu1 %v26435_v19 }
 0x44b   : > { %6396 = vmatprep.subr.mxu1 %v22585_v13  ;;  %6343 = vmatprep.mubr.f32.mxu0 %v26435_v19 }
 0x44c   : > { %6398 = vmatpush1.msra.mxu1 %v22578_v55 }
 0x44d   : > { %6400 = vmatprep.subr.mxu1 %v22588_v63  ;;  %6246 = vmatmul.mubr.f32.gmra.mxu1 %v22336_v8 }
 0x44e   : > { %6345 = vmatmul.mubr.f32.vlgmr.msra.gmra.mxu0 %v22309_v1  ;;  %6402 = vmatpush1.msra.mxu1 %v22601_v57 }
 0x44f   : > { %6251 = vmatprep.mubr.f32.mxu1 %v26435_v19  ;;  %6350 = vmatprep.mubr.f32.mxu0 %v26435_v19 }
 0x451   : > { %6255 = vmatmul.mubr.f32.gmra.mxu1 %v22459_v30 }
 0x452   : > { %6352 = vmatmul.mubr.f32.gmra.mxu0 %v22317_v39  ;;  %6435 = vmatprep.mubr.f32.mxu1 %v26435_v19 }
 0x453   : > { %6357 = vmatprep.mubr.f32.mxu0 %v26435_v19 }
 0x455   : > { %6437 = vmatmul.mubr.f32.vlgmr.msra.gmra.mxu1 %v22309_v1 }
 0x456   : > { %6359 = vmatmul.mubr.f32.gmra.mxu0 %v22338_v45  ;;  %6442 = vmatprep.mubr.f32.mxu1 %v26435_v19 }
 0x457   : > { %6542 = vmatprep.mubr.f32.mxu0 %v26435_v19 }
 0x459   : > { %6444 = vmatmul.mubr.f32.gmra.mxu1 %v22317_v39 }
 0x45a   : > { %6449 = vmatprep.mubr.f32.mxu1 %v26435_v19 }
 0x45d   : > { %6451 = vmatmul.mubr.f32.gmra.mxu1 %v22338_v45 }
 0x45e   : > { %6648 = vmatprep.mubr.f32.mxu1 %v26435_v19 }
 0x4ca   : > { %v5304_v6 = vpop.f32.mrf.mxu0 }
 0x4cb   : > { %v5305_v61 = vadd.f32 %v5304_v6, %v22595_v11 }
 0x4cc   : > { %v5306_v26 = vpop.f32.mrf.mxu0 }
 0x4cd   : > { %v5307_v5 = vadd.f32 %v5306_v26, %v22595_v11 }
 0x4ce   : > { %v5315_v8 = vpop.f32.mrf.mxu0 }
 0x4cf   : > { %v5316_v25 = vadd.f32 %v5315_v8, %v22593_v32 }
 0x4d0   : > { %v5317_v16 = vpop.f32.mrf.mxu0 }
 0x4d1   : > { %v5318_v24 = vadd.f32 %v5317_v16, %v22593_v32 }
 0x4d2   : > { %v5326_v30 = vpop.f32.mrf.mxu0 }
 0x4d3   : > { %v5428_v1 = vpop.f32.mrf.mxu1  ;;  %v5327_v14 = vadd.f32 %v5326_v30, %v22552_v48 }
 0x4d4   : > { %v5328_v18 = vpop.f32.mrf.mxu0  ;;  %v5429_v20 = vadd.f32 %v5428_v1, %v5305_v61 }
 0x4d5   : > { %v5430_v55 = vpop.f32.mrf.mxu1  ;;  %v5329_v49 = vadd.f32 %v5328_v18, %v22552_v48 }
 0x4d6   : > { %v5527_v13 = vpop.f32.mrf.mxu0  ;;  %v5431_v15 = vadd.f32 %v5430_v55, %v5307_v5  ;;  %v22743_v5 = vand.u32 4294901760, %v6458_v10 }
 0x4d7   : > { %v5435_v63 = vpop.f32.mrf.mxu1  ;;  %v5528_v6 = vadd.f32 %v5527_v13, %v5429_v20 }
 0x4d8   : > { %v5529_v57 = vpop.f32.mrf.mxu0  ;;  %v5436_v33 = vadd.f32 %v5435_v63, %v5316_v25 }
 0x4d9   : > { %v5437_v43 = vpop.f32.mrf.mxu1  ;;  %v5530_v2 = vadd.f32 %v5529_v57, %v5431_v15 }
 0x4da   : > { %v5438_v60 = vadd.f32 %v5437_v43, %v5318_v24 }
 0x4dc   : > { %v5442_v42 = vpop.f32.mrf.mxu1  ;;  %v5535_v39 = vpop.f32.mrf.mxu0 }
 0x4dd   : > { %v5536_v12 = vadd.f32 %v5535_v39, %v5436_v33  ;;  %v5443_v26 = vadd.f32 %v5442_v42, %v5327_v14 }
 0x4de   : > { %v5444_v4 = vpop.f32.mrf.mxu1  ;;  %v5537_v23 = vpop.f32.mrf.mxu0 }
 0x4df   : > { %v5538_v44 = vadd.f32 %v5537_v23, %v5438_v60  ;;  %v5445_v43 = vadd.f32 %v5444_v4, %v5329_v49 }
 0x4e0   : > { %v5543_v52 = vpop.f32.mrf.mxu0  ;;  %v5623_v45 = vpop.f32.mrf.mxu1 }
 0x4e1   : > { %v5544_v25 = vadd.f32 %v5543_v52, %v5443_v26  ;;  %v5624_v1 = vadd.f32 %v5623_v45, %v5528_v6 }
 0x4e2   : > { %v5545_v38 = vpop.f32.mrf.mxu0  ;;  %v5625_v59 = vpop.f32.mrf.mxu1 }
 0x4e3   : > { %v5626_v30 = vadd.f32 %v5625_v59, %v5530_v2  ;;  %v5546_v24 = vadd.f32 %v5545_v38, %v5445_v43 }
 0x4e5   : > { %v5632_v21 = vpop.f32.mrf.mxu1  ;;  %v5731_v36 = vpop.f32.mrf.mxu0 }
 0x4e6   : > { %v5633_v8 = vadd.f32 %v5632_v21, %v5536_v12  ;;  %v5732_v18 = vadd.f32 %v5731_v36, %v5624_v1 }
 0x4e7   : > { %v5634_v37 = vpop.f32.mrf.mxu1  ;;  %v5733_v62 = vpop.f32.mrf.mxu0 }
 0x4e8   : > { %v5635_v63 = vadd.f32 %v5634_v37, %v5538_v44  ;;  %v5734_v7 = vadd.f32 %v5733_v62, %v5626_v30 }
 0x4e9   : > { %v5641_v9 = vpop.f32.mrf.mxu1  ;;  %v5738_v58 = vpop.f32.mrf.mxu0 }
 0x4ea   : > { %v5739_v39 = vadd.f32 %v5738_v58, %v5633_v8  ;;  %v5642_v13 = vadd.f32 %v5641_v9, %v5544_v25  ;;  %v22750_v58 = vsub.f32 %v6458_v10, %v22743_v5 }
 0x4eb   : > { %v5643_v0 = vpop.f32.mrf.mxu1  ;;  %v5740_v41 = vpop.f32.mrf.mxu0 }
 0x4ec   : > { %v5741_v57 = vadd.f32 %v5740_v41, %v5635_v63  ;;  %v5644_v4 = vadd.f32 %v5643_v0, %v5546_v24  ;;  %v22766_v10 = vand.u32 4294901760, %v22750_v58 }
 0x4ed   : > { %v5823_v54 = vpop.f32.mrf.mxu1  ;;  %v5745_v35 = vpop.f32.mrf.mxu0 }
 0x4ee   : > { %v5746_v52 = vadd.f32 %v5745_v35, %v5642_v13  ;;  %v5824_v45 = vadd.f32 %v5823_v54, %v5732_v18 }
 0x4ef   : > { %v5825_v16 = vpop.f32.mrf.mxu1  ;;  %v5747_v55 = vpop.f32.mrf.mxu0 }
 0x4f0   : > { %v5826_v14 = vadd.f32 %v5825_v16, %v5734_v7  ;;  %v5748_v15 = vadd.f32 %v5747_v55, %v5644_v4  ;;  %v22760_v20 = vand.u32 4294901760, %v5824_v45  ;;  %v6546_v55 = vsub.f32 %v22750_v58, %v22766_v10 }
 0x4f1   : > { %v5830_v61 = vpop.f32.mrf.mxu1  ;;  %v22745_v23 = vpop.f32.mrf.mxu0 }
 0x4f2   : > { %v5831_v42 = vadd.f32 %v5830_v61, %v5739_v39  ;;  %v22758_v9 = vand.u32 4294901760, %v5826_v14  ;;  %v22788_v63 = vsub.f32 %v5824_v45, %v22760_v20 }
 0x4f3   : > { %v5832_v21 = vpop.f32.mrf.mxu1  ;;  %v22747_v37 = vpop.f32.mrf.mxu0 }
 0x4f4   : > { %v5833_v59 = vadd.f32 %v5832_v21, %v5741_v57  ;;  %v22754_v60 = vand.u32 4294901760, %v5831_v42  ;;  %v22778_v6 = vsub.f32 %v5826_v14, %v22758_v9  ;;  %v6612_v13 = vand.u32 4294901760, %v22788_v63 }
 0x4f5   : > { %v22809_v14 = vand.u32 4294901760, %v6546_v55 }
 0x4f6   : > { %v22752_v33 = vand.u32 4294901760, %v5833_v59  ;;  %v5837_v62 = vpop.f32.mrf.mxu1  ;;  %v22756_v36 = vpop.f32.mrf.mxu0  ;;  %v22774_v35 = vsub.f32 %v5831_v42, %v22754_v60  ;;  %v6606_v18 = vand.u32 4294901760, %v22778_v6 }
 0x4f7   : > { %v5838_v38 = vadd.f32 %v5837_v62, %v5746_v52 }
 0x4f8   : > { %v5839_v41 = vpop.f32.mrf.mxu1  ;;  %v22763_v54 = vpop.f32.mrf.mxu0  ;;  %v22769_v2 = vsub.f32 %v5833_v59, %v22752_v33  ;;  %v6600_v7 = vand.u32 4294901760, %v22774_v35 }
 0x4f9   : > { %v6461_v0 = vsel %vm415_vm0, %v5838_v38, 0  ;;  %v5840_v12 = vadd.f32 %v5839_v41, %v5748_v15  ;;  %v6607_v38 = vsub.f32 %v22778_v6, %v6606_v18  ;;  %v6613_v41 = vsub.f32 %v22788_v63, %v6612_v13 }
 0x4fa   : > { %v22771_v44 = vand.u32 4294901760, %v6461_v0  ;;  %v6594_v61 = vand.u32 4294901760, %v22769_v2  ;;  %v6601_v45 = vsub.f32 %v22774_v35, %v6600_v7 }
 0x4fb   : > { %v6464_v49 = vsel %vm415_vm0, %v5840_v12, 0  ;;  %v22783_v16 = vpop.f32.mrf.mxu0 }
 0x4fc   : > { %v6587_v26 = vsub.f32 %v6461_v0, %v22771_v44  ;;  %v22781_v8 = vand.u32 4294901760, %v6464_v49  ;;  %v22785_v30 = vpop.f32.mrf.mxu1  ;;  %v6595_v52 = vsub.f32 %v22769_v2, %v6594_v61 }
 0x4fd   : > { %v22792_v25 = vpop.f32.mrf.mxu0 }
 0x4fe   : > { %v6588_v43 = vand.u32 4294901760, %v6587_v26  ;;  %v22794_v1 = vpop.f32.mrf.mxu1  ;;  %6499 = vmatprep.subr.mxu0 %v22781_v8  ;;  %v6581_v39 = vsub.f32 %v6464_v49, %v22781_v8  ;;  %v6596_v55 = vand.u32 4294901760, %v6595_v52 }
 0x4ff   : > { %6501 = vmatpush1.msra.mxu0 %v22771_v44  ;;  %v22801_v57 = vpop.f32.mrf.mxu0 }
 0x500   : > { %6503 = vmatprep.subr.mxu0 %v22752_v33  ;;  %v6582_v24 = vand.u32 4294901760, %v6581_v39  ;;  %v22806_v42 = vpop.f32.mrf.mxu1  ;;  %v6589_v21 = vsub.f32 %v6587_v26, %v6588_v43 }
 0x501   : > { %6505 = vmatpush1.msra.mxu0 %v22754_v60  ;;  %v22811_v59 = vpop.f32.mrf.mxu0 }
 0x502   : > { %6507 = vmatprep.subr.mxu0 %v22758_v9  ;;  %v6583_v4 = vsub.f32 %v6581_v39, %v6582_v24  ;;  %v22816_v62 = vpop.f32.mrf.mxu1  ;;  %v6590_v0 = vand.u32 4294901760, %v6589_v21  ;;  %v6614_v21 = vand.u32 4294901760, %v6613_v41 }
 0x503   : > { %6509 = vmatpush1.msra.mxu0 %v22760_v20 }
 0x504   : > { %6548 = vmatmul.mubr.f32.vlgmr.msra.gmra.mxu0 %v22809_v14  ;;  %6684 = vmatprep.subr.mxu0 %v6581_v39  ;;  %v6584_v15 = vand.u32 4294901760, %v6583_v4  ;;  %v6602_v39 = vand.u32 4294901760, %v6601_v45 }
 0x505   : > { %6687 = vmatpush1.msra.mxu0 %v6587_v26  ;;  %6732 = vmatprep.mubr.f32.mxu0 %v26435_v19  ;;  %v22823_v12 = vpop.f32.mrf.mxu1  ;;  %v6150_v49 = vpop.f32.mrf.mxu0  ;;  %v6608_v26 = vand.u32 4294901760, %v6607_v38 }
 0x506   : > { %6585 = vmatprep.subr.mxu1 %v6584_v15  ;;  %6690 = vmatprep.subr.mxu0 %v22769_v2 }
 0x507   : > { %6591 = vmatpush1.msra.mxu1 %v6590_v0  ;;  %6693 = vmatpush1.msra.mxu0 %v22774_v35  ;;  %v22827_v4 = vpop.f32.mrf.mxu1  ;;  %v6152_v29 = vpop.f32.mrf.mxu0 }
 0x508   : > { %6597 = vmatprep.subr.mxu1 %v6596_v55  ;;  %6696 = vmatprep.subr.mxu0 %v22778_v6 }
 0x509   : > { %6603 = vmatpush1.msra.mxu1 %v6602_v39  ;;  %6699 = vmatpush1.msra.mxu0 %v22788_v63  ;;  %v6158_v27 = vpop.f32.mrf.mxu0  ;;  %v6238_v15 = vpop.f32.mrf.mxu1 }
 0x50a   : > { %6609 = vmatprep.subr.mxu1 %v6608_v26  ;;  %6735 = vmatmul.mubr.f32.vlgmr.msra.gmra.mxu0 %v22750_v58 }
 0x50b   : > { %6850 = vmatprep.subr.mxu0 %v6582_v24  ;;  %6615 = vmatpush1.msra.mxu1 %v6614_v21  ;;  %v6160_v2 = vpop.f32.mrf.mxu0  ;;  %v6240_v35 = vpop.f32.mrf.mxu1 }
 0x50c   : > { %6854 = vmatpush1.msra.mxu0 %v6588_v43  ;;  %6650 = vmatmul.mubr.f32.vlgmr.msra.gmra.mxu1 %v22743_v5  ;;  %v5931_v43 = vadd.f32 %v22756_v36, %v22593_v32 }
 0x50d   : > { %6768 = vmatprep.subr.mxu1 %v22781_v8  ;;  %6858 = vmatprep.subr.mxu0 %v6594_v61  ;;  %v6247_v6 = vpop.f32.mrf.mxu1  ;;  %v5922_v61 = vadd.f32 %v22747_v37, %v22595_v11  ;;  %v5942_v37 = vadd.f32 %v22783_v16, %v22552_v48 }
 0x50e   : > { %6770 = vmatpush1.msra.mxu1 %v22771_v44  ;;  %6862 = vmatpush1.msra.mxu0 %v6600_v7  ;;  %v6346_v63 = vpop.f32.mrf.mxu0  ;;  %v6051_v36 = vadd.f32 %v22806_v42, %v5931_v43 }
 0x50f   : > { %6772 = vmatprep.subr.mxu1 %v22752_v33  ;;  %6866 = vmatprep.subr.mxu0 %v6606_v18  ;;  %v6249_v52 = vpop.f32.mrf.mxu1  ;;  %v5920_v18 = vadd.f32 %v22745_v23, %v22595_v11  ;;  %v6046_v38 = vadd.f32 %v22794_v1, %v5922_v61 }
 0x510   : > { %6774 = vmatpush1.msra.mxu1 %v22754_v60  ;;  %6870 = vmatpush1.msra.mxu0 %v6612_v13  ;;  %v6348_v24 = vpop.f32.mrf.mxu0  ;;  %v5933_v13 = vadd.f32 %v22763_v54, %v22593_v32  ;;  %v6151_v23 = vadd.f32 %v6150_v49, %v6051_v36 }
 0x511   : > { %6903 = vmatprep.mubr.f32.mxu0 %v26435_v19  ;;  %6776 = vmatprep.subr.mxu1 %v22758_v9  ;;  %v6256_v7 = vpop.f32.mrf.mxu1  ;;  %v6044_v11 = vadd.f32 %v22785_v30, %v5920_v18  ;;  %v6145_v16 = vadd.f32 %v22811_v59, %v6046_v38  ;;  %v6058_v30 = vadd.f32 %v22823_v12, %v5942_v37 }
 0x512   : > { %6905 = vmatmul.mubr.f32.vlgmr.msra.gmra.mxu0 %v22743_v5  ;;  %6778 = vmatpush1.msra.mxu1 %v22760_v20  ;;  %v6353_v45 = vpop.f32.mrf.mxu0  ;;  %v6053_v32 = vadd.f32 %v22816_v62, %v5933_v13  ;;  %v6248_v62 = vadd.f32 %v6247_v6, %v6151_v23 }
 0x513   : > { %6811 = vmatprep.mubr.f32.mxu1 %v26435_v19  ;;  %6938 = vmatprep.subr.mxu1 %v22781_v8  ;;  %v6258_v41 = vpop.f32.mrf.mxu1  ;;  %v5944_v8 = vadd.f32 %v22792_v25, %v22552_v48  ;;  %v6143_v42 = vadd.f32 %v22801_v57, %v6044_v11  ;;  %v6241_v49 = vadd.f32 %v6240_v35, %v6145_v16 }
 0x514   : > { %6815 = vmatmul.mubr.f32.vlgmr.msra.gmra.mxu1 %v22766_v10  ;;  %7059 = vmatprep.mubr.f32.mxu0 %v26435_v19  ;;  %v6355_v54 = vpop.f32.mrf.mxu0  ;;  %v6153_v0 = vadd.f32 %v6152_v29, %v6053_v32  ;;  %v6159_v48 = vadd.f32 %v6158_v27, %v6058_v30  ;;  %v6354_v26 = vadd.f32 %v6353_v45, %v6248_v62 }
 0x515   : > { %6940 = vmatpush1.msra.mxu1 %v22771_v44  ;;  %6981 = vmatprep.mubr.f32.mxu1 %v26435_v19  ;;  %v6438_v1 = vpop.f32.mrf.mxu1  ;;  %v6060_v44 = vadd.f32 %v22827_v4, %v5944_v8  ;;  %v6239_v25 = vadd.f32 %v6238_v15, %v6143_v42  ;;  %v6349_v57 = vadd.f32 %v6348_v24, %v6241_v49 }
 0x516   : > { %6942 = vmatprep.subr.mxu1 %v22752_v33  ;;  %v6360_v55 = vpop.f32.mrf.mxu0  ;;  %v6250_v59 = vadd.f32 %v6249_v52, %v6153_v0 }
 0x517   : > { %6944 = vmatpush1.msra.mxu1 %v22754_v60  ;;  %v6440_v39 = vpop.f32.mrf.mxu1  ;;  %v6161_v33 = vadd.f32 %v6160_v2, %v6060_v44  ;;  %v6347_v29 = vadd.f32 %v6346_v63, %v6239_v25  ;;  %v6257_v60 = vadd.f32 %v6256_v7, %v6159_v48 }
 0x518   : > { %6946 = vmatprep.subr.mxu1 %v22758_v9  ;;  %v6356_v21 = vadd.f32 %v6355_v54, %v6250_v59  ;;  %v6362_v35 = vpop.f32.mrf.mxu0  ;;  %v6441_v6 = vadd.f32 %v6440_v39, %v6349_v57 }
 0x519   : > { %6948 = vmatpush1.msra.mxu1 %v22760_v20  ;;  %v6445_v12 = vpop.f32.mrf.mxu1  ;;  %v6259_v27 = vadd.f32 %v6258_v41, %v6161_v33  ;;  %v6361_v15 = vadd.f32 %v6360_v55, %v6257_v60  ;;  %v6439_v52 = vadd.f32 %v6438_v1, %v6347_v29 }
 0x51a   : > { %6983 = vmatmul.mubr.f32.vlgmr.msra.gmra.mxu1 %v22743_v5  ;;  %v6446_v4 = vadd.f32 %v6445_v12, %v6354_v26  ;;  %v22877_v63 = vand.u32 4294901760, %v6441_v6 }
 0x51b   : > { %7165 = vmatprep.mubr.f32.mxu1 %v26435_v19  ;;  %v6447_v9 = vpop.f32.mrf.mxu1  ;;  %v6363_v20 = vadd.f32 %v6362_v35, %v6259_v27  ;;  %v22879_v13 = vand.u32 4294901760, %v6439_v52 }
 0x51c   : > { %v6448_v43 = vadd.f32 %v6447_v9, %v6356_v21  ;;  %v22873_v2 = vand.u32 4294901760, %v6446_v4  ;;  %v7122_v32 = vsub.f32 %v6441_v6, %v22877_v63 }
 0x51d   : > { %v6452_v61 = vpop.f32.mrf.mxu1  ;;  %v7128_v8 = vsub.f32 %v6439_v52, %v22879_v13 }
 0x51e   : > { %v22875_v24 = vand.u32 4294901760, %v6448_v43  ;;  %v6453_v18 = vadd.f32 %v6452_v61, %v6361_v15  ;;  %v7116_v41 = vsub.f32 %v6446_v4, %v22873_v2  ;;  %v7123_v62 = vand.u32 4294901760, %v7122_v32 }
 0x51f   : > { %v6454_v7 = vpop.f32.mrf.mxu1  ;;  %v7129_v44 = vand.u32 4294901760, %v7128_v8 }
 0x520   : > { %v6467_v36 = vsel %vm415_vm0, %v6453_v18, 0  ;;  %v6455_v45 = vadd.f32 %v6454_v7, %v6363_v20  ;;  %v7110_v37 = vsub.f32 %v6448_v43, %v22875_v24  ;;  %v7117_v30 = vand.u32 4294901760, %v7116_v41 }
 0x521   : > { %v22883_v38 = vand.u32 4294901760, %v6467_v36  ;;  %v7124_v59 = vsub.f32 %v7122_v32, %v7123_v62  ;;  %v7130_v26 = vsub.f32 %v7128_v8, %v7129_v44 }
 0x522   : > { %v6470_v11 = vsel %vm415_vm0, %v6455_v45, 0  ;;  %v7111_v42 = vand.u32 4294901760, %v7110_v37  ;;  %v7118_v48 = vsub.f32 %v7116_v41, %v7117_v30 }
 0x523   : > { %v7104_v23 = vsub.f32 %v6467_v36, %v22883_v38  ;;  %v7015_v54 = vand.u32 4294901760, %v6470_v11  ;;  %v7125_v29 = vand.u32 4294901760, %v7124_v59 }
 0x524   : > { %v7112_v39 = vsub.f32 %v7110_v37, %v7111_v42  ;;  %v7119_v12 = vand.u32 4294901760, %v7118_v48 }
 0x525   : > { %v7105_v16 = vand.u32 4294901760, %v7104_v23  ;;  %7016 = vmatprep.subr.mxu0 %v7015_v54  ;;  %v7098_v1 = vsub.f32 %v6470_v11, %v7015_v54 }
 0x526   : > { %7018 = vmatpush1.msra.mxu0 %v22883_v38  ;;  %v7113_v57 = vand.u32 4294901760, %v7112_v39 }
 0x527   : > { %7020 = vmatprep.subr.mxu0 %v22875_v24  ;;  %v7099_v0 = vand.u32 4294901760, %v7098_v1  ;;  %v7106_v49 = vsub.f32 %v7104_v23, %v7105_v16 }
 0x528   : > { %7022 = vmatpush1.msra.mxu0 %v22873_v2 }
 0x529   : > { %7024 = vmatprep.subr.mxu0 %v22877_v63  ;;  %v7100_v55 = vsub.f32 %v7098_v1, %v7099_v0  ;;  %v7107_v33 = vand.u32 4294901760, %v7106_v49 }
 0x52a   : > { %7026 = vmatpush1.msra.mxu0 %v22879_v13 }
 0x52b   : > { %7065 = vmatmul.mubr.f32.vlgmr.msra.gmra.mxu0 %v22809_v14  ;;  %7201 = vmatprep.subr.mxu0 %v7098_v1  ;;  %v7101_v25 = vand.u32 4294901760, %v7100_v55  ;;  %v7131_v14 = vand.u32 4294901760, %v7130_v26 }
 0x52c   : > { %7204 = vmatpush1.msra.mxu0 %v7104_v23  ;;  %7249 = vmatprep.mubr.f32.mxu0 %v26435_v19 }
 0x52d   : > { %7102 = vmatprep.subr.mxu1 %v7101_v25  ;;  %7207 = vmatprep.subr.mxu0 %v7110_v37 }
 0x52e   : > { %7108 = vmatpush1.msra.mxu1 %v7107_v33  ;;  %7210 = vmatpush1.msra.mxu0 %v7116_v41 }
 0x52f   : > { %7114 = vmatprep.subr.mxu1 %v7113_v57  ;;  %7213 = vmatprep.subr.mxu0 %v7122_v32 }
 0x530   : > { %7120 = vmatpush1.msra.mxu1 %v7119_v12  ;;  %7216 = vmatpush1.msra.mxu0 %v7128_v8 }
 0x531   : > { %7126 = vmatprep.subr.mxu1 %v7125_v29  ;;  %7252 = vmatmul.mubr.f32.vlgmr.msra.gmra.mxu0 %v22750_v58 }
 0x532   : > { %7367 = vmatprep.subr.mxu0 %v7099_v0  ;;  %7132 = vmatpush1.msra.mxu1 %v7131_v14 }
 0x533   : > { %7371 = vmatpush1.msra.mxu0 %v7105_v16  ;;  %7167 = vmatmul.mubr.f32.vlgmr.msra.gmra.mxu1 %v22743_v5 }
 0x534   : > { %7285 = vmatprep.subr.mxu1 %v7015_v54  ;;  %7375 = vmatprep.subr.mxu0 %v7111_v42 }
 0x535   : > { %7287 = vmatpush1.msra.mxu1 %v22883_v38  ;;  %7379 = vmatpush1.msra.mxu0 %v7117_v30 }
 0x536   : > { %7289 = vmatprep.subr.mxu1 %v22875_v24  ;;  %7383 = vmatprep.subr.mxu0 %v7123_v62 }
 0x537   : > { %7291 = vmatpush1.msra.mxu1 %v22873_v2  ;;  %7387 = vmatpush1.msra.mxu0 %v7129_v44 }
 0x538   : > { %7420 = vmatprep.mubr.f32.mxu0 %v26435_v19  ;;  %7293 = vmatprep.subr.mxu1 %v22877_v63 }
 0x539   : > { %7422 = vmatmul.mubr.f32.vlgmr.msra.gmra.mxu0 %v22743_v5  ;;  %7295 = vmatpush1.msra.mxu1 %v22879_v13 }
 0x53a   : > { %7328 = vmatprep.mubr.f32.mxu1 %v26435_v19  ;;  %7455 = vmatprep.subr.mxu1 %v7015_v54 }
 0x53b   : > { %7332 = vmatmul.mubr.f32.vlgmr.msra.gmra.mxu1 %v22766_v10  ;;  %7674 = vmatprep.mubr.f32.mxu0 %v26435_v19 }
 0x53c   : > { %7457 = vmatpush1.msra.mxu1 %v22883_v38  ;;  %7498 = vmatprep.mubr.f32.mxu1 %v26435_v19 }
 0x53d   : > { %7459 = vmatprep.subr.mxu1 %v22875_v24 }
 0x53e   : > { %7461 = vmatpush1.msra.mxu1 %v22873_v2 }
 0x53f   : > { %7463 = vmatprep.subr.mxu1 %v22877_v63 }
 0x540   : > { %7465 = vmatpush1.msra.mxu1 %v22879_v13 }
 0x541   : > { %7500 = vmatmul.mubr.f32.vlgmr.msra.gmra.mxu1 %v22743_v5 }
 0x542   : > { %7782 = vmatprep.mubr.f32.mxu1 %v26435_v19 }
 0x5c4   : > { %v6549_v58 = vpop.f32.mrf.mxu0 }
 0x5c6   : > { %v6551_v60 = vpop.f32.mrf.mxu0 }
 0x5ca   : > { %v6736_v35 = vpop.f32.mrf.mxu0 }
 0x5cc   : > { %v6651_v10 = vpop.f32.mrf.mxu1  ;;  %v6738_v27 = vpop.f32.mrf.mxu0 }
 0x5cd   : > { %v6652_v4 = vadd.f32 %v6651_v10, %v6549_v58 }
 0x5ce   : > { %v6653_v21 = vpop.f32.mrf.mxu1 }
 0x5cf   : > { %v6654_v6 = vadd.f32 %v6653_v21, %v6551_v60  ;;  %v6737_v9 = vadd.f32 %v6736_v35, %v6652_v4 }
 0x5d1   : > { %v6739_v43 = vadd.f32 %v6738_v27, %v6654_v6 }
 0x5d2   : > { %v6906_v61 = vpop.f32.mrf.mxu0 }
 0x5d4   : > { %v6816_v15 = vpop.f32.mrf.mxu1  ;;  %v6908_v18 = vpop.f32.mrf.mxu0 }
 0x5d5   : > { %v6817_v52 = vadd.f32 %v6816_v15, %v6737_v9 }
 0x5d6   : > { %v6818_v20 = vpop.f32.mrf.mxu1 }
 0x5d7   : > { %v6819_v2 = vadd.f32 %v6818_v20, %v6739_v43  ;;  %v6907_v24 = vadd.f32 %v6906_v61, %v6817_v52 }
 0x5d9   : > { %v6909_v7 = vadd.f32 %v6908_v18, %v6819_v2 }
 0x5da   : > { %v6984_v5 = vpop.f32.mrf.mxu1 }
 0x5db   : > { %v6985_v63 = vadd.f32 %v6984_v5, %v6907_v24 }
 0x5dc   : > { %v6986_v13 = vpop.f32.mrf.mxu1 }
 0x5dd   : > { %v7506_v36 = vmul.f32 0.2236068, %v6985_v63  ;;  %v6987_v45 = vadd.f32 %v6986_v13, %v6909_v7 }
 0x5df   : > { %v7510_v37 = vsel %vm415_vm0, %v7506_v36, -inf  ;;  %v7507_v38 = vmul.f32 0.2236068, %v6987_v45 }
 0x5e0   : > { %v7511_v41 = vrot.slane %v7510_v37, 4 }
 0x5e1   : > { %v7517_v11 = vsel %vm415_vm0, %v7507_v38, -inf }
 0x5e2   : > { %v7512_v32 = vmax.f32 %v7510_v37, %v7511_v41  ;;  %v7518_v23 = vrot.slane %v7517_v11, 4 }
 0x5e4   : > { %v7513_v54 = vrot.slane %v7512_v32, 2  ;;  %v7519_v8 = vmax.f32 %v7517_v11, %v7518_v23 }
 0x5e6   : > { %v7514_v16 = vmax.f32 %v7512_v32, %v7513_v54  ;;  %v7520_v1 = vrot.slane %v7519_v8, 2 }
 0x5e8   : > { %v7515_v42 = vrot.slane %v7514_v16, 1  ;;  %v7521_v30 = vmax.f32 %v7519_v8, %v7520_v1 }
 0x5ea   : > { %v7516_v0 = vmax.f32 %v7514_v16, %v7515_v42  ;;  %v7522_v62 = vrot.slane %v7521_v30, 1 }
 0x5eb   : > { %v7066_v25 = vpop.f32.mrf.mxu0 }
 0x5ec   : > { %v7538_v44 = vsub.f32 %v7506_v36, %v7516_v0  ;;  %v7523_v49 = vmax.f32 %v7521_v30, %v7522_v62 }
 0x5ed   : > { %v7068_v26 = vpop.f32.mrf.mxu0 }
 0x5ee   : > { %v7542_v55 = vmul.f32 1.442695, %v7538_v44  ;;  %v7539_v39 = vsub.f32 %v7507_v38, %v7523_v49  ;;  %v7588_v44 = vsel %vm7586_vm3, %v22682_v46, 0 }
 0x5f0   : > { %20171 = vpow2.f32 %v7542_v55  ;;  %v7544_v48 = vmul.f32 1.442695, %v7539_v39 }
 0x5f1   : > { %v7253_v12 = vpop.f32.mrf.mxu0 }
 0x5f2   : > { %20173 = vpow2.f32 %v7544_v48 }
 0x5f3   : > { %v7168_v59 = vpop.f32.mrf.mxu1  ;;  %v7255_v58 = vpop.f32.mrf.mxu0 }
 0x5f4   : > { %v7169_v57 = vadd.f32 %v7168_v59, %v7066_v25  ;;  %v22925_v25 = vand.u32 4294901760, %v7588_v44 }
 0x5f5   : > { %v7170_v33 = vpop.f32.mrf.mxu1 }
 0x5f6   : > { %v7171_v29 = vadd.f32 %v7170_v33, %v7068_v26  ;;  %v7254_v14 = vadd.f32 %v7253_v12, %v7169_v57  ;;  %v7591_v33 = vsel %vm7586_vm3, %v22694_v34, 0 }
 0x5f8   : > { %v7256_v4 = vadd.f32 %v7255_v58, %v7171_v29  ;;  %v22930_v29 = vsub.f32 %v7588_v44, %v22925_v25 }
 0x5f9   : > { %v7423_v6 = vpop.f32.mrf.mxu0 }
 0x5fb   : > { %v7333_v10 = vpop.f32.mrf.mxu1  ;;  %v7425_v24 = vpop.f32.mrf.mxu0 }
 0x5fc   : > { %v7334_v21 = vadd.f32 %v7333_v10, %v7254_v14  ;;  %v22932_v14 = vand.u32 4294901760, %v7591_v33  ;;  %v7594_v10 = vsel %vm7586_vm3, %v22707_v17, 0 }
 0x5fd   : > { %v20172_v60 = vpop.eup %20171  ;;  %v7335_v9 = vpop.f32.mrf.mxu1 }
 0x5fe   : > { %v7550_v35 = vsel %vm415_vm0, %v20172_v60, 0.0  ;;  %v7336_v52 = vadd.f32 %v7335_v9, %v7256_v4  ;;  %v7424_v2 = vadd.f32 %v7423_v6, %v7334_v21  ;;  %v22940_v34 = vsub.f32 %v7591_v33, %v22932_v14 }
 0x5ff   : > { %v20174_v27 = vpop.eup %20173  ;;  %v7551_v15 = vrot.slane %v7550_v35, 4  ;;  %v22942_v9 = vand.u32 4294901760, %v7594_v10 }
 0x600   : > { %v7557_v43 = vsel %vm415_vm0, %v20174_v27, 0.0  ;;  %v7426_v13 = vadd.f32 %v7425_v24, %v7336_v52 }
 0x601   : > { %v7552_v61 = vadd.f32 %v7551_v15, %v7550_v35  ;;  %v7558_v20 = vrot.slane %v7557_v43, 4  ;;  %v7501_v18 = vpop.f32.mrf.mxu1  ;;  %v22937_v35 = vand.u32 4294901760, %v22930_v29  ;;  %v22951_v24 = vsub.f32 %v7594_v10, %v22942_v9 }
 0x602   : > { %v7502_v7 = vadd.f32 %v7501_v18, %v7424_v2  ;;  %v22948_v2 = vand.u32 4294901760, %v22940_v34 }
 0x603   : > { %v7553_v5 = vrot.slane %v7552_v61, 2  ;;  %v7559_v63 = vadd.f32 %v7558_v20, %v7557_v43  ;;  %v7503_v36 = vpop.f32.mrf.mxu1 }
 0x604   : > { %v7508_v38 = vmul.f32 0.2236068, %v7502_v7  ;;  %v7504_v41 = vadd.f32 %v7503_v36, %v7426_v13  ;;  %v22960_v13 = vand.u32 4294901760, %v22951_v24  ;;  %v7689_v36 = vsub.f32 %v22940_v34, %v22948_v2 }
 0x605   : > { %v7554_v45 = vadd.f32 %v7553_v5, %v7552_v61  ;;  %v7560_v37 = vrot.slane %v7559_v63, 2  ;;  %v7678_v61 = vsub.f32 %v22930_v29, %v22937_v35 }
 0x606   : > { %v7524_v23 = vsel %vm415_vm0, %v7508_v38, -inf  ;;  %v7509_v54 = vmul.f32 0.2236068, %v7504_v41  ;;  %v22967_v41 = vand.u32 4294901760, %v7689_v36 }
 0x607   : > { %v7555_v11 = vrot.slane %v7554_v45, 1  ;;  %v7561_v32 = vadd.f32 %v7560_v37, %v7559_v63  ;;  %v7525_v8 = vrot.slane %v7524_v23, 4  ;;  %v22957_v7 = vand.u32 4294901760, %v7678_v61 }
 0x608   : > { %v7531_v42 = vsel %vm415_vm0, %v7509_v54, -inf }
 0x609   : > { %v7556_v16 = vadd.f32 %v7555_v11, %v7554_v45  ;;  %v7562_v1 = vrot.slane %v7561_v32, 1  ;;  %v7526_v30 = vmax.f32 %v7524_v23, %v7525_v8  ;;  %v7532_v0 = vrot.slane %v7531_v42, 4 }
 0x60b   : > { %20175 = vrcp.f32 %v7556_v16  ;;  %v7563_v62 = vadd.f32 %v7562_v1, %v7561_v32  ;;  %v7527_v49 = vrot.slane %v7526_v30, 2  ;;  %v7533_v55 = vmax.f32 %v7531_v42, %v7532_v0 }
 0x60c   : > { %v7700_v32 = vsub.f32 %v22951_v24, %v22960_v13 }
 0x60d   : > { %20177 = vrcp.f32 %v7563_v62  ;;  %v7528_v39 = vmax.f32 %v7526_v30, %v7527_v49  ;;  %v7534_v48 = vrot.slane %v7533_v55, 2 }
 0x60e   : > { %v22975_v0 = vand.u32 4294901760, %v7700_v32 }
 0x60f   : > { %v7529_v59 = vrot.slane %v7528_v39, 1  ;;  %v7535_v26 = vmax.f32 %v7533_v55, %v7534_v48 }
 0x611   : > { %v7530_v57 = vmax.f32 %v7528_v39, %v7529_v59  ;;  %v7536_v12 = vrot.slane %v7535_v26, 1 }
 0x613   : > { %v7540_v46 = vsub.f32 %v7508_v38, %v7530_v57  ;;  %v7537_v58 = vmax.f32 %v7535_v26, %v7536_v12 }
 0x615   : > { %v7546_v21 = vmul.f32 1.442695, %v7540_v46  ;;  %v7541_v4 = vsub.f32 %v7509_v54, %v7537_v58 }
 0x617   : > { %20179 = vpow2.f32 %v7546_v21  ;;  %v7548_v15 = vmul.f32 1.442695, %v7541_v4 }
 0x618   : > { %v20176_v6 = vpop.eup %20175 }
 0x619   : > { %v7579_v52 = vmul.f32 %v20176_v6, %v20172_v60  ;;  %20181 = vpow2.f32 %v7548_v15 }
 0x61a   : > { %v20178_v43 = vpop.eup %20177 }
 0x61b   : > { %v7581_v17 = vmul.f32 %v20178_v43, %v20174_v27  ;;  %v7597_v20 = vsel %vm415_vm0, %v7579_v52, 0 }
 0x61c   : > { %v22953_v18 = vand.u32 4294901760, %v7597_v20 }
 0x61d   : > { %v7600_v5 = vsel %vm415_vm0, %v7581_v17, 0 }
 0x61e   : > { %v7638_v63 = vand.u32 4294901760, %v7600_v5  ;;  %v7745_v60 = vsub.f32 %v7597_v20, %v22953_v18 }
 0x620   : > { %7639 = vmatprep.subr.mxu0 %v7638_v63  ;;  %v7739_v27 = vsub.f32 %v7600_v5, %v7638_v63  ;;  %v7746_v45 = vand.u32 4294901760, %v7745_v60 }
 0x621   : > { %7641 = vmatpush1.msra.mxu0 %v22953_v18 }
 0x622   : > { %7680 = vmatmul.mubr.f32.vlgmr.msra.gmra.mxu0 %v22957_v7  ;;  %7836 = vmatprep.subr.mxu0 %v7739_v27  ;;  %v7740_v37 = vand.u32 4294901760, %v7739_v27  ;;  %v7747_v38 = vsub.f32 %v7745_v60, %v7746_v45 }
 0x623   : > { %7839 = vmatpush1.msra.mxu0 %v7745_v60  ;;  %7685 = vmatprep.mubr.f32.mxu0 %v26435_v19 }
 0x624   : > { %8024 = vmatprep.subr.mxu0 %v7740_v37  ;;  %v7741_v11 = vsub.f32 %v7739_v27, %v7740_v37  ;;  %v20180_v23 = vpop.eup %20179  ;;  %v7748_v42 = vand.u32 4294901760, %v7747_v38  ;;  %v20251_v37 = vld [vmem:[%s26213_s5 + $0x8] sm:$0xff]  ;;  %v20336_v38 = vmov 10  }
 0x625   : > { %v7564_v54 = vsel %vm415_vm0, %v20180_v23, 0.0 }
 0x626   : > { %7691 = vmatmul.mubr.f32.gmra.mxu0 %v22967_v41  ;;  %v7742_v8 = vand.u32 4294901760, %v7741_v11  ;;  %v20182_v16 = vpop.eup %20181  ;;  %v7565_v1 = vrot.slane %v7564_v54, 4 }
 0x627   : > { %7696 = vmatprep.mubr.f32.mxu0 %v26435_v19  ;;  %v7571_v30 = vsel %vm415_vm0, %v20182_v16, 0.0 }
 0x628   : > { %7743 = vmatprep.subr.mxu1 %v7742_v8  ;;  %v7566_v62 = vadd.f32 %v7565_v1, %v7564_v54  ;;  %v7572_v44 = vrot.slane %v7571_v30, 4 }
 0x629   : > { %7749 = vmatpush1.msra.mxu1 %v7748_v42 }
 0x62a   : > { %7702 = vmatmul.mubr.f32.gmra.mxu0 %v22975_v0  ;;  %7784 = vmatmul.mubr.f32.vlgmr.msra.gmra.mxu1 %v22925_v25  ;;  %v7567_v49 = vrot.slane %v7566_v62, 2  ;;  %v7573_v55 = vadd.f32 %v7572_v44, %v7571_v30 }
 0x62b   : > { %7928 = vmatprep.subr.mxu1 %v7638_v63  ;;  %7789 = vmatprep.mubr.f32.mxu1 %v26435_v19 }
 0x62c   : > { %7930 = vmatpush1.msra.mxu1 %v22953_v18  ;;  %7872 = vmatprep.mubr.f32.mxu0 %v26435_v19  ;;  %v7568_v39 = vadd.f32 %v7567_v49, %v7566_v62  ;;  %v7574_v48 = vrot.slane %v7573_v55, 2 }
 0x62d   : > { %8114 = vmatprep.subr.mxu1 %v7638_v63 }
 0x62e   : > { %7791 = vmatmul.mubr.f32.gmra.mxu1 %v22932_v14  ;;  %7875 = vmatmul.mubr.f32.vlgmr.msra.gmra.mxu0 %v22930_v29  ;;  %v7569_v59 = vrot.slane %v7568_v39, 1  ;;  %v7575_v26 = vadd.f32 %v7574_v48, %v7573_v55 }
 0x62f   : > { %8028 = vmatpush1.msra.mxu0 %v7746_v45  ;;  %7796 = vmatprep.mubr.f32.mxu1 %v26435_v19 }
 0x630   : > { %7880 = vmatprep.mubr.f32.mxu0 %v26435_v19  ;;  %v7570_v33 = vadd.f32 %v7569_v59, %v7568_v39  ;;  %v7576_v57 = vrot.slane %v7575_v26, 1  ;;  %v8734_v59 = vld [vmem:[%s26211_s3 + $0xa8] sm:$0xff] }
 0x632   : > { %7798 = vmatmul.mubr.f32.gmra.mxu1 %v22942_v9  ;;  %7883 = vmatmul.mubr.f32.gmra.mxu0 %v22940_v34  ;;  %20183 = vrcp.f32 %v7570_v33  ;;  %v7577_v12 = vadd.f32 %v7576_v57, %v7575_v26 }
 0x633   : > { %7888 = vmatprep.mubr.f32.mxu0 %v26435_v19  ;;  %7963 = vmatprep.mubr.f32.mxu1 %v26435_v19 }
 0x634   : > { %20185 = vrcp.f32 %v7577_v12 }
 0x636   : > { %7891 = vmatmul.mubr.f32.gmra.mxu0 %v22951_v24  ;;  %7967 = vmatmul.mubr.f32.vlgmr.msra.gmra.mxu1 %v22937_v35 }
 0x637   : > { %8116 = vmatpush1.msra.mxu1 %v22953_v18  ;;  %7972 = vmatprep.mubr.f32.mxu1 %v26435_v19 }
 0x638   : > { %8061 = vmatprep.mubr.f32.mxu0 %v26435_v19 }
 0x63a   : > { %7976 = vmatmul.mubr.f32.gmra.mxu1 %v22948_v2  ;;  %8063 = vmatmul.mubr.f32.vlgmr.msra.gmra.mxu0 %v22925_v25 }
 0x63b   : > { %7981 = vmatprep.mubr.f32.mxu1 %v26435_v19  ;;  %8068 = vmatprep.mubr.f32.mxu0 %v26435_v19 }
 0x63e   : > { %7985 = vmatmul.mubr.f32.gmra.mxu1 %v22960_v13  ;;  %8070 = vmatmul.mubr.f32.gmra.mxu0 %v22932_v14 }
 0x63f   : > { %8075 = vmatprep.mubr.f32.mxu0 %v26435_v19  ;;  %8149 = vmatprep.mubr.f32.mxu1 %v26435_v19  ;;  %v20184_v46 = vpop.eup %20183 }
 0x640   : > { %v7583_v58 = vmul.f32 %v20184_v46, %v20180_v23  ;;  %v8750_v46 = vsel %vm597_vm1, %v8734_v59, 0 }
 0x641   : > { %v20186_v10 = vpop.eup %20185 }
 0x642   : > { %8077 = vmatmul.mubr.f32.gmra.mxu0 %v22942_v9  ;;  %8151 = vmatmul.mubr.f32.vlgmr.msra.gmra.mxu1 %v22925_v25  ;;  %v7585_v21 = vmul.f32 %v20186_v10, %v20182_v16  ;;  %v7603_v4 = vsel %vm415_vm0, %v7583_v58, 0  ;;  %v20337_v16 = vmov 11  }
 0x643   : > { %8156 = vmatprep.mubr.f32.mxu1 %v26435_v19  ;;  %8237 = vmatprep.mubr.f32.mxu0 %v26435_v19  ;;  %v8203_v6 = vand.u32 4294901760, %v7603_v4 }
 0x644   : > { %v7606_v15 = vsel %vm415_vm0, %v7585_v21, 0 }
 0x645   : > { %v8201_v52 = vand.u32 4294901760, %v7606_v15  ;;  %v8308_v43 = vsub.f32 %v7603_v4, %v8203_v6  ;;  %v8735_v4 = vld [vmem:[%s26211_s3 + $0xb0] sm:$0xff] }
 0x646   : > { %8158 = vmatmul.mubr.f32.gmra.mxu1 %v22932_v14 }
 0x647   : > { %8163 = vmatprep.mubr.f32.mxu1 %v26435_v19  ;;  %8202 = vmatprep.subr.mxu0 %v8201_v52  ;;  %v8302_v61 = vsub.f32 %v7606_v15, %v8201_v52  ;;  %v8309_v17 = vand.u32 4294901760, %v8308_v43 }
 0x648   : > { %8204 = vmatpush1.msra.mxu0 %v8203_v6 }
 0x649   : > { %8243 = vmatmul.mubr.f32.vlgmr.msra.gmra.mxu0 %v22957_v7  ;;  %8399 = vmatprep.subr.mxu0 %v8302_v61  ;;  %v8303_v20 = vand.u32 4294901760, %v8302_v61  ;;  %v8310_v18 = vsub.f32 %v8308_v43, %v8309_v17 }
 0x64a   : > { %8402 = vmatpush1.msra.mxu0 %v8308_v43  ;;  %8248 = vmatprep.mubr.f32.mxu0 %v26435_v19 }
 0x64b   : > { %8587 = vmatprep.subr.mxu0 %v8303_v20  ;;  %8165 = vmatmul.mubr.f32.gmra.mxu1 %v22942_v9  ;;  %v8304_v5 = vsub.f32 %v8302_v61, %v8303_v20  ;;  %v8311_v60 = vand.u32 4294901760, %v8310_v18 }
 0x64c   : > { %8345 = vmatprep.mubr.f32.mxu1 %v26435_v19 }
 0x64d   : > { %8254 = vmatmul.mubr.f32.gmra.mxu0 %v22967_v41  ;;  %v8305_v63 = vand.u32 4294901760, %v8304_v5 }
 0x64e   : > { %8259 = vmatprep.mubr.f32.mxu0 %v26435_v19 }
 0x64f   : > { %8306 = vmatprep.subr.mxu1 %v8305_v63  ;;  %v8753_v63 = vsel %vm597_vm1, %v8735_v4, 0 }
 0x650   : > { %8312 = vmatpush1.msra.mxu1 %v8311_v60 }
 0x651   : > { %8265 = vmatmul.mubr.f32.gmra.mxu0 %v22975_v0  ;;  %8347 = vmatmul.mubr.f32.vlgmr.msra.gmra.mxu1 %v22925_v25 }
 0x652   : > { %8491 = vmatprep.subr.mxu1 %v8201_v52  ;;  %8352 = vmatprep.mubr.f32.mxu1 %v26435_v19 }
 0x653   : > { %8493 = vmatpush1.msra.mxu1 %v8203_v6  ;;  %8435 = vmatprep.mubr.f32.mxu0 %v26435_v19 }
 0x654   : > { %8677 = vmatprep.subr.mxu1 %v8201_v52 }
 0x655   : > { %8354 = vmatmul.mubr.f32.gmra.mxu1 %v22932_v14  ;;  %8438 = vmatmul.mubr.f32.vlgmr.msra.gmra.mxu0 %v22930_v29 }
 0x656   : > { %8591 = vmatpush1.msra.mxu0 %v8309_v17  ;;  %8359 = vmatprep.mubr.f32.mxu1 %v26435_v19  ;;  %v23065_v17 = vand.u32 4294901760, %v8750_v46 }
 0x657   : > { %8443 = vmatprep.mubr.f32.mxu0 %v26435_v19 }
 0x659   : > { %8361 = vmatmul.mubr.f32.gmra.mxu1 %v22942_v9  ;;  %8446 = vmatmul.mubr.f32.gmra.mxu0 %v22940_v34 }
 0x65a   : > { %8451 = vmatprep.mubr.f32.mxu0 %v26435_v19  ;;  %8526 = vmatprep.mubr.f32.mxu1 %v26435_v19 }
 0x65d   : > { %8454 = vmatmul.mubr.f32.gmra.mxu0 %v22951_v24  ;;  %8530 = vmatmul.mubr.f32.vlgmr.msra.gmra.mxu1 %v22937_v35 }
 0x65e   : > { %8679 = vmatpush1.msra.mxu1 %v8203_v6  ;;  %8535 = vmatprep.mubr.f32.mxu1 %v26435_v19 }
 0x65f   : > { %8624 = vmatprep.mubr.f32.mxu0 %v26435_v19 }
 0x661   : > { %8539 = vmatmul.mubr.f32.gmra.mxu1 %v22948_v2  ;;  %8626 = vmatmul.mubr.f32.vlgmr.msra.gmra.mxu0 %v22925_v25 }
 0x662   : > { %8544 = vmatprep.mubr.f32.mxu1 %v26435_v19  ;;  %8631 = vmatprep.mubr.f32.mxu0 %v26435_v19 }
 0x665   : > { %8548 = vmatmul.mubr.f32.gmra.mxu1 %v22960_v13  ;;  %8633 = vmatmul.mubr.f32.gmra.mxu0 %v22932_v14  ;;  %v20335_v13 = vmov 9  }
 0x666   : > { %8638 = vmatprep.mubr.f32.mxu0 %v26435_v19  ;;  %8712 = vmatprep.mubr.f32.mxu1 %v26435_v19 }
 0x667   : > { %20101 = vset.pattern.permute.xlu1 %v20335_v13  ;;  %20102 = vset.pattern.permute.xlu0 %v20335_v13 }
 0x669   : > { %8640 = vmatmul.mubr.f32.gmra.mxu0 %v22942_v9  ;;  %8714 = vmatmul.mubr.f32.vlgmr.msra.gmra.mxu1 %v22925_v25  ;;  %v20249_v25 = vld [vmem:[%s26213_s5] sm:$0xff] }
 0x66a   : > { %8719 = vmatprep.mubr.f32.mxu1 %v26435_v19  ;;  %8840 = vmatprep.mubr.f32.mxu0 %v26435_v19 }
 0x66b   : > { %8738 = vperm.xlu1 %20101, %v20249_v25  }
 0x66d   : > { %8721 = vmatmul.mubr.f32.gmra.mxu1 %v22932_v14  ;;  %v20250_v14 = vld [vmem:[%s26213_s5 + $0x10] sm:$0xf] }
 0x66e   : > { %8726 = vmatprep.mubr.f32.mxu1 %v26435_v19  ;;  %8746 = vperm.xlu0 %20102, %v20250_v14  }
 0x66f   : > { %8742 = vperm.xlu1 %20101, %v20251_v37  }
 0x671   : > { %8728 = vmatmul.mubr.f32.gmra.mxu1 %v22942_v9 }
 0x672   : > { %8968 = vmatprep.mubr.f32.mxu1 %v26435_v19  ;;  %20105 = vset.pattern.permute.xlu0 %v20336_v38 }
 0x673   : > { %10141 = vperm.xlu0 %20105, %v20251_v37   ;;  %20103 = vset.pattern.permute.xlu1 %v20336_v38 }
 0x674   : > { %10145 = vperm.xlu1 %20103, %v20250_v14  }
 0x677   : > { %20108 = vset.pattern.permute.xlu0 %v20337_v16 }
 0x678   : > { %10161 = vperm.xlu0 %20108, %v20249_v25   ;;  %20104 = vset.pattern.permute.xlu1 %v20337_v16 }
 0x679   : > { %10169 = vperm.xlu1 %20104, %v20250_v14  }
 0x67d   : > { %20106 = vset.pattern.permute.xlu1 %v20336_v38  ;;  %v23071_v38 = vand.u32 4294901760, %v8753_v63 }
 0x67e   : > { %10137 = vperm.xlu1 %20106, %v20249_v25  }
 0x682   : > { %20107 = vset.pattern.permute.xlu1 %v20337_v16 }
 0x683   : > { %10165 = vperm.xlu1 %20107, %v20251_v37  }
 0x6e2   : > { %v7681_v29 = vpop.f32.mrf.mxu0 }
 0x6e4   : > { %v7683_v35 = vpop.f32.mrf.mxu0 }
 0x6e6   : > { %v7692_v34 = vpop.f32.mrf.mxu0 }
 0x6e8   : > { %v7694_v2 = vpop.f32.mrf.mxu0 }
 0x6ea   : > { %v7703_v24 = vpop.f32.mrf.mxu0  ;;  %v7785_v7 = vpop.f32.mrf.mxu1 }
 0x6eb   : > { %v7786_v52 = vadd.f32 %v7785_v7, %v7681_v29  ;;  %v23069_v7 = vsub.f32 %v8750_v46, %v23065_v17 }
 0x6ec   : > { %v7705_v9 = vpop.f32.mrf.mxu0  ;;  %v7787_v27 = vpop.f32.mrf.mxu1 }
 0x6ed   : > { %v7788_v58 = vadd.f32 %v7787_v27, %v7683_v35 }
 0x6ee   : > { %v7792_v36 = vpop.f32.mrf.mxu1  ;;  %v7876_v45 = vpop.f32.mrf.mxu0 }
 0x6ef   : > { %v7793_v57 = vadd.f32 %v7792_v36, %v7692_v34  ;;  %v7877_v60 = vadd.f32 %v7876_v45, %v7786_v52 }
 0x6f0   : > { %v7794_v41 = vpop.f32.mrf.mxu1  ;;  %v7878_v11 = vpop.f32.mrf.mxu0 }
 0x6f1   : > { %v7795_v12 = vadd.f32 %v7794_v41, %v7694_v2  ;;  %v7879_v43 = vadd.f32 %v7878_v11, %v7788_v58 }
 0x6f2   : > { %v7799_v32 = vpop.f32.mrf.mxu1  ;;  %v7884_v23 = vpop.f32.mrf.mxu0 }
 0x6f3   : > { %v7885_v6 = vadd.f32 %v7884_v23, %v7793_v57  ;;  %v7800_v20 = vadd.f32 %v7799_v32, %v7703_v24  ;;  %v8736_v24 = vld [vmem:[%s26211_s3 + $0xb8] sm:$0xf] }
 0x6f4   : > { %v7801_v54 = vpop.f32.mrf.mxu1  ;;  %v7886_v8 = vpop.f32.mrf.mxu0 }
 0x6f5   : > { %v7887_v15 = vadd.f32 %v7886_v8, %v7795_v12  ;;  %v7802_v13 = vadd.f32 %v7801_v54, %v7705_v9 }
 0x6f6   : > { %v7892_v1 = vpop.f32.mrf.mxu0  ;;  %v7968_v42 = vpop.f32.mrf.mxu1 }
 0x6f7   : > { %v7893_v25 = vadd.f32 %v7892_v1, %v7800_v20  ;;  %v7969_v36 = vadd.f32 %v7968_v42, %v7877_v60  ;;  %v8756_v1 = vsel %vm597_vm1, %v8736_v24, 0 }
 0x6f8   : > { %v7894_v30 = vpop.f32.mrf.mxu0  ;;  %v7970_v0 = vpop.f32.mrf.mxu1  ;;  %v23095_v57 = vand.u32 4294901760, %v8756_v1 }
 0x6f9   : > { %v7971_v35 = vadd.f32 %v7970_v0, %v7879_v43  ;;  %v7895_v45 = vadd.f32 %v7894_v30, %v7802_v13 }
 0x6fa   : > { %v7977_v62 = vpop.f32.mrf.mxu1  ;;  %v8064_v44 = vpop.f32.mrf.mxu0  ;;  %v23129_v60 = vsub.f32 %v8756_v1, %v23095_v57 }
 0x6fb   : > { %v7978_v18 = vadd.f32 %v7977_v62, %v7885_v6  ;;  %v8065_v9 = vadd.f32 %v8064_v44, %v7969_v36 }
 0x6fc   : > { %v7979_v49 = vpop.f32.mrf.mxu1  ;;  %v8066_v55 = vpop.f32.mrf.mxu0 }
 0x6fd   : > { %v7980_v5 = vadd.f32 %v7979_v49, %v7887_v15  ;;  %v8067_v37 = vadd.f32 %v8066_v55, %v7971_v35  ;;  %v23084_v55 = vand.u32 4294901760, %v23069_v7 }
 0x6fe   : > { %v7986_v39 = vpop.f32.mrf.mxu1  ;;  %v8071_v48 = vpop.f32.mrf.mxu0 }
 0x6ff   : > { %v8072_v14 = vadd.f32 %v8071_v48, %v7978_v18  ;;  %v7987_v41 = vadd.f32 %v7986_v39, %v7893_v25  ;;  %v23089_v48 = vsub.f32 %v8753_v63, %v23071_v38  ;;  %v8844_v52 = vsub.f32 %v23069_v7, %v23084_v55 }
 0x700   : > { %v7988_v26 = vpop.f32.mrf.mxu1  ;;  %v8073_v33 = vpop.f32.mrf.mxu0 }
 0x701   : > { %v8074_v27 = vadd.f32 %v8073_v33, %v7980_v5  ;;  %v7989_v8 = vadd.f32 %v7988_v26, %v7895_v45  ;;  %v23114_v43 = vand.u32 4294901760, %v23089_v48  ;;  %v23144_v36 = vand.u32 4294901760, %v8844_v52 }
 0x702   : > { %v8078_v10 = vpop.f32.mrf.mxu0  ;;  %v8152_v21 = vpop.f32.mrf.mxu1 }
 0x703   : > { %v8079_v16 = vadd.f32 %v8078_v10, %v7987_v41  ;;  %v8153_v42 = vadd.f32 %v8152_v21, %v8065_v9  ;;  %v8855_v45 = vsub.f32 %v23089_v48, %v23114_v43 }
 0x704   : > { %v8154_v61 = vpop.f32.mrf.mxu1  ;;  %v8080_v34 = vpop.f32.mrf.mxu0 }
 0x705   : > { %v8155_v23 = vadd.f32 %v8154_v61, %v8067_v37  ;;  %v8081_v30 = vadd.f32 %v8080_v34, %v7989_v8  ;;  %v23098_v58 = vand.u32 4294901760, %v8153_v42 }
 0x706   : > { %v8159_v2 = vpop.f32.mrf.mxu1 }
 0x707   : > { %v8160_v11 = vadd.f32 %v8159_v2, %v8072_v14  ;;  %v23091_v59 = vand.u32 4294901760, %v8155_v23  ;;  %v23132_v35 = vsub.f32 %v8153_v42, %v23098_v58 }
 0x708   : > { %v8161_v29 = vpop.f32.mrf.mxu1 }
 0x709   : > { %v8162_v32 = vadd.f32 %v8161_v29, %v8074_v27  ;;  %v23076_v54 = vpop.f32.mrf.mxu0  ;;  %v23086_v39 = vand.u32 4294901760, %v8160_v11  ;;  %v23117_v61 = vsub.f32 %v8155_v23, %v23091_v59  ;;  %v26255_v9 = vand.u32 4294901760, %v23132_v35 }
 0x70b   : > { %v23079_v0 = vand.u32 4294901760, %v8162_v32  ;;  %v23081_v62 = vpop.f32.mrf.mxu0  ;;  %v8166_v49 = vpop.f32.mrf.mxu1  ;;  %v23108_v6 = vsub.f32 %v8160_v11, %v23086_v39  ;;  %v26251_v41 = vand.u32 4294901760, %v23117_v61  ;;  %v23155_v11 = vand.u32 4294901760, %v23129_v60 }
 0x70c   : > { %v8167_v44 = vadd.f32 %v8166_v49, %v8079_v16  ;;  %v8933_v52 = vsub.f32 %v23132_v35, %v26255_v9 }
 0x70d   : > { %v23093_v26 = vpop.f32.mrf.mxu0  ;;  %v8168_v33 = vpop.f32.mrf.mxu1  ;;  %v23101_v10 = vsub.f32 %v8162_v32, %v23079_v0  ;;  %v26252_v27 = vand.u32 4294901760, %v23108_v6 }
 0x70e   : > { %v8759_v12 = vsel %vm415_vm0, %v8167_v44, 0  ;;  %v8169_v46 = vadd.f32 %v8168_v33, %v8081_v30  ;;  %v23179_v33 = vand.u32 4294901760, %v8855_v45 }
 0x70f   : > { %v23103_v21 = vand.u32 4294901760, %v8759_v12  ;;  %v23105_v4 = vpop.f32.mrf.mxu0  ;;  %v26253_v14 = vand.u32 4294901760, %v23101_v10  ;;  %v8921_v42 = vsub.f32 %v23108_v6, %v26252_v27  ;;  %v26457_v47 = vand.u32 4294901760, %v23101_v10 }
 0x710   : > { %v8762_v15 = vsel %vm415_vm0, %v8169_v46, 0  ;;  %v8866_v46 = vsub.f32 %v23129_v60, %v23155_v11 }
 0x711   : > { %v23120_v20 = vsub.f32 %v8759_v12, %v23103_v21  ;;  %v23122_v18 = vand.u32 4294901760, %v8762_v15  ;;  %v23124_v5 = vpop.f32.mrf.mxu0  ;;  %v23126_v63 = vpop.f32.mrf.mxu1  ;;  %v8915_v1 = vsub.f32 %v23101_v10, %v26253_v14  ;;  %v8927_v12 = vsub.f32 %v23117_v61, %v26251_v41 }
 0x712   : > { %v8922_v41 = vand.u32 4294901760, %v8921_v42 }
 0x713   : > { %v26254_v34 = vand.u32 4294901760, %v23120_v20  ;;  %v23135_v2 = vpop.f32.mrf.mxu0  ;;  %v23137_v13 = vpop.f32.mrf.mxu1  ;;  %8797 = vmatprep.subr.mxu0 %v23122_v18  ;;  %v8901_v25 = vsub.f32 %v8762_v15, %v23122_v18  ;;  %v8916_v45 = vand.u32 4294901760, %v8915_v1  ;;  %v8934_v1 = vand.u32 4294901760, %v8933_v52 }
 0x714   : > { %8799 = vmatpush1.msra.mxu0 %v23103_v21  ;;  %v8351_v22 = vadd.f32 %v23137_v13, %v23081_v62  ;;  %v8349_v62 = vadd.f32 %v23126_v63, %v23076_v54 }
 0x715   : > { %v23146_v37 = vpop.f32.mrf.mxu1  ;;  %v23148_v29 = vpop.f32.mrf.mxu0  ;;  %8801 = vmatprep.subr.mxu0 %v23079_v0  ;;  %v8902_v24 = vand.u32 4294901760, %v8901_v25  ;;  %v8909_v32 = vsub.f32 %v23120_v20, %v26254_v34  ;;  %v23196_v34 = vand.u32 4294901760, %v8866_v46 }
 0x716   : > { %8803 = vmatpush1.msra.mxu0 %v23086_v39  ;;  %v8440_v54 = vadd.f32 %v23148_v29, %v8349_v62 }
 0x717   : > { %v23162_v23 = vpop.f32.mrf.mxu1  ;;  %v23164_v8 = vpop.f32.mrf.mxu0  ;;  %8805 = vmatprep.subr.mxu0 %v23091_v59  ;;  %v8903_v16 = vsub.f32 %v8901_v25, %v8902_v24  ;;  %v8910_v15 = vand.u32 4294901760, %v8909_v32  ;;  %v8928_v32 = vand.u32 4294901760, %v8927_v12 }
 0x718   : > { %8807 = vmatpush1.msra.mxu0 %v23098_v58  ;;  %v8358_v50 = vadd.f32 %v23162_v23, %v23105_v4 }
 0x719   : > { %v23174_v49 = vpop.f32.mrf.mxu1  ;;  %v23176_v30 = vpop.f32.mrf.mxu0  ;;  %8846 = vmatmul.mubr.f32.vlgmr.msra.gmra.mxu0 %v23144_v36  ;;  %9018 = vmatprep.subr.mxu0 %v8901_v25  ;;  %v8904_v44 = vand.u32 4294901760, %v8903_v16 }
 0x71a   : > { %9021 = vmatpush1.msra.mxu0 %v23120_v20  ;;  %8851 = vmatprep.mubr.f32.mxu0 %v26435_v19 }
 0x71b   : > { %v8364_v25 = vpop.f32.mrf.mxu1  ;;  %v8449_v16 = vpop.f32.mrf.mxu0  ;;  %8905 = vmatprep.subr.mxu1 %v8904_v44  ;;  %9024 = vmatprep.subr.mxu0 %v23101_v10  ;;  %v8442_v10 = vadd.f32 %v23164_v8, %v8351_v22 }
 0x71c   : > { %8911 = vmatpush1.msra.mxu1 %v8910_v15  ;;  %9027 = vmatpush1.msra.mxu0 %v23108_v6  ;;  %v8450_v4 = vadd.f32 %v8449_v16, %v8358_v50 }
 0x71d   : > { %v8455_v27 = vpop.f32.mrf.mxu0  ;;  %v23193_v14 = vpop.f32.mrf.mxu1  ;;  %8857 = vmatmul.mubr.f32.gmra.mxu0 %v23179_v33  ;;  %8917 = vmatprep.subr.mxu1 %v8916_v45 }
 0x71e   : > { %9030 = vmatprep.subr.mxu0 %v23117_v61  ;;  %8923 = vmatpush1.msra.mxu1 %v8922_v41 }
 0x71f   : > { %v8457_v44 = vpop.f32.mrf.mxu0  ;;  %v8533_v9 = vpop.f32.mrf.mxu1  ;;  %9033 = vmatpush1.msra.mxu0 %v23132_v35  ;;  %8929 = vmatprep.subr.mxu1 %v8928_v32  ;;  %v26456_v32 = vand.u32 4294901760, %v23120_v20  ;;  %v26458_v20 = vand.u32 4294901760, %v23108_v6  ;;  %v8365_v6 = vadd.f32 %v8364_v25, %v23135_v2  ;;  %v8532_v25 = vadd.f32 %v23193_v14, %v8440_v54 }
 0x720   : > { %9218 = vmatprep.subr.mxu0 %v8902_v24  ;;  %8862 = vmatprep.mubr.f32.mxu0 %v26435_v19  ;;  %v8534_v22 = vadd.f32 %v8533_v9, %v8442_v10 }
 0x721   : > { %v8540_v42 = vpop.f32.mrf.mxu1  ;;  %v23201_v15 = vpop.f32.mrf.mxu0  ;;  %8935 = vmatpush1.msra.mxu1 %v8934_v1  ;;  %8868 = vmatmul.mubr.f32.gmra.mxu0 %v23196_v34  ;;  %v8356_v1 = vadd.f32 %v23146_v37, %v23093_v26  ;;  %v8363_v26 = vadd.f32 %v23174_v49, %v23124_v5  ;;  %v26460_v49 = vand.u32 4294901760, %v23132_v35 }
 0x722   : > { %8970 = vmatmul.mubr.f32.vlgmr.msra.gmra.mxu1 %v23065_v17  ;;  %9118 = vmatprep.subr.mxu1 %v23122_v18  ;;  %v8628_v9 = vadd.f32 %v23201_v15, %v8532_v25 }
 0x723   : > { %v8542_v41 = vpop.f32.mrf.mxu1  ;;  %v8629_v12 = vpop.f32.mrf.mxu0  ;;  %9120 = vmatpush1.msra.mxu1 %v23103_v21  ;;  %8975 = vmatprep.mubr.f32.mxu1 %v26435_v19  ;;  %v8448_v37 = vadd.f32 %v23176_v30, %v8356_v1  ;;  %v8456_v5 = vadd.f32 %v8455_v27, %v8363_v26 }
 0x724   : > { %9122 = vmatprep.subr.mxu1 %v23079_v0  ;;  %9066 = vmatprep.mubr.f32.mxu0 %v26435_v19  ;;  %v8543_v23 = vadd.f32 %v8542_v41, %v8450_v4  ;;  %v8630_v27 = vadd.f32 %v8629_v12, %v8534_v22 }
 0x725   : > { %v8549_v24 = vpop.f32.mrf.mxu1  ;;  %v8634_v46 = vpop.f32.mrf.mxu0  ;;  %9124 = vmatpush1.msra.mxu1 %v23086_v39  ;;  %9069 = vmatmul.mubr.f32.vlgmr.msra.gmra.mxu0 %v23069_v7  ;;  %v8541_v50 = vadd.f32 %v8540_v42, %v8448_v37 }
 0x726   : > { %8977 = vmatmul.mubr.f32.gmra.mxu1 %v23071_v38  ;;  %9126 = vmatprep.subr.mxu1 %v23091_v59  ;;  %v8550_v2 = vadd.f32 %v8549_v24, %v8456_v5 }
 0x727   : > { %v8551_v52 = vpop.f32.mrf.mxu1  ;;  %v8636_v45 = vpop.f32.mrf.mxu0  ;;  %9222 = vmatpush1.msra.mxu0 %v26456_v32  ;;  %9128 = vmatpush1.msra.mxu1 %v23098_v58  ;;  %v8635_v8 = vadd.f32 %v8634_v46, %v8541_v50 }
 0x728   : > { %9226 = vmatprep.subr.mxu0 %v26457_v47  ;;  %9320 = vmatprep.subr.mxu1 %v23122_v18  ;;  %v26459_v47 = vand.u32 4294901760, %v23117_v61  ;;  %v8458_v61 = vadd.f32 %v8457_v44, %v8365_v6  ;;  %v8637_v30 = vadd.f32 %v8636_v45, %v8543_v23 }
 0x729   : > { %v8715_v28 = vpop.f32.mrf.mxu1  ;;  %9230 = vmatpush1.msra.mxu0 %v26458_v20  ;;  %8982 = vmatprep.mubr.f32.mxu1 %v26435_v19  ;;  %v8641_v18 = vpop.f32.mrf.mxu0 }
 0x72a   : > { %9074 = vmatprep.mubr.f32.mxu0 %v26435_v19  ;;  %9234 = vmatprep.subr.mxu0 %v26459_v47  ;;  %v8552_v16 = vadd.f32 %v8551_v52, %v8458_v61  ;;  %v8642_v35 = vadd.f32 %v8641_v18, %v8550_v2  ;;  %v8716_v52 = vadd.f32 %v8715_v28, %v8628_v9 }
 0x72b   : > { %v8717_v13 = vpop.f32.mrf.mxu1  ;;  %8984 = vmatmul.mubr.f32.gmra.mxu1 %v23095_v57  ;;  %9077 = vmatmul.mubr.f32.gmra.mxu0 %v23089_v48  ;;  %v8643_v42 = vpop.f32.mrf.mxu0 }
 0x72c   : > { %9238 = vmatpush1.msra.mxu0 %v26460_v49  ;;  %9082 = vmatprep.mubr.f32.mxu0 %v26435_v19  ;;  %v8718_v24 = vadd.f32 %v8717_v13, %v8630_v27  ;;  %v8644_v12 = vadd.f32 %v8643_v42, %v8552_v16 }
 0x72d   : > { %v8722_v63 = vpop.f32.mrf.mxu1  ;;  %9161 = vmatprep.mubr.f32.mxu1 %v26435_v19 }
 0x72e   : > { %v8723_v29 = vadd.f32 %v8722_v63, %v8635_v8  ;;  %v23264_v1 = vand.u32 4294901760, %v8718_v24 }
 0x72f   : > { %v8724_v41 = vpop.f32.mrf.mxu1  ;;  %9085 = vmatmul.mubr.f32.gmra.mxu0 %v23129_v60  ;;  %9165 = vmatmul.mubr.f32.vlgmr.msra.gmra.mxu1 %v23084_v55 }
 0x730   : > { %v8725_v44 = vadd.f32 %v8724_v41, %v8637_v30  ;;  %9322 = vmatpush1.msra.mxu1 %v23103_v21  ;;  %9170 = vmatprep.mubr.f32.mxu1 %v26435_v19  ;;  %v23259_v32 = vand.u32 4294901760, %v8723_v29  ;;  %v23288_v4 = vsub.f32 %v8718_v24, %v23264_v1 }
 0x731   : > { %9324 = vmatprep.subr.mxu1 %v23079_v0  ;;  %v8729_v14 = vpop.f32.mrf.mxu1  ;;  %9271 = vmatprep.mubr.f32.mxu0 %v26435_v19 }
 0x732   : > { %v8730_v46 = vadd.f32 %v8729_v14, %v8642_v35  ;;  %9326 = vmatpush1.msra.mxu1 %v23086_v39  ;;  %v23255_v45 = vand.u32 4294901760, %v8725_v44  ;;  %v9541_v23 = vand.u32 4294901760, %v23288_v4  ;;  %v23372_v35 = vpop.permute.xlu1 %8738 }
 0x733   : > { %9328 = vmatprep.subr.mxu1 %v23091_v59  ;;  %v8731_v21 = vpop.f32.mrf.mxu1  ;;  %9174 = vmatmul.mubr.f32.gmra.mxu1 %v23114_v43  ;;  %v23271_v59 = vand.u32 4294901760, %v8716_v52 }
 0x734   : > { %v8765_v15 = vsel %vm415_vm0, %v8730_v46, 0  ;;  %v8732_v0 = vadd.f32 %v8731_v21, %v8644_v12  ;;  %9273 = vmatmul.mubr.f32.vlgmr.msra.gmra.mxu0 %v23065_v17  ;;  %9330 = vmatpush1.msra.mxu1 %v23098_v58  ;;  %v23274_v20 = vsub.f32 %v8725_v44, %v23255_v45  ;;  %v23283_v58 = vsub.f32 %v8723_v29, %v23259_v32 }
 0x735   : > { %v23266_v39 = vand.u32 4294901760, %v8765_v15  ;;  %9179 = vmatprep.mubr.f32.mxu1 %v26435_v19  ;;  %9278 = vmatprep.mubr.f32.mxu0 %v26435_v19  ;;  %v23296_v10 = vsub.f32 %v8716_v52, %v23271_v59  ;;  %v9542_v2 = vsub.f32 %v23288_v4, %v9541_v23 }
 0x736   : > { %v8768_v28 = vsel %vm415_vm0, %v8732_v0, 0  ;;  %v9529_v18 = vand.u32 4294901760, %v23274_v20  ;;  %v9535_v13 = vand.u32 4294901760, %v23283_v58  ;;  %v23374_v14 = vpop.permute.xlu1 %8742  ;;  %v23378_v0 = vpop.permute.xlu0 %8746 }
 0x737   : > { %v23277_v26 = vsub.f32 %v8765_v15, %v23266_v39  ;;  %v23279_v37 = vand.u32 4294901760, %v8768_v28  ;;  %9183 = vmatmul.mubr.f32.gmra.mxu1 %v23155_v11  ;;  %v9547_v49 = vand.u32 4294901760, %v23296_v10  ;;  %v9543_v25 = vand.u32 4294901760, %v9542_v2 }
 0x738   : > { %9280 = vmatmul.mubr.f32.gmra.mxu0 %v23071_v38  ;;  %9363 = vmatprep.mubr.f32.mxu1 %v26435_v19  ;;  %v9530_v61 = vsub.f32 %v23274_v20, %v9529_v18  ;;  %v9536_v22 = vsub.f32 %v23283_v58, %v9535_v13 }
 0x739   : > { %v9523_v47 = vand.u32 4294901760, %v23277_v26  ;;  %9412 = vmatprep.subr.mxu0 %v23279_v37  ;;  %9285 = vmatprep.mubr.f32.mxu0 %v26435_v19  ;;  %v9516_v62 = vsub.f32 %v8768_v28, %v23279_v37  ;;  %v9548_v8 = vsub.f32 %v23296_v10, %v9547_v49 }
 0x73a   : > { %9414 = vmatpush1.msra.mxu0 %v23266_v39  ;;  %v9531_v30 = vand.u32 4294901760, %v9530_v61 }
 0x73b   : > { %9365 = vmatmul.mubr.f32.vlgmr.msra.gmra.mxu1 %v23065_v17  ;;  %9416 = vmatprep.subr.mxu0 %v23255_v45  ;;  %v9517_v6 = vand.u32 4294901760, %v9516_v62  ;;  %v9524_v50 = vsub.f32 %v23277_v26, %v9523_v47  ;;  %v9549_v27 = vand.u32 4294901760, %v9548_v8 }
 0x73c   : > { %9287 = vmatmul.mubr.f32.gmra.mxu0 %v23095_v57  ;;  %9370 = vmatprep.mubr.f32.mxu1 %v26435_v19 }
 0x73d   : > { %9418 = vmatpush1.msra.mxu0 %v23259_v32  ;;  %9455 = vmatprep.mubr.f32.mxu0 %v26435_v19  ;;  %v9518_v5 = vsub.f32 %v9516_v62, %v9517_v6  ;;  %v9525_v63 = vand.u32 4294901760, %v9524_v50 }
 0x73e   : > { %9420 = vmatprep.subr.mxu0 %v23264_v1 }
 0x73f   : > { %9422 = vmatpush1.msra.mxu0 %v23271_v59  ;;  %9372 = vmatmul.mubr.f32.gmra.mxu1 %v23071_v38  ;;  %v9519_v54 = vand.u32 4294901760, %v9518_v5 }
 0x740   : > { %9461 = vmatmul.mubr.f32.vlgmr.msra.gmra.mxu0 %v23144_v36  ;;  %9633 = vmatprep.subr.mxu0 %v9516_v62  ;;  %v9537_v36 = vand.u32 4294901760, %v9536_v22 }
 0x741   : > { %9636 = vmatpush1.msra.mxu0 %v23277_v26  ;;  %9520 = vmatprep.subr.mxu1 %v9519_v54 }
 0x742   : > { %9639 = vmatprep.subr.mxu0 %v23274_v20  ;;  %9377 = vmatprep.mubr.f32.mxu1 %v26435_v19 }
 0x743   : > { %9466 = vmatprep.mubr.f32.mxu0 %v26435_v19  ;;  %9526 = vmatpush1.msra.mxu1 %v9525_v63 }
 0x744   : > { %9642 = vmatpush1.msra.mxu0 %v23283_v58  ;;  %9379 = vmatmul.mubr.f32.gmra.mxu1 %v23095_v57 }
 0x745   : > { %9472 = vmatmul.mubr.f32.gmra.mxu0 %v23179_v33  ;;  %9532 = vmatprep.subr.mxu1 %v9531_v30 }
 0x746   : > { %9645 = vmatprep.subr.mxu0 %v23288_v4  ;;  %9538 = vmatpush1.msra.mxu1 %v9537_v36 }
 0x747   : > { %9648 = vmatpush1.msra.mxu0 %v23296_v10  ;;  %9544 = vmatprep.subr.mxu1 %v9543_v25 }
 0x748   : > { %9833 = vmatprep.subr.mxu0 %v9517_v6  ;;  %9477 = vmatprep.mubr.f32.mxu0 %v26435_v19 }
 0x749   : > { %9550 = vmatpush1.msra.mxu1 %v9549_v27  ;;  %9583 = vmatprep.mubr.f32.mxu1 %v26435_v19 }
 0x74a   : > { %9483 = vmatmul.mubr.f32.gmra.mxu0 %v23196_v34  ;;  %9585 = vmatmul.mubr.f32.vlgmr.msra.gmra.mxu1 %v23065_v17 }
 0x74b   : > { %9733 = vmatprep.subr.mxu1 %v23279_v37  ;;  %9590 = vmatprep.mubr.f32.mxu1 %v26435_v19 }
 0x74c   : > { %9735 = vmatpush1.msra.mxu1 %v23266_v39  ;;  %9681 = vmatprep.mubr.f32.mxu0 %v26435_v19 }
 0x74d   : > { %9737 = vmatprep.subr.mxu1 %v23255_v45 }
 0x74e   : > { %9739 = vmatpush1.msra.mxu1 %v23259_v32  ;;  %9684 = vmatmul.mubr.f32.vlgmr.msra.gmra.mxu0 %v23069_v7 }
 0x74f   : > { %9592 = vmatmul.mubr.f32.gmra.mxu1 %v23071_v38  ;;  %9741 = vmatprep.subr.mxu1 %v23264_v1 }
 0x750   : > { %9837 = vmatpush1.msra.mxu0 %v9523_v47  ;;  %9743 = vmatpush1.msra.mxu1 %v23271_v59 }
 0x751   : > { %9841 = vmatprep.subr.mxu0 %v9529_v18  ;;  %9935 = vmatprep.subr.mxu1 %v23279_v37 }
 0x752   : > { %9845 = vmatpush1.msra.mxu0 %v9535_v13  ;;  %9597 = vmatprep.mubr.f32.mxu1 %v26435_v19 }
 0x753   : > { %9689 = vmatprep.mubr.f32.mxu0 %v26435_v19  ;;  %9849 = vmatprep.subr.mxu0 %v9541_v23 }
 0x754   : > { %9599 = vmatmul.mubr.f32.gmra.mxu1 %v23095_v57  ;;  %9692 = vmatmul.mubr.f32.gmra.mxu0 %v23089_v48 }
 0x755   : > { %9853 = vmatpush1.msra.mxu0 %v9547_v49  ;;  %9697 = vmatprep.mubr.f32.mxu0 %v26435_v19 }
 0x756   : > { %9776 = vmatprep.mubr.f32.mxu1 %v26435_v19 }
 0x758   : > { %9700 = vmatmul.mubr.f32.gmra.mxu0 %v23129_v60  ;;  %9780 = vmatmul.mubr.f32.vlgmr.msra.gmra.mxu1 %v23084_v55 }
 0x759   : > { %9937 = vmatpush1.msra.mxu1 %v23266_v39  ;;  %9785 = vmatprep.mubr.f32.mxu1 %v26435_v19 }
 0x75a   : > { %9939 = vmatprep.subr.mxu1 %v23255_v45  ;;  %9886 = vmatprep.mubr.f32.mxu0 %v26435_v19 }
 0x75b   : > { %9941 = vmatpush1.msra.mxu1 %v23259_v32 }
 0x75c   : > { %9943 = vmatprep.subr.mxu1 %v23264_v1  ;;  %9789 = vmatmul.mubr.f32.gmra.mxu1 %v23114_v43 }
 0x75d   : > { %9888 = vmatmul.mubr.f32.vlgmr.msra.gmra.mxu0 %v23065_v17  ;;  %9945 = vmatpush1.msra.mxu1 %v23271_v59 }
 0x75e   : > { %9794 = vmatprep.mubr.f32.mxu1 %v26435_v19  ;;  %9893 = vmatprep.mubr.f32.mxu0 %v26435_v19 }
 0x760   : > { %9798 = vmatmul.mubr.f32.gmra.mxu1 %v23155_v11 }
 0x761   : > { %9895 = vmatmul.mubr.f32.gmra.mxu0 %v23071_v38  ;;  %9978 = vmatprep.mubr.f32.mxu1 %v26435_v19 }
 0x762   : > { %9900 = vmatprep.mubr.f32.mxu0 %v26435_v19 }
 0x764   : > { %9980 = vmatmul.mubr.f32.vlgmr.msra.gmra.mxu1 %v23065_v17 }
 0x765   : > { %9902 = vmatmul.mubr.f32.gmra.mxu0 %v23095_v57  ;;  %9985 = vmatprep.mubr.f32.mxu1 %v26435_v19 }
 0x766   : > { %10276 = vmatprep.mubr.f32.mxu0 %v26435_v19 }
 0x768   : > { %9987 = vmatmul.mubr.f32.gmra.mxu1 %v23071_v38 }
 0x769   : > { %9992 = vmatprep.mubr.f32.mxu1 %v26435_v19 }
 0x76c   : > { %9994 = vmatmul.mubr.f32.gmra.mxu1 %v23095_v57 }
 0x76d   : > { %10382 = vmatprep.mubr.f32.mxu1 %v26435_v19 }
 0x7d9   : > { %v8847_v7 = vpop.f32.mrf.mxu0 }
 0x7da   : > { %v8848_v15 = vadd.f32 %v8847_v7, %v23372_v35 }
 0x7db   : > { %v8849_v55 = vpop.f32.mrf.mxu0 }
 0x7dc   : > { %v8850_v4 = vadd.f32 %v8849_v55, %v23372_v35 }
 0x7dd   : > { %v8858_v48 = vpop.f32.mrf.mxu0 }
 0x7de   : > { %v8859_v45 = vadd.f32 %v8858_v48, %v23374_v14 }
 0x7df   : > { %v8860_v43 = vpop.f32.mrf.mxu0 }
 0x7e0   : > { %v8861_v59 = vadd.f32 %v8860_v43, %v23374_v14 }
 0x7e1   : > { %v8869_v60 = vpop.f32.mrf.mxu0 }
 0x7e2   : > { %v8971_v17 = vpop.f32.mrf.mxu1  ;;  %v8870_v26 = vadd.f32 %v8869_v60, %v23378_v0 }
 0x7e3   : > { %v8871_v34 = vpop.f32.mrf.mxu0  ;;  %v8972_v58 = vadd.f32 %v8971_v17, %v8848_v15 }
 0x7e4   : > { %v8973_v11 = vpop.f32.mrf.mxu1  ;;  %v8872_v54 = vadd.f32 %v8871_v34, %v23378_v0 }
 0x7e5   : > { %v9070_v33 = vpop.f32.mrf.mxu0  ;;  %v8974_v18 = vadd.f32 %v8973_v11, %v8850_v4 }
 0x7e6   : > { %v8978_v16 = vpop.f32.mrf.mxu1  ;;  %v9071_v13 = vadd.f32 %v9070_v33, %v8972_v58 }
 0x7e7   : > { %v9072_v42 = vpop.f32.mrf.mxu0  ;;  %v8979_v28 = vadd.f32 %v8978_v16, %v8859_v45 }
 0x7e8   : > { %v8980_v41 = vpop.f32.mrf.mxu1  ;;  %v9073_v22 = vadd.f32 %v9072_v42, %v8974_v18 }
 0x7e9   : > { %v8981_v47 = vadd.f32 %v8980_v41, %v8861_v59 }
 0x7eb   : > { %v8985_v38 = vpop.f32.mrf.mxu1  ;;  %v9078_v29 = vpop.f32.mrf.mxu0 }
 0x7ec   : > { %v9079_v62 = vadd.f32 %v9078_v29, %v8979_v28  ;;  %v8986_v49 = vadd.f32 %v8985_v38, %v8870_v26 }
 0x7ed   : > { %v8987_v44 = vpop.f32.mrf.mxu1  ;;  %v9080_v57 = vpop.f32.mrf.mxu0 }
 0x7ee   : > { %v9081_v5 = vadd.f32 %v9080_v57, %v8981_v47  ;;  %v8988_v36 = vadd.f32 %v8987_v44, %v8872_v54 }
 0x7ef   : > { %v9086_v9 = vpop.f32.mrf.mxu0  ;;  %v9166_v24 = vpop.f32.mrf.mxu1 }
 0x7f0   : > { %v9167_v63 = vadd.f32 %v9166_v24, %v9071_v13  ;;  %v9087_v25 = vadd.f32 %v9086_v9, %v8986_v49 }
 0x7f1   : > { %v9088_v12 = vpop.f32.mrf.mxu0  ;;  %v9168_v46 = vpop.f32.mrf.mxu1 }
 0x7f2   : > { %v9169_v7 = vadd.f32 %v9168_v46, %v9073_v22  ;;  %v9089_v17 = vadd.f32 %v9088_v12, %v8988_v36 }
 0x7f3   : > { %v9175_v52 = vpop.f32.mrf.mxu1 }
 0x7f4   : > { %v9274_v21 = vpop.f32.mrf.mxu0  ;;  %v9176_v50 = vadd.f32 %v9175_v52, %v9079_v62 }
 0x7f5   : > { %v9177_v32 = vpop.f32.mrf.mxu1  ;;  %v9275_v55 = vadd.f32 %v9274_v21, %v9167_v63 }
 0x7f6   : > { %v9276_v1 = vpop.f32.mrf.mxu0  ;;  %v9178_v2 = vadd.f32 %v9177_v32, %v9081_v5 }
 0x7f7   : > { %v9184_v39 = vpop.f32.mrf.mxu1  ;;  %v9277_v16 = vadd.f32 %v9276_v1, %v9169_v7 }
 0x7f8   : > { %v9281_v20 = vpop.f32.mrf.mxu0  ;;  %v9185_v11 = vadd.f32 %v9184_v39, %v9087_v25 }
 0x7f9   : > { %v9186_v37 = vpop.f32.mrf.mxu1  ;;  %v9282_v8 = vadd.f32 %v9281_v20, %v9176_v50  ;;  %v20338_v50 = vmov 12  }
 0x7fa   : > { %v9283_v10 = vpop.f32.mrf.mxu0  ;;  %v9187_v38 = vadd.f32 %v9186_v37, %v9089_v17  ;;  %20109 = vset.pattern.permute.xlu1 %v20338_v50 }
 0x7fb   : > { %v9366_v6 = vpop.f32.mrf.mxu1  ;;  %v9284_v48 = vadd.f32 %v9283_v10, %v9178_v2 }
 0x7fc   : > { %v9288_v23 = vpop.f32.mrf.mxu0  ;;  %v9367_v34 = vadd.f32 %v9366_v6, %v9275_v55 }
 0x7fd   : > { %v9368_v61 = vpop.f32.mrf.mxu1  ;;  %v9289_v29 = vadd.f32 %v9288_v23, %v9185_v11  ;;  %v20339_v23 = vmov 14  }
 0x7fe   : > { %v9290_v30 = vpop.f32.mrf.mxu0  ;;  %v9369_v57 = vadd.f32 %v9368_v61, %v9277_v16  ;;  %v10000_v45 = vadd.f32 %v9367_v34, %v22404_v40  ;;  %20111 = vset.pattern.permute.xlu0 %v20339_v23 }
 0x7ff   : > { %v9373_v27 = vpop.f32.mrf.mxu1  ;;  %v9291_v24 = vadd.f32 %v9290_v30, %v9187_v38  ;;  %v20340_v30 = vmov 13  }
 0x800   : > { %v9374_v43 = vadd.f32 %v9373_v27, %v9282_v8  ;;  %v23384_v60 = vpop.f32.mrf.mxu0  ;;  %v10001_v39 = vadd.f32 %v9369_v57, %v22415_v31 }
 0x801   : > { %v9375_v33 = vpop.f32.mrf.mxu1 }
 0x802   : > { %v9376_v41 = vadd.f32 %v9375_v33, %v9284_v48  ;;  %v23386_v42 = vpop.f32.mrf.mxu0  ;;  %v10004_v44 = vadd.f32 %v9374_v43, %v22397_v3 }
 0x804   : > { %v9380_v9 = vpop.f32.mrf.mxu1  ;;  %v10005_v12 = vadd.f32 %v9376_v41, %v22407_v56  ;;  %v10012_v28 = vadd.f32 %v10004_v44, %v10000_v45 }
 0x805   : > { %v9381_v46 = vadd.f32 %v9380_v9, %v9289_v29  ;;  %v23389_v52 = vpop.f32.mrf.mxu0 }
 0x806   : > { %v9382_v21 = vpop.f32.mrf.mxu1  ;;  %v10021_v20 = vadd.f32 %v10005_v12, %v10001_v39 }
 0x807   : > { %v10008_v32 = vadd.f32 %v9381_v46, %v22386_v51  ;;  %v9383_v15 = vadd.f32 %v9382_v21, %v9291_v24  ;;  %v23394_v1 = vpop.f32.mrf.mxu0 }
 0x809   : > { %v10013_v3 = vsel %vm415_vm0, %v10008_v32, 0.0  ;;  %v10009_v59 = vadd.f32 %v9383_v15, %v22400_v53  ;;  %v10185_v53 = vld [vmem:[%s26213_s5] sm:$0x3] }
 0x80a   : > { %v10014_v26 = vadd.f32 %v10013_v3, %v10012_v28  ;;  %v23399_v37 = vpop.f32.mrf.mxu0  ;;  %v23401_v40 = vpop.f32.mrf.mxu1  ;;  %10188 = vperm.xlu1 %20109, %v10185_v53   ;;  %11335 = vperm.xlu0 %20111, %v10185_v53  }
 0x80b   : > { %v10022_v56 = vsel %vm415_vm0, %v10009_v59, 0.0 }
 0x80c   : > { %v10015_v58 = vrot.slane %v10014_v26, 4  ;;  %v10023_v51 = vadd.f32 %v10022_v56, %v10021_v20  ;;  %v23404_v4 = vpop.f32.mrf.mxu0  ;;  %v23406_v47 = vpop.f32.mrf.mxu1  ;;  %v9474_v20 = vadd.f32 %v23389_v52, %v23374_v14 }
 0x80e   : > { %v10016_v31 = vadd.f32 %v10015_v58, %v10014_v26  ;;  %v10024_v62 = vrot.slane %v10023_v51, 4  ;;  %v23408_v10 = vpop.f32.mrf.mxu0  ;;  %20110 = vset.pattern.permute.xlu1 %v20340_v30 }
 0x80f   : > { %v9593_v6 = vpop.f32.mrf.mxu1  ;;  %11327 = vperm.xlu1 %20110, %v10185_v53  }
 0x810   : > { %v10017_v18 = vrot.slane %v10016_v31, 2  ;;  %v10025_v13 = vadd.f32 %v10024_v62, %v10023_v51  ;;  %v23413_v5 = vpop.f32.mrf.mxu0  ;;  %v9476_v62 = vadd.f32 %v23394_v1, %v23374_v14  ;;  %v9594_v53 = vadd.f32 %v9593_v6, %v9474_v20 }
 0x811   : > { %v9595_v49 = vpop.f32.mrf.mxu1  ;;  %v9487_v14 = vadd.f32 %v23404_v4, %v23378_v0 }
 0x812   : > { %v10018_v54 = vadd.f32 %v10017_v18, %v10016_v31  ;;  %v10026_v61 = vrot.slane %v10025_v13, 2  ;;  %v9465_v18 = vadd.f32 %v23386_v42, %v23372_v35 }
 0x814   : > { %v10019_v22 = vrot.slane %v10018_v54, 1  ;;  %v10027_v63 = vadd.f32 %v10026_v61, %v10025_v13  ;;  %v9600_v2 = vpop.f32.mrf.mxu1  ;;  %v9693_v8 = vpop.f32.mrf.mxu0  ;;  %v9596_v61 = vadd.f32 %v9595_v49, %v9476_v62  ;;  %v9589_v1 = vadd.f32 %v23406_v47, %v9465_v18 }
 0x816   : > { %v10020_v36 = vadd.f32 %v10019_v22, %v10018_v54  ;;  %v10028_v25 = vrot.slane %v10027_v63, 1  ;;  %v9602_v27 = vpop.f32.mrf.mxu1  ;;  %v9695_v7 = vpop.f32.mrf.mxu0  ;;  %v9694_v22 = vadd.f32 %v9693_v8, %v9594_v53 }
 0x818   : > { %v10048_v55 = vmul.f32 0.05, %v10020_v36  ;;  %v10029_v48 = vadd.f32 %v10028_v25, %v10027_v63  ;;  %v9701_v43 = vpop.f32.mrf.mxu0  ;;  %v9781_v17 = vpop.f32.mrf.mxu1 }
 0x81a   : > { %v23415_v11 = vsub.f32 %v10000_v45, %v10048_v55  ;;  %v23417_v33 = vsub.f32 %v10004_v44, %v10048_v55  ;;  %v23419_v16 = vsub.f32 %v10008_v32, %v10048_v55  ;;  %v10049_v34 = vmul.f32 0.05, %v10029_v48  ;;  %v9703_v41 = vpop.f32.mrf.mxu0  ;;  %v9783_v38 = vpop.f32.mrf.mxu1 }
 0x81b   : > { %v9688_v48 = vadd.f32 %v23413_v5, %v9589_v1 }
 0x81c   : > { %v10064_v29 = vmul.f32 %v23415_v11, %v23415_v11  ;;  %v10068_v57 = vmul.f32 %v23417_v33, %v23417_v33  ;;  %v10072_v9 = vmul.f32 %v23419_v16, %v23419_v16  ;;  %v23427_v24 = vsub.f32 %v10001_v39, %v10049_v34  ;;  %v9790_v46 = vpop.f32.mrf.mxu1 }
 0x81d   : > { %v23429_v45 = vsub.f32 %v10005_v12, %v10049_v34  ;;  %v23431_v44 = vsub.f32 %v10009_v59, %v10049_v34  ;;  %v9889_v21 = vpop.f32.mrf.mxu0  ;;  %v9463_v59 = vadd.f32 %v23384_v60, %v23372_v35  ;;  %v9485_v60 = vadd.f32 %v23399_v37, %v23378_v0 }
 0x81e   : > { %v10076_v32 = vadd.f32 %v10068_v57, %v10064_v29  ;;  %v10077_v15 = vsel %vm415_vm0, %v10072_v9, 0.0  ;;  %v10065_v28 = vmul.f32 %v23427_v24, %v23427_v24  ;;  %v9792_v3 = vpop.f32.mrf.mxu1  ;;  %v9791_v25 = vadd.f32 %v9790_v46, %v9694_v22  ;;  %v10184_v22 = vld [vmem:[%s26211_s3 + $0xc0] sm:$0x3] }
 0x81f   : > { %v10069_v39 = vmul.f32 %v23429_v45, %v23429_v45  ;;  %v10073_v12 = vmul.f32 %v23431_v44, %v23431_v44  ;;  %v9891_v26 = vpop.f32.mrf.mxu0  ;;  %v9587_v50 = vadd.f32 %v23401_v40, %v9463_v59  ;;  %v9601_v36 = vadd.f32 %v9600_v2, %v9485_v60  ;;  %v26464_v60 = vld [vmem:[#allocation42_spill] sm:$0xff] }
 0x820   : > { %v10078_v56 = vadd.f32 %v10077_v15, %v10076_v32  ;;  %v9799_v58 = vpop.f32.mrf.mxu1  ;;  %v9696_v40 = vadd.f32 %v9695_v7, %v9596_v61  ;;  %v9603_v37 = vadd.f32 %v9602_v27, %v9487_v14  ;;  %v9784_v32 = vadd.f32 %v9783_v38, %v9688_v48 }
 0x821   : > { %v10085_v51 = vadd.f32 %v10069_v39, %v10065_v28  ;;  %v10086_v31 = vsel %vm415_vm0, %v10073_v12, 0.0  ;;  %v9896_v52 = vpop.f32.mrf.mxu0  ;;  %v9686_v6 = vadd.f32 %v23408_v10, %v9587_v50  ;;  %v9702_v57 = vadd.f32 %v9701_v43, %v9601_v36 }
 0x822   : > { %v10079_v13 = vrot.slane %v10078_v56, 4  ;;  %v9801_v23 = vpop.f32.mrf.mxu1  ;;  %v9793_v9 = vadd.f32 %v9792_v3, %v9696_v40  ;;  %v9897_v0 = vadd.f32 %v9896_v52, %v9791_v25  ;;  %v9704_v47 = vadd.f32 %v9703_v41, %v9603_v37  ;;  %v26462_v52 = vld [vmem:[#allocation44_spill] sm:$0xff] }
 0x823   : > { %v10087_v54 = vadd.f32 %v10086_v31, %v10085_v51  ;;  %v9898_v63 = vpop.f32.mrf.mxu0  ;;  %v9782_v49 = vadd.f32 %v9781_v17, %v9686_v6  ;;  %v9800_v2 = vadd.f32 %v9799_v58, %v9702_v57  ;;  %v9892_v39 = vadd.f32 %v9891_v26, %v9784_v32  ;;  %v26461_v31 = vld [vmem:[#allocation46_spill] sm:$0xff] }
 0x824   : > { %v10080_v30 = vadd.f32 %v10079_v13, %v10078_v56  ;;  %v9981_v35 = vpop.f32.mrf.mxu1  ;;  %v9899_v7 = vadd.f32 %v9898_v63, %v9793_v9  ;;  %v9802_v59 = vadd.f32 %v9801_v23, %v9704_v47  ;;  %v26463_v13 = vld [vmem:[#allocation37_spill] sm:$0xff] }
 0x825   : > { %v10088_v42 = vrot.slane %v10087_v54, 4  ;;  %v9903_v8 = vpop.f32.mrf.mxu0  ;;  %v9890_v10 = vadd.f32 %v9889_v21, %v9782_v49 }
 0x826   : > { %v10081_v55 = vrot.slane %v10080_v30, 2  ;;  %v9983_v34 = vpop.f32.mrf.mxu1  ;;  %v9904_v56 = vadd.f32 %v9903_v8, %v9800_v2 }
 0x827   : > { %v10089_v29 = vadd.f32 %v10088_v42, %v10087_v54  ;;  %v9982_v5 = vadd.f32 %v9981_v35, %v9890_v10  ;;  %v9905_v27 = vpop.f32.mrf.mxu0  ;;  %v9984_v51 = vadd.f32 %v9983_v34, %v9892_v39  ;;  %v26466_v42 = vld [vmem:[#allocation48_spill] sm:$0xff]  ;;  %v23469_v34 = vpop.permute.xlu1 %10145 }
 0x828   : > { %v10082_v4 = vadd.f32 %v10081_v55, %v10080_v30  ;;  %v9988_v15 = vpop.f32.mrf.mxu1  ;;  %v9906_v62 = vadd.f32 %v9905_v27, %v9802_v59  ;;  %v26465_v30 = vld [vmem:[#allocation27_spill] sm:$0xff]  ;;  %v10192_v55 = vsel %vm597_vm1, %v10184_v22, 0 }
 0x829   : > { %v10090_v28 = vrot.slane %v10089_v29, 2  ;;  %v9989_v46 = vadd.f32 %v9988_v15, %v9897_v0  ;;  %v10002_v18 = vadd.f32 %v9982_v5, %v26462_v52  ;;  %v10003_v14 = vadd.f32 %v9984_v51, %v26465_v30  ;;  %v23481_v5 = vpop.permute.xlu0 %10141 }
 0x82a   : > { %v10083_v20 = vrot.slane %v10082_v4, 1  ;;  %v9990_v17 = vpop.f32.mrf.mxu1 }
 0x82b   : > { %v10091_v12 = vadd.f32 %v10090_v28, %v10089_v29  ;;  %v9991_v43 = vadd.f32 %v9990_v17, %v9899_v7  ;;  %v10006_v41 = vadd.f32 %v9989_v46, %v26461_v31  ;;  %v23471_v29 = vand.u32 4294901760, %v10192_v55  ;;  %v23476_v15 = vpop.permute.xlu1 %10169 }
 0x82c   : > { %v10084_v3 = vadd.f32 %v10083_v20, %v10082_v4  ;;  %v9995_v38 = vpop.f32.mrf.mxu1 }
 0x82d   : > { %v10092_v21 = vrot.slane %v10091_v12, 1  ;;  %v9996_v53 = vadd.f32 %v9995_v38, %v9904_v56  ;;  %v10007_v26 = vadd.f32 %v9991_v43, %v26463_v13  ;;  %v10030_v1 = vadd.f32 %v10006_v41, %v10002_v18 }
 0x82e   : > { %v10112_v58 = vmul.f32 0.05, %v10084_v3  ;;  %v9997_v50 = vpop.f32.mrf.mxu1  ;;  %v23474_v47 = vsub.f32 %v10192_v55, %v23471_v29 }
 0x82f   : > { %v10093_v54 = vadd.f32 %v10092_v21, %v10091_v12  ;;  %v10010_v61 = vadd.f32 %v9996_v53, %v26464_v60  ;;  %v9998_v23 = vadd.f32 %v9997_v50, %v9906_v62  ;;  %v10039_v40 = vadd.f32 %v10007_v26, %v10003_v14  ;;  %v23485_v56 = vpop.permute.xlu1 %10137 }
 0x830   : > { %v10116_v63 = vadd.f32 1e-05, %v10112_v58  ;;  %v23479_v7 = vand.u32 4294901760, %v23474_v47 }
 0x831   : > { %v10113_v6 = vmul.f32 0.05, %v10093_v54  ;;  %v10031_v35 = vsel %vm415_vm0, %v10010_v61, 0.0  ;;  %v10011_v36 = vadd.f32 %v9998_v23, %v26466_v42  ;;  %v23516_v54 = vpop.permute.xlu0 %10161 }
 0x832   : > { %20187 = vrsqrt.f32 %v10116_v63  ;;  %v10032_v25 = vadd.f32 %v10031_v35, %v10030_v1  ;;  %v10280_v3 = vsub.f32 %v23474_v47, %v23479_v7 }
 0x833   : > { %v10117_v48 = vadd.f32 1e-05, %v10113_v6  ;;  %v10040_v37 = vsel %vm415_vm0, %v10011_v36, 0.0  ;;  %v23531_v1 = vpop.permute.xlu1 %10165 }
 0x834   : > { %v10033_v49 = vrot.slane %v10032_v25, 4  ;;  %v10041_v8 = vadd.f32 %v10040_v37, %v10039_v40 }
 0x835   : > { %20189 = vrsqrt.f32 %v10117_v48 }
 0x836   : > { %v10034_v57 = vadd.f32 %v10033_v49, %v10032_v25  ;;  %v10042_v9 = vrot.slane %v10041_v8, 4 }
 0x838   : > { %v10035_v0 = vrot.slane %v10034_v57, 2  ;;  %v10043_v4 = vadd.f32 %v10042_v9, %v10041_v8 }
 0x83a   : > { %v10036_v32 = vadd.f32 %v10035_v0, %v10034_v57  ;;  %v10044_v10 = vrot.slane %v10043_v4, 2 }
 0x83c   : > { %v10037_v28 = vrot.slane %v10036_v32, 1  ;;  %v10045_v2 = vadd.f32 %v10044_v10, %v10043_v4 }
 0x83e   : > { %v10038_v46 = vadd.f32 %v10037_v28, %v10036_v32  ;;  %v10046_v20 = vrot.slane %v10045_v2, 1 }
 0x83f   : > { %v20188_v39 = vpop.eup %20187 }
 0x840   : > { %v10132_v27 = vmul.f32 %v20188_v39, %v23419_v16  ;;  %v10050_v17 = vmul.f32 0.05, %v10038_v46  ;;  %v10047_v12 = vadd.f32 %v10046_v20, %v10045_v2  ;;  %v10124_v59 = vmul.f32 %v20188_v39, %v23415_v11 }
 0x841   : > { %v10128_v43 = vmul.f32 %v20188_v39, %v23417_v33 }
 0x842   : > { %v20190_v51 = vpop.eup %20189  ;;  %v23490_v31 = vsub.f32 %v10002_v18, %v10050_v17  ;;  %v23492_v38 = vsub.f32 %v10006_v41, %v10050_v17  ;;  %v23494_v21 = vsub.f32 %v10010_v61, %v10050_v17  ;;  %v10051_v62 = vmul.f32 0.05, %v10047_v12 }
 0x843   : > { %v10133_v16 = vmul.f32 %v20190_v51, %v23431_v44  ;;  %v10156_v53 = vmul.f32 %v23469_v34, %v10132_v27  ;;  %v10125_v11 = vmul.f32 %v20190_v51, %v23427_v24  ;;  %v10148_v58 = vmul.f32 %v23485_v56, %v10124_v59 }
 0x844   : > { %v10066_v33 = vmul.f32 %v23490_v31, %v23490_v31  ;;  %v10070_v52 = vmul.f32 %v23492_v38, %v23492_v38  ;;  %v10074_v41 = vmul.f32 %v23494_v21, %v23494_v21  ;;  %v23506_v18 = vsub.f32 %v10003_v14, %v10051_v62 }
 0x845   : > { %v23508_v13 = vsub.f32 %v10007_v26, %v10051_v62  ;;  %v23510_v44 = vsub.f32 %v10011_v36, %v10051_v62  ;;  %v10157_v50 = vmul.f32 %v23469_v34, %v10133_v16  ;;  %v23514_v24 = vadd.f32 %v23476_v15, %v10156_v53 }
 0x846   : > { %v10094_v60 = vadd.f32 %v10070_v52, %v10066_v33  ;;  %v10095_v61 = vsel %vm415_vm0, %v10074_v41, 0.0  ;;  %v10067_v23 = vmul.f32 %v23506_v18, %v23506_v18  ;;  %v10149_v22 = vmul.f32 %v23485_v56, %v10125_v11 }
 0x847   : > { %v10071_v26 = vmul.f32 %v23508_v13, %v23508_v13  ;;  %v10075_v63 = vmul.f32 %v23510_v44, %v23510_v44  ;;  %v23527_v30 = vadd.f32 %v23476_v15, %v10157_v50  ;;  %v10195_v14 = vsel %vm415_vm0, %v23514_v24, 0 }
 0x848   : > { %v10096_v6 = vadd.f32 %v10095_v61, %v10094_v60  ;;  %v10129_v35 = vmul.f32 %v20190_v51, %v23429_v45  ;;  %v10152_v42 = vmul.f32 %v23481_v5, %v10128_v43  ;;  %v23536_v36 = vadd.f32 %v23516_v54, %v10148_v58 }
 0x849   : > { %v10103_v40 = vadd.f32 %v10071_v26, %v10067_v23  ;;  %v10104_v25 = vsel %vm415_vm0, %v10075_v63, 0.0  ;;  %v10198_v55 = vsel %vm415_vm0, %v23527_v30, 0  ;;  %v23542_v48 = vadd.f32 %v23516_v54, %v10149_v22 }
 0x84a   : > { %v10097_v37 = vrot.slane %v10096_v6, 4  ;;  %v10153_v49 = vmul.f32 %v23481_v5, %v10129_v35  ;;  %v23546_v8 = vadd.f32 %v23531_v1, %v10152_v42  ;;  %v23548_v45 = vand.u32 4294901760, %v10198_v55 }
 0x84b   : > { %v10105_v57 = vadd.f32 %v10104_v25, %v10103_v40  ;;  %v23550_v9 = vand.u32 4294901760, %v10195_v14  ;;  %v23553_v0 = vand.u32 4294901760, %v23542_v48  ;;  %v23556_v4 = vand.u32 4294901760, %v23536_v36 }
 0x84c   : > { %v10098_v32 = vadd.f32 %v10097_v37, %v10096_v6  ;;  %v23559_v10 = vadd.f32 %v23531_v1, %v10153_v49  ;;  %10233 = vmatprep.subr.mxu0 %v23548_v45  ;;  %v23563_v28 = vand.u32 4294901760, %v23546_v8  ;;  %v10315_v2 = vsub.f32 %v10198_v55, %v23548_v45 }
 0x84d   : > { %v10106_v46 = vrot.slane %v10105_v57, 4  ;;  %10235 = vmatpush1.msra.mxu0 %v23550_v9  ;;  %v10321_v20 = vsub.f32 %v10195_v14, %v23550_v9  ;;  %v23570_v39 = vsub.f32 %v23542_v48, %v23553_v0  ;;  %v23574_v27 = vsub.f32 %v23536_v36, %v23556_v4 }
 0x84e   : > { %v10099_v17 = vrot.slane %v10098_v32, 2  ;;  %v23577_v12 = vand.u32 4294901760, %v23559_v10  ;;  %v10316_v59 = vand.u32 4294901760, %v10315_v2  ;;  %v10333_v43 = vsub.f32 %v23546_v8, %v23563_v28 }
 0x84f   : > { %v10107_v51 = vadd.f32 %v10106_v46, %v10105_v57  ;;  %v23581_v62 = vand.u32 4294901760, %v10280_v3  ;;  %v10322_v16 = vand.u32 4294901760, %v10321_v20  ;;  %v10340_v53 = vand.u32 4294901760, %v23570_v39 }
 0x850   : > { %v10100_v11 = vadd.f32 %v10099_v17, %v10098_v32  ;;  %10237 = vmatprep.subr.mxu0 %v23577_v12  ;;  %v10317_v58 = vsub.f32 %v10315_v2, %v10316_v59  ;;  %v10327_v33 = vsub.f32 %v23559_v10, %v23577_v12  ;;  %v10334_v52 = vand.u32 4294901760, %v10333_v43 }
 0x851   : > { %v10108_v41 = vrot.slane %v10107_v51, 2  ;;  %10239 = vmatpush1.msra.mxu0 %v23563_v28  ;;  %v10323_v50 = vsub.f32 %v10321_v20, %v10322_v16  ;;  %v10346_v60 = vand.u32 4294901760, %v23574_v27  ;;  %v10341_v35 = vsub.f32 %v23570_v39, %v10340_v53 }
 0x852   : > { %v10101_v61 = vrot.slane %v10100_v11, 1  ;;  %10241 = vmatprep.subr.mxu0 %v23553_v0  ;;  %v10318_v3 = vand.u32 4294901760, %v10317_v58  ;;  %v10328_v23 = vand.u32 4294901760, %v10327_v33  ;;  %v10335_v26 = vsub.f32 %v10333_v43, %v10334_v52 }
 0x853   : > { %v10109_v22 = vadd.f32 %v10108_v41, %v10107_v51  ;;  %10243 = vmatpush1.msra.mxu0 %v23556_v4  ;;  %v10324_v14 = vand.u32 4294901760, %v10323_v50  ;;  %v10347_v40 = vsub.f32 %v23574_v27, %v10346_v60  ;;  %v10342_v32 = vand.u32 4294901760, %v10341_v35 }
 0x854   : > { %v10102_v63 = vadd.f32 %v10101_v61, %v10100_v11  ;;  %10418 = vmatprep.subr.mxu0 %v10315_v2  ;;  %10282 = vmatmul.mubr.f32.vlgmr.msra.gmra.mxu0 %v23581_v62  ;;  %v10329_v6 = vsub.f32 %v10327_v33, %v10328_v23  ;;  %v10336_v49 = vand.u32 4294901760, %v10335_v26 }
 0x855   : > { %v10110_v42 = vrot.slane %v10109_v22, 1  ;;  %10421 = vmatpush1.msra.mxu0 %v10321_v20  ;;  %10319 = vmatprep.subr.mxu1 %v10318_v3  ;;  %v10348_v46 = vand.u32 4294901760, %v10347_v40 }
 0x856   : > { %v10114_v25 = vmul.f32 0.05, %v10102_v63  ;;  %10424 = vmatprep.subr.mxu0 %v10327_v33  ;;  %10325 = vmatpush1.msra.mxu1 %v10324_v14  ;;  %v10330_v55 = vand.u32 4294901760, %v10329_v6 }
 0x857   : > { %v10111_v37 = vadd.f32 %v10110_v42, %v10109_v22  ;;  %10427 = vmatpush1.msra.mxu0 %v10333_v43  ;;  %10466 = vmatprep.mubr.f32.mxu0 %v26435_v19 }
 0x858   : > { %v10118_v57 = vadd.f32 1e-05, %v10114_v25  ;;  %10331 = vmatprep.subr.mxu1 %v10330_v55  ;;  %10430 = vmatprep.subr.mxu0 %v23570_v39 }
 0x859   : > { %v10115_v2 = vmul.f32 0.05, %v10111_v37  ;;  %10337 = vmatpush1.msra.mxu1 %v10336_v49  ;;  %10433 = vmatpush1.msra.mxu0 %v23574_v27 }
 0x85a   : > { %20191 = vrsqrt.f32 %v10118_v57  ;;  %10343 = vmatprep.subr.mxu1 %v10342_v32  ;;  %10584 = vmatprep.subr.mxu0 %v10316_v59 }
 0x85b   : > { %v10119_v20 = vadd.f32 1e-05, %v10115_v2  ;;  %10349 = vmatpush1.msra.mxu1 %v10348_v46  ;;  %10469 = vmatmul.mubr.f32.vlgmr.msra.gmra.mxu0 %v23474_v47 }
 0x85c   : > { %10588 = vmatpush1.msra.mxu0 %v10322_v16  ;;  %10384 = vmatmul.mubr.f32.vlgmr.msra.gmra.mxu1 %v23471_v29 }
 0x85d   : > { %20193 = vrsqrt.f32 %v10119_v20  ;;  %10502 = vmatprep.subr.mxu1 %v23548_v45  ;;  %10592 = vmatprep.subr.mxu0 %v10328_v23 }
 0x85e   : > { %10504 = vmatpush1.msra.mxu1 %v23550_v9  ;;  %10596 = vmatpush1.msra.mxu0 %v10334_v52 }
 0x85f   : > { %10506 = vmatprep.subr.mxu1 %v23577_v12  ;;  %10600 = vmatprep.subr.mxu0 %v10340_v53 }
 0x860   : > { %10508 = vmatpush1.msra.mxu1 %v23563_v28  ;;  %10604 = vmatpush1.msra.mxu0 %v10346_v60 }
 0x861   : > { %10510 = vmatprep.subr.mxu1 %v23553_v0  ;;  %10545 = vmatprep.mubr.f32.mxu1 %v26435_v19 }
 0x862   : > { %10512 = vmatpush1.msra.mxu1 %v23556_v4  ;;  %10637 = vmatprep.mubr.f32.mxu0 %v26435_v19 }
 0x863   : > { %10549 = vmatmul.mubr.f32.vlgmr.msra.gmra.mxu1 %v23479_v7  ;;  %10672 = vmatprep.subr.mxu1 %v23548_v45 }
 0x864   : > { %10674 = vmatpush1.msra.mxu1 %v23550_v9  ;;  %10639 = vmatmul.mubr.f32.vlgmr.msra.gmra.mxu0 %v23471_v29 }
 0x865   : > { %10676 = vmatprep.subr.mxu1 %v23577_v12  ;;  %10715 = vmatprep.mubr.f32.mxu1 %v26435_v19 }
 0x866   : > { %10678 = vmatpush1.msra.mxu1 %v23563_v28  ;;  %10793 = vmatprep.mubr.f32.mxu0 %v26435_v19 }
 0x867   : > { %v20192_v39 = vpop.eup %20191  ;;  %10680 = vmatprep.subr.mxu1 %v23553_v0 }
 0x868   : > { %v10134_v27 = vmul.f32 %v20192_v39, %v23494_v21  ;;  %v10126_v17 = vmul.f32 %v20192_v39, %v23490_v31  ;;  %v10130_v45 = vmul.f32 %v20192_v39, %v23492_v38  ;;  %10682 = vmatpush1.msra.mxu1 %v23556_v4 }
 0x869   : > { %10717 = vmatmul.mubr.f32.vlgmr.msra.gmra.mxu1 %v23471_v29 }
 0x86a   : > { %v20194_v9 = vpop.eup %20193  ;;  %v10158_v12 = vmul.f32 %v23469_v34, %v10134_v27  ;;  %v10150_v28 = vmul.f32 %v23485_v56, %v10126_v17  ;;  %v10154_v59 = vmul.f32 %v23481_v5, %v10130_v45  ;;  %10899 = vmatprep.mubr.f32.mxu1 %v26435_v19 }
 0x86b   : > { %v10135_v0 = vmul.f32 %v20194_v9, %v23510_v44  ;;  %v10127_v21 = vmul.f32 %v20194_v9, %v23506_v18  ;;  %v10131_v31 = vmul.f32 %v20194_v9, %v23508_v13 }
 0x86c   : > { %v23629_v38 = vadd.f32 %v23476_v15, %v10158_v12  ;;  %v23632_v4 = vadd.f32 %v23531_v1, %v10154_v59  ;;  %v23635_v43 = vadd.f32 %v23516_v54, %v10150_v28 }
 0x86d   : > { %v10159_v51 = vmul.f32 %v23469_v34, %v10135_v0  ;;  %v10151_v16 = vmul.f32 %v23485_v56, %v10127_v21  ;;  %v10155_v53 = vmul.f32 %v23481_v5, %v10131_v31 }
 0x86e   : > { %v10201_v18 = vsel %vm415_vm0, %v23629_v38, 0  ;;  %v23643_v13 = vand.u32 4294901760, %v23632_v4  ;;  %v23646_v44 = vand.u32 4294901760, %v23635_v43 }
 0x86f   : > { %v23649_v11 = vadd.f32 %v23476_v15, %v10159_v51  ;;  %v23652_v58 = vadd.f32 %v23531_v1, %v10155_v53  ;;  %v23655_v34 = vadd.f32 %v23516_v54, %v10151_v16  ;;  %v23657_v56 = vand.u32 4294901760, %v10201_v18 }
 0x870   : > { %v10850_v5 = vsub.f32 %v23632_v4, %v23643_v13  ;;  %v10862_v61 = vsub.f32 %v23635_v43, %v23646_v44 }
 0x871   : > { %v10204_v33 = vsel %vm415_vm0, %v23649_v11, 0  ;;  %v23664_v52 = vand.u32 4294901760, %v23652_v58  ;;  %v23667_v15 = vand.u32 4294901760, %v23655_v34  ;;  %v10838_v1 = vsub.f32 %v10201_v18, %v23657_v56 }
 0x872   : > { %v10749_v41 = vand.u32 4294901760, %v10204_v33  ;;  %v10851_v22 = vand.u32 4294901760, %v10850_v5  ;;  %v10863_v6 = vand.u32 4294901760, %v10862_v61 }
 0x873   : > { %v10844_v54 = vsub.f32 %v23652_v58, %v23664_v52  ;;  %v10839_v50 = vand.u32 4294901760, %v10838_v1  ;;  %v10856_v60 = vsub.f32 %v23655_v34, %v23667_v15 }
 0x874   : > { %10750 = vmatprep.subr.mxu0 %v10749_v41  ;;  %v10832_v3 = vsub.f32 %v10204_v33, %v10749_v41  ;;  %v10852_v40 = vsub.f32 %v10850_v5, %v10851_v22  ;;  %v10864_v49 = vsub.f32 %v10862_v61, %v10863_v6 }
 0x875   : > { %10752 = vmatpush1.msra.mxu0 %v23657_v56  ;;  %v10845_v23 = vand.u32 4294901760, %v10844_v54  ;;  %v10857_v63 = vand.u32 4294901760, %v10856_v60  ;;  %v10840_v14 = vsub.f32 %v10838_v1, %v10839_v50 }
 0x876   : > { %10754 = vmatprep.subr.mxu0 %v23664_v52  ;;  %v10833_v26 = vand.u32 4294901760, %v10832_v3  ;;  %v10853_v32 = vand.u32 4294901760, %v10852_v40  ;;  %v20253_v40 = vld [vmem:[%s26213_s5 + $0x10] sm:$0xf] }
 0x877   : > { %10756 = vmatpush1.msra.mxu0 %v23643_v13  ;;  %v10846_v42 = vsub.f32 %v10844_v54, %v10845_v23  ;;  %v10858_v55 = vsub.f32 %v10856_v60, %v10857_v63  ;;  %v10841_v37 = vand.u32 4294901760, %v10840_v14  ;;  %v20341_v14 = vmov 15  }
 0x878   : > { %10758 = vmatprep.subr.mxu0 %v23667_v15  ;;  %v10834_v35 = vsub.f32 %v10832_v3, %v10833_v26  ;;  %20112 = vset.pattern.permute.xlu1 %v20341_v14 }
 0x879   : > { %10760 = vmatpush1.msra.mxu0 %v23646_v44  ;;  %v10847_v57 = vand.u32 4294901760, %v10846_v42  ;;  %v10859_v2 = vand.u32 4294901760, %v10858_v55  ;;  %20113 = vset.pattern.permute.xlu0 %v20341_v14  ;;  %v20252_v42 = vld [vmem:[%s26213_s5] sm:$0xff] }
 0x87a   : > { %10799 = vmatmul.mubr.f32.vlgmr.msra.gmra.mxu0 %v23581_v62  ;;  %10935 = vmatprep.subr.mxu0 %v10832_v3  ;;  %v10835_v25 = vand.u32 4294901760, %v10834_v35  ;;  %v10865_v62 = vand.u32 4294901760, %v10864_v49 }
 0x87b   : > { %10938 = vmatpush1.msra.mxu0 %v10838_v1  ;;  %10983 = vmatprep.mubr.f32.mxu0 %v26435_v19 }
 0x87c   : > { %10836 = vmatprep.subr.mxu1 %v10835_v25  ;;  %10941 = vmatprep.subr.mxu0 %v10844_v54 }
 0x87d   : > { %10842 = vmatpush1.msra.mxu1 %v10841_v37  ;;  %10944 = vmatpush1.msra.mxu0 %v10850_v5 }
 0x87e   : > { %10848 = vmatprep.subr.mxu1 %v10847_v57  ;;  %10947 = vmatprep.subr.mxu0 %v10856_v60 }
 0x87f   : > { %10854 = vmatpush1.msra.mxu1 %v10853_v32  ;;  %10950 = vmatpush1.msra.mxu0 %v10862_v61  ;;  %v20254_v32 = vld [vmem:[%s26213_s5 + $0x8] sm:$0xff] }
 0x880   : > { %10860 = vmatprep.subr.mxu1 %v10859_v2  ;;  %11101 = vmatprep.subr.mxu0 %v10833_v26  ;;  %v20342_v2 = vmov 16  }
 0x881   : > { %10866 = vmatpush1.msra.mxu1 %v10865_v62  ;;  %10986 = vmatmul.mubr.f32.vlgmr.msra.gmra.mxu0 %v23474_v47 }
 0x882   : > { %11105 = vmatpush1.msra.mxu0 %v10839_v50  ;;  %10901 = vmatmul.mubr.f32.vlgmr.msra.gmra.mxu1 %v23471_v29 }
 0x883   : > { %11019 = vmatprep.subr.mxu1 %v10749_v41  ;;  %11109 = vmatprep.subr.mxu0 %v10845_v23 }
 0x884   : > { %11021 = vmatpush1.msra.mxu1 %v23657_v56  ;;  %11113 = vmatpush1.msra.mxu0 %v10851_v22 }
 0x885   : > { %11023 = vmatprep.subr.mxu1 %v23664_v52  ;;  %11117 = vmatprep.subr.mxu0 %v10857_v63 }
 0x886   : > { %11025 = vmatpush1.msra.mxu1 %v23643_v13  ;;  %11121 = vmatpush1.msra.mxu0 %v10863_v6 }
 0x887   : > { %11027 = vmatprep.subr.mxu1 %v23667_v15  ;;  %11062 = vmatprep.mubr.f32.mxu1 %v26435_v19 }
 0x888   : > { %11029 = vmatpush1.msra.mxu1 %v23646_v44  ;;  %11154 = vmatprep.mubr.f32.mxu0 %v26435_v19 }
 0x889   : > { %11066 = vmatmul.mubr.f32.vlgmr.msra.gmra.mxu1 %v23479_v7  ;;  %11189 = vmatprep.subr.mxu1 %v10749_v41  ;;  %v23703_v7 = vpop.permute.xlu1 %10188 }
 0x88a   : > { %11191 = vmatpush1.msra.mxu1 %v23657_v56  ;;  %11156 = vmatmul.mubr.f32.vlgmr.msra.gmra.mxu0 %v23471_v29 }
 0x88b   : > { %11193 = vmatprep.subr.mxu1 %v23664_v52  ;;  %11232 = vmatprep.mubr.f32.mxu1 %v26435_v19 }
 0x88c   : > { %11195 = vmatpush1.msra.mxu1 %v23643_v13  ;;  %11449 = vmatprep.mubr.f32.mxu0 %v26435_v19 }
 0x88d   : > { %11197 = vmatprep.subr.mxu1 %v23667_v15  ;;  %11350 = vperm.xlu1 %20112, %v20252_v42  }
 0x88e   : > { %11199 = vmatpush1.msra.mxu1 %v23646_v44  ;;  %11358 = vperm.xlu0 %20113, %v20253_v40  }
 0x88f   : > { %11234 = vmatmul.mubr.f32.vlgmr.msra.gmra.mxu1 %v23471_v29 }
 0x890   : > { %11557 = vmatprep.mubr.f32.mxu1 %v26435_v19 }
 0x891   : > { %11354 = vperm.xlu1 %20112, %v20254_v32  }
 0x892   : > { %20116 = vset.pattern.permute.xlu0 %v20342_v2 }
 0x893   : > { %12650 = vperm.xlu0 %20116, %v20254_v32  }
 0x895   : > { %20114 = vset.pattern.permute.xlu1 %v20342_v2 }
 0x896   : > { %12654 = vperm.xlu1 %20114, %v20253_v40  }
 0x914   : > { %v10283_v47 = vpop.f32.mrf.mxu0 }
 0x915   : > { %v10284_v20 = vadd.f32 %v10283_v47, %v23703_v7 }
 0x916   : > { %v10285_v46 = vpop.f32.mrf.mxu0 }
 0x917   : > { %v10286_v39 = vadd.f32 %v10285_v46, %v23703_v7 }
 0x91b   : > { %v10470_v45 = vpop.f32.mrf.mxu0 }
 0x91c   : > { %v10385_v27 = vpop.f32.mrf.mxu1 }
 0x91d   : > { %v10386_v17 = vadd.f32 %v10385_v27, %v10284_v20  ;;  %v10472_v59 = vpop.f32.mrf.mxu0 }
 0x91e   : > { %v10387_v9 = vpop.f32.mrf.mxu1 }
 0x91f   : > { %v10388_v12 = vadd.f32 %v10387_v9, %v10286_v39  ;;  %v10471_v28 = vadd.f32 %v10470_v45, %v10386_v17 }
 0x921   : > { %v10473_v21 = vadd.f32 %v10472_v59, %v10388_v12  ;;  %v20343_v12 = vmov 17  }
 0x922   : > { %20119 = vset.pattern.permute.xlu0 %v20343_v12  ;;  %20115 = vset.pattern.permute.xlu1 %v20343_v12 }
 0x923   : > { %v10550_v0 = vpop.f32.mrf.mxu1  ;;  %12670 = vperm.xlu0 %20119, %v20252_v42   ;;  %12678 = vperm.xlu1 %20115, %v20253_v40  }
 0x924   : > { %v10551_v29 = vadd.f32 %v10550_v0, %v10471_v28  ;;  %v10640_v31 = vpop.f32.mrf.mxu0 }
 0x925   : > { %v10552_v51 = vpop.f32.mrf.mxu1 }
 0x926   : > { %v10553_v16 = vadd.f32 %v10552_v51, %v10473_v21  ;;  %v10642_v53 = vpop.f32.mrf.mxu0  ;;  %v10641_v18 = vadd.f32 %v10640_v31, %v10551_v29 }
 0x927   : > { %20117 = vset.pattern.permute.xlu1 %v20342_v2 }
 0x928   : > { %v10643_v44 = vadd.f32 %v10642_v53, %v10553_v16  ;;  %12646 = vperm.xlu1 %20117, %v20252_v42   ;;  %v11346_v42 = vld [vmem:[%s26212_s4] sm:$0xff] }
 0x929   : > { %v10718_v13 = vpop.f32.mrf.mxu1 }
 0x92a   : > { %v10719_v56 = vadd.f32 %v10718_v13, %v10641_v18 }
 0x92b   : > { %v10720_v5 = vpop.f32.mrf.mxu1 }
 0x92c   : > { %v11241_v33 = vsel %vm11240_vm4, %v10719_v56, 0.0  ;;  %v10721_v52 = vadd.f32 %v10720_v5, %v10643_v44  ;;  %20118 = vset.pattern.permute.xlu1 %v20343_v12 }
 0x92d   : > { %v11242_v15 = vrot.slane %v11241_v33, 4  ;;  %12674 = vperm.xlu1 %20118, %v20254_v32   ;;  %v11347_v32 = vld [vmem:[%s26212_s4 + $0x8] sm:$0xff] }
 0x92e   : > { %v11248_v1 = vsel %vm11240_vm4, %v10721_v52, 0.0 }
 0x92f   : > { %v11243_v41 = vadd.f32 %v11242_v15, %v11241_v33  ;;  %v11249_v54 = vrot.slane %v11248_v1, 4 }
 0x931   : > { %v11244_v50 = vrot.slane %v11243_v41, 2  ;;  %v11250_v60 = vadd.f32 %v11249_v54, %v11248_v1 }
 0x933   : > { %v11245_v61 = vadd.f32 %v11244_v50, %v11243_v41  ;;  %v11251_v3 = vrot.slane %v11250_v60, 2 }
 0x935   : > { %v11246_v23 = vrot.slane %v11245_v61, 1  ;;  %v11252_v22 = vadd.f32 %v11251_v3, %v11250_v60 }
 0x937   : > { %v11247_v26 = vadd.f32 %v11246_v23, %v11245_v61  ;;  %v11253_v63 = vrot.slane %v11252_v22, 1 }
 0x939   : > { %v11270_v6 = vmul.f32 0.5, %v11247_v26  ;;  %v11254_v35 = vadd.f32 %v11253_v63, %v11252_v22 }
 0x93a   : > { %v10800_v57 = vpop.f32.mrf.mxu0 }
 0x93b   : > { %v23715_v25 = vsub.f32 %v10719_v56, %v11270_v6  ;;  %v11271_v55 = vmul.f32 0.5, %v11254_v35  ;;  %v10801_v45 = vadd.f32 %v10800_v57, %v23703_v7 }
 0x93c   : > { %v10802_v39 = vpop.f32.mrf.mxu0 }
 0x93d   : > { %v11278_v37 = vmul.f32 %v23715_v25, %v23715_v25  ;;  %v23719_v49 = vsub.f32 %v10721_v52, %v11271_v55  ;;  %v10803_v21 = vadd.f32 %v10802_v39, %v23703_v7 }
 0x93f   : > { %v11282_v62 = vsel %vm11240_vm4, %v11278_v37, 0.0  ;;  %v11279_v47 = vmul.f32 %v23719_v49, %v23719_v49 }
 0x940   : > { %v11283_v46 = vrot.slane %v11282_v62, 4 }
 0x941   : > { %v11289_v20 = vsel %vm11240_vm4, %v11279_v47, 0.0  ;;  %v10987_v28 = vpop.f32.mrf.mxu0  ;;  %v11363_v47 = vsel %vm11361_vm5, %v11346_v42, 0 }
 0x942   : > { %v11284_v27 = vadd.f32 %v11283_v46, %v11282_v62  ;;  %v11290_v17 = vrot.slane %v11289_v20, 4  ;;  %v10902_v9 = vpop.f32.mrf.mxu1  ;;  %v23739_v39 = vand.u32 4294901760, %v11363_v47 }
 0x943   : > { %v10903_v29 = vadd.f32 %v10902_v9, %v10801_v45  ;;  %v10989_v18 = vpop.f32.mrf.mxu0  ;;  %v11366_v45 = vsel %vm11361_vm5, %v11347_v32, 0 }
 0x944   : > { %v11285_v59 = vrot.slane %v11284_v27, 2  ;;  %v11291_v0 = vadd.f32 %v11290_v17, %v11289_v20  ;;  %v10904_v31 = vpop.f32.mrf.mxu1 }
 0x945   : > { %v10905_v53 = vadd.f32 %v10904_v31, %v10803_v21  ;;  %v10988_v56 = vadd.f32 %v10987_v28, %v10903_v29  ;;  %v11348_v28 = vld [vmem:[%s26212_s4 + $0x10] sm:$0xf]  ;;  %v23748_v31 = vpop.permute.xlu1 %11327 }
 0x946   : > { %v11286_v51 = vadd.f32 %v11285_v59, %v11284_v27  ;;  %v11292_v16 = vrot.slane %v11291_v0, 2  ;;  %v23746_v59 = vsub.f32 %v11363_v47, %v23739_v39 }
 0x947   : > { %v10990_v15 = vadd.f32 %v10989_v18, %v10905_v53  ;;  %v11369_v53 = vsel %vm11361_vm5, %v11348_v28, 0 }
 0x948   : > { %v11287_v13 = vrot.slane %v11286_v51, 1  ;;  %v11293_v44 = vadd.f32 %v11292_v16, %v11291_v0 }
 0x949   : > { %v11067_v5 = vpop.f32.mrf.mxu1 }
 0x94a   : > { %v11288_v33 = vadd.f32 %v11287_v13, %v11286_v51  ;;  %v11294_v52 = vrot.slane %v11293_v44, 1  ;;  %v11068_v1 = vadd.f32 %v11067_v5, %v10988_v56  ;;  %v11157_v41 = vpop.f32.mrf.mxu0  ;;  %v23750_v51 = vand.u32 4294901760, %v11366_v45  ;;  %v23754_v56 = vpop.permute.xlu0 %11335 }
 0x94b   : > { %v11069_v54 = vpop.f32.mrf.mxu1 }
 0x94c   : > { %v11310_v7 = vmul.f32 0.5, %v11288_v33  ;;  %v11295_v50 = vadd.f32 %v11294_v52, %v11293_v44  ;;  %v11070_v60 = vadd.f32 %v11069_v54, %v10990_v15  ;;  %v11159_v61 = vpop.f32.mrf.mxu0  ;;  %v11158_v22 = vadd.f32 %v11157_v41, %v11068_v1 }
 0x94d   : > { %v23759_v52 = vand.u32 4294901760, %v23746_v59  ;;  %v23764_v41 = vsub.f32 %v11366_v45, %v23750_v51 }
 0x94e   : > { %v11314_v3 = vadd.f32 1e-05, %v11310_v7  ;;  %v11311_v23 = vmul.f32 0.5, %v11295_v50  ;;  %v11160_v14 = vadd.f32 %v11159_v61, %v11070_v60 }
 0x94f   : > { %v11235_v26 = vpop.f32.mrf.mxu1 }
 0x950   : > { %20195 = vrsqrt.f32 %v11314_v3  ;;  %v11315_v63 = vadd.f32 1e-05, %v11311_v23  ;;  %v11236_v6 = vadd.f32 %v11235_v26, %v11158_v22  ;;  %v11453_v3 = vsub.f32 %v23746_v59, %v23759_v52 }
 0x951   : > { %v11237_v35 = vpop.f32.mrf.mxu1  ;;  %v23781_v26 = vand.u32 4294901760, %v23764_v41 }
 0x952   : > { %20197 = vrsqrt.f32 %v11315_v63  ;;  %v11255_v40 = vsel %vm11240_vm4, %v11236_v6, 0.0  ;;  %v11238_v55 = vadd.f32 %v11237_v35, %v11160_v14 }
 0x953   : > { %v11256_v37 = vrot.slane %v11255_v40, 4 }
 0x954   : > { %v11262_v57 = vsel %vm11240_vm4, %v11238_v55, 0.0 }
 0x955   : > { %v11257_v2 = vadd.f32 %v11256_v37, %v11255_v40  ;;  %v11263_v62 = vrot.slane %v11262_v57, 4 }
 0x957   : > { %v11258_v46 = vrot.slane %v11257_v2, 2  ;;  %v11264_v20 = vadd.f32 %v11263_v62, %v11262_v57 }
 0x959   : > { %v11259_v27 = vadd.f32 %v11258_v46, %v11257_v2  ;;  %v11265_v17 = vrot.slane %v11264_v20, 2  ;;  %v23789_v2 = vand.u32 4294901760, %v11453_v3  ;;  %v11464_v46 = vsub.f32 %v23764_v41, %v23781_v26 }
 0x95b   : > { %v11260_v9 = vrot.slane %v11259_v27, 1  ;;  %v11266_v12 = vadd.f32 %v11265_v17, %v11264_v20 }
 0x95d   : > { %v20196_v0 = vpop.eup %20195  ;;  %v11261_v21 = vadd.f32 %v11260_v9, %v11259_v27  ;;  %v11267_v29 = vrot.slane %v11266_v12, 1 }
 0x95e   : > { %v11322_v16 = vmul.f32 %v20196_v0, %v23715_v25  ;;  %v23766_v25 = vand.u32 4294901760, %v11369_v53  ;;  %v23797_v0 = vand.u32 4294901760, %v11464_v46 }
 0x95f   : > { %v20198_v18 = vpop.eup %20197  ;;  %v11272_v13 = vmul.f32 0.5, %v11261_v21  ;;  %v11268_v44 = vadd.f32 %v11267_v29, %v11266_v12 }
 0x960   : > { %v11323_v5 = vmul.f32 %v20198_v18, %v23719_v49  ;;  %v11330_v33 = vmul.f32 %v23748_v31, %v11322_v16  ;;  %v23784_v63 = vsub.f32 %v11369_v53, %v23766_v25 }
 0x961   : > { %v23761_v15 = vsub.f32 %v11236_v6, %v11272_v13  ;;  %v11273_v1 = vmul.f32 0.5, %v11268_v44 }
 0x962   : > { %v11331_v54 = vmul.f32 %v23748_v31, %v11323_v5  ;;  %v11338_v7 = vadd.f32 %v23754_v56, %v11330_v33  ;;  %v23794_v20 = vand.u32 4294901760, %v23784_v63 }
 0x963   : > { %v11280_v49 = vmul.f32 %v23761_v15, %v23761_v15  ;;  %v23772_v50 = vsub.f32 %v11238_v55, %v11273_v1 }
 0x964   : > { %v11339_v60 = vadd.f32 %v23754_v56, %v11331_v54  ;;  %v11342_v61 = vmax.f32 %v11338_v7, 0.0  ;;  %v11475_v21 = vsub.f32 %v23784_v63, %v23794_v20 }
 0x965   : > { %v11296_v23 = vsel %vm11240_vm4, %v11280_v49, 0.0  ;;  %v11281_v22 = vmul.f32 %v23772_v50, %v23772_v50 }
 0x966   : > { %v11297_v14 = vrot.slane %v11296_v23, 4  ;;  %v11343_v6 = vmax.f32 %v11339_v60, 0.0  ;;  %v11372_v35 = vsel %vm11240_vm4, %v11342_v61, 0  ;;  %v23803_v33 = vand.u32 4294901760, %v11475_v21  ;;  %v23882_v21 = vpop.permute.xlu1 %11350 }
 0x967   : > { %v11303_v40 = vsel %vm11240_vm4, %v11281_v22, 0.0  ;;  %v11415_v55 = vand.u32 4294901760, %v11372_v35 }
 0x968   : > { %v11298_v42 = vadd.f32 %v11297_v14, %v11296_v23  ;;  %v11304_v37 = vrot.slane %v11303_v40, 4  ;;  %v11375_v57 = vsel %vm11240_vm4, %v11343_v6, 0 }
 0x969   : > { %v11413_v62 = vand.u32 4294901760, %v11375_v57  ;;  %v11520_v47 = vsub.f32 %v11372_v35, %v11415_v55 }
 0x96a   : > { %v11299_v32 = vrot.slane %v11298_v42, 2  ;;  %v11305_v27 = vadd.f32 %v11304_v37, %v11303_v40 }
 0x96b   : > { %11414 = vmatprep.subr.mxu0 %v11413_v62  ;;  %v11514_v17 = vsub.f32 %v11375_v57, %v11413_v62  ;;  %v11521_v45 = vand.u32 4294901760, %v11520_v47 }
 0x96c   : > { %v11300_v9 = vadd.f32 %v11299_v32, %v11298_v42  ;;  %v11306_v12 = vrot.slane %v11305_v27, 2  ;;  %11416 = vmatpush1.msra.mxu0 %v11415_v55 }
 0x96d   : > { %11455 = vmatmul.mubr.f32.vlgmr.msra.gmra.mxu0 %v23789_v2  ;;  %11611 = vmatprep.subr.mxu0 %v11514_v17  ;;  %v11515_v28 = vand.u32 4294901760, %v11514_v17  ;;  %v11522_v53 = vsub.f32 %v11520_v47, %v11521_v45 }
 0x96e   : > { %v11301_v29 = vrot.slane %v11300_v9, 1  ;;  %v11307_v16 = vadd.f32 %v11306_v12, %v11305_v27  ;;  %11614 = vmatpush1.msra.mxu0 %v11520_v47  ;;  %11460 = vmatprep.mubr.f32.mxu0 %v26435_v19 }
 0x96f   : > { %11799 = vmatprep.subr.mxu0 %v11515_v28  ;;  %v11516_v18 = vsub.f32 %v11514_v17, %v11515_v28  ;;  %v11523_v7 = vand.u32 4294901760, %v11522_v53 }
 0x970   : > { %v11302_v13 = vadd.f32 %v11301_v29, %v11300_v9  ;;  %v11308_v44 = vrot.slane %v11307_v16, 1 }
 0x971   : > { %11466 = vmatmul.mubr.f32.gmra.mxu0 %v23797_v0  ;;  %v11517_v5 = vand.u32 4294901760, %v11516_v18 }
 0x972   : > { %v11312_v1 = vmul.f32 0.5, %v11302_v13  ;;  %v11309_v54 = vadd.f32 %v11308_v44, %v11307_v16  ;;  %11471 = vmatprep.mubr.f32.mxu0 %v26435_v19  ;;  %v23884_v13 = vpop.permute.xlu1 %11354 }
 0x973   : > { %11518 = vmatprep.subr.mxu1 %v11517_v5 }
 0x974   : > { %v11316_v49 = vadd.f32 1e-05, %v11312_v1  ;;  %v11313_v60 = vmul.f32 0.5, %v11309_v54  ;;  %11524 = vmatpush1.msra.mxu1 %v11523_v7  ;;  %v23887_v7 = vpop.permute.xlu0 %11358 }
 0x975   : > { %11477 = vmatmul.mubr.f32.gmra.mxu0 %v23803_v33  ;;  %11559 = vmatmul.mubr.f32.vlgmr.msra.gmra.mxu1 %v23739_v39 }
 0x976   : > { %20199 = vrsqrt.f32 %v11316_v49  ;;  %v11317_v61 = vadd.f32 1e-05, %v11313_v60  ;;  %11703 = vmatprep.subr.mxu1 %v11413_v62  ;;  %11564 = vmatprep.mubr.f32.mxu1 %v26435_v19 }
 0x977   : > { %11705 = vmatpush1.msra.mxu1 %v11415_v55  ;;  %11647 = vmatprep.mubr.f32.mxu0 %v26435_v19 }
 0x978   : > { %20201 = vrsqrt.f32 %v11317_v61  ;;  %11889 = vmatprep.subr.mxu1 %v11413_v62 }
 0x979   : > { %11566 = vmatmul.mubr.f32.gmra.mxu1 %v23750_v51  ;;  %11650 = vmatmul.mubr.f32.vlgmr.msra.gmra.mxu0 %v23746_v59 }
 0x97a   : > { %11803 = vmatpush1.msra.mxu0 %v11521_v45  ;;  %11571 = vmatprep.mubr.f32.mxu1 %v26435_v19 }
 0x97b   : > { %11655 = vmatprep.mubr.f32.mxu0 %v26435_v19 }
 0x97d   : > { %11573 = vmatmul.mubr.f32.gmra.mxu1 %v23766_v25  ;;  %11658 = vmatmul.mubr.f32.gmra.mxu0 %v23764_v41 }
 0x97e   : > { %11663 = vmatprep.mubr.f32.mxu0 %v26435_v19  ;;  %11738 = vmatprep.mubr.f32.mxu1 %v26435_v19 }
 0x981   : > { %11666 = vmatmul.mubr.f32.gmra.mxu0 %v23784_v63  ;;  %11742 = vmatmul.mubr.f32.vlgmr.msra.gmra.mxu1 %v23759_v52 }
 0x982   : > { %11891 = vmatpush1.msra.mxu1 %v11415_v55  ;;  %11747 = vmatprep.mubr.f32.mxu1 %v26435_v19 }
 0x983   : > { %v20200_v3 = vpop.eup %20199  ;;  %11836 = vmatprep.mubr.f32.mxu0 %v26435_v19 }
 0x984   : > { %v11324_v23 = vmul.f32 %v20200_v3, %v23761_v15 }
 0x985   : > { %v20202_v22 = vpop.eup %20201  ;;  %11751 = vmatmul.mubr.f32.gmra.mxu1 %v23781_v26  ;;  %11838 = vmatmul.mubr.f32.vlgmr.msra.gmra.mxu0 %v23739_v39 }
 0x986   : > { %v11325_v14 = vmul.f32 %v20202_v22, %v23772_v50  ;;  %v11332_v6 = vmul.f32 %v23748_v31, %v11324_v23  ;;  %11756 = vmatprep.mubr.f32.mxu1 %v26435_v19  ;;  %11843 = vmatprep.mubr.f32.mxu0 %v26435_v19 }
 0x988   : > { %v11333_v35 = vmul.f32 %v23748_v31, %v11325_v14  ;;  %v11340_v40 = vadd.f32 %v23754_v56, %v11332_v6 }
 0x989   : > { %11760 = vmatmul.mubr.f32.gmra.mxu1 %v23794_v20  ;;  %11845 = vmatmul.mubr.f32.gmra.mxu0 %v23750_v51 }
 0x98a   : > { %v11341_v15 = vadd.f32 %v23754_v56, %v11333_v35  ;;  %v11344_v55 = vmax.f32 %v11340_v40, 0.0  ;;  %11850 = vmatprep.mubr.f32.mxu0 %v26435_v19  ;;  %11924 = vmatprep.mubr.f32.mxu1 %v26435_v19 }
 0x98c   : > { %v11345_v50 = vmax.f32 %v11341_v15, 0.0  ;;  %v11378_v42 = vsel %vm11240_vm4, %v11344_v55, 0 }
 0x98d   : > { %11852 = vmatmul.mubr.f32.gmra.mxu0 %v23766_v25  ;;  %11926 = vmatmul.mubr.f32.vlgmr.msra.gmra.mxu1 %v23739_v39  ;;  %v11978_v31 = vand.u32 4294901760, %v11378_v42 }
 0x98e   : > { %v11381_v37 = vsel %vm11240_vm4, %v11345_v50, 0  ;;  %11931 = vmatprep.mubr.f32.mxu1 %v26435_v19  ;;  %12012 = vmatprep.mubr.f32.mxu0 %v26435_v19 }
 0x98f   : > { %v11976_v56 = vand.u32 4294901760, %v11381_v37  ;;  %v12083_v57 = vsub.f32 %v11378_v42, %v11978_v31 }
 0x991   : > { %11977 = vmatprep.subr.mxu0 %v11976_v56  ;;  %11933 = vmatmul.mubr.f32.gmra.mxu1 %v23750_v51  ;;  %v12077_v62 = vsub.f32 %v11381_v37, %v11976_v56  ;;  %v12084_v47 = vand.u32 4294901760, %v12083_v57 }
 0x992   : > { %11979 = vmatpush1.msra.mxu0 %v11978_v31  ;;  %11938 = vmatprep.mubr.f32.mxu1 %v26435_v19 }
 0x993   : > { %12018 = vmatmul.mubr.f32.vlgmr.msra.gmra.mxu0 %v23789_v2  ;;  %12174 = vmatprep.subr.mxu0 %v12077_v62  ;;  %v12078_v46 = vand.u32 4294901760, %v12077_v62  ;;  %v12085_v32 = vsub.f32 %v12083_v57, %v12084_v47 }
 0x994   : > { %12177 = vmatpush1.msra.mxu0 %v12083_v57  ;;  %12023 = vmatprep.mubr.f32.mxu0 %v26435_v19 }
 0x995   : > { %12362 = vmatprep.subr.mxu0 %v12078_v46  ;;  %11940 = vmatmul.mubr.f32.gmra.mxu1 %v23766_v25  ;;  %v12079_v27 = vsub.f32 %v12077_v62, %v12078_v46  ;;  %v12086_v45 = vand.u32 4294901760, %v12085_v32 }
 0x996   : > { %12120 = vmatprep.mubr.f32.mxu1 %v26435_v19 }
 0x997   : > { %12029 = vmatmul.mubr.f32.gmra.mxu0 %v23797_v0  ;;  %v12080_v17 = vand.u32 4294901760, %v12079_v27 }
 0x998   : > { %12034 = vmatprep.mubr.f32.mxu0 %v26435_v19 }
 0x999   : > { %12081 = vmatprep.subr.mxu1 %v12080_v17 }
 0x99a   : > { %12087 = vmatpush1.msra.mxu1 %v12086_v45 }
 0x99b   : > { %12040 = vmatmul.mubr.f32.gmra.mxu0 %v23803_v33  ;;  %12122 = vmatmul.mubr.f32.vlgmr.msra.gmra.mxu1 %v23739_v39 }
 0x99c   : > { %12266 = vmatprep.subr.mxu1 %v11976_v56  ;;  %12127 = vmatprep.mubr.f32.mxu1 %v26435_v19 }
 0x99d   : > { %12268 = vmatpush1.msra.mxu1 %v11978_v31  ;;  %12210 = vmatprep.mubr.f32.mxu0 %v26435_v19 }
 0x99e   : > { %12452 = vmatprep.subr.mxu1 %v11976_v56 }
 0x99f   : > { %12129 = vmatmul.mubr.f32.gmra.mxu1 %v23750_v51  ;;  %12213 = vmatmul.mubr.f32.vlgmr.msra.gmra.mxu0 %v23746_v59 }
 0x9a0   : > { %12366 = vmatpush1.msra.mxu0 %v12084_v47  ;;  %12134 = vmatprep.mubr.f32.mxu1 %v26435_v19 }
 0x9a1   : > { %12218 = vmatprep.mubr.f32.mxu0 %v26435_v19 }
 0x9a3   : > { %12136 = vmatmul.mubr.f32.gmra.mxu1 %v23766_v25  ;;  %12221 = vmatmul.mubr.f32.gmra.mxu0 %v23764_v41 }
 0x9a4   : > { %12226 = vmatprep.mubr.f32.mxu0 %v26435_v19  ;;  %12301 = vmatprep.mubr.f32.mxu1 %v26435_v19 }
 0x9a7   : > { %12229 = vmatmul.mubr.f32.gmra.mxu0 %v23784_v63  ;;  %12305 = vmatmul.mubr.f32.vlgmr.msra.gmra.mxu1 %v23759_v52 }
 0x9a8   : > { %12454 = vmatpush1.msra.mxu1 %v11978_v31  ;;  %12310 = vmatprep.mubr.f32.mxu1 %v26435_v19 }
 0x9a9   : > { %12399 = vmatprep.mubr.f32.mxu0 %v26435_v19 }
 0x9ab   : > { %12314 = vmatmul.mubr.f32.gmra.mxu1 %v23781_v26  ;;  %12401 = vmatmul.mubr.f32.vlgmr.msra.gmra.mxu0 %v23739_v39 }
 0x9ac   : > { %12319 = vmatprep.mubr.f32.mxu1 %v26435_v19  ;;  %12406 = vmatprep.mubr.f32.mxu0 %v26435_v19 }
 0x9af   : > { %12323 = vmatmul.mubr.f32.gmra.mxu1 %v23794_v20  ;;  %12408 = vmatmul.mubr.f32.gmra.mxu0 %v23750_v51 }
 0x9b0   : > { %12413 = vmatprep.mubr.f32.mxu0 %v26435_v19  ;;  %12487 = vmatprep.mubr.f32.mxu1 %v26435_v19 }
 0x9b3   : > { %12415 = vmatmul.mubr.f32.gmra.mxu0 %v23766_v25  ;;  %12489 = vmatmul.mubr.f32.vlgmr.msra.gmra.mxu1 %v23739_v39 }
 0x9b4   : > { %12494 = vmatprep.mubr.f32.mxu1 %v26435_v19  ;;  %12811 = vmatprep.mubr.f32.mxu0 %v26435_v19 }
 0x9b7   : > { %12496 = vmatmul.mubr.f32.gmra.mxu1 %v23750_v51 }
 0x9b8   : > { %12501 = vmatprep.mubr.f32.mxu1 %v26435_v19 }
 0x9bb   : > { %12503 = vmatmul.mubr.f32.gmra.mxu1 %v23766_v25 }
 0x9bc   : > { %13005 = vmatprep.mubr.f32.mxu1 %v26435_v19 }
 0xa2d   : > { %v11456_v59 = vpop.f32.mrf.mxu0 }
 0xa2e   : > { %v11457_v49 = vadd.f32 %v11456_v59, %v23882_v21 }
 0xa2f   : > { %v11458_v52 = vpop.f32.mrf.mxu0 }
 0xa30   : > { %v11459_v40 = vadd.f32 %v11458_v52, %v23882_v21 }
 0xa31   : > { %v11467_v41 = vpop.f32.mrf.mxu0 }
 0xa32   : > { %v11468_v54 = vadd.f32 %v11467_v41, %v23884_v13 }
 0xa33   : > { %v11469_v26 = vpop.f32.mrf.mxu0 }
 0xa34   : > { %v11470_v14 = vadd.f32 %v11469_v26, %v23884_v13 }
 0xa35   : > { %v11478_v63 = vpop.f32.mrf.mxu0  ;;  %v11560_v2 = vpop.f32.mrf.mxu1 }
 0xa36   : > { %v11479_v6 = vadd.f32 %v11478_v63, %v23887_v7  ;;  %v11561_v35 = vadd.f32 %v11560_v2, %v11457_v49 }
 0xa37   : > { %v11480_v20 = vpop.f32.mrf.mxu0  ;;  %v11562_v39 = vpop.f32.mrf.mxu1 }
 0xa38   : > { %v11563_v31 = vadd.f32 %v11562_v39, %v11459_v40  ;;  %v11481_v47 = vadd.f32 %v11480_v20, %v23887_v7 }
 0xa39   : > { %v11567_v9 = vpop.f32.mrf.mxu1  ;;  %v11651_v12 = vpop.f32.mrf.mxu0 }
 0xa3a   : > { %v11568_v22 = vadd.f32 %v11567_v9, %v11468_v54  ;;  %v11652_v37 = vadd.f32 %v11651_v12, %v11561_v35 }
 0xa3b   : > { %v11569_v28 = vpop.f32.mrf.mxu1  ;;  %v11653_v0 = vpop.f32.mrf.mxu0 }
 0xa3c   : > { %v11570_v50 = vadd.f32 %v11569_v28, %v11470_v14  ;;  %v11654_v27 = vadd.f32 %v11653_v0, %v11563_v31 }
 0xa3d   : > { %v11574_v51 = vpop.f32.mrf.mxu1  ;;  %v11659_v29 = vpop.f32.mrf.mxu0 }
 0xa3e   : > { %v11660_v42 = vadd.f32 %v11659_v29, %v11568_v22  ;;  %v11575_v62 = vadd.f32 %v11574_v51, %v11479_v6 }
 0xa3f   : > { %v11576_v16 = vpop.f32.mrf.mxu1  ;;  %v11661_v25 = vpop.f32.mrf.mxu0 }
 0xa40   : > { %v11662_v46 = vadd.f32 %v11661_v25, %v11570_v50  ;;  %v11577_v41 = vadd.f32 %v11576_v16, %v11481_v47 }
 0xa41   : > { %v11667_v53 = vpop.f32.mrf.mxu0  ;;  %v11743_v18 = vpop.f32.mrf.mxu1 }
 0xa42   : > { %v11744_v17 = vadd.f32 %v11743_v18, %v11652_v37  ;;  %v11668_v26 = vadd.f32 %v11667_v53, %v11575_v62 }
 0xa43   : > { %v11669_v44 = vpop.f32.mrf.mxu0  ;;  %v11745_v5 = vpop.f32.mrf.mxu1 }
 0xa44   : > { %v11746_v2 = vadd.f32 %v11745_v5, %v11654_v27  ;;  %v11670_v39 = vadd.f32 %v11669_v44, %v11577_v41 }
 0xa45   : > { %v11752_v33 = vpop.f32.mrf.mxu1  ;;  %v11839_v1 = vpop.f32.mrf.mxu0 }
 0xa46   : > { %v11753_v32 = vadd.f32 %v11752_v33, %v11660_v42  ;;  %v11840_v9 = vadd.f32 %v11839_v1, %v11744_v17 }
 0xa47   : > { %v11754_v60 = vpop.f32.mrf.mxu1  ;;  %v11841_v61 = vpop.f32.mrf.mxu0 }
 0xa48   : > { %v11755_v52 = vadd.f32 %v11754_v60, %v11662_v46  ;;  %v11842_v51 = vadd.f32 %v11841_v61, %v11746_v2 }
 0xa49   : > { %v11761_v3 = vpop.f32.mrf.mxu1  ;;  %v11846_v23 = vpop.f32.mrf.mxu0 }
 0xa4a   : > { %v11847_v63 = vadd.f32 %v11846_v23, %v11753_v32  ;;  %v11762_v12 = vadd.f32 %v11761_v3, %v11668_v26 }
 0xa4b   : > { %v11763_v15 = vpop.f32.mrf.mxu1  ;;  %v11848_v55 = vpop.f32.mrf.mxu0 }
 0xa4c   : > { %v11849_v29 = vadd.f32 %v11848_v55, %v11755_v52  ;;  %v11764_v0 = vadd.f32 %v11763_v15, %v11670_v39 }
 0xa4d   : > { %v11853_v56 = vpop.f32.mrf.mxu0  ;;  %v11927_v57 = vpop.f32.mrf.mxu1 }
 0xa4e   : > { %v11928_v49 = vadd.f32 %v11927_v57, %v11840_v9  ;;  %v11854_v18 = vadd.f32 %v11853_v56, %v11762_v12 }
 0xa4f   : > { %v11855_v45 = vpop.f32.mrf.mxu0  ;;  %v11929_v59 = vpop.f32.mrf.mxu1 }
 0xa50   : > { %v11930_v22 = vadd.f32 %v11929_v59, %v11842_v51  ;;  %v11856_v1 = vadd.f32 %v11855_v45, %v11764_v0  ;;  %v12509_v44 = vadd.f32 %v11928_v49, %v23536_v36 }
 0xa51   : > { %v11934_v28 = vpop.f32.mrf.mxu1 }
 0xa52   : > { %v11935_v54 = vadd.f32 %v11934_v28, %v11847_v63  ;;  %v12510_v35 = vadd.f32 %v11930_v22, %v23542_v48 }
 0xa53   : > { %v23894_v20 = vpop.f32.mrf.mxu0  ;;  %v11936_v25 = vpop.f32.mrf.mxu1 }
 0xa54   : > { %v11937_v33 = vadd.f32 %v11936_v25, %v11849_v29  ;;  %v12513_v16 = vadd.f32 %v11935_v54, %v23546_v8 }
 0xa55   : > { %v23897_v53 = vpop.f32.mrf.mxu0  ;;  %v11941_v5 = vpop.f32.mrf.mxu1 }
 0xa56   : > { %v11942_v60 = vadd.f32 %v11941_v5, %v11854_v18  ;;  %v12514_v3 = vadd.f32 %v11937_v33, %v23559_v10  ;;  %v12521_v40 = vadd.f32 %v12513_v16, %v12509_v44 }
 0xa57   : > { %v12030_v61 = vpop.f32.mrf.mxu0  ;;  %v11943_v23 = vpop.f32.mrf.mxu1 }
 0xa58   : > { %v12517_v14 = vadd.f32 %v11942_v60, %v23514_v24  ;;  %v11944_v6 = vadd.f32 %v11943_v23, %v11856_v1  ;;  %v12530_v50 = vadd.f32 %v12514_v3, %v12510_v35 }
 0xa59   : > { %v12032_v15 = vpop.f32.mrf.mxu0 }
 0xa5a   : > { %v12522_v8 = vsel %vm415_vm0, %v12517_v14, 0.0  ;;  %v12518_v55 = vadd.f32 %v11944_v6, %v23527_v30 }
 0xa5b   : > { %v12523_v42 = vadd.f32 %v12522_v8, %v12521_v40  ;;  %v12041_v31 = vpop.f32.mrf.mxu0  ;;  %v12123_v37 = vpop.f32.mrf.mxu1 }
 0xa5c   : > { %v12531_v36 = vsel %vm415_vm0, %v12518_v55, 0.0 }
 0xa5d   : > { %v12524_v10 = vrot.slane %v12523_v42, 4  ;;  %v12532_v56 = vadd.f32 %v12531_v36, %v12530_v50  ;;  %v12043_v57 = vpop.f32.mrf.mxu0  ;;  %v12125_v62 = vpop.f32.mrf.mxu1 }
 0xa5f   : > { %v12525_v24 = vadd.f32 %v12524_v10, %v12523_v42  ;;  %v12533_v47 = vrot.slane %v12532_v56, 4  ;;  %v12130_v46 = vpop.f32.mrf.mxu1  ;;  %v12214_v48 = vpop.f32.mrf.mxu0  ;;  %v12020_v42 = vadd.f32 %v23894_v20, %v23882_v21  ;;  %v12022_v20 = vadd.f32 %v23897_v53, %v23882_v21 }
 0xa61   : > { %v12526_v32 = vrot.slane %v12525_v24, 2  ;;  %v12534_v27 = vadd.f32 %v12533_v47, %v12532_v56  ;;  %v12132_v17 = vpop.f32.mrf.mxu1  ;;  %v12216_v45 = vpop.f32.mrf.mxu0 }
 0xa63   : > { %v12527_v59 = vadd.f32 %v12526_v32, %v12525_v24  ;;  %v12535_v30 = vrot.slane %v12534_v27, 2  ;;  %v12137_v41 = vpop.f32.mrf.mxu1  ;;  %v12222_v26 = vpop.f32.mrf.mxu0 }
 0xa65   : > { %v12528_v52 = vrot.slane %v12527_v59, 1  ;;  %v12536_v63 = vadd.f32 %v12535_v30, %v12534_v27  ;;  %v12139_v2 = vpop.f32.mrf.mxu1  ;;  %v12224_v9 = vpop.f32.mrf.mxu0  ;;  %v12042_v27 = vadd.f32 %v12041_v31, %v23887_v7 }
 0xa67   : > { %v12529_v28 = vadd.f32 %v12528_v52, %v12527_v59  ;;  %v12537_v39 = vrot.slane %v12536_v63, 1  ;;  %v12230_v12 = vpop.f32.mrf.mxu0  ;;  %v12306_v29 = vpop.f32.mrf.mxu1  ;;  %v12124_v59 = vadd.f32 %v12123_v37, %v12020_v42 }
 0xa69   : > { %v12557_v54 = vmul.f32 0.05, %v12529_v28  ;;  %v12538_v51 = vadd.f32 %v12537_v39, %v12536_v63  ;;  %v12232_v49 = vpop.f32.mrf.mxu0  ;;  %v12308_v25 = vpop.f32.mrf.mxu1 }
 0xa6b   : > { %v23906_v0 = vsub.f32 %v12509_v44, %v12557_v54  ;;  %v23908_v18 = vsub.f32 %v12513_v16, %v12557_v54  ;;  %v23910_v33 = vsub.f32 %v12517_v14, %v12557_v54  ;;  %v12558_v22 = vmul.f32 0.05, %v12538_v51  ;;  %v12315_v5 = vpop.f32.mrf.mxu1  ;;  %v12402_v1 = vpop.f32.mrf.mxu0 }
 0xa6c   : > { %v12031_v16 = vadd.f32 %v12030_v61, %v23884_v13  ;;  %v12033_v61 = vadd.f32 %v12032_v15, %v23884_v13  ;;  %v12215_v13 = vadd.f32 %v12214_v48, %v12124_v59 }
 0xa6d   : > { %v12573_v60 = vmul.f32 %v23906_v0, %v23906_v0  ;;  %v12577_v23 = vmul.f32 %v23908_v18, %v23908_v18  ;;  %v12581_v6 = vmul.f32 %v23910_v33, %v23910_v33  ;;  %v23918_v40 = vsub.f32 %v12510_v35, %v12558_v22  ;;  %v12317_v44 = vpop.f32.mrf.mxu1  ;;  %v12404_v8 = vpop.f32.mrf.mxu0 }
 0xa6e   : > { %v23921_v14 = vsub.f32 %v12514_v3, %v12558_v22  ;;  %v23923_v50 = vsub.f32 %v12518_v55, %v12558_v22  ;;  %v12131_v55 = vadd.f32 %v12130_v46, %v12031_v16  ;;  %v12133_v39 = vadd.f32 %v12132_v17, %v12033_v61 }
 0xa6f   : > { %v12585_v36 = vadd.f32 %v12577_v23, %v12573_v60  ;;  %v12586_v10 = vsel %vm415_vm0, %v12581_v6, 0.0  ;;  %v12574_v56 = vmul.f32 %v23918_v40, %v23918_v40  ;;  %v12324_v24 = vpop.f32.mrf.mxu1  ;;  %v12409_v35 = vpop.f32.mrf.mxu0  ;;  %v12044_v22 = vadd.f32 %v12043_v57, %v23887_v7 }
 0xa70   : > { %v12578_v47 = vmul.f32 %v23921_v14, %v23921_v14  ;;  %v12582_v3 = vmul.f32 %v23923_v50, %v23923_v50  ;;  %v12223_v54 = vadd.f32 %v12222_v26, %v12131_v55  ;;  %v12126_v60 = vadd.f32 %v12125_v62, %v12022_v20 }
 0xa71   : > { %v12587_v32 = vadd.f32 %v12586_v10, %v12585_v36  ;;  %v12326_v30 = vpop.f32.mrf.mxu1  ;;  %v12411_v52 = vpop.f32.mrf.mxu0  ;;  %v12138_v23 = vadd.f32 %v12137_v41, %v12042_v27  ;;  %v12225_v21 = vadd.f32 %v12224_v9, %v12133_v39  ;;  %v12140_v37 = vadd.f32 %v12139_v2, %v12044_v22 }
 0xa72   : > { %v12594_v63 = vadd.f32 %v12578_v47, %v12574_v56  ;;  %v12595_v28 = vsel %vm415_vm0, %v12582_v3, 0.0  ;;  %v12316_v53 = vadd.f32 %v12315_v5, %v12223_v54  ;;  %v12217_v31 = vadd.f32 %v12216_v45, %v12126_v60 }
 0xa73   : > { %v12588_v51 = vrot.slane %v12587_v32, 4  ;;  %v12490_v15 = vpop.f32.mrf.mxu1  ;;  %v12307_v16 = vadd.f32 %v12306_v29, %v12215_v13  ;;  %v12416_v42 = vpop.f32.mrf.mxu0  ;;  %v12231_v56 = vadd.f32 %v12230_v12, %v12138_v23  ;;  %v12318_v17 = vadd.f32 %v12317_v44, %v12225_v21 }
 0xa74   : > { %v12596_v46 = vadd.f32 %v12595_v28, %v12594_v63  ;;  %v12410_v26 = vadd.f32 %v12409_v35, %v12316_v53  ;;  %v12233_v3 = vadd.f32 %v12232_v49, %v12140_v37  ;;  %v12309_v7 = vadd.f32 %v12308_v25, %v12217_v31  ;;  %v12693_v49 = vld [vmem:[%s26211_s3 + $0xc8] sm:$0xff] }
 0xa75   : > { %v12589_v6 = vadd.f32 %v12588_v51, %v12587_v32  ;;  %v12492_v36 = vpop.f32.mrf.mxu1  ;;  %v12403_v57 = vadd.f32 %v12402_v1, %v12307_v16  ;;  %v12325_v61 = vadd.f32 %v12324_v24, %v12231_v56  ;;  %v12412_v41 = vadd.f32 %v12411_v52, %v12318_v17  ;;  %v12418_v2 = vpop.f32.mrf.mxu0 }
 0xa76   : > { %v12597_v10 = vrot.slane %v12596_v46, 4  ;;  %v12405_v55 = vadd.f32 %v12404_v8, %v12309_v7  ;;  %v12327_v32 = vadd.f32 %v12326_v30, %v12233_v3  ;;  %v12694_v8 = vld [vmem:[%s26211_s3 + $0xd0] sm:$0xff]  ;;  %v12703_v54 = vsel %vm597_vm1, %v12693_v49, 0 }
 0xa77   : > { %v12590_v47 = vrot.slane %v12589_v6, 2  ;;  %v12497_v62 = vpop.f32.mrf.mxu1  ;;  %v12491_v45 = vadd.f32 %v12490_v15, %v12403_v57  ;;  %v12417_v27 = vadd.f32 %v12416_v42, %v12325_v61  ;;  %v12706_v60 = vsel %vm597_vm1, %v12694_v8, 0 }
 0xa78   : > { %v12598_v48 = vadd.f32 %v12597_v10, %v12596_v46  ;;  %v12498_v9 = vadd.f32 %v12497_v62, %v12410_v26  ;;  %v12493_v1 = vadd.f32 %v12492_v36, %v12405_v55  ;;  %v12419_v59 = vadd.f32 %v12418_v2, %v12327_v32  ;;  %v12695_v10 = vld [vmem:[%s26211_s3 + $0xd8] sm:$0xff]  ;;  %v12696_v2 = vld [vmem:[%s26211_s3 + $0xe0] sm:$0xff] }
 0xa79   : > { %v12591_v5 = vadd.f32 %v12590_v47, %v12589_v6  ;;  %v12499_v29 = vpop.f32.mrf.mxu1  ;;  %v12511_v63 = vadd.f32 %v12491_v45, %v23635_v43  ;;  %v23960_v21 = vand.u32 4294901760, %v12703_v54  ;;  %v23975_v47 = vpop.permute.xlu1 %12654  ;;  %v12709_v57 = vsel %vm597_vm1, %v12695_v10, 0 }
 0xa7a   : > { %v12599_v20 = vrot.slane %v12598_v48, 2  ;;  %v12500_v12 = vadd.f32 %v12499_v29, %v12412_v41  ;;  %v23944_v44 = vadd.f32 %v12498_v9, %v23632_v4  ;;  %v12512_v15 = vadd.f32 %v12493_v1, %v23655_v34 }
 0xa7b   : > { %v12592_v25 = vrot.slane %v12591_v5, 1  ;;  %v12504_v24 = vpop.f32.mrf.mxu1  ;;  %v23970_v17 = vsub.f32 %v12703_v54, %v23960_v21  ;;  %v23984_v9 = vand.u32 4294901760, %v12709_v57  ;;  %v23999_v1 = vsel %vm597_vm1, %v12696_v2, 0 }
 0xa7c   : > { %v12600_v35 = vadd.f32 %v12599_v20, %v12598_v48  ;;  %v12505_v52 = vadd.f32 %v12504_v24, %v12417_v27  ;;  %v23951_v28 = vadd.f32 %v12500_v12, %v23652_v58  ;;  %v12539_v46 = vadd.f32 %v23944_v44, %v12511_v63  ;;  %v12697_v24 = vld [vmem:[%s26211_s3 + $0xe8] sm:$0xff] }
 0xa7d   : > { %v12593_v30 = vadd.f32 %v12592_v25, %v12591_v5  ;;  %v12506_v39 = vpop.f32.mrf.mxu1  ;;  %26467 = vst [vmem:[#allocation49_spill] sm:$0xff] %v23970_v17  ;;  %v23979_v61 = vand.u32 4294901760, %v23970_v17  ;;  %v23986_v45 = vpop.permute.xlu1 %12678  ;;  %v23996_v12 = vsub.f32 %v12709_v57, %v23984_v9 }
 0xa7e   : > { %v12601_v51 = vrot.slane %v12600_v35, 1  ;;  %v12519_v4 = vadd.f32 %v12505_v52, %v23629_v38  ;;  %v12507_v22 = vadd.f32 %v12506_v39, %v12419_v59  ;;  %v12548_v6 = vadd.f32 %v23951_v28, %v12512_v15 }
 0xa7f   : > { %v12621_v13 = vmul.f32 0.05, %v12593_v30  ;;  %v23963_v38 = vand.u32 4294901760, %v12706_v60  ;;  %v12815_v32 = vsub.f32 %v23970_v17, %v23979_v61 }
 0xa80   : > { %v12602_v23 = vadd.f32 %v12601_v51, %v12600_v35  ;;  %v12540_v43 = vsel %vm415_vm0, %v12519_v4, 0.0  ;;  %v12520_v58 = vadd.f32 %v12507_v22, %v23649_v11  ;;  %v24004_v35 = vpop.permute.xlu0 %12650  ;;  %v24016_v22 = vand.u32 4294901760, %v23996_v12 }
 0xa81   : > { %v12625_v53 = vadd.f32 1e-05, %v12621_v13  ;;  %v12541_v31 = vadd.f32 %v12540_v43, %v12539_v46  ;;  %v23973_v26 = vsub.f32 %v12706_v60, %v23963_v38  ;;  %v24009_v30 = vand.u32 4294901760, %v12815_v32  ;;  %v24013_v51 = vpop.permute.xlu1 %12646 }
 0xa82   : > { %v12622_v37 = vmul.f32 0.05, %v12602_v23  ;;  %v12549_v16 = vsel %vm415_vm0, %v12520_v58, 0.0  ;;  %v24019_v60 = vand.u32 4294901760, %v23999_v1  ;;  %v24022_v13 = vsel %vm597_vm1, %v12697_v24, 0 }
 0xa83   : > { %20203 = vrsqrt.f32 %v12625_v53  ;;  %v12542_v34 = vrot.slane %v12541_v31, 4  ;;  %v12550_v42 = vadd.f32 %v12549_v16, %v12548_v6  ;;  %v23982_v41 = vand.u32 4294901760, %v23973_v26 }
 0xa84   : > { %v12626_v36 = vadd.f32 1e-05, %v12622_v37 }
 0xa85   : > { %v12543_v11 = vadd.f32 %v12542_v34, %v12541_v31  ;;  %v12551_v56 = vrot.slane %v12550_v42, 4  ;;  %v12826_v27 = vsub.f32 %v23973_v26, %v23982_v41 }
 0xa86   : > { %20205 = vrsqrt.f32 %v12626_v36 }
 0xa87   : > { %v12544_v3 = vrot.slane %v12543_v11, 2  ;;  %v12552_v7 = vadd.f32 %v12551_v56, %v12550_v42  ;;  %v24011_v39 = vand.u32 4294901760, %v12826_v27 }
 0xa89   : > { %v12545_v62 = vadd.f32 %v12544_v3, %v12543_v11  ;;  %v12553_v48 = vrot.slane %v12552_v7, 2 }
 0xa8b   : > { %v12546_v5 = vrot.slane %v12545_v62, 1  ;;  %v12554_v55 = vadd.f32 %v12553_v48, %v12552_v7  ;;  %v24066_v7 = vpop.permute.xlu1 %12674 }
 0xa8d   : > { %v12547_v29 = vadd.f32 %v12546_v5, %v12545_v62  ;;  %v12555_v20 = vrot.slane %v12554_v55, 1 }
 0xa8f   : > { %v12559_v49 = vmul.f32 0.05, %v12547_v29  ;;  %v12556_v25 = vadd.f32 %v12555_v20, %v12554_v55 }
 0xa90   : > { %v20204_v8 = vpop.eup %20203 }
 0xa91   : > { %v12641_v59 = vmul.f32 %v20204_v8, %v23910_v33  ;;  %v24007_v52 = vsub.f32 %v12511_v63, %v12559_v49  ;;  %v12560_v54 = vmul.f32 0.05, %v12556_v25  ;;  %v24025_v33 = vsub.f32 %v23944_v44, %v12559_v49 }
 0xa92   : > { %v24027_v63 = vsub.f32 %v12519_v4, %v12559_v49  ;;  %v12633_v43 = vmul.f32 %v20204_v8, %v23906_v0  ;;  %v12637_v34 = vmul.f32 %v20204_v8, %v23908_v18 }
 0xa93   : > { %v20206_v46 = vpop.eup %20205  ;;  %v12665_v23 = vmul.f32 %v23975_v47, %v12641_v59  ;;  %v24031_v53 = vsub.f32 %v12512_v15, %v12560_v54  ;;  %v24034_v6 = vsub.f32 %v23951_v28, %v12560_v54  ;;  %v24036_v31 = vsub.f32 %v12520_v58, %v12560_v54  ;;  %v24053_v58 = vpop.permute.xlu0 %12670 }
 0xa94   : > { %v12642_v37 = vmul.f32 %v20206_v46, %v23923_v50  ;;  %v12575_v16 = vmul.f32 %v24007_v52, %v24007_v52  ;;  %v12634_v4 = vmul.f32 %v20206_v46, %v23918_v40  ;;  %v12579_v42 = vmul.f32 %v24025_v33, %v24025_v33 }
 0xa95   : > { %v24042_v44 = vadd.f32 %v23986_v45, %v12665_v23  ;;  %v12576_v0 = vmul.f32 %v24031_v53, %v24031_v53  ;;  %v12580_v28 = vmul.f32 %v24034_v6, %v24034_v6  ;;  %v12584_v15 = vmul.f32 %v24036_v31, %v24036_v31 }
 0xa96   : > { %v12666_v50 = vmul.f32 %v23975_v47, %v12642_v37  ;;  %v12657_v18 = vmul.f32 %v24013_v51, %v12633_v43  ;;  %v12658_v36 = vmul.f32 %v24013_v51, %v12634_v4  ;;  %v12638_v3 = vmul.f32 %v20206_v46, %v23921_v14  ;;  %v12698_v37 = vld [vmem:[%s26211_s3 + $0xf0] sm:$0xff] }
 0xa97   : > { %26468 = vst [vmem:[#allocation62_spill] sm:$0xff] %v24042_v44  ;;  %v12730_v40 = vsel %vm415_vm0, %v24042_v44, 0  ;;  %v12612_v10 = vadd.f32 %v12580_v28, %v12576_v0  ;;  %v12613_v11 = vsel %vm415_vm0, %v12584_v15, 0.0  ;;  %v12583_v57 = vmul.f32 %v24027_v63, %v24027_v63 }
 0xa98   : > { %v24063_v56 = vadd.f32 %v23986_v45, %v12666_v50  ;;  %v12661_v62 = vmul.f32 %v24004_v35, %v12637_v34  ;;  %v24072_v48 = vadd.f32 %v24053_v58, %v12657_v18  ;;  %v24075_v5 = vadd.f32 %v24053_v58, %v12658_v36 }
 0xa99   : > { %v12614_v55 = vadd.f32 %v12613_v11, %v12612_v10  ;;  %v12662_v29 = vmul.f32 %v24004_v35, %v12638_v3  ;;  %v24080_v14 = vand.u32 4294901760, %v12730_v40  ;;  %v12603_v20 = vadd.f32 %v12579_v42, %v12575_v16 }
 0xa9a   : > { %26469 = vst [vmem:[#allocation65_spill] sm:$0xff] %v24063_v56  ;;  %26470 = vst [vmem:[#allocation68_spill] sm:$0xff] %v24072_v48  ;;  %v12733_v2 = vsel %vm415_vm0, %v24063_v56, 0  ;;  %v24083_v32 = vadd.f32 %v24066_v7, %v12661_v62  ;;  %v24088_v49 = vand.u32 4294901760, %v24075_v5  ;;  %v24094_v8 = vand.u32 4294901760, %v24072_v48 }
 0xa9b   : > { %26471 = vst [vmem:[#allocation29_spill] sm:$0xff] %v24075_v5  ;;  %v24085_v27 = vand.u32 4294901760, %v12733_v2  ;;  %v12615_v25 = vrot.slane %v12614_v55, 4  ;;  %v24091_v24 = vadd.f32 %v24066_v7, %v12662_v29  ;;  %v24097_v59 = vsub.f32 %v12730_v40, %v24080_v14 }
 0xa9c   : > { %26472 = vst [vmem:[#allocation45_spill] sm:$0xff] %v24083_v32  ;;  %v12604_v54 = vsel %vm415_vm0, %v12583_v57, 0.0  ;;  %v24102_v46 = vand.u32 4294901760, %v24083_v32  ;;  %v24109_v43 = vsub.f32 %v24075_v5, %v24088_v49  ;;  %v24121_v0 = vsub.f32 %v24072_v48, %v24094_v8 }
 0xa9d   : > { %26473 = vst [vmem:[#allocation51_spill] sm:$0xff] %v24091_v24  ;;  %12768 = vmatprep.subr.mxu0 %v24085_v27  ;;  %v24105_v23 = vsub.f32 %v12733_v2, %v24085_v27  ;;  %v12616_v16 = vadd.f32 %v12615_v25, %v12614_v55  ;;  %v24116_v4 = vand.u32 4294901760, %v24091_v24  ;;  %v26261_v34 = vand.u32 4294901760, %v24097_v59 }
 0xa9e   : > { %12770 = vmatpush1.msra.mxu0 %v24080_v14  ;;  %v24126_v15 = vsub.f32 %v24083_v32, %v24102_v46  ;;  %v24130_v50 = vsub.f32 %v23999_v1, %v24019_v60  ;;  %v24133_v42 = vand.u32 4294901760, %v24022_v13  ;;  %v26266_v36 = vand.u32 4294901760, %v24109_v43 }
 0xa9f   : > { %v12939_v28 = vand.u32 4294901760, %v24105_v23  ;;  %v12617_v40 = vrot.slane %v12616_v16, 2  ;;  %12772 = vmatprep.subr.mxu0 %v24116_v4  ;;  %v24138_v18 = vsub.f32 %v24091_v24, %v24116_v4  ;;  %v12718_v10 = vsel %vm597_vm1, %v12698_v37, 0 }
 0xaa0   : > { %v12605_v11 = vadd.f32 %v12604_v54, %v12603_v20  ;;  %12774 = vmatpush1.msra.mxu0 %v24102_v46  ;;  %v12946_v3 = vsub.f32 %v24097_v59, %v26261_v34  ;;  %v26260_v57 = vand.u32 4294901760, %v24126_v15  ;;  %v12837_v29 = vsub.f32 %v23996_v12, %v24016_v22  ;;  %v12699_v20 = vld [vmem:[%s26211_s3 + $0xf8] sm:$0xff] }
 0xaa1   : > { %v12940_v1 = vsub.f32 %v24105_v23, %v12939_v28  ;;  %v12618_v62 = vadd.f32 %v12617_v40, %v12616_v16  ;;  %12776 = vmatprep.subr.mxu0 %v24088_v49  ;;  %v26264_v55 = vand.u32 4294901760, %v24138_v18  ;;  %v24161_v37 = vand.u32 4294901760, %v24130_v50 }
 0xaa2   : > { %12778 = vmatpush1.msra.mxu0 %v24094_v8  ;;  %v12958_v54 = vsub.f32 %v24126_v15, %v26260_v57  ;;  %v24165_v16 = vsub.f32 %v24022_v13, %v24133_v42  ;;  %v12964_v57 = vsub.f32 %v24109_v43, %v26266_v36  ;;  %v24175_v34 = vand.u32 4294901760, %v12718_v10  ;;  %v12700_v36 = vld [vmem:[%s26211_s3 + $0x100] sm:$0xff] }
 0xaa3   : > { %v12941_v25 = vand.u32 4294901760, %v12940_v1  ;;  %v12619_v40 = vrot.slane %v12618_v62, 1  ;;  %12817 = vmatmul.mubr.f32.vlgmr.msra.gmra.mxu0 %v24009_v30  ;;  %13097 = vmatprep.subr.mxu0 %v24105_v23  ;;  %v12952_v1 = vsub.f32 %v24138_v18, %v26264_v55  ;;  %v12606_v2 = vrot.slane %v12605_v11, 4 }
 0xaa4   : > { %13100 = vmatpush1.msra.mxu0 %v24097_v59  ;;  %v12947_v13 = vand.u32 4294901760, %v12946_v3  ;;  %v12721_v56 = vsel %vm597_vm1, %v12699_v20, 0  ;;  %12822 = vmatprep.mubr.f32.mxu0 %v26435_v19  ;;  %v26474_v55 = vand.u32 4294901760, %v24121_v0  ;;  %v12959_v3 = vand.u32 4294901760, %v12958_v54 }
 0xaa5   : > { %12942 = vmatprep.subr.mxu1 %v12941_v25  ;;  %v12620_v5 = vadd.f32 %v12619_v40, %v12618_v62  ;;  %13103 = vmatprep.subr.mxu0 %v24138_v18  ;;  %v12953_v23 = vand.u32 4294901760, %v12952_v1  ;;  %v24188_v25 = vand.u32 4294901760, %v12837_v29  ;;  %v12848_v62 = vsub.f32 %v24130_v50, %v24161_v37 }
 0xaa6   : > { %v12970_v44 = vsub.f32 %v24121_v0, %v26474_v55  ;;  %12948 = vmatpush1.msra.mxu1 %v12947_v13  ;;  %13106 = vmatpush1.msra.mxu0 %v24126_v15  ;;  %v24193_v20 = vand.u32 4294901760, %v24165_v16  ;;  %v12965_v55 = vand.u32 4294901760, %v12964_v57  ;;  %v24197_v1 = vsub.f32 %v12718_v10, %v24175_v34  ;;  %v12701_v57 = vld [vmem:[%s26211_s3 + $0x108] sm:$0xff] }
 0xaa7   : > { %v12624_v40 = vmul.f32 0.05, %v12620_v5  ;;  %12828 = vmatmul.mubr.f32.gmra.mxu0 %v24011_v39  ;;  %12954 = vmatprep.subr.mxu1 %v12953_v23  ;;  %v24199_v13 = vand.u32 4294901760, %v12721_v56  ;;  %v12607_v24 = vadd.f32 %v12606_v2, %v12605_v11  ;;  %v12724_v29 = vsel %vm597_vm1, %v12700_v36, 0 }
 0xaa8   : > { %13109 = vmatprep.subr.mxu0 %v24109_v43  ;;  %12960 = vmatpush1.msra.mxu1 %v12959_v3  ;;  %v12971_v5 = vand.u32 4294901760, %v12970_v44  ;;  %v24208_v10 = vand.u32 4294901760, %v12848_v62  ;;  %v12859_v11 = vsub.f32 %v24165_v16, %v24193_v20  ;;  %v24214_v36 = vand.u32 4294901760, %v24197_v1 }
 0xaa9   : > { %v12628_v54 = vadd.f32 1e-05, %v12624_v40  ;;  %13112 = vmatpush1.msra.mxu0 %v24121_v0  ;;  %12966 = vmatprep.subr.mxu1 %v12965_v55  ;;  %v24217_v44 = vsub.f32 %v12721_v56, %v24199_v13  ;;  %v24219_v2 = vand.u32 4294901760, %v12724_v29  ;;  %v12727_v23 = vsel %vm597_vm1, %v12701_v57, 0 }
 0xaaa   : > { %13399 = vmatprep.subr.mxu0 %v12939_v28  ;;  %12833 = vmatprep.mubr.f32.mxu0 %v26435_v19  ;;  %26475 = vst [vmem:[#allocation47_spill] sm:$0xff] %v24208_v10  ;;  %v12608_v28 = vrot.slane %v12607_v24, 2  ;;  %v24228_v3 = vand.u32 4294901760, %v12859_v11  ;;  %v12870_v56 = vsub.f32 %v24197_v1, %v24214_v36  ;;  %v24240_v55 = vand.u32 4294901760, %v12727_v23 }
 0xaab   : > { %20207 = vrsqrt.f32 %v12628_v54  ;;  %12972 = vmatpush1.msra.mxu1 %v12971_v5  ;;  %12839 = vmatmul.mubr.f32.gmra.mxu0 %v24188_v25  ;;  %v24235_v62 = vand.u32 4294901760, %v24217_v44  ;;  %v24238_v40 = vsub.f32 %v12724_v29, %v24219_v2 }
 0xaac   : > { %13007 = vmatmul.mubr.f32.vlgmr.msra.gmra.mxu1 %v23960_v21  ;;  %13245 = vmatprep.subr.mxu1 %v24085_v27  ;;  %26476 = vst [vmem:[#allocation54_spill] sm:$0xff] %v24228_v3  ;;  %v12609_v54 = vadd.f32 %v12608_v28, %v12607_v24  ;;  %v24249_v5 = vand.u32 4294901760, %v12870_v56  ;;  %v24257_v57 = vsub.f32 %v12727_v23, %v24240_v55 }
 0xaad   : > { %13247 = vmatpush1.msra.mxu1 %v24080_v14  ;;  %12844 = vmatprep.mubr.f32.mxu0 %v26435_v19  ;;  %v12881_v29 = vsub.f32 %v24217_v44, %v24235_v62  ;;  %v24254_v24 = vand.u32 4294901760, %v24238_v40 }
 0xaae   : > { %13249 = vmatprep.subr.mxu1 %v24116_v4  ;;  %13012 = vmatprep.mubr.f32.mxu1 %v26435_v19  ;;  %26477 = vst [vmem:[#allocation52_spill] sm:$0xff] %v24249_v5  ;;  %v12610_v11 = vrot.slane %v12609_v54, 1  ;;  %v24268_v56 = vand.u32 4294901760, %v24257_v57 }
 0xaaf   : > { %13251 = vmatpush1.msra.mxu1 %v24102_v46  ;;  %12850 = vmatmul.mubr.f32.gmra.mxu0 %v24208_v10  ;;  %v12892_v28 = vsub.f32 %v24238_v40, %v24254_v24 }
 0xab0   : > { %13014 = vmatmul.mubr.f32.gmra.mxu1 %v23963_v38  ;;  %13253 = vmatprep.subr.mxu1 %v24088_v49  ;;  %v12611_v23 = vadd.f32 %v12610_v11, %v12609_v54 }
 0xab1   : > { %13255 = vmatpush1.msra.mxu1 %v24094_v8  ;;  %12855 = vmatprep.mubr.f32.mxu0 %v26435_v19  ;;  %v24285_v11 = vand.u32 4294901760, %v12892_v28  ;;  %v24304_v28 = vld [vmem:[%s26213_s5 + $0x8] sm:$0xff] }
 0xab2   : > { %13543 = vmatprep.subr.mxu1 %v24085_v27  ;;  %13019 = vmatprep.mubr.f32.mxu1 %v26435_v19  ;;  %v24263_v27 = vand.u32 4294901760, %v12881_v29  ;;  %v20344_v29 = vmov 18   ;;  %v12623_v10 = vmul.f32 0.05, %v12611_v23 }
 0xab3   : > { %12861 = vmatmul.mubr.f32.gmra.mxu0 %v24228_v3  ;;  %20120 = vset.pattern.permute.xlu1 %v20344_v29  ;;  %26478 = vst [vmem:[#allocation64_spill] sm:$0xff] %v24285_v11  ;;  %v24292_v3 = vld [vmem:[%s26213_s5 + $0x10] sm:$0xf] }
 0xab4   : > { %13021 = vmatmul.mubr.f32.gmra.mxu1 %v23984_v9  ;;  %12866 = vmatprep.mubr.f32.mxu0 %v26435_v19  ;;  %v12627_v23 = vadd.f32 1e-05, %v12623_v10  ;;  %v26480_v10 = vand.u32 4294901760, %v24097_v59  ;;  %v26484_v59 = vand.u32 4294901760, %v24121_v0  ;;  %v20345_v0 = vmov 19  }
 0xab5   : > { %13026 = vmatprep.mubr.f32.mxu1 %v26435_v19  ;;  %20121 = vset.pattern.permute.xlu0 %v20344_v29 }
 0xab6   : > { %14568 = vperm.xlu0 %20121, %v24292_v3   ;;  %20209 = vrsqrt.f32 %v12627_v23  ;;  %v26481_v23 = vand.u32 4294901760, %v24138_v18 }
 0xab7   : > { %12872 = vmatmul.mubr.f32.gmra.mxu0 %v24249_v5  ;;  %v24280_v5 = vld [vmem:[%s26213_s5] sm:$0xff] }
 0xab8   : > { %v24270_v48 = vpop.eup %20207  ;;  %13028 = vmatmul.mubr.f32.gmra.mxu1 %v24019_v60  ;;  %12877 = vmatprep.mubr.f32.mxu0 %v26435_v19 }
 0xab9   : > { %v12644_v32 = vmul.f32 %v24270_v48, %v24036_v31  ;;  %13033 = vmatprep.mubr.f32.mxu1 %v26435_v19  ;;  %14560 = vperm.xlu1 %20120, %v24280_v5   ;;  %v12903_v31 = vsub.f32 %v24257_v57, %v24268_v56 }
 0xaba   : > { %20123 = vset.pattern.permute.xlu0 %v20345_v0 }
 0xabb   : > { %v12668_v54 = vmul.f32 %v23975_v47, %v12644_v32  ;;  %12883 = vmatmul.mubr.f32.gmra.mxu0 %v24263_v27  ;;  %v24308_v29 = vand.u32 4294901760, %v12903_v31  ;;  %14584 = vperm.xlu0 %20123, %v24280_v5  }
 0xabc   : > { %13035 = vmatmul.mubr.f32.gmra.mxu1 %v24133_v42  ;;  %12888 = vmatprep.mubr.f32.mxu0 %v26435_v19 }
 0xabd   : > { %v24298_v32 = vadd.f32 %v23986_v45, %v12668_v54  ;;  %13040 = vmatprep.mubr.f32.mxu1 %v26435_v19  ;;  %14564 = vperm.xlu1 %20120, %v24304_v28  }
 0xabf   : > { %26479 = vst [vmem:[#allocation50_spill] sm:$0xff] %v24298_v32  ;;  %12894 = vmatmul.mubr.f32.gmra.mxu0 %v24285_v11  ;;  %v12739_v54 = vsel %vm415_vm0, %v24298_v32, 0  ;;  %v26482_v32 = vand.u32 4294901760, %v24126_v15 }
 0xac0   : > { %13042 = vmatmul.mubr.f32.gmra.mxu1 %v24175_v34  ;;  %12899 = vmatprep.mubr.f32.mxu0 %v26435_v19  ;;  %v24318_v11 = vand.u32 4294901760, %v12739_v54 }
 0xac1   : > { %13047 = vmatprep.mubr.f32.mxu1 %v26435_v19  ;;  %20122 = vset.pattern.permute.xlu1 %v20345_v0 }
 0xac2   : > { %v24326_v31 = vsub.f32 %v12739_v54, %v24318_v11  ;;  %14592 = vperm.xlu1 %20122, %v24292_v3  }
 0xac3   : > { %12905 = vmatmul.mubr.f32.gmra.mxu0 %v24308_v29 }
 0xac4   : > { %13049 = vmatmul.mubr.f32.gmra.mxu1 %v24199_v13  ;;  %13145 = vmatprep.mubr.f32.mxu0 %v26435_v19  ;;  %v13848_v18 = vand.u32 4294901760, %v24326_v31 }
 0xac5   : > { %13054 = vmatprep.mubr.f32.mxu1 %v26435_v19 }
 0xac6   : > { %14588 = vperm.xlu1 %20122, %v24304_v28  }
 0xac7   : > { %13148 = vmatmul.mubr.f32.vlgmr.msra.gmra.mxu0 %v23970_v17  ;;  %v26483_v17 = vand.u32 4294901760, %v24109_v43  ;;  %v20210_v43 = vpop.eup %20209 }
 0xac8   : > { %13056 = vmatmul.mubr.f32.gmra.mxu1 %v24219_v2  ;;  %13403 = vmatpush1.msra.mxu0 %v26480_v10  ;;  %v12643_v15 = vmul.f32 %v20210_v43, %v24027_v63  ;;  %v12640_v63 = vmul.f32 %v24270_v48, %v24034_v6 }
 0xac9   : > { %13407 = vmatprep.subr.mxu0 %v26481_v23  ;;  %13061 = vmatprep.mubr.f32.mxu1 %v26435_v19 }
 0xaca   : > { %13411 = vmatpush1.msra.mxu0 %v26482_v32  ;;  %13153 = vmatprep.mubr.f32.mxu0 %v26435_v19 }
 0xacb   : > { %13415 = vmatprep.subr.mxu0 %v26483_v17  ;;  %13156 = vmatmul.mubr.f32.gmra.mxu0 %v23973_v26  ;;  %v13849_v17 = vsub.f32 %v24326_v31, %v13848_v18 }
 0xacc   : > { %13063 = vmatmul.mubr.f32.gmra.mxu1 %v24240_v55  ;;  %13419 = vmatpush1.msra.mxu0 %v26484_v59 }
 0xacd   : > { %13677 = vmatprep.subr.mxu0 %v24318_v11  ;;  %13161 = vmatprep.mubr.f32.mxu0 %v26435_v19  ;;  %v13850_v32 = vand.u32 4294901760, %v13849_v17 }
 0xace   : > { %13288 = vmatprep.mubr.f32.mxu1 %v26435_v19 }
 0xacf   : > { %13164 = vmatmul.mubr.f32.gmra.mxu0 %v23996_v12 }
 0xad0   : > { %13292 = vmatmul.mubr.f32.vlgmr.msra.gmra.mxu1 %v23979_v61  ;;  %13169 = vmatprep.mubr.f32.mxu0 %v26435_v19 }
 0xad1   : > { %13545 = vmatpush1.msra.mxu1 %v24080_v14  ;;  %13297 = vmatprep.mubr.f32.mxu1 %v26435_v19  ;;  %v12667_v14 = vmul.f32 %v23975_v47, %v12643_v15  ;;  %v12635_v47 = vmul.f32 %v20210_v43, %v24007_v52 }
 0xad2   : > { %13547 = vmatprep.subr.mxu1 %v24116_v4 }
 0xad3   : > { %13549 = vmatpush1.msra.mxu1 %v24102_v46  ;;  %13172 = vmatmul.mubr.f32.gmra.mxu0 %v24130_v50  ;;  %v24376_v6 = vadd.f32 %v23986_v45, %v12667_v14  ;;  %v12664_v46 = vmul.f32 %v24004_v35, %v12640_v63  ;;  %v12659_v52 = vmul.f32 %v24013_v51, %v12635_v47 }
 0xad4   : > { %13551 = vmatprep.subr.mxu1 %v24088_v49  ;;  %13301 = vmatmul.mubr.f32.gmra.mxu1 %v23982_v41  ;;  %v12639_v49 = vmul.f32 %v20210_v43, %v24025_v33 }
 0xad5   : > { %13553 = vmatpush1.msra.mxu1 %v24094_v8  ;;  %13177 = vmatprep.mubr.f32.mxu0 %v26435_v19  ;;  %v12636_v8 = vmul.f32 %v24270_v48, %v24031_v53  ;;  %26485 = vst [vmem:[#allocation57_spill] sm:$0xff] %v24376_v6  ;;  %v12736_v45 = vsel %vm415_vm0, %v24376_v6, 0  ;;  %v24390_v48 = vadd.f32 %v24066_v7, %v12664_v46 }
 0xad6   : > { %13851 = vmatprep.subr.mxu1 %v13850_v32  ;;  %13306 = vmatprep.mubr.f32.mxu1 %v26435_v19  ;;  %v12663_v33 = vmul.f32 %v24004_v35, %v12639_v49  ;;  %v24405_v3 = vand.u32 4294901760, %v12736_v45 }
 0xad7   : > { %13180 = vmatmul.mubr.f32.gmra.mxu0 %v24165_v16  ;;  %v12660_v53 = vmul.f32 %v24013_v51, %v12636_v8  ;;  %26486 = vst [vmem:[#allocation66_spill] sm:$0xff] %v24390_v48  ;;  %v24402_v51 = vadd.f32 %v24053_v58, %v12659_v52  ;;  %v24410_v5 = vand.u32 4294901760, %v24390_v48 }
 0xad8   : > { %13310 = vmatmul.mubr.f32.gmra.mxu1 %v24016_v22  ;;  %13185 = vmatprep.mubr.f32.mxu0 %v26435_v19  ;;  %v24395_v35 = vadd.f32 %v24066_v7, %v12663_v33  ;;  %v24424_v54 = vsub.f32 %v12736_v45, %v24405_v3 }
 0xad9   : > { %13315 = vmatprep.mubr.f32.mxu1 %v26435_v19  ;;  %v24399_v4 = vadd.f32 %v24053_v58, %v12660_v53  ;;  %26489 = vst [vmem:[#allocation55_spill] sm:$0xff] %v24402_v51  ;;  %v24421_v58 = vand.u32 4294901760, %v24402_v51  ;;  %v24430_v10 = vsub.f32 %v24390_v48, %v24410_v5 }
 0xada   : > { %26487 = vst [vmem:[#allocation63_spill] sm:$0xff] %v24395_v35  ;;  %v24414_v7 = vand.u32 4294901760, %v24395_v35  ;;  %v13854_v17 = vand.u32 4294901760, %v24424_v54 }
 0xadb   : > { %13188 = vmatmul.mubr.f32.gmra.mxu0 %v24197_v1  ;;  %26488 = vst [vmem:[#allocation32_spill] sm:$0xff] %v24399_v4  ;;  %v24417_v28 = vand.u32 4294901760, %v24399_v4  ;;  %v24445_v43 = vsub.f32 %v24402_v51, %v24421_v58  ;;  %v13860_v0 = vand.u32 4294901760, %v24430_v10 }
 0xadc   : > { %13319 = vmatmul.mubr.f32.gmra.mxu1 %v24161_v37  ;;  %13193 = vmatprep.mubr.f32.mxu0 %v26435_v19  ;;  %v24435_v23 = vsub.f32 %v24395_v35, %v24414_v7  ;;  %v13855_v14 = vsub.f32 %v24424_v54, %v13854_v17 }
 0xadd   : > { %13324 = vmatprep.mubr.f32.mxu1 %v26435_v19  ;;  %v24439_v59 = vsub.f32 %v24399_v4, %v24417_v28  ;;  %v13878_v63 = vand.u32 4294901760, %v24445_v43  ;;  %v13861_v49 = vsub.f32 %v24430_v10, %v13860_v0 }
 0xade   : > { %v13866_v15 = vand.u32 4294901760, %v24435_v23  ;;  %v13856_v46 = vand.u32 4294901760, %v13855_v14 }
 0xadf   : > { %13196 = vmatmul.mubr.f32.gmra.mxu0 %v24217_v44  ;;  %v26276_v32 = vand.u32 4294901760, %v24439_v59  ;;  %v13879_v33 = vsub.f32 %v24445_v43, %v13878_v63  ;;  %v13862_v53 = vand.u32 4294901760, %v13861_v49 }
 0xae0   : > { %13328 = vmatmul.mubr.f32.gmra.mxu1 %v24193_v20  ;;  %13201 = vmatprep.mubr.f32.mxu0 %v26435_v19  ;;  %v13867_v8 = vsub.f32 %v24435_v23, %v13866_v15 }
 0xae1   : > { %13333 = vmatprep.mubr.f32.mxu1 %v26435_v19  ;;  %v13873_v47 = vsub.f32 %v24439_v59, %v26276_v32  ;;  %v13880_v32 = vand.u32 4294901760, %v13879_v33 }
 0xae2   : > { %v13868_v52 = vand.u32 4294901760, %v13867_v8 }
 0xae3   : > { %13204 = vmatmul.mubr.f32.gmra.mxu0 %v24238_v40  ;;  %v13874_v45 = vand.u32 4294901760, %v13873_v47 }
 0xae4   : > { %13337 = vmatmul.mubr.f32.gmra.mxu1 %v24214_v36  ;;  %13209 = vmatprep.mubr.f32.mxu0 %v26435_v19 }
 0xae5   : > { %13342 = vmatprep.mubr.f32.mxu1 %v26435_v19 }
 0xae7   : > { %13212 = vmatmul.mubr.f32.gmra.mxu0 %v24257_v57 }
 0xae8   : > { %13346 = vmatmul.mubr.f32.gmra.mxu1 %v24235_v62  ;;  %13452 = vmatprep.mubr.f32.mxu0 %v26435_v19 }
 0xae9   : > { %13351 = vmatprep.mubr.f32.mxu1 %v26435_v19 }
 0xaeb   : > { %13454 = vmatmul.mubr.f32.vlgmr.msra.gmra.mxu0 %v23960_v21 }
 0xaec   : > { %13355 = vmatmul.mubr.f32.gmra.mxu1 %v24254_v24  ;;  %13679 = vmatpush1.msra.mxu0 %v24405_v3 }
 0xaed   : > { %13681 = vmatprep.subr.mxu0 %v24410_v5  ;;  %13360 = vmatprep.mubr.f32.mxu1 %v26435_v19 }
 0xaee   : > { %13683 = vmatpush1.msra.mxu0 %v24414_v7  ;;  %13459 = vmatprep.mubr.f32.mxu0 %v26435_v19 }
 0xaef   : > { %13685 = vmatprep.subr.mxu0 %v24417_v28  ;;  %13461 = vmatmul.mubr.f32.gmra.mxu0 %v23963_v38 }
 0xaf0   : > { %13364 = vmatmul.mubr.f32.gmra.mxu1 %v24268_v56  ;;  %13687 = vmatpush1.msra.mxu0 %v24421_v58 }
 0xaf1   : > { %14006 = vmatprep.subr.mxu0 %v24326_v31  ;;  %13466 = vmatprep.mubr.f32.mxu0 %v26435_v19 }
 0xaf2   : > { %13586 = vmatprep.mubr.f32.mxu1 %v26435_v19 }
 0xaf3   : > { %13468 = vmatmul.mubr.f32.gmra.mxu0 %v23984_v9 }
 0xaf4   : > { %13588 = vmatmul.mubr.f32.vlgmr.msra.gmra.mxu1 %v23960_v21  ;;  %13473 = vmatprep.mubr.f32.mxu0 %v26435_v19 }
 0xaf5   : > { %13857 = vmatpush1.msra.mxu1 %v13856_v46  ;;  %13593 = vmatprep.mubr.f32.mxu1 %v26435_v19 }
 0xaf6   : > { %13863 = vmatprep.subr.mxu1 %v13862_v53 }
 0xaf7   : > { %13869 = vmatpush1.msra.mxu1 %v13868_v52  ;;  %13475 = vmatmul.mubr.f32.gmra.mxu0 %v24019_v60 }
 0xaf8   : > { %13875 = vmatprep.subr.mxu1 %v13874_v45  ;;  %13595 = vmatmul.mubr.f32.gmra.mxu1 %v23963_v38 }
 0xaf9   : > { %13881 = vmatpush1.msra.mxu1 %v13880_v32  ;;  %13480 = vmatprep.mubr.f32.mxu0 %v26435_v19 }
 0xafa   : > { %14154 = vmatprep.subr.mxu1 %v24318_v11  ;;  %13600 = vmatprep.mubr.f32.mxu1 %v26435_v19 }
 0xafb   : > { %13482 = vmatmul.mubr.f32.gmra.mxu0 %v24133_v42 }
 0xafc   : > { %13602 = vmatmul.mubr.f32.gmra.mxu1 %v23984_v9  ;;  %13487 = vmatprep.mubr.f32.mxu0 %v26435_v19 }
 0xafd   : > { %13607 = vmatprep.mubr.f32.mxu1 %v26435_v19 }
 0xaff   : > { %13489 = vmatmul.mubr.f32.gmra.mxu0 %v24175_v34 }
 0xb00   : > { %13609 = vmatmul.mubr.f32.gmra.mxu1 %v24019_v60  ;;  %13494 = vmatprep.mubr.f32.mxu0 %v26435_v19 }
 0xb01   : > { %13614 = vmatprep.mubr.f32.mxu1 %v26435_v19 }
 0xb03   : > { %13496 = vmatmul.mubr.f32.gmra.mxu0 %v24199_v13 }
 0xb04   : > { %13616 = vmatmul.mubr.f32.gmra.mxu1 %v24133_v42  ;;  %13501 = vmatprep.mubr.f32.mxu0 %v26435_v19 }
 0xb05   : > { %13621 = vmatprep.mubr.f32.mxu1 %v26435_v19 }
 0xb07   : > { %13503 = vmatmul.mubr.f32.gmra.mxu0 %v24219_v2 }
 0xb08   : > { %13623 = vmatmul.mubr.f32.gmra.mxu1 %v24175_v34  ;;  %13508 = vmatprep.mubr.f32.mxu0 %v26435_v19 }
 0xb09   : > { %13628 = vmatprep.mubr.f32.mxu1 %v26435_v19 }
 0xb0b   : > { %13510 = vmatmul.mubr.f32.gmra.mxu0 %v24240_v55 }
 0xb0c   : > { %13630 = vmatmul.mubr.f32.gmra.mxu1 %v24199_v13  ;;  %13720 = vmatprep.mubr.f32.mxu0 %v26435_v19 }
 0xb0d   : > { %13635 = vmatprep.mubr.f32.mxu1 %v26435_v19 }
 0xb0f   : > { %13726 = vmatmul.mubr.f32.vlgmr.msra.gmra.mxu0 %v24009_v30  ;;  %v26490_v30 = vld [vmem:[#allocation47_spill] sm:$0xff] }
 0xb10   : > { %13637 = vmatmul.mubr.f32.gmra.mxu1 %v24219_v2  ;;  %14009 = vmatpush1.msra.mxu0 %v24424_v54 }
 0xb11   : > { %14012 = vmatprep.subr.mxu0 %v24430_v10  ;;  %13642 = vmatprep.mubr.f32.mxu1 %v26435_v19 }
 0xb12   : > { %14015 = vmatpush1.msra.mxu0 %v24435_v23  ;;  %13731 = vmatprep.mubr.f32.mxu0 %v26435_v19 }
 0xb13   : > { %14018 = vmatprep.subr.mxu0 %v24439_v59  ;;  %13737 = vmatmul.mubr.f32.gmra.mxu0 %v24011_v39  ;;  %v26491_v39 = vld [vmem:[#allocation54_spill] sm:$0xff] }
 0xb14   : > { %13644 = vmatmul.mubr.f32.gmra.mxu1 %v24240_v55  ;;  %14021 = vmatpush1.msra.mxu0 %v24445_v43 }
 0xb15   : > { %14308 = vmatprep.subr.mxu0 %v13848_v18  ;;  %13742 = vmatprep.mubr.f32.mxu0 %v26435_v19 }
 0xb16   : > { %13914 = vmatprep.mubr.f32.mxu1 %v26435_v19 }
 0xb17   : > { %13748 = vmatmul.mubr.f32.gmra.mxu0 %v24188_v25  ;;  %v26492_v25 = vld [vmem:[#allocation52_spill] sm:$0xff] }
 0xb18   : > { %13916 = vmatmul.mubr.f32.vlgmr.msra.gmra.mxu1 %v23960_v21  ;;  %13753 = vmatprep.mubr.f32.mxu0 %v26435_v19 }
 0xb19   : > { %14156 = vmatpush1.msra.mxu1 %v24405_v3  ;;  %13921 = vmatprep.mubr.f32.mxu1 %v26435_v19 }
 0xb1a   : > { %14158 = vmatprep.subr.mxu1 %v24410_v5 }
 0xb1b   : > { %14160 = vmatpush1.msra.mxu1 %v24414_v7  ;;  %13759 = vmatmul.mubr.f32.gmra.mxu0 %v26490_v30 }
 0xb1c   : > { %14162 = vmatprep.subr.mxu1 %v24417_v28  ;;  %13923 = vmatmul.mubr.f32.gmra.mxu1 %v23963_v38 }
 0xb1d   : > { %14164 = vmatpush1.msra.mxu1 %v24421_v58  ;;  %13764 = vmatprep.mubr.f32.mxu0 %v26435_v19 }
 0xb1e   : > { %14452 = vmatprep.subr.mxu1 %v24318_v11  ;;  %13928 = vmatprep.mubr.f32.mxu1 %v26435_v19  ;;  %v26493_v11 = vld [vmem:[#allocation64_spill] sm:$0xff] }
 0xb1f   : > { %13770 = vmatmul.mubr.f32.gmra.mxu0 %v26491_v39 }
 0xb20   : > { %13930 = vmatmul.mubr.f32.gmra.mxu1 %v23984_v9  ;;  %13775 = vmatprep.mubr.f32.mxu0 %v26435_v19 }
 0xb21   : > { %13935 = vmatprep.mubr.f32.mxu1 %v26435_v19 }
 0xb23   : > { %13781 = vmatmul.mubr.f32.gmra.mxu0 %v26492_v25 }
 0xb24   : > { %13937 = vmatmul.mubr.f32.gmra.mxu1 %v24019_v60  ;;  %13786 = vmatprep.mubr.f32.mxu0 %v26435_v19 }
 0xb25   : > { %13942 = vmatprep.mubr.f32.mxu1 %v26435_v19 }
 0xb27   : > { %13792 = vmatmul.mubr.f32.gmra.mxu0 %v24263_v27  ;;  %v26494_v27 = vld [vmem:[#allocation49_spill] sm:$0xff] }
 0xb28   : > { %13944 = vmatmul.mubr.f32.gmra.mxu1 %v24133_v42  ;;  %13797 = vmatprep.mubr.f32.mxu0 %v26435_v19 }
 0xb29   : > { %13949 = vmatprep.mubr.f32.mxu1 %v26435_v19 }
 0xb2b   : > { %13803 = vmatmul.mubr.f32.gmra.mxu0 %v26493_v11 }
 0xb2c   : > { %13951 = vmatmul.mubr.f32.gmra.mxu1 %v24175_v34  ;;  %13808 = vmatprep.mubr.f32.mxu0 %v26435_v19 }
 0xb2d   : > { %13956 = vmatprep.mubr.f32.mxu1 %v26435_v19 }
 0xb2f   : > { %13814 = vmatmul.mubr.f32.gmra.mxu0 %v24308_v29  ;;  %v26495_v29 = vand.u32 4294901760, %v24439_v59 }
 0xb30   : > { %13958 = vmatmul.mubr.f32.gmra.mxu1 %v24199_v13  ;;  %14054 = vmatprep.mubr.f32.mxu0 %v26435_v19 }
 0xb31   : > { %13963 = vmatprep.mubr.f32.mxu1 %v26435_v19 }
 0xb33   : > { %14057 = vmatmul.mubr.f32.vlgmr.msra.gmra.mxu0 %v26494_v27 }
 0xb34   : > { %13965 = vmatmul.mubr.f32.gmra.mxu1 %v24219_v2  ;;  %14312 = vmatpush1.msra.mxu0 %v13854_v17 }
 0xb35   : > { %14316 = vmatprep.subr.mxu0 %v13860_v0  ;;  %13970 = vmatprep.mubr.f32.mxu1 %v26435_v19 }
 0xb36   : > { %14320 = vmatpush1.msra.mxu0 %v13866_v15  ;;  %14062 = vmatprep.mubr.f32.mxu0 %v26435_v19 }
 0xb37   : > { %14324 = vmatprep.subr.mxu0 %v26495_v29  ;;  %14065 = vmatmul.mubr.f32.gmra.mxu0 %v23973_v26 }
 0xb38   : > { %13972 = vmatmul.mubr.f32.gmra.mxu1 %v24240_v55  ;;  %14328 = vmatpush1.msra.mxu0 %v13878_v63 }
 0xb39   : > { %14070 = vmatprep.mubr.f32.mxu0 %v26435_v19  ;;  %14197 = vmatprep.mubr.f32.mxu1 %v26435_v19 }
 0xb3b   : > { %14073 = vmatmul.mubr.f32.gmra.mxu0 %v23996_v12 }
 0xb3c   : > { %14201 = vmatmul.mubr.f32.vlgmr.msra.gmra.mxu1 %v23979_v61  ;;  %14078 = vmatprep.mubr.f32.mxu0 %v26435_v19 }
 0xb3d   : > { %14454 = vmatpush1.msra.mxu1 %v24405_v3  ;;  %14206 = vmatprep.mubr.f32.mxu1 %v26435_v19 }
 0xb3e   : > { %14456 = vmatprep.subr.mxu1 %v24410_v5 }
 0xb3f   : > { %14458 = vmatpush1.msra.mxu1 %v24414_v7  ;;  %14081 = vmatmul.mubr.f32.gmra.mxu0 %v24130_v50 }
 0xb40   : > { %14460 = vmatprep.subr.mxu1 %v24417_v28  ;;  %14210 = vmatmul.mubr.f32.gmra.mxu1 %v23982_v41 }
 0xb41   : > { %14462 = vmatpush1.msra.mxu1 %v24421_v58  ;;  %14086 = vmatprep.mubr.f32.mxu0 %v26435_v19 }
 0xb42   : > { %14215 = vmatprep.mubr.f32.mxu1 %v26435_v19 }
 0xb43   : > { %14089 = vmatmul.mubr.f32.gmra.mxu0 %v24165_v16 }
 0xb44   : > { %14219 = vmatmul.mubr.f32.gmra.mxu1 %v24016_v22  ;;  %14094 = vmatprep.mubr.f32.mxu0 %v26435_v19 }
 0xb45   : > { %14224 = vmatprep.mubr.f32.mxu1 %v26435_v19 }
 0xb47   : > { %14097 = vmatmul.mubr.f32.gmra.mxu0 %v24197_v1 }
 0xb48   : > { %14228 = vmatmul.mubr.f32.gmra.mxu1 %v24161_v37  ;;  %14102 = vmatprep.mubr.f32.mxu0 %v26435_v19 }
 0xb49   : > { %14233 = vmatprep.mubr.f32.mxu1 %v26435_v19 }
 0xb4b   : > { %14105 = vmatmul.mubr.f32.gmra.mxu0 %v24217_v44 }
 0xb4c   : > { %14237 = vmatmul.mubr.f32.gmra.mxu1 %v24193_v20  ;;  %14110 = vmatprep.mubr.f32.mxu0 %v26435_v19 }
 0xb4d   : > { %14242 = vmatprep.mubr.f32.mxu1 %v26435_v19 }
 0xb4f   : > { %14113 = vmatmul.mubr.f32.gmra.mxu0 %v24238_v40 }
 0xb50   : > { %14246 = vmatmul.mubr.f32.gmra.mxu1 %v24214_v36  ;;  %14118 = vmatprep.mubr.f32.mxu0 %v26435_v19 }
 0xb51   : > { %14251 = vmatprep.mubr.f32.mxu1 %v26435_v19 }
 0xb53   : > { %14121 = vmatmul.mubr.f32.gmra.mxu0 %v24257_v57 }
 0xb54   : > { %14255 = vmatmul.mubr.f32.gmra.mxu1 %v24235_v62  ;;  %14361 = vmatprep.mubr.f32.mxu0 %v26435_v19 }
 0xb55   : > { %14260 = vmatprep.mubr.f32.mxu1 %v26435_v19 }
 0xb57   : > { %14363 = vmatmul.mubr.f32.vlgmr.msra.gmra.mxu0 %v23960_v21 }
 0xb58   : > { %14264 = vmatmul.mubr.f32.gmra.mxu1 %v24254_v24  ;;  %14368 = vmatprep.mubr.f32.mxu0 %v26435_v19 }
 0xb59   : > { %14269 = vmatprep.mubr.f32.mxu1 %v26435_v19 }
 0xb5b   : > { %14370 = vmatmul.mubr.f32.gmra.mxu0 %v23963_v38 }
 0xb5c   : > { %14273 = vmatmul.mubr.f32.gmra.mxu1 %v24268_v56  ;;  %14375 = vmatprep.mubr.f32.mxu0 %v26435_v19 }
 0xb5d   : > { %14495 = vmatprep.mubr.f32.mxu1 %v26435_v19 }
 0xb5f   : > { %14377 = vmatmul.mubr.f32.gmra.mxu0 %v23984_v9 }
 0xb60   : > { %14497 = vmatmul.mubr.f32.vlgmr.msra.gmra.mxu1 %v23960_v21  ;;  %14382 = vmatprep.mubr.f32.mxu0 %v26435_v19 }
 0xb61   : > { %14502 = vmatprep.mubr.f32.mxu1 %v26435_v19 }
 0xb63   : > { %v12818_v26 = vpop.f32.mrf.mxu0  ;;  %14384 = vmatmul.mubr.f32.gmra.mxu0 %v24019_v60 }
 0xb64   : > { %14504 = vmatmul.mubr.f32.gmra.mxu1 %v23963_v38  ;;  %14389 = vmatprep.mubr.f32.mxu0 %v26435_v19 }
 0xb65   : > { %v24623_v61 = vpop.f32.mrf.mxu0  ;;  %14509 = vmatprep.mubr.f32.mxu1 %v26435_v19 }
 0xb67   : > { %v12829_v41 = vpop.f32.mrf.mxu0  ;;  %14391 = vmatmul.mubr.f32.gmra.mxu0 %v24133_v42 }
 0xb68   : > { %14511 = vmatmul.mubr.f32.gmra.mxu1 %v23984_v9  ;;  %14396 = vmatprep.mubr.f32.mxu0 %v26435_v19 }
 0xb69   : > { %v24629_v21 = vpop.f32.mrf.mxu0  ;;  %14516 = vmatprep.mubr.f32.mxu1 %v26435_v19 }
 0xb6b   : > { %v12840_v12 = vpop.f32.mrf.mxu0  ;;  %14398 = vmatmul.mubr.f32.gmra.mxu0 %v24175_v34 }
 0xb6c   : > { %v13008_v38 = vpop.f32.mrf.mxu1  ;;  %14518 = vmatmul.mubr.f32.gmra.mxu1 %v24019_v60  ;;  %14403 = vmatprep.mubr.f32.mxu0 %v26435_v19 }
 0xb6d   : > { %v13009_v22 = vadd.f32 %v13008_v38, %v12818_v26  ;;  %v24635_v50 = vpop.f32.mrf.mxu0  ;;  %14523 = vmatprep.mubr.f32.mxu1 %v26435_v19 }
 0xb6e   : > { %v24638_v9 = vpop.f32.mrf.mxu1 }
 0xb6f   : > { %v12851_v37 = vpop.f32.mrf.mxu0  ;;  %14405 = vmatmul.mubr.f32.gmra.mxu0 %v24199_v13 }
 0xb70   : > { %v13015_v16 = vpop.f32.mrf.mxu1  ;;  %14525 = vmatmul.mubr.f32.gmra.mxu1 %v24133_v42  ;;  %14410 = vmatprep.mubr.f32.mxu0 %v26435_v19 }
 0xb71   : > { %v13016_v20 = vadd.f32 %v13015_v16, %v12829_v41  ;;  %v24643_v1 = vpop.f32.mrf.mxu0  ;;  %14530 = vmatprep.mubr.f32.mxu1 %v26435_v19 }
 0xb72   : > { %v24646_v60 = vpop.f32.mrf.mxu1 }
 0xb73   : > { %v12862_v36 = vpop.f32.mrf.mxu0  ;;  %14412 = vmatmul.mubr.f32.gmra.mxu0 %v24219_v2 }
 0xb74   : > { %v13022_v44 = vpop.f32.mrf.mxu1  ;;  %14532 = vmatmul.mubr.f32.gmra.mxu1 %v24175_v34  ;;  %14417 = vmatprep.mubr.f32.mxu0 %v26435_v19 }
 0xb75   : > { %v13023_v62 = vadd.f32 %v13022_v44, %v12840_v12  ;;  %v24651_v40 = vpop.f32.mrf.mxu0  ;;  %14537 = vmatprep.mubr.f32.mxu1 %v26435_v19 }
 0xb76   : > { %v24654_v42 = vpop.f32.mrf.mxu1 }
 0xb77   : > { %v12873_v24 = vpop.f32.mrf.mxu0  ;;  %14419 = vmatmul.mubr.f32.gmra.mxu0 %v24240_v55 }
 0xb78   : > { %v13029_v57 = vpop.f32.mrf.mxu1  ;;  %14539 = vmatmul.mubr.f32.gmra.mxu1 %v24199_v13  ;;  %14881 = vmatprep.mubr.f32.mxu0 %v26435_v19 }
 0xb79   : > { %v13030_v56 = vadd.f32 %v13029_v57, %v12851_v37  ;;  %v24659_v31 = vpop.f32.mrf.mxu0  ;;  %14544 = vmatprep.mubr.f32.mxu1 %v26435_v19 }
 0xb7a   : > { %v24662_v34 = vpop.f32.mrf.mxu1 }
 0xb7b   : > { %v12884_v18 = vpop.f32.mrf.mxu0 }
 0xb7c   : > { %v13036_v3 = vpop.f32.mrf.mxu1  ;;  %14546 = vmatmul.mubr.f32.gmra.mxu1 %v24219_v2 }
 0xb7d   : > { %v13037_v5 = vadd.f32 %v13036_v3, %v12862_v36  ;;  %v24665_v7 = vpop.f32.mrf.mxu0  ;;  %14551 = vmatprep.mubr.f32.mxu1 %v26435_v19 }
 0xb7e   : > { %26496 = vst [vmem:[#allocation67_spill] sm:$0xff] %v24665_v7  ;;  %v24668_v28 = vpop.f32.mrf.mxu1 }
 0xb7f   : > { %v12895_v13 = vpop.f32.mrf.mxu0 }
 0xb80   : > { %v13043_v58 = vpop.f32.mrf.mxu1  ;;  %14553 = vmatmul.mubr.f32.gmra.mxu1 %v24240_v55 }
 0xb81   : > { %v13044_v54 = vadd.f32 %v13043_v58, %v12873_v24  ;;  %v24671_v10 = vpop.f32.mrf.mxu0  ;;  %15009 = vmatprep.mubr.f32.mxu1 %v26435_v19 }
 0xb82   : > { %26497 = vst [vmem:[#allocation28_spill] sm:$0xff] %v24671_v10  ;;  %v24674_v23 = vpop.f32.mrf.mxu1 }
 0xb83   : > { %v12906_v59 = vpop.f32.mrf.mxu0 }
 0xb84   : > { %v13050_v2 = vpop.f32.mrf.mxu1 }
 0xb85   : > { %v13051_v17 = vadd.f32 %v13050_v2, %v12884_v18  ;;  %v24676_v43 = vpop.f32.mrf.mxu0 }
 0xb86   : > { %26498 = vst [vmem:[#allocation69_spill] sm:$0xff] %v24676_v43  ;;  %v24678_v0 = vpop.f32.mrf.mxu1 }
 0xb87   : > { %26499 = vst [vmem:[#allocation70_spill] sm:$0xff] %v24678_v0  ;;  %v13149_v15 = vpop.f32.mrf.mxu0 }
 0xb88   : > { %v13057_v32 = vpop.f32.mrf.mxu1  ;;  %v13150_v14 = vadd.f32 %v13149_v15, %v13009_v22 }
 0xb89   : > { %v13058_v63 = vadd.f32 %v13057_v32, %v12895_v13  ;;  %v24680_v49 = vpop.f32.mrf.mxu0 }
 0xb8a   : > { %v24682_v55 = vpop.f32.mrf.mxu1 }
 0xb8b   : > { %26500 = vst [vmem:[#allocation30_spill] sm:$0xff] %v24682_v55  ;;  %v13157_v8 = vpop.f32.mrf.mxu0 }
 0xb8c   : > { %v13064_v47 = vpop.f32.mrf.mxu1  ;;  %v13158_v46 = vadd.f32 %v13157_v8, %v13016_v20 }
 0xb8d   : > { %v13065_v33 = vadd.f32 %v13064_v47, %v12906_v59  ;;  %v24684_v53 = vpop.f32.mrf.mxu0 }
 0xb8e   : > { %v24686_v52 = vpop.f32.mrf.mxu1 }
 0xb8f   : > { %26501 = vst [vmem:[#allocation33_spill] sm:$0xff] %v24686_v52  ;;  %v13165_v45 = vpop.f32.mrf.mxu0 }
 0xb90   : > { %v13166_v30 = vadd.f32 %v13165_v45, %v13023_v62  ;;  %v13293_v39 = vpop.f32.mrf.mxu1 }
 0xb91   : > { %v13294_v25 = vadd.f32 %v13293_v39, %v13150_v14  ;;  %v24688_v11 = vpop.f32.mrf.mxu0 }
 0xb92   : > { %v24690_v27 = vpop.f32.mrf.mxu1 }
 0xb93   : > { %v13173_v29 = vpop.f32.mrf.mxu0 }
 0xb94   : > { %v13174_v26 = vadd.f32 %v13173_v29, %v13030_v56  ;;  %v13302_v41 = vpop.f32.mrf.mxu1 }
 0xb95   : > { %v13303_v12 = vadd.f32 %v13302_v41, %v13158_v46  ;;  %v24692_v38 = vpop.f32.mrf.mxu0 }
 0xb96   : > { %v24694_v22 = vpop.f32.mrf.mxu1 }
 0xb97   : > { %v13181_v37 = vpop.f32.mrf.mxu0 }
 0xb98   : > { %v13182_v16 = vadd.f32 %v13181_v37, %v13037_v5  ;;  %v13311_v20 = vpop.f32.mrf.mxu1 }
 0xb99   : > { %v13312_v36 = vadd.f32 %v13311_v20, %v13166_v30  ;;  %v24696_v44 = vpop.f32.mrf.mxu0 }
 0xb9a   : > { %v24698_v62 = vpop.f32.mrf.mxu1 }
 0xb9b   : > { %v13189_v24 = vpop.f32.mrf.mxu0 }
 0xb9c   : > { %v13190_v57 = vadd.f32 %v13189_v24, %v13044_v54  ;;  %v13320_v18 = vpop.f32.mrf.mxu1 }
 0xb9d   : > { %v13321_v3 = vadd.f32 %v13320_v18, %v13174_v26  ;;  %v24700_v13 = vpop.f32.mrf.mxu0 }
 0xb9e   : > { %v24702_v56 = vpop.f32.mrf.mxu1 }
 0xb9f   : > { %v13197_v58 = vpop.f32.mrf.mxu0 }
 0xba0   : > { %v13198_v59 = vadd.f32 %v13197_v58, %v13051_v17  ;;  %v13329_v2 = vpop.f32.mrf.mxu1 }
 0xba1   : > { %v13330_v15 = vadd.f32 %v13329_v2, %v13182_v16  ;;  %v24704_v32 = vpop.f32.mrf.mxu0 }
 0xba2   : > { %26502 = vst [vmem:[#allocation10_spill] sm:$0xff] %v24704_v32  ;;  %v24706_v5 = vpop.f32.mrf.mxu1 }
 0xba3   : > { %v13205_v14 = vpop.f32.mrf.mxu0 }
 0xba4   : > { %v13206_v8 = vadd.f32 %v13205_v14, %v13058_v63  ;;  %v13338_v47 = vpop.f32.mrf.mxu1 }
 0xba5   : > { %v13339_v46 = vadd.f32 %v13338_v47, %v13190_v57  ;;  %v24708_v45 = vpop.f32.mrf.mxu0 }
 0xba6   : > { %26503 = vst [vmem:[#allocation13_spill] sm:$0xff] %v24708_v45  ;;  %v24710_v54 = vpop.f32.mrf.mxu1 }
 0xba7   : > { %v13213_v30 = vpop.f32.mrf.mxu0 }
 0xba8   : > { %v13214_v39 = vadd.f32 %v13213_v30, %v13065_v33  ;;  %v13347_v29 = vpop.f32.mrf.mxu1 }
 0xba9   : > { %v13348_v26 = vadd.f32 %v13347_v29, %v13198_v59  ;;  %v24712_v41 = vpop.f32.mrf.mxu0 }
 0xbaa   : > { %26504 = vst [vmem:[#allocation11_spill] sm:$0xff] %v24712_v41  ;;  %v24714_v17 = vpop.f32.mrf.mxu1 }
 0xbab   : > { %26505 = vst [vmem:[#allocation3_spill] sm:$0xff] %v24714_v17  ;;  %v13455_v37 = vpop.f32.mrf.mxu0 }
 0xbac   : > { %v13356_v16 = vpop.f32.mrf.mxu1  ;;  %v13456_v20 = vadd.f32 %v13455_v37, %v13294_v25 }
 0xbad   : > { %v13357_v24 = vadd.f32 %v13356_v16, %v13206_v8  ;;  %v24716_v18 = vpop.f32.mrf.mxu0 }
 0xbae   : > { %v24718_v63 = vpop.f32.mrf.mxu1 }
 0xbaf   : > { %26506 = vst [vmem:[#allocation12_spill] sm:$0xff] %v24718_v63  ;;  %v13462_v57 = vpop.f32.mrf.mxu0 }
 0xbb0   : > { %v13365_v58 = vpop.f32.mrf.mxu1  ;;  %v13463_v2 = vadd.f32 %v13462_v57, %v13303_v12  ;;  %v24732_v57 = vpop.permute.xlu1 %14560 }
 0xbb1   : > { %v13366_v14 = vadd.f32 %v13365_v58, %v13214_v39  ;;  %v24720_v47 = vpop.f32.mrf.mxu0 }
 0xbb2   : > { %v24722_v33 = vpop.f32.mrf.mxu1 }
 0xbb3   : > { %26507 = vst [vmem:[#allocation20_spill] sm:$0xff] %v24722_v33  ;;  %v13469_v59 = vpop.f32.mrf.mxu0 }
 0xbb4   : > { %v13470_v30 = vadd.f32 %v13469_v59, %v13312_v36  ;;  %v13589_v29 = vpop.f32.mrf.mxu1 }
 0xbb5   : > { %v13590_v4 = vadd.f32 %v13589_v29, %v13456_v20  ;;  %v24724_v6 = vpop.f32.mrf.mxu0 }
 0xbb6   : > { %v24726_v25 = vpop.f32.mrf.mxu1 }
 0xbb7   : > { %v13476_v8 = vpop.f32.mrf.mxu0 }
 0xbb8   : > { %v13477_v37 = vadd.f32 %v13476_v8, %v13321_v3  ;;  %v13596_v16 = vpop.f32.mrf.mxu1 }
 0xbb9   : > { %v13597_v48 = vadd.f32 %v13596_v16, %v13463_v2  ;;  %v24728_v51 = vpop.f32.mrf.mxu0  ;;  %v24741_v2 = vadd.f32 %v24732_v57, %v13590_v4  ;;  %v24745_v16 = vpop.permute.xlu1 %14564 }
 0xbba   : > { %v24730_v12 = vpop.f32.mrf.mxu1  ;;  %v24758_v4 = vpop.permute.xlu0 %14568 }
 0xbbb   : > { %v13483_v39 = vpop.f32.mrf.mxu0  ;;  %26509 = vst [vmem:[#allocation22_spill] sm:$0xff] %v24741_v2 }
 0xbbc   : > { %v13484_v58 = vadd.f32 %v13483_v39, %v13330_v15  ;;  %v13603_v35 = vpop.f32.mrf.mxu1 }
 0xbbd   : > { %v13604_v36 = vadd.f32 %v13603_v35, %v13470_v30  ;;  %v24734_v59 = vpop.f32.mrf.mxu0 }
 0xbbe   : > { %v24736_v20 = vpop.f32.mrf.mxu1 }
 0xbbf   : > { %v13490_v29 = vpop.f32.mrf.mxu0 }
 0xbc0   : > { %v13491_v19 = vadd.f32 %v13490_v29, %v13339_v46  ;;  %v13610_v33 = vpop.f32.mrf.mxu1  ;;  %v24754_v46 = vadd.f32 %v24745_v16, %v13597_v48 }
 0xbc1   : > { %v24738_v3 = vadd.f32 %v13610_v33, %v13477_v37  ;;  %v24743_v8 = vpop.f32.mrf.mxu0 }
 0xbc2   : > { %v24747_v63 = vpop.f32.mrf.mxu1  ;;  %26511 = vst [vmem:[#allocation24_spill] sm:$0xff] %v24754_v46 }
 0xbc3   : > { %26508 = vst [vmem:[#allocation21_spill] sm:$0xff] %v24738_v3  ;;  %v14607_v35 = vmul.f32 %v24741_v2, %v24738_v3  ;;  %v13497_v15 = vpop.f32.mrf.mxu0 }
 0xbc4   : > { %v13498_v30 = vadd.f32 %v13497_v15, %v13348_v26  ;;  %v13617_v39 = vpop.f32.mrf.mxu1 }
 0xbc5   : > { %v24751_v17 = vadd.f32 %v13617_v39, %v13484_v58  ;;  %v24756_v33 = vpop.f32.mrf.mxu0  ;;  %v24767_v58 = vadd.f32 %v24758_v4, %v13604_v36 }
 0xbc6   : > { %26512 = vst [vmem:[#allocation25_spill] sm:$0xff] %v24756_v33  ;;  %v24760_v37 = vpop.f32.mrf.mxu1 }
 0xbc7   : > { %26510 = vst [vmem:[#allocation23_spill] sm:$0xff] %v24751_v17  ;;  %v14611_v29 = vmul.f32 %v24754_v46, %v24751_v17  ;;  %v13504_v41 = vpop.f32.mrf.mxu0  ;;  %26514 = vst [vmem:[#allocation31_spill] sm:$0xff] %v24767_v58 }
 0xbc8   : > { %v13505_v45 = vadd.f32 %v13504_v41, %v13357_v24  ;;  %v13624_v32 = vpop.f32.mrf.mxu1 }
 0xbc9   : > { %v14619_v52 = vadd.f32 %v14611_v29, %v14607_v35  ;;  %v24764_v26 = vadd.f32 %v13624_v32, %v13491_v19  ;;  %v24769_v48 = vpop.f32.mrf.mxu0 }
 0xbca   : > { %26515 = vst [vmem:[#allocation34_spill] sm:$0xff] %v24769_v48  ;;  %v24771_v15 = vpop.f32.mrf.mxu1 }
 0xbcb   : > { %26513 = vst [vmem:[#allocation26_spill] sm:$0xff] %v24764_v26  ;;  %v14615_v39 = vmul.f32 %v24767_v58, %v24764_v26  ;;  %v13511_v33 = vpop.f32.mrf.mxu0 }
 0xbcc   : > { %v13512_v43 = vadd.f32 %v13511_v33, %v13366_v14  ;;  %v13631_v55 = vpop.f32.mrf.mxu1 }
 0xbcd   : > { %v14620_v10 = vsel %vm415_vm0, %v14615_v39, 0.0  ;;  %v24776_v41 = vadd.f32 %v13631_v55, %v13498_v30  ;;  %v24778_v24 = vpop.f32.mrf.mxu0 }
 0xbce   : > { %26517 = vst [vmem:[#allocation38_spill] sm:$0xff] %v24778_v24  ;;  %v24780_v19 = vadd.f32 %v14620_v10, %v14619_v52  ;;  %v24782_v32 = vpop.f32.mrf.mxu1 }
 0xbcf   : > { %26516 = vst [vmem:[#allocation36_spill] sm:$0xff] %v24776_v41  ;;  %26519 = vst [vmem:[#allocation59_spill] sm:$0xff] %v24782_v32  ;;  %v13727_v36 = vpop.f32.mrf.mxu0 }
 0xbd0   : > { %26518 = vst [vmem:[#allocation53_spill] sm:$0xff] %v24780_v19  ;;  %v13638_v35 = vpop.f32.mrf.mxu1 }
 0xbd1   : > { %v24784_v29 = vadd.f32 %v13638_v35, %v13505_v45  ;;  %v24786_v48 = vpop.f32.mrf.mxu0 }
 0xbd2   : > { %v24788_v0 = vpop.f32.mrf.mxu1 }
 0xbd3   : > { %26520 = vst [vmem:[#allocation56_spill] sm:$0xff] %v24784_v29  ;;  %26521 = vst [vmem:[#allocation60_spill] sm:$0xff] %v24788_v0  ;;  %v13738_v14 = vpop.f32.mrf.mxu0 }
 0xbd4   : > { %v13645_v33 = vpop.f32.mrf.mxu1 }
 0xbd5   : > { %v24790_v7 = vadd.f32 %v13645_v33, %v13512_v43  ;;  %v24792_v55 = vpop.f32.mrf.mxu0 }
 0xbd6   : > { %26523 = vst [vmem:[#allocation40_spill] sm:$0xff] %v24792_v55  ;;  %v24794_v30 = vpop.f32.mrf.mxu1 }
 0xbd7   : > { %26522 = vst [vmem:[#allocation35_spill] sm:$0xff] %v24790_v7  ;;  %26524 = vst [vmem:[#allocation58_spill] sm:$0xff] %v24794_v30  ;;  %v13749_v10 = vpop.f32.mrf.mxu0 }
 0xbd8   : > { %v13917_v52 = vpop.f32.mrf.mxu1 }
 0xbd9   : > { %v13918_v39 = vadd.f32 %v13917_v52, %v13727_v36  ;;  %v24796_v41 = vpop.f32.mrf.mxu0 }
 0xbda   : > { %26525 = vst [vmem:[#allocation61_spill] sm:$0xff] %v24796_v41  ;;  %v24798_v32 = vpop.f32.mrf.mxu1 }
 0xbdb   : > { %v13760_v45 = vpop.f32.mrf.mxu0 }
 0xbdc   : > { %v13924_v35 = vpop.f32.mrf.mxu1 }
 0xbdd   : > { %v13925_v29 = vadd.f32 %v13924_v35, %v13738_v14  ;;  %v24800_v24 = vpop.f32.mrf.mxu0 }
 0xbde   : > { %26526 = vst [vmem:[#allocation43_spill] sm:$0xff] %v24800_v24  ;;  %v24802_v0 = vpop.f32.mrf.mxu1 }
 0xbdf   : > { %26527 = vst [vmem:[#allocation71_spill] sm:$0xff] %v24802_v0  ;;  %v13771_v43 = vpop.f32.mrf.mxu0 }
 0xbe0   : > { %v13931_v33 = vpop.f32.mrf.mxu1 }
 0xbe1   : > { %v13932_v7 = vadd.f32 %v13931_v33, %v13749_v10  ;;  %v24804_v58 = vpop.f32.mrf.mxu0 }
 0xbe2   : > { %26528 = vst [vmem:[#allocation39_spill] sm:$0xff] %v24804_v58  ;;  %v24806_v30 = vpop.f32.mrf.mxu1 }
 0xbe3   : > { %26529 = vst [vmem:[#allocation41_spill] sm:$0xff] %v24806_v30  ;;  %v13782_v46 = vpop.f32.mrf.mxu0 }
 0xbe4   : > { %v13938_v36 = vpop.f32.mrf.mxu1 }
 0xbe5   : > { %v24808_v52 = vadd.f32 %v13938_v36, %v13760_v45  ;;  %v24810_v2 = vpop.f32.mrf.mxu0 }
 0xbe6   : > { %26531 = vst [vmem:[#allocation5_spill] sm:$0xff] %v24810_v2  ;;  %v24812_v26 = vpop.f32.mrf.mxu1 }
 0xbe7   : > { %26530 = vst [vmem:[#allocation6_spill] sm:$0xff] %v24808_v52  ;;  %26532 = vst [vmem:[#allocation9_spill] sm:$0xff] %v24812_v26  ;;  %v13793_v14 = vpop.f32.mrf.mxu0 }
 0xbe8   : > { %v13945_v35 = vpop.f32.mrf.mxu1 }
 0xbe9   : > { %v24814_v24 = vadd.f32 %v13945_v35, %v13771_v43  ;;  %v24816_v17 = vpop.f32.mrf.mxu0 }
 0xbea   : > { %26534 = vst [vmem:[#allocation8_spill] sm:$0xff] %v24816_v17  ;;  %v24818_v3 = vpop.f32.mrf.mxu1 }
 0xbeb   : > { %26533 = vst [vmem:[#allocation4_spill] sm:$0xff] %v24814_v24  ;;  %26535 = vst [vmem:[#allocation7_spill] sm:$0xff] %v24818_v3  ;;  %v13804_v10 = vpop.f32.mrf.mxu0 }
 0xbec   : > { %v13952_v33 = vpop.f32.mrf.mxu1 }
 0xbed   : > { %v24820_v58 = vadd.f32 %v13952_v33, %v13782_v46  ;;  %v24822_v19 = vpop.f32.mrf.mxu0 }
 0xbee   : > { %26537 = vst [vmem:[#allocation19_spill] sm:$0xff] %v24822_v19  ;;  %v24824_v45 = vpop.f32.mrf.mxu1 }
 0xbef   : > { %26536 = vst [vmem:[#allocation17_spill] sm:$0xff] %v24820_v58  ;;  %26538 = vst [vmem:[#allocation16_spill] sm:$0xff] %v24824_v45  ;;  %v13815_v36 = vpop.f32.mrf.mxu0 }
 0xbf0   : > { %v13959_v2 = vpop.f32.mrf.mxu1 }
 0xbf1   : > { %v13960_v52 = vadd.f32 %v13959_v2, %v13793_v14  ;;  %v24826_v26 = vpop.f32.mrf.mxu0 }
 0xbf2   : > { %26539 = vst [vmem:[#allocation15_spill] sm:$0xff] %v24826_v26  ;;  %v24828_v30 = vpop.f32.mrf.mxu1 }
 0xbf3   : > { %26540 = vst [vmem:[#allocation18_spill] sm:$0xff] %v24828_v30  ;;  %v14058_v43 = vpop.f32.mrf.mxu0 }
 0xbf4   : > { %v13966_v35 = vpop.f32.mrf.mxu1  ;;  %v14059_v17 = vadd.f32 %v14058_v43, %v13918_v39 }
 0xbf5   : > { %v13967_v24 = vadd.f32 %v13966_v35, %v13804_v10  ;;  %v24830_v3 = vpop.f32.mrf.mxu0 }
 0xbf6   : > { %v24832_v41 = vpop.f32.mrf.mxu1 }
 0xbf7   : > { %26541 = vst [vmem:[#allocation14_spill] sm:$0xff] %v24832_v41  ;;  %v14066_v46 = vpop.f32.mrf.mxu0 }
 0xbf8   : > { %v13973_v33 = vpop.f32.mrf.mxu1  ;;  %v14067_v19 = vadd.f32 %v14066_v46, %v13925_v29 }
 0xbf9   : > { %v13974_v58 = vadd.f32 %v13973_v33, %v13815_v36  ;;  %v24834_v45 = vpop.f32.mrf.mxu0 }
 0xbfa   : > { %v24836_v0 = vpop.f32.mrf.mxu1 }
 0xbfb   : > { %26542 = vst [vmem:[#allocation46_spill] sm:$0xff] %v24836_v0  ;;  %v14074_v2 = vpop.f32.mrf.mxu0 }
 0xbfc   : > { %v14075_v14 = vadd.f32 %v14074_v2, %v13932_v7  ;;  %v14202_v26 = vpop.f32.mrf.mxu1 }
 0xbfd   : > { %v24838_v30 = vadd.f32 %v14202_v26, %v14059_v17  ;;  %v24840_v55 = vpop.f32.mrf.mxu0 }
 0xbfe   : > { %v24842_v39 = vpop.f32.mrf.mxu1 }
 0xbff   : > { %v24844_v10 = vpop.f32.mrf.mxu0 }
 0xc00   : > { %26543 = vst [vmem:[#allocation44_spill] sm:$0xff] %v24844_v10  ;;  %v14211_v43 = vpop.f32.mrf.mxu1 }
 0xc01   : > { %v24846_v35 = vadd.f32 %v14211_v43, %v14067_v19  ;;  %v24848_v29 = vpop.f32.mrf.mxu0 }
 0xc02   : > { %26544 = vst [vmem:[#allocation37_spill] sm:$0xff] %v24848_v29  ;;  %v24850_v36 = vpop.f32.mrf.mxu1 }
 0xc03   : > { %v24852_v46 = vpop.f32.mrf.mxu0 }
 0xc04   : > { %26545 = vst [vmem:[#allocation42_spill] sm:$0xff] %v24852_v46  ;;  %v14220_v33 = vpop.f32.mrf.mxu1 }
 0xc05   : > { %v24854_v7 = vadd.f32 %v14220_v33, %v14075_v14  ;;  %v24856_v17 = vpop.f32.mrf.mxu0  ;;  %v13025_v33 = vadd.f32 %v24654_v42, %v24635_v50  ;;  %v13039_v50 = vadd.f32 %v24668_v28, %v24651_v40 }
 0xc06   : > { %26547 = vst [vmem:[#allocation48_spill] sm:$0xff] %v24856_v17  ;;  %v24858_v26 = vpop.f32.mrf.mxu1 }
 0xc07   : > { %26546 = vst [vmem:[#allocation27_spill] sm:$0xff] %v24854_v7  ;;  %v24860_v2 = vpop.f32.mrf.mxu0 }
 0xc08   : > { %26548 = vst [vmem:[#allocation47_spill] sm:$0xff] %v24860_v2  ;;  %v24862_v0 = vpop.f32.mrf.mxu1  ;;  %v13018_v2 = vadd.f32 %v24646_v60, %v24629_v21  ;;  %v13032_v21 = vadd.f32 %v24662_v34, %v24643_v1 }
 0xc09   : > { %26549 = vst [vmem:[#allocation54_spill] sm:$0xff] %v24862_v0  ;;  %v24864_v41 = vpop.f32.mrf.mxu0 }
 0xc0a   : > { %26550 = vst [vmem:[#allocation52_spill] sm:$0xff] %v24864_v41  ;;  %v24866_v19 = vpop.f32.mrf.mxu1  ;;  %v13160_v42 = vadd.f32 %v24684_v53, %v13018_v2 }
 0xc0b   : > { %26551 = vst [vmem:[#allocation64_spill] sm:$0xff] %v24866_v19  ;;  %v14106_v43 = vpop.f32.mrf.mxu0  ;;  %v13046_v19 = vadd.f32 %v24674_v23, %v24659_v31 }
 0xc0c   : > { %v14107_v29 = vadd.f32 %v14106_v43, %v13960_v52  ;;  %v24868_v10 = vpop.f32.mrf.mxu1  ;;  %v13168_v52 = vadd.f32 %v24688_v11, %v13025_v33 }
 0xc0d   : > { %v24870_v46 = vpop.f32.mrf.mxu0  ;;  %v13192_v31 = vadd.f32 %v24700_v13, %v13046_v19 }
 0xc0e   : > { %26552 = vst [vmem:[#allocation49_spill] sm:$0xff] %v24870_v46  ;;  %v24872_v14 = vpop.f32.mrf.mxu1  ;;  %v13011_v46 = vadd.f32 %v24638_v9, %v24623_v61  ;;  %v13314_v60 = vadd.f32 %v24698_v62, %v13168_v52  ;;  %v13184_v61 = vadd.f32 %v24696_v44, %v13039_v50  ;;  %v13176_v62 = vadd.f32 %v24692_v38, %v13032_v21  ;;  %v26554_v21 = vld [vmem:[#allocation71_spill] sm:$0xff] }
 0xc0f   : > { %v14114_v17 = vpop.f32.mrf.mxu0  ;;  %v13341_v28 = vadd.f32 %v24710_v54, %v13192_v31  ;;  %v13920_v50 = vadd.f32 %v24798_v32, %v24786_v48 }
 0xc10   : > { %v14115_v0 = vadd.f32 %v14114_v17, %v13967_v24  ;;  %v24878_v7 = vpop.f32.mrf.mxu1  ;;  %v13152_v11 = vadd.f32 %v24680_v49, %v13011_v46  ;;  %v13305_v24 = vadd.f32 %v24694_v22, %v13160_v42  ;;  %v13472_v53 = vadd.f32 %v24724_v6, %v13314_v60 }
 0xc11   : > { %v24883_v43 = vpop.f32.mrf.mxu0  ;;  %v13332_v49 = vadd.f32 %v24706_v5, %v13184_v61  ;;  %v13493_v54 = vadd.f32 %v24743_v8, %v13341_v28  ;;  %v13323_v6 = vadd.f32 %v24702_v56, %v13176_v62  ;;  %v26555_v62 = vld [vmem:[#allocation61_spill] sm:$0xff] }
 0xc12   : > { %v24890_v41 = vpop.f32.mrf.mxu1  ;;  %v13296_v34 = vadd.f32 %v24690_v27, %v13152_v11  ;;  %v13465_v22 = vadd.f32 %v24720_v47, %v13305_v24  ;;  %v13606_v44 = vadd.f32 %v24736_v20, %v13472_v53  ;;  %v14061_v24 = vadd.f32 %v24830_v3, %v13920_v50 }
 0xc13   : > { %v14122_v23 = vpop.f32.mrf.mxu0  ;;  %v13486_v27 = vadd.f32 %v24734_v59, %v13332_v49  ;;  %v24918_v5 = vadd.f32 %v24771_v15, %v13493_v54  ;;  %v13479_v8 = vadd.f32 %v24728_v51, %v13323_v6  ;;  %v26556_v49 = vld [vmem:[#allocation41_spill] sm:$0xff] }
 0xc14   : > { %v14123_v9 = vadd.f32 %v14122_v23, %v13974_v58  ;;  %v14256_v40 = vpop.f32.mrf.mxu1  ;;  %v13599_v46 = vadd.f32 %v24730_v12, %v13465_v22  ;;  %v14205_v53 = vadd.f32 %v24842_v39, %v14061_v24 }
 0xc15   : > { %v24901_v17 = vadd.f32 %v14256_v40, %v14107_v29  ;;  %v24903_v1 = vpop.f32.mrf.mxu0  ;;  %v13458_v29 = vadd.f32 %v24716_v18, %v13296_v34  ;;  %v24925_v19 = vadd.f32 %v24760_v37, %v13486_v27  ;;  %v24930_v18 = vadd.f32 %v24758_v4, %v13606_v44 }
 0xc16   : > { %v24909_v13 = vpop.f32.mrf.mxu1  ;;  %v24933_v59 = vadd.f32 %v24745_v16, %v13599_v46 }
 0xc17   : > { %v14364_v58 = vpop.f32.mrf.mxu0  ;;  %v13592_v20 = vadd.f32 %v24726_v25, %v13458_v29  ;;  %v14616_v25 = vmul.f32 %v24930_v18, %v24918_v5 }
 0xc18   : > { %v14265_v38 = vpop.f32.mrf.mxu1  ;;  %v14612_v52 = vmul.f32 %v24933_v59, %v24925_v19  ;;  %v14365_v31 = vadd.f32 %v14364_v58, %v24838_v30  ;;  %v13934_v30 = vadd.f32 %v26556_v49, %v26555_v62  ;;  %v26557_v58 = vld [vmem:[#allocation53_spill] sm:$0xff]  ;;  %v26566_v49 = vld [vmem:[#allocation39_spill] sm:$0xff] }
 0xc19   : > { %v24920_v47 = vadd.f32 %v14265_v38, %v14115_v0  ;;  %v14366_v2 = vpop.f32.mrf.mxu0  ;;  %v24936_v0 = vadd.f32 %v24747_v63, %v13479_v8  ;;  %v24943_v33 = vadd.f32 %v24732_v57, %v13592_v20  ;;  %v26553_v63 = vld [vmem:[#allocation40_spill] sm:$0xff]  ;;  %v14622_v6 = vrot.slane %v26557_v58, 4  ;;  %v26558_v38 = vld [vmem:[#allocation21_spill] sm:$0xff] }
 0xc1a   : > { %v24927_v56 = vpop.f32.mrf.mxu1  ;;  %v13927_v60 = vadd.f32 %v26554_v21, %v26553_v63  ;;  %v14077_v27 = vadd.f32 %v24840_v55, %v13934_v30  ;;  %v26561_v63 = vld [vmem:[#allocation27_spill] sm:$0xff] }
 0xc1b   : > { %v14371_v12 = vpop.f32.mrf.mxu0  ;;  %v14608_v11 = vmul.f32 %v24943_v33, %v24936_v0  ;;  %v24976_v55 = vadd.f32 %v14622_v6, %v26557_v58  ;;  %v26567_v30 = vld [vmem:[#allocation7_spill] sm:$0xff]  ;;  %v26569_v58 = vld [vmem:[#allocation42_spill] sm:$0xff] }
 0xc1c   : > { %v14274_v15 = vpop.f32.mrf.mxu1  ;;  %v14069_v40 = vadd.f32 %v24834_v45, %v13927_v60  ;;  %v14372_v44 = vadd.f32 %v14371_v12, %v24846_v35  ;;  %v14367_v45 = vadd.f32 %v14366_v2, %v14205_v53  ;;  %v14223_v50 = vadd.f32 %v24858_v26, %v14077_v27 }
 0xc1d   : > { %v24940_v51 = vadd.f32 %v14274_v15, %v14123_v9  ;;  %v14373_v37 = vpop.f32.mrf.mxu0  ;;  %v14629_v9 = vsel %vm415_vm0, %v14616_v25, 0.0  ;;  %v14628_v32 = vadd.f32 %v14612_v52, %v14608_v11  ;;  %v26559_v25 = vld [vmem:[#allocation6_spill] sm:$0xff] }
 0xc1e   : > { %v24949_v42 = vpop.f32.mrf.mxu1  ;;  %v14214_v22 = vadd.f32 %v24850_v36, %v14069_v40  ;;  %v26560_v36 = vld [vmem:[#allocation44_spill] sm:$0xff]  ;;  %v26562_v11 = vld [vmem:[#allocation54_spill] sm:$0xff]  ;;  %v26563_v40 = vld [vmem:[#allocation23_spill] sm:$0xff] }
 0xc1f   : > { %v14378_v23 = vpop.f32.mrf.mxu0  ;;  %v24966_v29 = vadd.f32 %v14629_v9, %v14628_v32  ;;  %v14083_v52 = vadd.f32 %v26560_v36, %v26559_v25  ;;  %v26572_v36 = vld [vmem:[#allocation48_spill] sm:$0xff] }
 0xc20   : > { %v14498_v61 = vpop.f32.mrf.mxu1  ;;  %v14374_v39 = vadd.f32 %v14373_v37, %v14214_v22  ;;  %v14379_v21 = vadd.f32 %v14378_v23, %v26561_v63  ;;  %v26564_v23 = vld [vmem:[#allocation43_spill] sm:$0xff]  ;;  %v13948_v22 = vadd.f32 %v26567_v30, %v26566_v49  ;;  %v26578_v30 = vld [vmem:[#allocation52_spill] sm:$0xff] }
 0xc21   : > { %v14499_v28 = vadd.f32 %v14498_v61, %v14365_v31  ;;  %v14380_v48 = vpop.f32.mrf.mxu0  ;;  %v14631_v37 = vrot.slane %v24966_v29, 4  ;;  %v14230_v24 = vadd.f32 %v26562_v11, %v14083_v52  ;;  %v26574_v11 = vld [vmem:[#allocation26_spill] sm:$0xff] }
 0xc22   : > { %v14500_v34 = vpop.f32.mrf.mxu1  ;;  %v14381_v9 = vadd.f32 %v14380_v48, %v14223_v50  ;;  %v14093_v52 = vadd.f32 %v26572_v36, %v13948_v22  ;;  %v26579_v22 = vld [vmem:[#allocation64_spill] sm:$0xff] }
 0xc23   : > { %v14573_v3 = vadd.f32 %v24732_v57, %v14499_v28  ;;  %v14385_v54 = vpop.f32.mrf.mxu0  ;;  %v14501_v35 = vadd.f32 %v14500_v34, %v14367_v45  ;;  %v26565_v34 = vld [vmem:[#allocation9_spill] sm:$0xff] }
 0xc24   : > { %v14505_v46 = vpop.f32.mrf.mxu1  ;;  %v13941_v62 = vadd.f32 %v26565_v34, %v26564_v23  ;;  %v14386_v27 = vadd.f32 %v14385_v54, %v14230_v24  ;;  %v26575_v24 = vld [vmem:[#allocation17_spill] sm:$0xff] }
 0xc25   : > { %v14661_v20 = vmul.f32 %v14573_v3, %v26558_v38  ;;  %v14506_v8 = vadd.f32 %v14505_v46, %v14372_v44  ;;  %v14387_v15 = vpop.f32.mrf.mxu0  ;;  %v26568_v44 = vld [vmem:[#allocation4_spill] sm:$0xff]  ;;  %v14574_v45 = vadd.f32 %v24732_v57, %v14501_v35 }
 0xc26   : > { %v14507_v12 = vpop.f32.mrf.mxu1  ;;  %v14091_v6 = vadd.f32 %v26569_v58, %v26568_v44 }
 0xc27   : > { %v14577_v60 = vadd.f32 %v24745_v16, %v14506_v8  ;;  %v14508_v2 = vadd.f32 %v14507_v12, %v14374_v39  ;;  %v14392_v31 = vpop.f32.mrf.mxu0  ;;  %v26571_v8 = vld [vmem:[#allocation16_spill] sm:$0xff] }
 0xc28   : > { %v14512_v61 = vpop.f32.mrf.mxu1  ;;  %v14239_v12 = vadd.f32 %v24868_v10, %v14091_v6 }
 0xc29   : > { %v14665_v28 = vmul.f32 %v14577_v60, %v26563_v40  ;;  %v14578_v32 = vadd.f32 %v24745_v16, %v14508_v2  ;;  %v14513_v26 = vadd.f32 %v14512_v61, %v14379_v21  ;;  %v14394_v53 = vpop.f32.mrf.mxu0  ;;  %v26570_v16 = vld [vmem:[#allocation5_spill] sm:$0xff]  ;;  %v26576_v61 = vld [vmem:[#allocation47_spill] sm:$0xff]  ;;  %v14241_v40 = vadd.f32 %v24872_v14, %v14093_v52 }
 0xc2a   : > { %v14514_v46 = vpop.f32.mrf.mxu1  ;;  %v13955_v25 = vadd.f32 %v26571_v8, %v26570_v16  ;;  %v26573_v21 = vld [vmem:[#allocation37_spill] sm:$0xff] }
 0xc2b   : > { %v14689_v48 = vadd.f32 %v14665_v28, %v14661_v20  ;;  %v14581_v39 = vadd.f32 %v24758_v4, %v14513_v26  ;;  %v14515_v38 = vadd.f32 %v14514_v46, %v14381_v9  ;;  %v14666_v50 = vmul.f32 %v14578_v32, %v24925_v19  ;;  %v14399_v20 = vpop.f32.mrf.mxu0 }
 0xc2c   : > { %v14519_v63 = vpop.f32.mrf.mxu1  ;;  %v14085_v2 = vadd.f32 %v26573_v21, %v13941_v62  ;;  %v14099_v9 = vadd.f32 %v26576_v61, %v26575_v24  ;;  %v14662_v28 = vmul.f32 %v14574_v45, %v24936_v0  ;;  %v14393_v26 = vadd.f32 %v14392_v31, %v14239_v12  ;;  %v26577_v62 = vld [vmem:[#allocation22_spill] sm:$0xff]  ;;  %v26580_v12 = vld [vmem:[#allocation24_spill] sm:$0xff] }
 0xc2d   : > { %v14669_v57 = vmul.f32 %v14581_v39, %v26574_v11  ;;  %v14582_v54 = vadd.f32 %v24758_v4, %v14515_v38  ;;  %v14520_v35 = vadd.f32 %v14519_v63, %v14386_v27  ;;  %v14101_v4 = vadd.f32 %v26578_v30, %v13955_v25  ;;  %v14401_v31 = vpop.f32.mrf.mxu0 }
 0xc2e   : > { %v14521_v10 = vpop.f32.mrf.mxu1  ;;  %v14232_v44 = vadd.f32 %v26579_v22, %v14085_v2  ;;  %v14698_v58 = vadd.f32 %v14666_v50, %v14662_v28  ;;  %v14248_v14 = vadd.f32 %v24878_v7, %v14099_v9  ;;  %v14395_v27 = vadd.f32 %v14394_v53, %v14241_v40  ;;  %v26581_v28 = vld [vmem:[#allocation31_spill] sm:$0xff] }
 0xc2f   : > { %v14690_v19 = vsel %vm415_vm0, %v14669_v57, 0.0  ;;  %v14670_v23 = vmul.f32 %v14582_v54, %v24918_v5  ;;  %v14609_v34 = vmul.f32 %v14573_v3, %v14520_v35  ;;  %v14659_v49 = vmul.f32 %v26577_v62, %v14520_v35 }
 0xc30   : > { %v14691_v6 = vadd.f32 %v14690_v19, %v14689_v48  ;;  %v14526_v46 = vpop.f32.mrf.mxu1  ;;  %v14250_v16 = vadd.f32 %v24890_v41, %v14101_v4  ;;  %v14388_v5 = vadd.f32 %v14387_v15, %v14232_v44  ;;  %v14632_v25 = vadd.f32 %v14631_v37, %v24966_v29 }
 0xc31   : > { %v14699_v0 = vsel %vm415_vm0, %v14670_v23, 0.0  ;;  %v14527_v38 = vadd.f32 %v14526_v46, %v14393_v26  ;;  %v14400_v63 = vadd.f32 %v14399_v20, %v14248_v14  ;;  %v14624_v9 = vrot.slane %v24976_v55, 2 }
 0xc32   : > { %v14692_v3 = vrot.slane %v14691_v6, 4  ;;  %v14700_v8 = vadd.f32 %v14699_v0, %v14698_v58  ;;  %v14528_v36 = vpop.f32.mrf.mxu1  ;;  %v14402_v21 = vadd.f32 %v14401_v31, %v14250_v16  ;;  %v14522_v7 = vadd.f32 %v14521_v10, %v14388_v5 }
 0xc33   : > { %v14613_v52 = vmul.f32 %v14577_v60, %v14527_v38  ;;  %v14663_v50 = vmul.f32 %v26580_v12, %v14527_v38  ;;  %v14529_v48 = vadd.f32 %v14528_v36, %v14395_v27  ;;  %v14633_v29 = vrot.slane %v14632_v25, 2 }
 0xc34   : > { %v14533_v53 = vpop.f32.mrf.mxu1  ;;  %v14693_v2 = vadd.f32 %v14692_v3, %v14691_v6  ;;  %v14701_v11 = vrot.slane %v14700_v8, 4  ;;  %v14610_v37 = vmul.f32 %v14574_v45, %v14522_v7  ;;  %v14660_v40 = vmul.f32 %v24943_v33, %v14522_v7 }
 0xc35   : > { %v14637_v57 = vadd.f32 %v14613_v52, %v14609_v34  ;;  %v14671_v35 = vadd.f32 %v14663_v50, %v14659_v49  ;;  %v14614_v24 = vmul.f32 %v14578_v32, %v14529_v48  ;;  %v14664_v41 = vmul.f32 %v24933_v59, %v14529_v48 }
 0xc36   : > { %v14534_v15 = vadd.f32 %v14533_v53, %v14400_v63  ;;  %v14535_v61 = vpop.f32.mrf.mxu1  ;;  %v14694_v10 = vrot.slane %v14693_v2, 2  ;;  %v14702_v19 = vadd.f32 %v14701_v11, %v14700_v8 }
 0xc37   : > { %v14536_v60 = vadd.f32 %v14535_v61, %v14402_v21  ;;  %v14646_v32 = vadd.f32 %v14614_v24, %v14610_v37  ;;  %v14680_v62 = vadd.f32 %v14664_v41, %v14660_v40 }
 0xc38   : > { %v14617_v20 = vmul.f32 %v14581_v39, %v14534_v15  ;;  %v14667_v26 = vmul.f32 %v26581_v28, %v14534_v15  ;;  %v14625_v39 = vadd.f32 %v14624_v9, %v24976_v55  ;;  %v14695_v58 = vadd.f32 %v14694_v10, %v14693_v2 }
 0xc39   : > { %v14618_v23 = vmul.f32 %v14582_v54, %v14536_v60  ;;  %v14668_v34 = vmul.f32 %v24930_v18, %v14536_v60  ;;  %v14634_v18 = vadd.f32 %v14633_v29, %v14632_v25  ;;  %v14703_v46 = vrot.slane %v14702_v19, 2 }
 0xc3a   : > { %v14638_v59 = vsel %vm415_vm0, %v14617_v20, 0.0  ;;  %v14672_v49 = vsel %vm415_vm0, %v14667_v26, 0.0  ;;  %v14626_v38 = vrot.slane %v14625_v39, 1  ;;  %v14696_v3 = vrot.slane %v14695_v58, 1 }
 0xc3b   : > { %v14639_v30 = vadd.f32 %v14638_v59, %v14637_v57  ;;  %v14673_v4 = vadd.f32 %v14672_v49, %v14671_v35  ;;  %v14647_v45 = vsel %vm415_vm0, %v14618_v23, 0.0  ;;  %v14681_v33 = vsel %vm415_vm0, %v14668_v34, 0.0 }
 0xc3c   : > { %v14648_v22 = vadd.f32 %v14647_v45, %v14646_v32  ;;  %v14682_v44 = vadd.f32 %v14681_v33, %v14680_v62  ;;  %v14635_v52 = vrot.slane %v14634_v18, 1  ;;  %v14704_v12 = vadd.f32 %v14703_v46, %v14702_v19  ;;  %v25022_v45 = vpop.f32.mrf.mxu0 }
 0xc3d   : > { %v14640_v54 = vrot.slane %v14639_v30, 4  ;;  %v14674_v6 = vrot.slane %v14673_v4, 4  ;;  %v14627_v21 = vadd.f32 %v14626_v38, %v14625_v39  ;;  %v14697_v53 = vadd.f32 %v14696_v3, %v14695_v58  ;;  %v20259_v58 = vld [vmem:[%s26213_s5 + $0x10] sm:$0xf] }
 0xc3e   : > { %v14649_v14 = vrot.slane %v14648_v22, 4  ;;  %v14683_v27 = vrot.slane %v14682_v44, 4  ;;  %v14636_v57 = vadd.f32 %v14635_v52, %v14634_v18  ;;  %v14705_v35 = vrot.slane %v14704_v12, 1  ;;  %v25042_v18 = vld [vmem:[%s26213_s5 + $0x8] sm:$0xff] }
 0xc3f   : > { %v14641_v0 = vadd.f32 %v14640_v54, %v14639_v30  ;;  %v14675_v31 = vadd.f32 %v14674_v6, %v14673_v4  ;;  %v14655_v9 = vmul.f32 0.2236068, %v14627_v21  ;;  %v14709_v37 = vmul.f32 0.2236068, %v14697_v53  ;;  %v25035_v54 = vpop.f32.mrf.mxu0  ;;  %v26590_v53 = vld [vmem:[#allocation11_spill] sm:$0xff] }
 0xc40   : > { %v14650_v16 = vadd.f32 %v14649_v14, %v14648_v22  ;;  %v14684_v5 = vadd.f32 %v14683_v27, %v14682_v44  ;;  %v14656_v28 = vmul.f32 0.2236068, %v14636_v57  ;;  %v14706_v26 = vadd.f32 %v14705_v35, %v14704_v12  ;;  %v25024_v22 = vpop.f32.mrf.mxu1  ;;  %v25029_v44 = vld [vmem:[%s26213_s5] sm:$0xff]  ;;  %v26583_v27 = vld [vmem:[#allocation70_spill] sm:$0xff] }
 0xc41   : > { %v14642_v8 = vrot.slane %v14641_v0, 2  ;;  %v14676_v36 = vrot.slane %v14675_v31, 2  ;;  %v20346_v39 = vmov 20   ;;  %v20347_v46 = vmov 21   ;;  %v26582_v14 = vld [vmem:[#allocation67_spill] sm:$0xff] }
 0xc42   : > { %v14651_v55 = vrot.slane %v14650_v16, 2  ;;  %v14685_v50 = vrot.slane %v14684_v5, 2  ;;  %v14710_v49 = vmul.f32 0.2236068, %v14706_v26  ;;  %20124 = vset.pattern.permute.xlu1 %v20346_v39  ;;  %20125 = vset.pattern.permute.xlu0 %v20346_v39  ;;  %v25037_v6 = vpop.f32.mrf.mxu1  ;;  %v20348_v57 = vmov 22   ;;  %v26591_v35 = vld [vmem:[#allocation3_spill] sm:$0xff]  ;;  %v25066_v26 = vpop.permute.xlu0 %14584 }
 0xc43   : > { %v14643_v48 = vadd.f32 %v14642_v8, %v14641_v0  ;;  %v14677_v63 = vadd.f32 %v14676_v36, %v14675_v31  ;;  %14779 = vperm.xlu1 %20124, %v25029_v44   ;;  %14787 = vperm.xlu0 %20125, %v20259_v58   ;;  %v13053_v0 = vadd.f32 %v26583_v27, %v26582_v14  ;;  %v14413_v31 = vpop.f32.mrf.mxu0  ;;  %v26586_v8 = vld [vmem:[#allocation69_spill] sm:$0xff]  ;;  %v26601_v39 = vld [vmem:[#allocation14_spill] sm:$0xff] }
 0xc44   : > { %v14652_v7 = vadd.f32 %v14651_v55, %v14650_v16  ;;  %v14686_v25 = vadd.f32 %v14685_v50, %v14684_v5  ;;  %v26584_v16 = vld [vmem:[#allocation28_spill] sm:$0xff]  ;;  %v26585_v5 = vld [vmem:[#allocation30_spill] sm:$0xff]  ;;  %v26587_v36 = vld [vmem:[#allocation33_spill] sm:$0xff] }
 0xc45   : > { %v14644_v2 = vrot.slane %v14643_v48, 1  ;;  %v14678_v11 = vrot.slane %v14677_v63, 1  ;;  %v13060_v3 = vadd.f32 %v26585_v5, %v26584_v16  ;;  %v13067_v52 = vadd.f32 %v26587_v36, %v26586_v8  ;;  %v26588_v55 = vld [vmem:[#allocation10_spill] sm:$0xff]  ;;  %v26603_v5 = vld [vmem:[#allocation60_spill] sm:$0xff]  ;;  %v26604_v8 = vld [vmem:[#allocation15_spill] sm:$0xff] }
 0xc46   : > { %v14653_v24 = vrot.slane %v14652_v7, 1  ;;  %v14687_v41 = vrot.slane %v14686_v25, 1  ;;  %v13200_v50 = vadd.f32 %v26588_v55, %v13053_v0  ;;  %v26605_v36 = vld [vmem:[#allocation46_spill] sm:$0xff] }
 0xc47   : > { %v14645_v15 = vadd.f32 %v14644_v2, %v14643_v48  ;;  %v14679_v61 = vadd.f32 %v14678_v11, %v14677_v63  ;;  %14783 = vperm.xlu1 %20124, %v25042_v18   ;;  %20128 = vset.pattern.permute.xlu0 %v20347_v46  ;;  %v14547_v63 = vpop.f32.mrf.mxu1  ;;  %v13216_v2 = vadd.f32 %v26590_v53, %v13067_v52  ;;  %v26606_v55 = vld [vmem:[#allocation58_spill] sm:$0xff] }
 0xc48   : > { %v14654_v29 = vadd.f32 %v14653_v24, %v14652_v7  ;;  %v14688_v60 = vadd.f32 %v14687_v41, %v14686_v25  ;;  %16182 = vperm.xlu0 %20128, %v25042_v18   ;;  %v26589_v7 = vld [vmem:[#allocation13_spill] sm:$0xff]  ;;  %v13350_v24 = vadd.f32 %v26591_v35, %v13200_v50  ;;  %v14415_v41 = vpop.f32.mrf.mxu0  ;;  %v13976_v52 = vadd.f32 %v26605_v36, %v26604_v8 }
 0xc49   : > { %v14657_v40 = vmul.f32 0.2236068, %v14645_v15  ;;  %v14707_v20 = vmul.f32 0.2236068, %v14679_v61  ;;  %v13208_v25 = vadd.f32 %v26589_v7, %v13060_v3  ;;  %v26592_v61 = vld [vmem:[#allocation12_spill] sm:$0xff] }
 0xc4a   : > { %v14708_v10 = vmul.f32 0.2236068, %v14688_v60  ;;  %v14658_v34 = vmul.f32 0.2236068, %v14654_v29  ;;  %v26593_v29 = vld [vmem:[#allocation20_spill] sm:$0xff]  ;;  %v14420_v27 = vpop.f32.mrf.mxu0 }
 0xc4b   : > { %v14711_v19 = vsub.f32 %v14707_v20, %v14655_v9  ;;  %v14713_v23 = vsub.f32 %v14709_v37, %v14657_v40  ;;  %20126 = vset.pattern.permute.xlu1 %v20347_v46  ;;  %v13359_v9 = vadd.f32 %v26592_v61, %v13208_v25  ;;  %v13368_v60 = vadd.f32 %v26593_v29, %v13216_v2  ;;  %v25060_v37 = vpop.permute.xlu1 %14592  ;;  %v14775_v40 = vld [vmem:[%s26211_s3 + $0x110] sm:$0xff] }
 0xc4c   : > { %v14712_v32 = vsub.f32 %v14708_v10, %v14656_v28  ;;  %v14714_v4 = vsub.f32 %v14710_v49, %v14658_v34  ;;  %16186 = vperm.xlu1 %20126, %v20259_v58   ;;  %20131 = vset.pattern.permute.xlu0 %v20348_v57  ;;  %v26594_v20 = vld [vmem:[#allocation25_spill] sm:$0xff]  ;;  %v14549_v10 = vpop.f32.mrf.mxu1  ;;  %v26596_v34 = vld [vmem:[#allocation38_spill] sm:$0xff]  ;;  %v26598_v49 = vld [vmem:[#allocation8_spill] sm:$0xff]  ;;  %v14791_v0 = vsel %vm597_vm1, %v14775_v40, 0  ;;  %v14407_v25 = vadd.f32 %v25022_v45, %v24901_v17  ;;  %v14422_v17 = vpop.f32.mrf.mxu0 }
 0xc4d   : > { %v14715_v62 = vmul.f32 1.442695, %v14711_v19  ;;  %v14719_v59 = vmul.f32 1.442695, %v14713_v23  ;;  %16202 = vperm.xlu0 %20131, %v25029_v44   ;;  %v13500_v28 = vadd.f32 %v26594_v20, %v13350_v24  ;;  %v26595_v19 = vld [vmem:[#allocation34_spill] sm:$0xff]  ;;  %v14125_v2 = vadd.f32 %v24903_v1, %v13976_v52 }
 0xc4e   : > { %v14717_v30 = vmul.f32 1.442695, %v14712_v32  ;;  %v14721_v33 = vmul.f32 1.442695, %v14714_v4  ;;  %v13507_v23 = vadd.f32 %v26595_v19, %v13359_v9  ;;  %v13514_v32 = vadd.f32 %v26596_v34, %v13368_v60  ;;  %v14554_v53 = vpop.f32.mrf.mxu1 }
 0xc4f   : > { %20211 = vpow2.f32 %v14715_v62  ;;  %v26597_v62 = vld [vmem:[#allocation59_spill] sm:$0xff]  ;;  %v14421_v35 = vadd.f32 %v14420_v27, %v24940_v51  ;;  %v25090_v24 = vand.u32 4294901760, %v14791_v0  ;;  %v14541_v9 = vadd.f32 %v25024_v22, %v14407_v25  ;;  %v14776_v51 = vld [vmem:[%s26211_s3 + $0x118] sm:$0xff] }
 0xc50   : > { %20213 = vpow2.f32 %v14719_v59  ;;  %20127 = vset.pattern.permute.xlu1 %v20348_v57  ;;  %v13634_v59 = vadd.f32 %v26597_v62, %v13500_v28  ;;  %v13641_v3 = vadd.f32 %v26603_v5, %v13507_v23  ;;  %v13648_v50 = vadd.f32 %v26606_v55, %v13514_v32  ;;  %v14556_v40 = vpop.f32.mrf.mxu1 }
 0xc51   : > { %20215 = vpow2.f32 %v14717_v30  ;;  %v26599_v30 = vld [vmem:[#allocation18_spill] sm:$0xff]  ;;  %16210 = vperm.xlu1 %20127, %v20259_v58   ;;  %v14589_v58 = vpop.permute.xlu1 %14588  ;;  %v14277_v45 = vadd.f32 %v24949_v42, %v14125_v2  ;;  %v25113_v28 = vsub.f32 %v14791_v0, %v25090_v24  ;;  %v14794_v34 = vsel %vm597_vm1, %v14776_v51, 0 }
 0xc52   : > { %20217 = vpow2.f32 %v14721_v33  ;;  %v13962_v4 = vadd.f32 %v26599_v30, %v26598_v49  ;;  %v26600_v33 = vld [vmem:[#allocation19_spill] sm:$0xff] }
 0xc53   : > { %v13969_v14 = vadd.f32 %v26601_v39, %v26600_v33  ;;  %v14423_v20 = vadd.f32 %v14422_v17, %v14277_v45 }
 0xc55   : > { %v14117_v7 = vadd.f32 %v24883_v43, %v13969_v14  ;;  %20129 = vset.pattern.permute.xlu1 %v20347_v46  ;;  %v26609_v46 = vld [vmem:[#allocation35_spill] sm:$0xff]  ;;  %v14557_v62 = vadd.f32 %v14556_v40, %v14423_v20 }
 0xc56   : > { %16178 = vperm.xlu1 %20129, %v25029_v44   ;;  %v14603_v42 = vadd.f32 %v25060_v37, %v26609_v46  ;;  %v14597_v44 = vadd.f32 %v25066_v26, %v14541_v9 }
 0xc57   : > { %v14268_v43 = vadd.f32 %v24927_v56, %v14117_v7  ;;  %v14606_v7 = vadd.f32 %v25060_v37, %v14557_v62 }
 0xc59   : > { %v14416_v22 = vadd.f32 %v14415_v41, %v14268_v43 }
 0xc5a   : > { %20130 = vset.pattern.permute.xlu1 %v20348_v57  ;;  %v14777_v57 = vld [vmem:[%s26211_s3 + $0x120] sm:$0xf] }
 0xc5b   : > { %v14550_v23 = vadd.f32 %v14549_v10, %v14416_v22  ;;  %16206 = vperm.xlu1 %20130, %v25042_v18   ;;  %v25129_v18 = vand.u32 4294901760, %v14794_v34  ;;  %v14797_v25 = vsel %vm597_vm1, %v14777_v57, 0 }
 0xc5c   : > { %v20212_v38 = vpop.eup %20211 }
 0xc5d   : > { %v20214_v12 = vpop.eup %20213  ;;  %v14723_v48 = vadd.f32 1.0, %v20212_v38  ;;  %v26602_v38 = vld [vmem:[#allocation36_spill] sm:$0xff]  ;;  %v25127_v52 = vadd.f32 %v14589_v58, %v14550_v23 }
 0xc5e   : > { %v20216_v21 = vpop.eup %20215  ;;  %v14725_v11 = vadd.f32 1.0, %v20214_v12  ;;  %v14595_v16 = vadd.f32 %v25066_v26, %v26602_v38 }
 0xc5f   : > { %20219 = vrcp.f32 %v14723_v48  ;;  %v14724_v15 = vadd.f32 1.0, %v20216_v21  ;;  %v20218_v12 = vpop.eup %20217  ;;  %v26607_v48 = vld [vmem:[#allocation49_spill] sm:$0xff] }
 0xc60   : > { %20221 = vrcp.f32 %v14725_v11  ;;  %v14109_v21 = vadd.f32 %v26607_v48, %v13962_v4  ;;  %v14414_v11 = vadd.f32 %v14413_v31, %v24920_v47  ;;  %v14726_v1 = vadd.f32 1.0, %v20218_v12  ;;  %v26608_v31 = vld [vmem:[#allocation56_spill] sm:$0xff] }
 0xc61   : > { %20223 = vrcp.f32 %v14724_v15  ;;  %v25093_v15 = vadd.f32 %v25066_v26, %v13634_v59  ;;  %v14555_v47 = vadd.f32 %v14554_v53, %v14421_v35  ;;  %v14599_v60 = vadd.f32 %v14589_v58, %v26608_v31 }
 0xc62   : > { %v14259_v61 = vadd.f32 %v24909_v13, %v14109_v21  ;;  %v14548_v29 = vadd.f32 %v14547_v63, %v14414_v11  ;;  %v25104_v13 = vadd.f32 %v14589_v58, %v13641_v3  ;;  %v25110_v63 = vadd.f32 %v25060_v37, %v13648_v50 }
 0xc63   : > { %20225 = vrcp.f32 %v14726_v1  ;;  %v14605_v32 = vadd.f32 %v25060_v37, %v14555_v47  ;;  %v25142_v35 = vand.u32 4294901760, %v25113_v28  ;;  %v25154_v47 = vand.u32 4294901760, %v14797_v25 }
 0xc64   : > { %v14409_v56 = vadd.f32 %v25035_v54, %v14259_v61  ;;  %v14601_v41 = vadd.f32 %v14589_v58, %v14548_v29  ;;  %v25145_v61 = vsub.f32 %v14794_v34, %v25129_v18 }
 0xc65   : > { %v14885_v40 = vsub.f32 %v25113_v28, %v25142_v35 }
 0xc66   : > { %v14543_v19 = vadd.f32 %v25037_v6, %v14409_v56 }
 0xc68   : > { %v25122_v38 = vadd.f32 %v25066_v26, %v14543_v19  ;;  %v25175_v19 = vand.u32 4294901760, %v25145_v61 }
 0xc6c   : > { %v20220_v54 = vpop.eup %20219 }
 0xc6d   : > { %v20222_v59 = vpop.eup %20221  ;;  %v14735_v49 = vmul.f32 %v20220_v54, %v14595_v16  ;;  %v14747_v30 = vsub.f32 1.0, %v20220_v54  ;;  %v14739_v4 = vmul.f32 %v20220_v54, %v14599_v60  ;;  %v14743_v33 = vmul.f32 %v20220_v54, %v14603_v42 }
 0xc6e   : > { %v20224_v39 = vpop.eup %20223  ;;  %v14737_v6 = vmul.f32 %v20222_v59, %v14597_v44  ;;  %v14749_v10 = vsub.f32 1.0, %v20222_v59  ;;  %v14741_v14 = vmul.f32 %v20222_v59, %v14601_v41  ;;  %v14745_v27 = vmul.f32 %v20222_v59, %v14605_v32 }
 0xc6f   : > { %v14751_v0 = vmul.f32 %v14747_v30, %v14597_v44  ;;  %v14748_v5 = vsub.f32 1.0, %v20224_v39  ;;  %v14755_v3 = vmul.f32 %v14747_v30, %v14601_v41  ;;  %v14736_v55 = vmul.f32 %v20224_v39, %v25093_v15 }
 0xc70   : > { %v14753_v8 = vmul.f32 %v14749_v10, %v14595_v16  ;;  %v14757_v36 = vmul.f32 %v14749_v10, %v14599_v60  ;;  %v14740_v53 = vmul.f32 %v20224_v39, %v25104_v13  ;;  %v14759_v2 = vmul.f32 %v14747_v30, %v14605_v32  ;;  %v25165_v46 = vpop.eup %20225 }
 0xc71   : > { %v14763_v12 = vadd.f32 %v14751_v0, %v14735_v49  ;;  %v14752_v50 = vmul.f32 %v14748_v5, %v25122_v38  ;;  %v14767_v48 = vadd.f32 %v14755_v3, %v14739_v4  ;;  %v14756_v58 = vmul.f32 %v14748_v5, %v25127_v52 }
 0xc72   : > { %v25133_v26 = vadd.f32 %v14753_v8, %v14737_v6  ;;  %v25135_v21 = vadd.f32 %v14757_v36, %v14741_v14  ;;  %v14761_v11 = vmul.f32 %v14749_v10, %v14603_v42  ;;  %v14771_v9 = vadd.f32 %v14759_v2, %v14743_v33 }
 0xc73   : > { %v14764_v16 = vadd.f32 %v14752_v50, %v14736_v55  ;;  %v14768_v43 = vadd.f32 %v14756_v58, %v14740_v53  ;;  %v14744_v17 = vmul.f32 %v20224_v39, %v25110_v63  ;;  %v14760_v37 = vmul.f32 %v14748_v5, %v14606_v7 }
 0xc74   : > { %v25148_v45 = vadd.f32 %v14761_v11, %v14745_v27  ;;  %v25150_v1 = vand.u32 4294901760, %v14767_v48  ;;  %v14800_v31 = vsel %vm415_vm0, %v14771_v9, 0  ;;  %v25161_v22 = vand.u32 4294901760, %v14763_v12 }
 0xc75   : > { %v25152_v29 = vand.u32 4294901760, %v14764_v16  ;;  %v14772_v51 = vadd.f32 %v14760_v37, %v14744_v17  ;;  %v25157_v60 = vand.u32 4294901760, %v14768_v43  ;;  %v25159_v56 = vand.u32 4294901760, %v14800_v31 }
 0xc76   : > { %v25172_v44 = vsub.f32 %v14767_v48, %v25150_v1  ;;  %v25186_v41 = vsub.f32 %v14797_v25, %v25154_v47  ;;  %v25193_v49 = vsub.f32 %v14763_v12, %v25161_v22  ;;  %v14750_v30 = vsub.f32 1.0, %v25165_v46 }
 0xc77   : > { %v14803_v42 = vsel %vm415_vm0, %v14772_v51, 0  ;;  %v25169_v20 = vsub.f32 %v14768_v43, %v25157_v60  ;;  %v25180_v34 = vsub.f32 %v14800_v31, %v25159_v56  ;;  %v25183_v54 = vsub.f32 %v14764_v16, %v25152_v29 }
 0xc78   : > { %v25177_v23 = vand.u32 4294901760, %v14803_v42  ;;  %v25197_v4 = vand.u32 4294901760, %v14885_v40  ;;  %v14961_v33 = vand.u32 4294901760, %v25172_v44  ;;  %v14896_v6 = vsub.f32 %v25145_v61, %v25175_v19 }
 0xc79   : > { %v14949_v62 = vand.u32 4294901760, %v25180_v34  ;;  %v14955_v59 = vand.u32 4294901760, %v25169_v20  ;;  %v14967_v10 = vand.u32 4294901760, %v25183_v54  ;;  %v25205_v14 = vand.u32 4294901760, %v25186_v41 }
 0xc7a   : > { %14838 = vmatprep.subr.mxu0 %v25177_v23  ;;  %v14942_v32 = vsub.f32 %v14803_v42, %v25177_v23  ;;  %v14973_v3 = vand.u32 4294901760, %v25193_v49  ;;  %v14762_v57 = vmul.f32 %v14750_v30, %v25110_v63  ;;  %v14962_v8 = vsub.f32 %v25172_v44, %v14961_v33 }
 0xc7b   : > { %14840 = vmatpush1.msra.mxu0 %v25159_v56  ;;  %v14950_v27 = vsub.f32 %v25180_v34, %v14949_v62  ;;  %v14956_v5 = vsub.f32 %v25169_v20, %v14955_v59  ;;  %v25222_v12 = vand.u32 4294901760, %v14896_v6  ;;  %v14968_v55 = vsub.f32 %v25183_v54, %v14967_v10 }
 0xc7c   : > { %14842 = vmatprep.subr.mxu0 %v25157_v60  ;;  %v14943_v39 = vand.u32 4294901760, %v14942_v32  ;;  %v14907_v50 = vsub.f32 %v25186_v41, %v25205_v14  ;;  %v14746_v63 = vmul.f32 %v25165_v46, %v14606_v7  ;;  %v26610_v48 = vmov 0.0  }
 0xc7d   : > { %14844 = vmatpush1.msra.mxu0 %v25150_v1  ;;  %v14951_v25 = vand.u32 4294901760, %v14950_v27  ;;  %v14957_v16 = vand.u32 4294901760, %v14956_v5  ;;  %v14974_v53 = vsub.f32 %v25193_v49, %v14973_v3  ;;  %v14963_v2 = vand.u32 4294901760, %v14962_v8 }
 0xc7e   : > { %14846 = vmatprep.subr.mxu0 %v25152_v29  ;;  %v14944_v0 = vsub.f32 %v14942_v32, %v14943_v39  ;;  %v14774_v58 = vadd.f32 %v14762_v57, %v14746_v63  ;;  %v14969_v7 = vand.u32 4294901760, %v14968_v55  ;;  %v25238_v11 = vand.u32 4294901760, %v14907_v50 }
 0xc7f   : > { %14848 = vmatpush1.msra.mxu0 %v25161_v22  ;;  %v14975_v43 = vand.u32 4294901760, %v14974_v53  ;;  %v14758_v37 = vmul.f32 %v14750_v30, %v25104_v13  ;;  %v14754_v51 = vmul.f32 %v14750_v30, %v25093_v15  ;;  %v14742_v31 = vmul.f32 %v25165_v46, %v25127_v52 }
 0xc80   : > { %14887 = vmatmul.mubr.f32.vlgmr.msra.gmra.mxu0 %v25197_v4  ;;  %15059 = vmatprep.subr.mxu0 %v14942_v32  ;;  %v14945_v36 = vand.u32 4294901760, %v14944_v0  ;;  %v14809_v9 = vsel %vm415_vm0, %v14774_v58, 0  ;;  %v14738_v40 = vmul.f32 %v25165_v46, %v25122_v38  ;;  %v14806_v15 = vsel %vm415_vm0, %v25148_v45, 0 }
 0xc81   : > { %15062 = vmatpush1.msra.mxu0 %v25180_v34  ;;  %14892 = vmatprep.mubr.f32.mxu0 %v26610_v48  ;;  %v25249_v17 = vand.u32 4294901760, %v14809_v9  ;;  %v14770_v42 = vadd.f32 %v14758_v37, %v14742_v31  ;;  %v25282_v38 = vand.u32 4294901760, %v14806_v15 }
 0xc82   : > { %14946 = vmatprep.subr.mxu1 %v14945_v36  ;;  %15065 = vmatprep.subr.mxu0 %v25169_v20  ;;  %v14766_v52 = vadd.f32 %v14754_v51, %v14738_v40  ;;  %v25293_v20 = vand.u32 4294901760, %v25135_v21 }
 0xc83   : > { %14952 = vmatpush1.msra.mxu1 %v14951_v25  ;;  %15068 = vmatpush1.msra.mxu0 %v25172_v44  ;;  %v25265_v13 = vsub.f32 %v14809_v9, %v25249_v17  ;;  %v25288_v45 = vand.u32 4294901760, %v14770_v42 }
 0xc84   : > { %14898 = vmatmul.mubr.f32.gmra.mxu0 %v25222_v12  ;;  %14958 = vmatprep.subr.mxu1 %v14957_v16  ;;  %v25295_v44 = vand.u32 4294901760, %v14766_v52 }
 0xc85   : > { %15071 = vmatprep.subr.mxu0 %v25183_v54  ;;  %14964 = vmatpush1.msra.mxu1 %v14963_v2  ;;  %v15558_v46 = vand.u32 4294901760, %v25265_v13  ;;  %v25306_v54 = vand.u32 4294901760, %v25133_v26  ;;  %v25311_v32 = vsub.f32 %v14770_v42, %v25288_v45 }
 0xc86   : > { %15074 = vmatpush1.msra.mxu0 %v25193_v49  ;;  %14970 = vmatprep.subr.mxu1 %v14969_v7 }
 0xc87   : > { %15259 = vmatprep.subr.mxu0 %v14943_v39  ;;  %14903 = vmatprep.mubr.f32.mxu0 %v26610_v48  ;;  %v15559_v34 = vsub.f32 %v25265_v13, %v15558_v46 }
 0xc88   : > { %14976 = vmatpush1.msra.mxu1 %v14975_v43  ;;  %14909 = vmatmul.mubr.f32.gmra.mxu0 %v25238_v11 }
 0xc89   : > { %15011 = vmatmul.mubr.f32.vlgmr.msra.gmra.mxu1 %v25090_v24  ;;  %15159 = vmatprep.subr.mxu1 %v25177_v23 }
 0xc8a   : > { %15161 = vmatpush1.msra.mxu1 %v25159_v56  ;;  %15016 = vmatprep.mubr.f32.mxu1 %v26610_v48 }
 0xc8b   : > { %15163 = vmatprep.subr.mxu1 %v25157_v60  ;;  %15107 = vmatprep.mubr.f32.mxu0 %v26610_v48 }
 0xc8c   : > { %15165 = vmatpush1.msra.mxu1 %v25150_v1  ;;  %15110 = vmatmul.mubr.f32.vlgmr.msra.gmra.mxu0 %v25113_v28 }
 0xc8d   : > { %15018 = vmatmul.mubr.f32.gmra.mxu1 %v25129_v18  ;;  %15167 = vmatprep.subr.mxu1 %v25152_v29 }
 0xc8e   : > { %15263 = vmatpush1.msra.mxu0 %v14949_v62  ;;  %15169 = vmatpush1.msra.mxu1 %v25161_v22  ;;  %v25317_v62 = vsub.f32 %v25135_v21, %v25293_v20  ;;  %v15570_v21 = vand.u32 4294901760, %v25311_v32 }
 0xc8f   : > { %15267 = vmatprep.subr.mxu0 %v14955_v59  ;;  %15361 = vmatprep.subr.mxu1 %v25177_v23  ;;  %v25300_v23 = vsub.f32 %v14806_v15, %v25282_v38  ;;  %v25321_v59 = vsub.f32 %v14766_v52, %v25295_v44 }
 0xc90   : > { %15271 = vmatpush1.msra.mxu0 %v14961_v33  ;;  %15023 = vmatprep.mubr.f32.mxu1 %v26610_v48  ;;  %v15571_v30 = vsub.f32 %v25311_v32, %v15570_v21 }
 0xc91   : > { %15115 = vmatprep.mubr.f32.mxu0 %v26610_v48  ;;  %15275 = vmatprep.subr.mxu0 %v14967_v10  ;;  %v15564_v49 = vand.u32 4294901760, %v25300_v23 }
 0xc92   : > { %15025 = vmatmul.mubr.f32.gmra.mxu1 %v25154_v47  ;;  %15118 = vmatmul.mubr.f32.gmra.mxu0 %v25145_v61  ;;  %v15572_v27 = vand.u32 4294901760, %v15571_v30 }
 0xc93   : > { %15279 = vmatpush1.msra.mxu0 %v14973_v3  ;;  %15123 = vmatprep.mubr.f32.mxu0 %v26610_v48 }
 0xc94   : > { %15453 = vmatprep.subr.mxu0 %v25249_v17  ;;  %15202 = vmatprep.mubr.f32.mxu1 %v26610_v48 }
 0xc96   : > { %15126 = vmatmul.mubr.f32.gmra.mxu0 %v25186_v41  ;;  %15206 = vmatmul.mubr.f32.vlgmr.msra.gmra.mxu1 %v25142_v35 }
 0xc97   : > { %15363 = vmatpush1.msra.mxu1 %v25159_v56  ;;  %15211 = vmatprep.mubr.f32.mxu1 %v26610_v48  ;;  %v15560_v56 = vand.u32 4294901760, %v15559_v34 }
 0xc98   : > { %15365 = vmatprep.subr.mxu1 %v25157_v60  ;;  %15312 = vmatprep.mubr.f32.mxu0 %v26610_v48  ;;  %v25328_v60 = vsub.f32 %v25133_v26, %v25306_v54  ;;  %v15565_v26 = vsub.f32 %v25300_v23, %v15564_v49 }
 0xc99   : > { %15367 = vmatpush1.msra.mxu1 %v25150_v1  ;;  %v15576_v1 = vand.u32 4294901760, %v25317_v62 }
 0xc9a   : > { %15369 = vmatprep.subr.mxu1 %v25152_v29  ;;  %15215 = vmatmul.mubr.f32.gmra.mxu1 %v25175_v19  ;;  %v15582_v29 = vand.u32 4294901760, %v25321_v59  ;;  %v15566_v6 = vand.u32 4294901760, %v15565_v26 }
 0xc9b   : > { %15314 = vmatmul.mubr.f32.vlgmr.msra.gmra.mxu0 %v25090_v24  ;;  %15371 = vmatpush1.msra.mxu1 %v25161_v22  ;;  %v15588_v22 = vand.u32 4294901760, %v25328_v60  ;;  %v15577_v33 = vsub.f32 %v25317_v62, %v15576_v1 }
 0xc9c   : > { %15455 = vmatpush1.msra.mxu0 %v25282_v38  ;;  %15561 = vmatprep.subr.mxu1 %v15560_v56  ;;  %v15583_v39 = vsub.f32 %v25321_v59, %v15582_v29 }
 0xc9d   : > { %15457 = vmatprep.subr.mxu0 %v25288_v45  ;;  %15220 = vmatprep.mubr.f32.mxu1 %v26610_v48  ;;  %v15589_v10 = vsub.f32 %v25328_v60, %v15588_v22  ;;  %v15578_v0 = vand.u32 4294901760, %v15577_v33 }
 0xc9e   : > { %15459 = vmatpush1.msra.mxu0 %v25293_v20  ;;  %15319 = vmatprep.mubr.f32.mxu0 %v26610_v48  ;;  %v15584_v5 = vand.u32 4294901760, %v15583_v39 }
 0xc9f   : > { %15461 = vmatprep.subr.mxu0 %v25295_v44  ;;  %15224 = vmatmul.mubr.f32.gmra.mxu1 %v25205_v14  ;;  %v15590_v3 = vand.u32 4294901760, %v15589_v10 }
 0xca0   : > { %15321 = vmatmul.mubr.f32.gmra.mxu0 %v25129_v18  ;;  %15404 = vmatprep.mubr.f32.mxu1 %v26610_v48 }
 0xca1   : > { %15463 = vmatpush1.msra.mxu0 %v25306_v54  ;;  %15326 = vmatprep.mubr.f32.mxu0 %v26610_v48 }
 0xca2   : > { %15674 = vmatprep.subr.mxu0 %v25265_v13 }
 0xca3   : > { %15406 = vmatmul.mubr.f32.vlgmr.msra.gmra.mxu1 %v25090_v24 }
 0xca4   : > { %15328 = vmatmul.mubr.f32.gmra.mxu0 %v25154_v47  ;;  %15567 = vmatpush1.msra.mxu1 %v15566_v6 }
 0xca5   : > { %15573 = vmatprep.subr.mxu1 %v15572_v27  ;;  %15411 = vmatprep.mubr.f32.mxu1 %v26610_v48 }
 0xca6   : > { %15579 = vmatpush1.msra.mxu1 %v15578_v0  ;;  %15496 = vmatprep.mubr.f32.mxu0 %v26610_v48 }
 0xca7   : > { %15585 = vmatprep.subr.mxu1 %v15584_v5  ;;  %15413 = vmatmul.mubr.f32.gmra.mxu1 %v25129_v18 }
 0xca8   : > { %15502 = vmatmul.mubr.f32.vlgmr.msra.gmra.mxu0 %v25197_v4  ;;  %15591 = vmatpush1.msra.mxu1 %v15590_v3 }
 0xca9   : > { %15677 = vmatpush1.msra.mxu0 %v25300_v23  ;;  %15774 = vmatprep.subr.mxu1 %v25249_v17 }
 0xcaa   : > { %15680 = vmatprep.subr.mxu0 %v25311_v32  ;;  %15418 = vmatprep.mubr.f32.mxu1 %v26610_v48 }
 0xcab   : > { %15683 = vmatpush1.msra.mxu0 %v25317_v62  ;;  %15507 = vmatprep.mubr.f32.mxu0 %v26610_v48 }
 0xcac   : > { %15686 = vmatprep.subr.mxu0 %v25321_v59  ;;  %15420 = vmatmul.mubr.f32.gmra.mxu1 %v25154_v47 }
 0xcad   : > { %15513 = vmatmul.mubr.f32.gmra.mxu0 %v25222_v12  ;;  %15624 = vmatprep.mubr.f32.mxu1 %v26610_v48 }
 0xcae   : > { %15689 = vmatpush1.msra.mxu0 %v25328_v60  ;;  %15518 = vmatprep.mubr.f32.mxu0 %v26610_v48 }
 0xcaf   : > { %15874 = vmatprep.subr.mxu0 %v15558_v46 }
 0xcb0   : > { %15626 = vmatmul.mubr.f32.vlgmr.msra.gmra.mxu1 %v25090_v24 }
 0xcb1   : > { %15524 = vmatmul.mubr.f32.gmra.mxu0 %v25238_v11  ;;  %15776 = vmatpush1.msra.mxu1 %v25282_v38 }
 0xcb2   : > { %15778 = vmatprep.subr.mxu1 %v25288_v45  ;;  %15631 = vmatprep.mubr.f32.mxu1 %v26610_v48 }
 0xcb3   : > { %15780 = vmatpush1.msra.mxu1 %v25293_v20  ;;  %15722 = vmatprep.mubr.f32.mxu0 %v26610_v48 }
 0xcb4   : > { %15782 = vmatprep.subr.mxu1 %v25295_v44  ;;  %15633 = vmatmul.mubr.f32.gmra.mxu1 %v25129_v18 }
 0xcb5   : > { %15725 = vmatmul.mubr.f32.vlgmr.msra.gmra.mxu0 %v25113_v28  ;;  %15784 = vmatpush1.msra.mxu1 %v25306_v54 }
 0xcb6   : > { %15878 = vmatpush1.msra.mxu0 %v15564_v49  ;;  %15976 = vmatprep.subr.mxu1 %v25249_v17 }
 0xcb7   : > { %15882 = vmatprep.subr.mxu0 %v15570_v21  ;;  %15638 = vmatprep.mubr.f32.mxu1 %v26610_v48 }
 0xcb8   : > { %15886 = vmatpush1.msra.mxu0 %v15576_v1  ;;  %15730 = vmatprep.mubr.f32.mxu0 %v26610_v48 }
 0xcb9   : > { %15890 = vmatprep.subr.mxu0 %v15582_v29  ;;  %15640 = vmatmul.mubr.f32.gmra.mxu1 %v25154_v47 }
 0xcba   : > { %15733 = vmatmul.mubr.f32.gmra.mxu0 %v25145_v61  ;;  %15817 = vmatprep.mubr.f32.mxu1 %v26610_v48 }
 0xcbb   : > { %15894 = vmatpush1.msra.mxu0 %v15588_v22  ;;  %15738 = vmatprep.mubr.f32.mxu0 %v26610_v48 }
 0xcbd   : > { %15821 = vmatmul.mubr.f32.vlgmr.msra.gmra.mxu1 %v25142_v35 }
 0xcbe   : > { %15741 = vmatmul.mubr.f32.gmra.mxu0 %v25186_v41  ;;  %15978 = vmatpush1.msra.mxu1 %v25282_v38  ;;  %v25424_v50 = vpop.permute.xlu1 %14779  ;;  %v25430_v51 = vpop.permute.xlu0 %14787 }
 0xcbf   : > { %15980 = vmatprep.subr.mxu1 %v25288_v45  ;;  %15826 = vmatprep.mubr.f32.mxu1 %v26610_v48 }
 0xcc0   : > { %15982 = vmatpush1.msra.mxu1 %v25293_v20  ;;  %15927 = vmatprep.mubr.f32.mxu0 %v26610_v48 }
 0xcc1   : > { %15984 = vmatprep.subr.mxu1 %v25295_v44  ;;  %15830 = vmatmul.mubr.f32.gmra.mxu1 %v25175_v19 }
 0xcc2   : > { %15929 = vmatmul.mubr.f32.vlgmr.msra.gmra.mxu0 %v25090_v24  ;;  %15986 = vmatpush1.msra.mxu1 %v25306_v54  ;;  %v25426_v2 = vpop.permute.xlu1 %14783 }
 0xcc3   : > { %15835 = vmatprep.mubr.f32.mxu1 %v26610_v48  ;;  %15934 = vmatprep.mubr.f32.mxu0 %v26610_v48 }
 0xcc5   : > { %15839 = vmatmul.mubr.f32.gmra.mxu1 %v25205_v14 }
 0xcc6   : > { %15936 = vmatmul.mubr.f32.gmra.mxu0 %v25129_v18  ;;  %16019 = vmatprep.mubr.f32.mxu1 %v26610_v48 }
 0xcc7   : > { %15941 = vmatprep.mubr.f32.mxu0 %v26610_v48 }
 0xcc9   : > { %16021 = vmatmul.mubr.f32.vlgmr.msra.gmra.mxu1 %v25090_v24 }
 0xcca   : > { %15943 = vmatmul.mubr.f32.gmra.mxu0 %v25154_v47  ;;  %16026 = vmatprep.mubr.f32.mxu1 %v26610_v48 }
 0xccb   : > { %16315 = vmatprep.mubr.f32.mxu0 %v26610_v48 }
 0xccd   : > { %16028 = vmatmul.mubr.f32.gmra.mxu1 %v25129_v18 }
 0xcce   : > { %16033 = vmatprep.mubr.f32.mxu1 %v26610_v48 }
 0xcd1   : > { %16035 = vmatmul.mubr.f32.gmra.mxu1 %v25154_v47 }
 0xcd2   : > { %16421 = vmatprep.mubr.f32.mxu1 %v26610_v48 }
 0xd40   : > { %v14888_v28 = vpop.f32.mrf.mxu0 }
 0xd41   : > { %v14889_v37 = vadd.f32 %v14888_v28, %v25424_v50 }
 0xd42   : > { %v14890_v35 = vpop.f32.mrf.mxu0 }
 0xd43   : > { %v14891_v38 = vadd.f32 %v14890_v35, %v25424_v50 }
 0xd44   : > { %v14899_v61 = vpop.f32.mrf.mxu0 }
 0xd45   : > { %v14900_v43 = vadd.f32 %v14899_v61, %v25426_v2 }
 0xd46   : > { %v14901_v19 = vpop.f32.mrf.mxu0 }
 0xd47   : > { %v14902_v13 = vadd.f32 %v14901_v19, %v25426_v2 }
 0xd48   : > { %v14910_v41 = vpop.f32.mrf.mxu0 }
 0xd49   : > { %v15012_v24 = vpop.f32.mrf.mxu1  ;;  %v14911_v15 = vadd.f32 %v14910_v41, %v25430_v51 }
 0xd4a   : > { %v14912_v4 = vpop.f32.mrf.mxu0  ;;  %v15013_v46 = vadd.f32 %v15012_v24, %v14889_v37 }
 0xd4b   : > { %v15014_v14 = vpop.f32.mrf.mxu1  ;;  %v14913_v56 = vadd.f32 %v14912_v4, %v25430_v51 }
 0xd4c   : > { %v15111_v57 = vpop.f32.mrf.mxu0  ;;  %v15015_v34 = vadd.f32 %v15014_v14, %v14891_v38 }
 0xd4d   : > { %v15019_v8 = vpop.f32.mrf.mxu1  ;;  %v15112_v54 = vadd.f32 %v15111_v57, %v15013_v46 }
 0xd4e   : > { %v15113_v36 = vpop.f32.mrf.mxu0  ;;  %v15020_v40 = vadd.f32 %v15019_v8, %v14900_v43  ;;  %v26611_v8 = vld [vmem:[#allocation45_spill] sm:$0xff] }
 0xd4f   : > { %v15021_v12 = vpop.f32.mrf.mxu1  ;;  %v15114_v21 = vadd.f32 %v15113_v36, %v15015_v34 }
 0xd50   : > { %v15022_v45 = vadd.f32 %v15021_v12, %v14902_v13 }
 0xd52   : > { %v15026_v55 = vpop.f32.mrf.mxu1  ;;  %v15119_v18 = vpop.f32.mrf.mxu0 }
 0xd53   : > { %v15120_v20 = vadd.f32 %v15119_v18, %v15020_v40  ;;  %v15027_v49 = vadd.f32 %v15026_v55, %v14911_v15 }
 0xd54   : > { %v15028_v63 = vpop.f32.mrf.mxu1  ;;  %v15121_v47 = vpop.f32.mrf.mxu0 }
 0xd55   : > { %v15122_v32 = vadd.f32 %v15121_v47, %v15022_v45  ;;  %v15029_v30 = vadd.f32 %v15028_v63, %v14913_v56  ;;  %v26612_v47 = vld [vmem:[#allocation68_spill] sm:$0xff] }
 0xd56   : > { %v15127_v25 = vpop.f32.mrf.mxu0  ;;  %v15207_v16 = vpop.f32.mrf.mxu1 }
 0xd57   : > { %v15208_v1 = vadd.f32 %v15207_v16, %v15112_v54  ;;  %v15128_v33 = vadd.f32 %v15127_v25, %v15027_v49  ;;  %v26613_v16 = vld [vmem:[#allocation51_spill] sm:$0xff] }
 0xd58   : > { %v15129_v53 = vpop.f32.mrf.mxu0  ;;  %v15209_v58 = vpop.f32.mrf.mxu1 }
 0xd59   : > { %v15210_v6 = vadd.f32 %v15209_v58, %v15114_v21  ;;  %v15130_v3 = vadd.f32 %v15129_v53, %v15029_v30  ;;  %v20350_v21 = vmov 25  }
 0xd5a   : > { %v15216_v7 = vpop.f32.mrf.mxu1  ;;  %20134 = vset.pattern.permute.xlu0 %v20350_v21 }
 0xd5b   : > { %v15315_v11 = vpop.f32.mrf.mxu0  ;;  %v15217_v62 = vadd.f32 %v15216_v7, %v15120_v20  ;;  %v26614_v7 = vld [vmem:[#allocation62_spill] sm:$0xff] }
 0xd5c   : > { %v15218_v9 = vpop.f32.mrf.mxu1  ;;  %v15316_v10 = vadd.f32 %v15315_v11, %v15208_v1 }
 0xd5d   : > { %v15317_v17 = vpop.f32.mrf.mxu0  ;;  %v15219_v29 = vadd.f32 %v15218_v9, %v15122_v32 }
 0xd5e   : > { %v15318_v61 = vadd.f32 %v15317_v17, %v15210_v6  ;;  %v26615_v17 = vld [vmem:[#allocation29_spill] sm:$0xff]  ;;  %v20351_v6 = vmov 24  }
 0xd5f   : > { %v15225_v31 = vpop.f32.mrf.mxu1 }
 0xd60   : > { %v15322_v42 = vpop.f32.mrf.mxu0  ;;  %v15226_v28 = vadd.f32 %v15225_v31, %v15128_v33 }
 0xd61   : > { %v15227_v52 = vpop.f32.mrf.mxu1  ;;  %v15323_v26 = vadd.f32 %v15322_v42, %v15217_v62  ;;  %v26616_v42 = vld [vmem:[#allocation65_spill] sm:$0xff]  ;;  %v20349_v62 = vmov 23  }
 0xd62   : > { %v15324_v44 = vpop.f32.mrf.mxu0  ;;  %v15228_v4 = vadd.f32 %v15227_v52, %v15130_v3  ;;  %20132 = vset.pattern.permute.xlu1 %v20349_v62 }
 0xd63   : > { %v15407_v23 = vpop.f32.mrf.mxu1  ;;  %v15325_v27 = vadd.f32 %v15324_v44, %v15219_v29 }
 0xd64   : > { %v15329_v59 = vpop.f32.mrf.mxu0  ;;  %v15408_v19 = vadd.f32 %v15407_v23, %v15316_v10 }
 0xd65   : > { %v15409_v60 = vpop.f32.mrf.mxu1  ;;  %v15330_v14 = vadd.f32 %v15329_v59, %v15226_v28 }
 0xd66   : > { %v15331_v22 = vpop.f32.mrf.mxu0  ;;  %v15410_v57 = vadd.f32 %v15409_v60, %v15318_v61  ;;  %v16041_v25 = vadd.f32 %v15408_v19, %v26612_v47  ;;  %v20261_v60 = vld [vmem:[%s26213_s5] sm:$0x3] }
 0xd67   : > { %v15414_v39 = vpop.f32.mrf.mxu1  ;;  %v15332_v55 = vadd.f32 %v15331_v22, %v15228_v4  ;;  %16227 = vperm.xlu1 %20132, %v20261_v60   ;;  %17376 = vperm.xlu0 %20134, %v20261_v60  }
 0xd68   : > { %v15415_v0 = vadd.f32 %v15414_v39, %v15323_v26  ;;  %v25436_v5 = vpop.f32.mrf.mxu0  ;;  %v16042_v37 = vadd.f32 %v15410_v57, %v26615_v17 }
 0xd69   : > { %v15416_v35 = vpop.f32.mrf.mxu1 }
 0xd6a   : > { %v15417_v41 = vadd.f32 %v15416_v35, %v15325_v27  ;;  %v25438_v24 = vpop.f32.mrf.mxu0  ;;  %v16045_v36 = vadd.f32 %v15415_v0, %v26611_v8 }
 0xd6b   : > { %20133 = vset.pattern.permute.xlu1 %v20351_v6 }
 0xd6c   : > { %v15421_v12 = vpop.f32.mrf.mxu1  ;;  %v25443_v53 = vadd.f32 %v15417_v41, %v26613_v16  ;;  %v16053_v31 = vadd.f32 %v16045_v36, %v16041_v25  ;;  %17368 = vperm.xlu1 %20133, %v20261_v60  }
 0xd6d   : > { %v15422_v18 = vadd.f32 %v15421_v12, %v15330_v14  ;;  %v15514_v63 = vpop.f32.mrf.mxu0 }
 0xd6e   : > { %v15423_v58 = vpop.f32.mrf.mxu1  ;;  %v16062_v38 = vadd.f32 %v25443_v53, %v16042_v37 }
 0xd6f   : > { %v16049_v11 = vadd.f32 %v15422_v18, %v26614_v7  ;;  %v15424_v43 = vadd.f32 %v15423_v58, %v15332_v55  ;;  %v25446_v9 = vpop.f32.mrf.mxu0  ;;  %v15504_v58 = vadd.f32 %v25436_v5, %v25424_v50  ;;  %v15515_v7 = vadd.f32 %v15514_v63, %v25426_v2 }
 0xd70   : > { %v25449_v13 = vpop.f32.mrf.mxu1 }
 0xd71   : > { %v16054_v40 = vsel %vm415_vm0, %v16049_v11, 0.0  ;;  %v16050_v15 = vadd.f32 %v15424_v43, %v26616_v42  ;;  %v25453_v52 = vpop.f32.mrf.mxu0  ;;  %v15517_v42 = vadd.f32 %v25446_v9, %v25426_v2  ;;  %v15628_v2 = vadd.f32 %v25449_v13, %v15504_v58 }
 0xd72   : > { %v16055_v46 = vadd.f32 %v16054_v40, %v16053_v31  ;;  %v25456_v45 = vpop.f32.mrf.mxu1  ;;  %v15506_v40 = vadd.f32 %v25438_v24, %v25424_v50 }
 0xd73   : > { %v16063_v20 = vsel %vm415_vm0, %v16050_v15, 0.0  ;;  %v25459_v44 = vpop.f32.mrf.mxu0 }
 0xd74   : > { %v16056_v23 = vrot.slane %v16055_v46, 4  ;;  %v16064_v34 = vadd.f32 %v16063_v20, %v16062_v38  ;;  %v15634_v54 = vpop.f32.mrf.mxu1  ;;  %v15630_v62 = vadd.f32 %v25456_v45, %v15506_v40 }
 0xd75   : > { %v25461_v32 = vpop.f32.mrf.mxu0 }
 0xd76   : > { %v16057_v59 = vadd.f32 %v16056_v23, %v16055_v46  ;;  %v16065_v56 = vrot.slane %v16064_v34, 4  ;;  %v15636_v49 = vpop.f32.mrf.mxu1  ;;  %v15635_v23 = vadd.f32 %v15634_v54, %v15515_v7 }
 0xd77   : > { %v25466_v1 = vpop.f32.mrf.mxu0 }
 0xd78   : > { %v16058_v29 = vrot.slane %v16057_v59, 2  ;;  %v16066_v26 = vadd.f32 %v16065_v56, %v16064_v34 }
 0xd79   : > { %v15641_v22 = vpop.f32.mrf.mxu1 }
 0xd7a   : > { %v16059_v30 = vadd.f32 %v16058_v29, %v16057_v59  ;;  %v16067_v33 = vrot.slane %v16066_v26, 2  ;;  %v15734_v39 = vpop.f32.mrf.mxu0  ;;  %v15637_v59 = vadd.f32 %v15636_v49, %v15517_v42  ;;  %v15528_v29 = vadd.f32 %v25459_v44, %v25430_v51 }
 0xd7b   : > { %v15643_v10 = vpop.f32.mrf.mxu1  ;;  %v15735_v56 = vadd.f32 %v15734_v39, %v15635_v23 }
 0xd7c   : > { %v16060_v27 = vrot.slane %v16059_v30, 1  ;;  %v16068_v0 = vadd.f32 %v16067_v33, %v16066_v26  ;;  %v15736_v3 = vpop.f32.mrf.mxu0  ;;  %v15727_v26 = vadd.f32 %v25461_v32, %v15628_v2  ;;  %v15644_v45 = vadd.f32 %v15643_v10, %v15528_v29 }
 0xd7d   : > { %v15822_v28 = vpop.f32.mrf.mxu1  ;;  %v15737_v6 = vadd.f32 %v15736_v3, %v15637_v59 }
 0xd7e   : > { %v16061_v35 = vadd.f32 %v16060_v27, %v16059_v30  ;;  %v16069_v61 = vrot.slane %v16068_v0, 1  ;;  %v15742_v19 = vpop.f32.mrf.mxu0  ;;  %v15823_v49 = vadd.f32 %v15822_v28, %v15727_v26 }
 0xd7f   : > { %v15824_v41 = vpop.f32.mrf.mxu1 }
 0xd80   : > { %v16089_v4 = vmul.f32 0.05, %v16061_v35  ;;  %v16070_v14 = vadd.f32 %v16069_v61, %v16068_v0  ;;  %v15744_v57 = vpop.f32.mrf.mxu0  ;;  %v15729_v0 = vadd.f32 %v25466_v1, %v15630_v62  ;;  %v26620_v62 = vld [vmem:[#allocation57_spill] sm:$0xff] }
 0xd81   : > { %v15831_v8 = vpop.f32.mrf.mxu1 }
 0xd82   : > { %v25468_v12 = vsub.f32 %v16041_v25, %v16089_v4  ;;  %v25470_v55 = vsub.f32 %v16045_v36, %v16089_v4  ;;  %v25472_v18 = vsub.f32 %v16049_v11, %v16089_v4  ;;  %v16090_v47 = vmul.f32 0.05, %v16070_v14  ;;  %v15930_v16 = vpop.f32.mrf.mxu0 }
 0xd83   : > { %v15833_v43 = vpop.f32.mrf.mxu1  ;;  %v15832_v13 = vadd.f32 %v15831_v8, %v15735_v56  ;;  %v15825_v44 = vadd.f32 %v15824_v41, %v15729_v0  ;;  %v15931_v32 = vadd.f32 %v15930_v16, %v15823_v49 }
 0xd84   : > { %v16105_v17 = vmul.f32 %v25468_v12, %v25468_v12  ;;  %v16109_v31 = vmul.f32 %v25470_v55, %v25470_v55  ;;  %v16113_v36 = vmul.f32 %v25472_v18, %v25472_v18  ;;  %v25483_v25 = vsub.f32 %v16042_v37, %v16090_v47  ;;  %v15932_v11 = vpop.f32.mrf.mxu0 }
 0xd85   : > { %v25488_v5 = vsub.f32 %v25443_v53, %v16090_v47  ;;  %v25490_v63 = vsub.f32 %v16050_v15, %v16090_v47  ;;  %v15840_v38 = vpop.f32.mrf.mxu1  ;;  %v15526_v53 = vadd.f32 %v25453_v52, %v25430_v51  ;;  %v15834_v14 = vadd.f32 %v15833_v43, %v15737_v6 }
 0xd86   : > { %v16117_v46 = vadd.f32 %v16109_v31, %v16105_v17  ;;  %v16118_v20 = vsel %vm415_vm0, %v16113_v36, 0.0  ;;  %v16106_v37 = vmul.f32 %v25483_v25, %v25483_v25  ;;  %v15937_v34 = vpop.f32.mrf.mxu0  ;;  %v15745_v51 = vadd.f32 %v15744_v57, %v15644_v45 }
 0xd87   : > { %v16110_v50 = vmul.f32 %v25488_v5, %v25488_v5  ;;  %v16114_v24 = vmul.f32 %v25490_v63, %v25490_v63  ;;  %v15842_v9 = vpop.f32.mrf.mxu1  ;;  %v15642_v52 = vadd.f32 %v15641_v22, %v15526_v53  ;;  %v15938_v47 = vadd.f32 %v15937_v34, %v15832_v13  ;;  %v26619_v53 = vld [vmem:[#allocation66_spill] sm:$0xff] }
 0xd88   : > { %v16119_v15 = vadd.f32 %v16118_v20, %v16117_v46  ;;  %v15939_v60 = vpop.f32.mrf.mxu0  ;;  %v15933_v36 = vadd.f32 %v15932_v11, %v15825_v44  ;;  %v15843_v42 = vadd.f32 %v15842_v9, %v15745_v51 }
 0xd89   : > { %v16126_v54 = vadd.f32 %v16110_v50, %v16106_v37  ;;  %v16127_v21 = vsel %vm415_vm0, %v16114_v24, 0.0  ;;  %v16022_v30 = vpop.f32.mrf.mxu1  ;;  %v15743_v4 = vadd.f32 %v15742_v19, %v15642_v52  ;;  %v15940_v3 = vadd.f32 %v15939_v60, %v15834_v14  ;;  %v26617_v37 = vld [vmem:[#allocation63_spill] sm:$0xff]  ;;  %v26621_v60 = vld [vmem:[#allocation32_spill] sm:$0xff] }
 0xd8a   : > { %v16120_v33 = vrot.slane %v16119_v15, 4  ;;  %v15944_v39 = vpop.f32.mrf.mxu0  ;;  %v16023_v1 = vadd.f32 %v16022_v30, %v15931_v32  ;;  %v26618_v50 = vld [vmem:[#allocation55_spill] sm:$0xff]  ;;  %v26622_v30 = vld [vmem:[#allocation50_spill] sm:$0xff]  ;;  %v16225_v52 = vld [vmem:[%s26211_s3 + $0x128] sm:$0x3] }
 0xd8b   : > { %v16128_v27 = vadd.f32 %v16127_v21, %v16126_v54  ;;  %v16024_v35 = vpop.f32.mrf.mxu1  ;;  %v15841_v22 = vadd.f32 %v15840_v38, %v15743_v4  ;;  %v25522_v4 = vpop.permute.xlu1 %16186 }
 0xd8c   : > { %v16121_v61 = vadd.f32 %v16120_v33, %v16119_v15  ;;  %v15946_v10 = vpop.f32.mrf.mxu0  ;;  %v16025_v20 = vadd.f32 %v16024_v35, %v15933_v36  ;;  %v16043_v24 = vadd.f32 %v16023_v1, %v26618_v50 }
 0xd8d   : > { %v16129_v58 = vrot.slane %v16128_v27, 4  ;;  %v16029_v7 = vpop.f32.mrf.mxu1  ;;  %v15945_v46 = vadd.f32 %v15944_v39, %v15841_v22  ;;  %v15947_v23 = vadd.f32 %v15946_v10, %v15843_v42 }
 0xd8e   : > { %v16122_v17 = vrot.slane %v16121_v61, 2  ;;  %v16030_v8 = vadd.f32 %v16029_v7, %v15938_v47  ;;  %v16044_v54 = vadd.f32 %v16025_v20, %v26621_v60 }
 0xd8f   : > { %v16130_v31 = vadd.f32 %v16129_v58, %v16128_v27  ;;  %v16031_v28 = vpop.f32.mrf.mxu1  ;;  %v25526_v22 = vpop.permute.xlu1 %16210 }
 0xd90   : > { %v16123_v40 = vadd.f32 %v16122_v17, %v16121_v61  ;;  %v16032_v19 = vadd.f32 %v16031_v28, %v15940_v3  ;;  %v16047_v57 = vadd.f32 %v16030_v8, %v26617_v37  ;;  %v16231_v61 = vsel %vm597_vm1, %v16225_v52, 0 }
 0xd91   : > { %v16131_v43 = vrot.slane %v16130_v31, 2  ;;  %v16036_v41 = vpop.f32.mrf.mxu1  ;;  %v25524_v51 = vand.u32 4294901760, %v16231_v61 }
 0xd92   : > { %v16124_v16 = vrot.slane %v16123_v40, 1  ;;  %v16037_v34 = vadd.f32 %v16036_v41, %v15945_v46  ;;  %v16048_v11 = vadd.f32 %v16032_v19, %v26619_v53  ;;  %v16071_v21 = vadd.f32 %v16047_v57, %v16043_v24  ;;  %v25542_v41 = vpop.permute.xlu0 %16182 }
 0xd93   : > { %v16132_v38 = vadd.f32 %v16131_v43, %v16130_v31  ;;  %v16038_v2 = vpop.f32.mrf.mxu1  ;;  %v25529_v3 = vsub.f32 %v16231_v61, %v25524_v51  ;;  %v25534_v42 = vpop.permute.xlu1 %16178 }
 0xd94   : > { %v16125_v15 = vadd.f32 %v16124_v16, %v16123_v40  ;;  %v16051_v59 = vadd.f32 %v16037_v34, %v26620_v62  ;;  %v16039_v9 = vadd.f32 %v16038_v2, %v15947_v23  ;;  %v16080_v13 = vadd.f32 %v16048_v11, %v16044_v54 }
 0xd95   : > { %v16133_v56 = vrot.slane %v16132_v38, 1  ;;  %v25532_v10 = vand.u32 4294901760, %v25529_v3 }
 0xd96   : > { %v16153_v29 = vmul.f32 0.05, %v16125_v15  ;;  %v16072_v26 = vsel %vm415_vm0, %v16051_v59, 0.0  ;;  %v16052_v33 = vadd.f32 %v16039_v9, %v26622_v30  ;;  %v25580_v52 = vpop.permute.xlu0 %16202 }
 0xd97   : > { %v16134_v6 = vadd.f32 %v16133_v56, %v16132_v38  ;;  %v16073_v27 = vadd.f32 %v16072_v26, %v16071_v21  ;;  %v16319_v38 = vsub.f32 %v25529_v3, %v25532_v10 }
 0xd98   : > { %v16157_v0 = vadd.f32 1e-05, %v16153_v29  ;;  %v16081_v45 = vsel %vm415_vm0, %v16052_v33, 0.0  ;;  %v25575_v29 = vpop.permute.xlu1 %16206 }
 0xd99   : > { %v16154_v49 = vmul.f32 0.05, %v16134_v6  ;;  %v16074_v39 = vrot.slane %v16073_v27, 4  ;;  %v16082_v35 = vadd.f32 %v16081_v45, %v16080_v13 }
 0xd9a   : > { %20227 = vrsqrt.f32 %v16157_v0 }
 0xd9b   : > { %v16158_v14 = vadd.f32 1e-05, %v16154_v49  ;;  %v16075_v47 = vadd.f32 %v16074_v39, %v16073_v27  ;;  %v16083_v58 = vrot.slane %v16082_v35, 4 }
 0xd9d   : > { %20229 = vrsqrt.f32 %v16158_v14  ;;  %v16076_v44 = vrot.slane %v16075_v47, 2  ;;  %v16084_v32 = vadd.f32 %v16083_v58, %v16082_v35 }
 0xd9f   : > { %v16077_v7 = vadd.f32 %v16076_v44, %v16075_v47  ;;  %v16085_v17 = vrot.slane %v16084_v32, 2 }
 0xda1   : > { %v16078_v8 = vrot.slane %v16077_v7, 1  ;;  %v16086_v31 = vadd.f32 %v16085_v17, %v16084_v32 }
 0xda3   : > { %v16079_v36 = vadd.f32 %v16078_v8, %v16077_v7  ;;  %v16087_v1 = vrot.slane %v16086_v31, 1 }
 0xda5   : > { %v16091_v28 = vmul.f32 0.05, %v16079_v36  ;;  %v16088_v40 = vadd.f32 %v16087_v1, %v16086_v31 }
 0xda7   : > { %v20228_v46 = vpop.eup %20227  ;;  %v25536_v19 = vsub.f32 %v16043_v24, %v16091_v28  ;;  %v25538_v43 = vsub.f32 %v16047_v57, %v16091_v28  ;;  %v25540_v20 = vsub.f32 %v16051_v59, %v16091_v28  ;;  %v16092_v37 = vmul.f32 0.05, %v16088_v40 }
 0xda8   : > { %v16173_v16 = vmul.f32 %v20228_v46, %v25472_v18  ;;  %v16165_v23 = vmul.f32 %v20228_v46, %v25468_v12  ;;  %v16169_v34 = vmul.f32 %v20228_v46, %v25470_v55 }
 0xda9   : > { %v16107_v50 = vmul.f32 %v25536_v19, %v25536_v19  ;;  %v16111_v57 = vmul.f32 %v25538_v43, %v25538_v43  ;;  %v16115_v24 = vmul.f32 %v25540_v20, %v25540_v20  ;;  %v25555_v53 = vsub.f32 %v16044_v54, %v16092_v37 }
 0xdaa   : > { %v20230_v2 = vpop.eup %20229  ;;  %v25557_v18 = vsub.f32 %v16048_v11, %v16092_v37  ;;  %v25559_v12 = vsub.f32 %v16052_v33, %v16092_v37  ;;  %v16197_v55 = vmul.f32 %v25522_v4, %v16173_v16  ;;  %v16189_v15 = vmul.f32 %v25534_v42, %v16165_v23 }
 0xdab   : > { %v16174_v62 = vmul.f32 %v20230_v2, %v25490_v63  ;;  %v16135_v59 = vadd.f32 %v16111_v57, %v16107_v50  ;;  %v16136_v9 = vsel %vm415_vm0, %v16115_v24, 0.0  ;;  %v16108_v56 = vmul.f32 %v25555_v53, %v25555_v53 }
 0xdac   : > { %v16112_v60 = vmul.f32 %v25557_v18, %v25557_v18  ;;  %v16116_v11 = vmul.f32 %v25559_v12, %v25559_v12  ;;  %v25572_v54 = vadd.f32 %v25526_v22, %v16197_v55  ;;  %v16166_v21 = vmul.f32 %v20230_v2, %v25483_v25 }
 0xdad   : > { %v16137_v63 = vadd.f32 %v16136_v9, %v16135_v59  ;;  %v16198_v26 = vmul.f32 %v25522_v4, %v16174_v62  ;;  %v16170_v30 = vmul.f32 %v20230_v2, %v25488_v5  ;;  %v16193_v33 = vmul.f32 %v25542_v41, %v16169_v34 }
 0xdae   : > { %v16144_v6 = vadd.f32 %v16112_v60, %v16108_v56  ;;  %v16145_v13 = vsel %vm415_vm0, %v16116_v11, 0.0  ;;  %v16234_v27 = vsel %vm415_vm0, %v25572_v54, 0  ;;  %v16190_v0 = vmul.f32 %v25534_v42, %v16166_v21 }
 0xdaf   : > { %v16138_v25 = vrot.slane %v16137_v63, 4  ;;  %v25587_v45 = vadd.f32 %v25526_v22, %v16198_v26  ;;  %v16194_v49 = vmul.f32 %v25542_v41, %v16170_v30  ;;  %v25591_v5 = vadd.f32 %v25575_v29, %v16193_v33 }
 0xdb0   : > { %v16146_v39 = vadd.f32 %v16145_v13, %v16144_v6  ;;  %v25594_v35 = vadd.f32 %v25580_v52, %v16189_v15  ;;  %v25597_v61 = vadd.f32 %v25580_v52, %v16190_v0  ;;  %v25599_v14 = vand.u32 4294901760, %v16234_v27 }
 0xdb1   : > { %v16139_v47 = vadd.f32 %v16138_v25, %v16137_v63  ;;  %v16237_v58 = vsel %vm415_vm0, %v25587_v45, 0  ;;  %v25604_v44 = vadd.f32 %v25575_v29, %v16194_v49  ;;  %v25607_v32 = vand.u32 4294901760, %v25591_v5 }
 0xdb2   : > { %26623 = vst [vmem:[#allocation40_spill] sm:$0xff] %v25594_v35  ;;  %v16147_v7 = vrot.slane %v16146_v39, 4  ;;  %v25609_v17 = vand.u32 4294901760, %v16237_v58  ;;  %v25612_v8 = vand.u32 4294901760, %v25597_v61  ;;  %v25615_v31 = vand.u32 4294901760, %v25594_v35 }
 0xdb3   : > { %v16140_v36 = vrot.slane %v16139_v47, 2  ;;  %v25618_v1 = vand.u32 4294901760, %v25604_v44  ;;  %v16360_v28 = vsub.f32 %v16234_v27, %v25599_v14  ;;  %v25623_v40 = vsub.f32 %v25591_v5, %v25607_v32 }
 0xdb4   : > { %v16148_v46 = vadd.f32 %v16147_v7, %v16146_v39  ;;  %16272 = vmatprep.subr.mxu0 %v25609_v17  ;;  %v16354_v37 = vsub.f32 %v16237_v58, %v25609_v17  ;;  %v25629_v16 = vsub.f32 %v25597_v61, %v25612_v8  ;;  %v25633_v23 = vsub.f32 %v25594_v35, %v25615_v31 }
 0xdb5   : > { %v16141_v34 = vadd.f32 %v16140_v36, %v16139_v47  ;;  %16274 = vmatpush1.msra.mxu0 %v25599_v14  ;;  %v16366_v50 = vsub.f32 %v25604_v44, %v25618_v1  ;;  %v16361_v57 = vand.u32 4294901760, %v16360_v28  ;;  %v16373_v24 = vand.u32 4294901760, %v25623_v40 }
 0xdb6   : > { %v16149_v2 = vrot.slane %v16148_v46, 2  ;;  %16276 = vmatprep.subr.mxu0 %v25618_v1  ;;  %v25640_v55 = vand.u32 4294901760, %v16319_v38  ;;  %v16355_v15 = vand.u32 4294901760, %v16354_v37  ;;  %v16379_v62 = vand.u32 4294901760, %v25629_v16 }
 0xdb7   : > { %v16142_v59 = vrot.slane %v16141_v34, 1  ;;  %16278 = vmatpush1.msra.mxu0 %v25607_v32  ;;  %v16362_v9 = vsub.f32 %v16360_v28, %v16361_v57  ;;  %v16367_v56 = vand.u32 4294901760, %v16366_v50  ;;  %v16385_v60 = vand.u32 4294901760, %v25633_v23 }
 0xdb8   : > { %v16150_v11 = vadd.f32 %v16149_v2, %v16148_v46  ;;  %16280 = vmatprep.subr.mxu0 %v25612_v8  ;;  %v16356_v21 = vsub.f32 %v16354_v37, %v16355_v15  ;;  %v16374_v38 = vsub.f32 %v25623_v40, %v16373_v24  ;;  %v16380_v6 = vsub.f32 %v25629_v16, %v16379_v62 }
 0xdb9   : > { %v16143_v63 = vadd.f32 %v16142_v59, %v16141_v34  ;;  %16282 = vmatpush1.msra.mxu0 %v25615_v31  ;;  %v16368_v26 = vsub.f32 %v16366_v50, %v16367_v56  ;;  %v16363_v27 = vand.u32 4294901760, %v16362_v9  ;;  %v16386_v0 = vsub.f32 %v25633_v23, %v16385_v60 }
 0xdba   : > { %v16151_v30 = vrot.slane %v16150_v11, 1  ;;  %16457 = vmatprep.subr.mxu0 %v16354_v37  ;;  %16321 = vmatmul.mubr.f32.vlgmr.msra.gmra.mxu0 %v25640_v55  ;;  %v16357_v33 = vand.u32 4294901760, %v16356_v21  ;;  %v16375_v47 = vand.u32 4294901760, %v16374_v38  ;;  %v16381_v7 = vand.u32 4294901760, %v16380_v6 }
 0xdbb   : > { %v16155_v13 = vmul.f32 0.05, %v16143_v63  ;;  %16460 = vmatpush1.msra.mxu0 %v16360_v28  ;;  %16505 = vmatprep.mubr.f32.mxu0 %v26610_v48  ;;  %v16369_v49 = vand.u32 4294901760, %v16368_v26  ;;  %v16387_v36 = vand.u32 4294901760, %v16386_v0 }
 0xdbc   : > { %v16152_v25 = vadd.f32 %v16151_v30, %v16150_v11  ;;  %16358 = vmatprep.subr.mxu1 %v16357_v33  ;;  %16463 = vmatprep.subr.mxu0 %v16366_v50 }
 0xdbd   : > { %v16159_v39 = vadd.f32 1e-05, %v16155_v13  ;;  %16364 = vmatpush1.msra.mxu1 %v16363_v27  ;;  %16466 = vmatpush1.msra.mxu0 %v25623_v40 }
 0xdbe   : > { %v16156_v58 = vmul.f32 0.05, %v16152_v25  ;;  %16370 = vmatprep.subr.mxu1 %v16369_v49  ;;  %16469 = vmatprep.subr.mxu0 %v25629_v16 }
 0xdbf   : > { %20231 = vrsqrt.f32 %v16159_v39  ;;  %16376 = vmatpush1.msra.mxu1 %v16375_v47  ;;  %16472 = vmatpush1.msra.mxu0 %v25633_v23 }
 0xdc0   : > { %v16160_v28 = vadd.f32 1e-05, %v16156_v58  ;;  %16382 = vmatprep.subr.mxu1 %v16381_v7  ;;  %16623 = vmatprep.subr.mxu0 %v16355_v15 }
 0xdc1   : > { %16388 = vmatpush1.msra.mxu1 %v16387_v36  ;;  %16508 = vmatmul.mubr.f32.vlgmr.msra.gmra.mxu0 %v25529_v3 }
 0xdc2   : > { %20233 = vrsqrt.f32 %v16160_v28  ;;  %16627 = vmatpush1.msra.mxu0 %v16361_v57  ;;  %16541 = vmatprep.subr.mxu1 %v25609_v17 }
 0xdc3   : > { %16631 = vmatprep.subr.mxu0 %v16367_v56  ;;  %16423 = vmatmul.mubr.f32.vlgmr.msra.gmra.mxu1 %v25524_v51 }
 0xdc4   : > { %16543 = vmatpush1.msra.mxu1 %v25599_v14  ;;  %16635 = vmatpush1.msra.mxu0 %v16373_v24 }
 0xdc5   : > { %16545 = vmatprep.subr.mxu1 %v25618_v1  ;;  %16639 = vmatprep.subr.mxu0 %v16379_v62 }
 0xdc6   : > { %16547 = vmatpush1.msra.mxu1 %v25607_v32  ;;  %16643 = vmatpush1.msra.mxu0 %v16385_v60 }
 0xdc7   : > { %16549 = vmatprep.subr.mxu1 %v25612_v8  ;;  %16584 = vmatprep.mubr.f32.mxu1 %v26610_v48 }
 0xdc8   : > { %16551 = vmatpush1.msra.mxu1 %v25615_v31  ;;  %16676 = vmatprep.mubr.f32.mxu0 %v26610_v48 }
 0xdc9   : > { %16711 = vmatprep.subr.mxu1 %v25609_v17  ;;  %16588 = vmatmul.mubr.f32.vlgmr.msra.gmra.mxu1 %v25532_v10 }
 0xdca   : > { %16713 = vmatpush1.msra.mxu1 %v25599_v14  ;;  %16678 = vmatmul.mubr.f32.vlgmr.msra.gmra.mxu0 %v25524_v51 }
 0xdcb   : > { %16715 = vmatprep.subr.mxu1 %v25618_v1  ;;  %16754 = vmatprep.mubr.f32.mxu1 %v26610_v48 }
 0xdcc   : > { %v20232_v40 = vpop.eup %20231  ;;  %16717 = vmatpush1.msra.mxu1 %v25607_v32  ;;  %16832 = vmatprep.mubr.f32.mxu0 %v26610_v48 }
 0xdcd   : > { %v16175_v46 = vmul.f32 %v20232_v40, %v25540_v20  ;;  %v16167_v37 = vmul.f32 %v20232_v40, %v25536_v19  ;;  %v16171_v17 = vmul.f32 %v20232_v40, %v25538_v43  ;;  %16719 = vmatprep.subr.mxu1 %v25612_v8 }
 0xdce   : > { %16721 = vmatpush1.msra.mxu1 %v25615_v31 }
 0xdcf   : > { %v20234_v14 = vpop.eup %20233  ;;  %v16199_v1 = vmul.f32 %v25522_v4, %v16175_v46  ;;  %v16191_v16 = vmul.f32 %v25534_v42, %v16167_v37  ;;  %v16195_v23 = vmul.f32 %v25542_v41, %v16171_v17  ;;  %16756 = vmatmul.mubr.f32.vlgmr.msra.gmra.mxu1 %v25524_v51 }
 0xdd0   : > { %v16176_v32 = vmul.f32 %v20234_v14, %v25559_v12  ;;  %v16168_v20 = vmul.f32 %v20234_v14, %v25555_v53  ;;  %v16172_v19 = vmul.f32 %v20234_v14, %v25557_v18  ;;  %16938 = vmatprep.mubr.f32.mxu1 %v26610_v48 }
 0xdd1   : > { %v25687_v43 = vadd.f32 %v25526_v22, %v16199_v1  ;;  %v25690_v8 = vadd.f32 %v25575_v29, %v16195_v23  ;;  %v25693_v31 = vadd.f32 %v25580_v52, %v16191_v16 }
 0xdd2   : > { %v16200_v34 = vmul.f32 %v25522_v4, %v16176_v32  ;;  %v16192_v50 = vmul.f32 %v25534_v42, %v16168_v20  ;;  %v16196_v12 = vmul.f32 %v25542_v41, %v16172_v19 }
 0xdd3   : > { %v16240_v53 = vsel %vm415_vm0, %v25687_v43, 0  ;;  %v25701_v18 = vand.u32 4294901760, %v25690_v8  ;;  %v25704_v57 = vand.u32 4294901760, %v25693_v31 }
 0xdd4   : > { %v25707_v24 = vadd.f32 %v25526_v22, %v16200_v34  ;;  %v25710_v2 = vadd.f32 %v25575_v29, %v16196_v12  ;;  %v25713_v4 = vadd.f32 %v25580_v52, %v16192_v50  ;;  %v25715_v42 = vand.u32 4294901760, %v16240_v53 }
 0xdd5   : > { %v16889_v41 = vsub.f32 %v25690_v8, %v25701_v18  ;;  %v16901_v60 = vsub.f32 %v25693_v31, %v25704_v57 }
 0xdd6   : > { %v16243_v15 = vsel %vm415_vm0, %v25707_v24, 0  ;;  %v25722_v62 = vand.u32 4294901760, %v25710_v2  ;;  %v25725_v22 = vand.u32 4294901760, %v25713_v4  ;;  %v16877_v29 = vsub.f32 %v16240_v53, %v25715_v42 }
 0xdd7   : > { %v16788_v59 = vand.u32 4294901760, %v16243_v15  ;;  %v16890_v63 = vand.u32 4294901760, %v16889_v41  ;;  %v16902_v33 = vand.u32 4294901760, %v16901_v60 }
 0xdd8   : > { %v16883_v52 = vsub.f32 %v25710_v2, %v25722_v62  ;;  %v16878_v9 = vand.u32 4294901760, %v16877_v29  ;;  %v16895_v56 = vsub.f32 %v25713_v4, %v25725_v22 }
 0xdd9   : > { %16789 = vmatprep.subr.mxu0 %v16788_v59  ;;  %v16871_v11 = vsub.f32 %v16243_v15, %v16788_v59  ;;  %v16891_v27 = vsub.f32 %v16889_v41, %v16890_v63  ;;  %v16903_v39 = vsub.f32 %v16901_v60, %v16902_v33 }
 0xdda   : > { %16791 = vmatpush1.msra.mxu0 %v25715_v42  ;;  %v16884_v21 = vand.u32 4294901760, %v16883_v52  ;;  %v16896_v38 = vand.u32 4294901760, %v16895_v56  ;;  %v16879_v30 = vsub.f32 %v16877_v29, %v16878_v9 }
 0xddb   : > { %16793 = vmatprep.subr.mxu0 %v25722_v62  ;;  %v16872_v26 = vand.u32 4294901760, %v16871_v11  ;;  %v16892_v58 = vand.u32 4294901760, %v16891_v27  ;;  %v20352_v27 = vmov 26  }
 0xddc   : > { %16795 = vmatpush1.msra.mxu0 %v25701_v18  ;;  %v16885_v13 = vsub.f32 %v16883_v52, %v16884_v21  ;;  %v16897_v25 = vsub.f32 %v16895_v56, %v16896_v38  ;;  %v16880_v49 = vand.u32 4294901760, %v16879_v30  ;;  %20135 = vset.pattern.permute.xlu1 %v20352_v27 }
 0xddd   : > { %16797 = vmatprep.subr.mxu0 %v25725_v22  ;;  %v16873_v6 = vsub.f32 %v16871_v11, %v16872_v26  ;;  %20136 = vset.pattern.permute.xlu0 %v20352_v27  ;;  %v19777_v27 = vld [vmem:[%s26212_s4 + $0x18] sm:$0xff] }
 0xdde   : > { %16799 = vmatpush1.msra.mxu0 %v25704_v57  ;;  %v16886_v47 = vand.u32 4294901760, %v16885_v13  ;;  %v16898_v7 = vand.u32 4294901760, %v16897_v25  ;;  %v20262_v25 = vld [vmem:[%s26213_s5 + $0x10] sm:$0xf] }
 0xddf   : > { %16838 = vmatmul.mubr.f32.vlgmr.msra.gmra.mxu0 %v25640_v55  ;;  %16974 = vmatprep.subr.mxu0 %v16871_v11  ;;  %v16874_v0 = vand.u32 4294901760, %v16873_v6  ;;  %v16904_v55 = vand.u32 4294901760, %v16903_v39 }
 0xde0   : > { %16977 = vmatpush1.msra.mxu0 %v16877_v29  ;;  %17022 = vmatprep.mubr.f32.mxu0 %v26610_v48 }
 0xde1   : > { %16875 = vmatprep.subr.mxu1 %v16874_v0  ;;  %16980 = vmatprep.subr.mxu0 %v16883_v52 }
 0xde2   : > { %16881 = vmatpush1.msra.mxu1 %v16880_v49  ;;  %16983 = vmatpush1.msra.mxu0 %v16889_v41  ;;  %v20263_v49 = vld [vmem:[%s26213_s5] sm:$0xff] }
 0xde3   : > { %16887 = vmatprep.subr.mxu1 %v16886_v47  ;;  %16986 = vmatprep.subr.mxu0 %v16895_v56 }
 0xde4   : > { %16893 = vmatpush1.msra.mxu1 %v16892_v58  ;;  %16989 = vmatpush1.msra.mxu0 %v16901_v60 }
 0xde5   : > { %16899 = vmatprep.subr.mxu1 %v16898_v7  ;;  %17140 = vmatprep.subr.mxu0 %v16872_v26 }
 0xde6   : > { %16905 = vmatpush1.msra.mxu1 %v16904_v55  ;;  %17025 = vmatmul.mubr.f32.vlgmr.msra.gmra.mxu0 %v25529_v3 }
 0xde7   : > { %17144 = vmatpush1.msra.mxu0 %v16878_v9  ;;  %16940 = vmatmul.mubr.f32.vlgmr.msra.gmra.mxu1 %v25524_v51 }
 0xde8   : > { %17058 = vmatprep.subr.mxu1 %v16788_v59  ;;  %17148 = vmatprep.subr.mxu0 %v16884_v21 }
 0xde9   : > { %17060 = vmatpush1.msra.mxu1 %v25715_v42  ;;  %17152 = vmatpush1.msra.mxu0 %v16890_v63 }
 0xdea   : > { %17062 = vmatprep.subr.mxu1 %v25722_v62  ;;  %17156 = vmatprep.subr.mxu0 %v16896_v38 }
 0xdeb   : > { %17064 = vmatpush1.msra.mxu1 %v25701_v18  ;;  %17160 = vmatpush1.msra.mxu0 %v16902_v33 }
 0xdec   : > { %17066 = vmatprep.subr.mxu1 %v25725_v22  ;;  %17101 = vmatprep.mubr.f32.mxu1 %v26610_v48 }
 0xded   : > { %17068 = vmatpush1.msra.mxu1 %v25704_v57  ;;  %17193 = vmatprep.mubr.f32.mxu0 %v26610_v48 }
 0xdee   : > { %17105 = vmatmul.mubr.f32.vlgmr.msra.gmra.mxu1 %v25532_v10  ;;  %17228 = vmatprep.subr.mxu1 %v16788_v59  ;;  %v25761_v10 = vpop.permute.xlu1 %16227 }
 0xdef   : > { %17230 = vmatpush1.msra.mxu1 %v25715_v42  ;;  %17195 = vmatmul.mubr.f32.vlgmr.msra.gmra.mxu0 %v25524_v51 }
 0xdf0   : > { %17232 = vmatprep.subr.mxu1 %v25722_v62  ;;  %17271 = vmatprep.mubr.f32.mxu1 %v26610_v48 }
 0xdf1   : > { %17234 = vmatpush1.msra.mxu1 %v25701_v18  ;;  %17486 = vmatprep.mubr.f32.mxu0 %v26610_v48 }
 0xdf2   : > { %17236 = vmatprep.subr.mxu1 %v25725_v22  ;;  %17396 = vperm.xlu1 %20135, %v20262_v25  }
 0xdf3   : > { %17238 = vmatpush1.msra.mxu1 %v25704_v57  ;;  %17388 = vperm.xlu0 %20136, %v20263_v49  }
 0xdf4   : > { %17273 = vmatmul.mubr.f32.vlgmr.msra.gmra.mxu1 %v25524_v51 }
 0xdf5   : > { %17594 = vmatprep.mubr.f32.mxu1 %v26610_v48 }
 0xe7a   : > { %v16322_v3 = vpop.f32.mrf.mxu0 }
 0xe7b   : > { %v16323_v28 = vadd.f32 %v16322_v3, %v25761_v10  ;;  %v20264_v3 = vld [vmem:[%s26213_s5 + $0x8] sm:$0xff] }
 0xe7c   : > { %v16324_v36 = vpop.f32.mrf.mxu0  ;;  %17392 = vperm.xlu1 %20135, %v20264_v3   ;;  %v19778_v3 = vld [vmem:[%s26212_s4 + $0x20] sm:$0xff] }
 0xe7d   : > { %v16325_v40 = vadd.f32 %v16324_v36, %v25761_v10 }
 0xe81   : > { %v16509_v37 = vpop.f32.mrf.mxu0 }
 0xe83   : > { %v16424_v46 = vpop.f32.mrf.mxu1  ;;  %v16511_v23 = vpop.f32.mrf.mxu0 }
 0xe84   : > { %v16425_v17 = vadd.f32 %v16424_v46, %v16323_v28 }
 0xe85   : > { %v16426_v14 = vpop.f32.mrf.mxu1 }
 0xe86   : > { %v16427_v1 = vadd.f32 %v16426_v14, %v16325_v40  ;;  %v16510_v16 = vadd.f32 %v16509_v37, %v16425_v17 }
 0xe88   : > { %v16512_v20 = vadd.f32 %v16511_v23, %v16427_v1 }
 0xe89   : > { %v16589_v32 = vpop.f32.mrf.mxu1 }
 0xe8a   : > { %v16590_v51 = vadd.f32 %v16589_v32, %v16510_v16  ;;  %v16679_v19 = vpop.f32.mrf.mxu0 }
 0xe8b   : > { %v16591_v34 = vpop.f32.mrf.mxu1 }
 0xe8c   : > { %v16592_v50 = vadd.f32 %v16591_v34, %v16512_v20  ;;  %v16681_v12 = vpop.f32.mrf.mxu0  ;;  %v16680_v53 = vadd.f32 %v16679_v19, %v16590_v51 }
 0xe8e   : > { %v16682_v57 = vadd.f32 %v16681_v12, %v16592_v50 }
 0xe8f   : > { %v16757_v18 = vpop.f32.mrf.mxu1 }
 0xe90   : > { %v16758_v42 = vadd.f32 %v16757_v18, %v16680_v53 }
 0xe91   : > { %v16759_v41 = vpop.f32.mrf.mxu1 }
 0xe92   : > { %v17279_v15 = vmax.f32 %v16758_v42, 0.0  ;;  %v16760_v62 = vadd.f32 %v16759_v41, %v16682_v57 }
 0xe94   : > { %v17283_v22 = vsel %vm11240_vm4, %v17279_v15, 0.0  ;;  %v17280_v29 = vmax.f32 %v16760_v62, 0.0 }
 0xe95   : > { %v17284_v59 = vrot.slane %v17283_v22, 4 }
 0xe96   : > { %v17290_v52 = vsel %vm11240_vm4, %v17280_v29, 0.0 }
 0xe97   : > { %v17285_v9 = vadd.f32 %v17284_v59, %v17283_v22  ;;  %v17291_v56 = vrot.slane %v17290_v52, 4 }
 0xe99   : > { %v17286_v60 = vrot.slane %v17285_v9, 2  ;;  %v17292_v11 = vadd.f32 %v17291_v56, %v17290_v52 }
 0xe9b   : > { %v17287_v21 = vadd.f32 %v17286_v60, %v17285_v9  ;;  %v17293_v63 = vrot.slane %v17292_v11, 2 }
 0xe9d   : > { %v17288_v26 = vrot.slane %v17287_v21, 1  ;;  %v17294_v38 = vadd.f32 %v17293_v63, %v17292_v11 }
 0xe9f   : > { %v17289_v30 = vadd.f32 %v17288_v26, %v17287_v21  ;;  %v17295_v33 = vrot.slane %v17294_v38, 1  ;;  %v16839_v0 = vpop.f32.mrf.mxu0 }
 0xea0   : > { %v16840_v40 = vadd.f32 %v16839_v0, %v25761_v10 }
 0xea1   : > { %v17311_v6 = vmul.f32 0.5, %v17289_v30  ;;  %v17296_v13 = vadd.f32 %v17295_v33, %v17294_v38  ;;  %v16841_v55 = vpop.f32.mrf.mxu0 }
 0xea2   : > { %v16842_v1 = vadd.f32 %v16841_v55, %v25761_v10 }
 0xea3   : > { %v25773_v39 = vsub.f32 %v17279_v15, %v17311_v6  ;;  %v17312_v47 = vmul.f32 0.5, %v17296_v13 }
 0xea5   : > { %v17319_v58 = vmul.f32 %v25773_v39, %v25773_v39  ;;  %v25777_v7 = vsub.f32 %v17280_v29, %v17312_v47 }
 0xea6   : > { %v17026_v17 = vpop.f32.mrf.mxu0 }
 0xea7   : > { %v17323_v36 = vsel %vm11240_vm4, %v17319_v58, 0.0  ;;  %v17320_v28 = vmul.f32 %v25777_v7, %v25777_v7  ;;  %v16941_v46 = vpop.f32.mrf.mxu1  ;;  %v17400_v58 = vsel %vm11361_vm5, %v19777_v27, 0 }
 0xea8   : > { %v17324_v37 = vrot.slane %v17323_v36, 4  ;;  %v16942_v16 = vadd.f32 %v16941_v46, %v16840_v40  ;;  %v17028_v50 = vpop.f32.mrf.mxu0  ;;  %v25797_v40 = vand.u32 4294901760, %v17400_v58 }
 0xea9   : > { %v17330_v14 = vsel %vm11240_vm4, %v17320_v28, 0.0  ;;  %v16943_v23 = vpop.f32.mrf.mxu1 }
 0xeaa   : > { %v17325_v32 = vadd.f32 %v17324_v37, %v17323_v36  ;;  %v17331_v20 = vrot.slane %v17330_v14, 4  ;;  %v16944_v51 = vadd.f32 %v16943_v23, %v16842_v1  ;;  %v17027_v12 = vadd.f32 %v17026_v17, %v16942_v16 }
 0xeab   : > { %v17403_v17 = vsel %vm11361_vm5, %v19778_v3, 0  ;;  %v25804_v23 = vsub.f32 %v17400_v58, %v25797_v40 }
 0xeac   : > { %v17326_v19 = vrot.slane %v17325_v32, 2  ;;  %v17332_v34 = vadd.f32 %v17331_v20, %v17330_v14  ;;  %v17029_v42 = vadd.f32 %v17028_v50, %v16944_v51  ;;  %v19779_v14 = vld [vmem:[%s26212_s4 + $0x28] sm:$0xf] }
 0xeae   : > { %v17327_v53 = vadd.f32 %v17326_v19, %v17325_v32  ;;  %v17333_v18 = vrot.slane %v17332_v34, 2  ;;  %v17106_v57 = vpop.f32.mrf.mxu1  ;;  %v25806_v32 = vand.u32 4294901760, %v17403_v17  ;;  %v17406_v19 = vsel %vm11361_vm5, %v19779_v14, 0 }
 0xeaf   : > { %v17107_v41 = vadd.f32 %v17106_v57, %v17027_v12  ;;  %v17196_v15 = vpop.f32.mrf.mxu0 }
 0xeb0   : > { %v17328_v62 = vrot.slane %v17327_v53, 1  ;;  %v17334_v22 = vadd.f32 %v17333_v18, %v17332_v34  ;;  %v17108_v29 = vpop.f32.mrf.mxu1  ;;  %v25812_v18 = vand.u32 4294901760, %v25804_v23  ;;  %v25815_v57 = vsub.f32 %v17403_v17, %v25806_v32 }
 0xeb1   : > { %v17109_v59 = vadd.f32 %v17108_v29, %v17029_v42  ;;  %v17198_v9 = vpop.f32.mrf.mxu0  ;;  %v17197_v56 = vadd.f32 %v17196_v15, %v17107_v41  ;;  %v25817_v42 = vand.u32 4294901760, %v17406_v19  ;;  %v25820_v29 = vpop.permute.xlu0 %17376 }
 0xeb2   : > { %v17329_v10 = vadd.f32 %v17328_v62, %v17327_v53  ;;  %v17335_v52 = vrot.slane %v17334_v22, 1  ;;  %v25809_v53 = vpop.permute.xlu1 %17368 }
 0xeb3   : > { %v17199_v63 = vadd.f32 %v17198_v9, %v17109_v59 }
 0xeb4   : > { %v17351_v60 = vmul.f32 0.5, %v17329_v10  ;;  %v17336_v11 = vadd.f32 %v17335_v52, %v17334_v22  ;;  %v17274_v21 = vpop.f32.mrf.mxu1 }
 0xeb5   : > { %v17275_v26 = vadd.f32 %v17274_v21, %v17197_v56  ;;  %v17490_v56 = vsub.f32 %v25804_v23, %v25812_v18 }
 0xeb6   : > { %v17355_v38 = vadd.f32 1e-05, %v17351_v60  ;;  %v17352_v30 = vmul.f32 0.5, %v17336_v11  ;;  %v17276_v33 = vpop.f32.mrf.mxu1  ;;  %v25829_v60 = vand.u32 4294901760, %v25815_v57 }
 0xeb7   : > { %v17281_v6 = vmax.f32 %v17275_v26, 0.0  ;;  %v17277_v13 = vadd.f32 %v17276_v33, %v17199_v63  ;;  %v25847_v27 = vand.u32 4294901760, %v17490_v56 }
 0xeb8   : > { %20235 = vrsqrt.f32 %v17355_v38  ;;  %v17356_v0 = vadd.f32 1e-05, %v17352_v30 }
 0xeb9   : > { %v17297_v25 = vsel %vm11240_vm4, %v17281_v6, 0.0  ;;  %v17282_v49 = vmax.f32 %v17277_v13, 0.0 }
 0xeba   : > { %20237 = vrsqrt.f32 %v17356_v0  ;;  %v17298_v47 = vrot.slane %v17297_v25, 4 }
 0xebb   : > { %v17304_v55 = vsel %vm11240_vm4, %v17282_v49, 0.0 }
 0xebc   : > { %v17299_v36 = vadd.f32 %v17298_v47, %v17297_v25  ;;  %v17305_v28 = vrot.slane %v17304_v55, 4 }
 0xebe   : > { %v17300_v46 = vrot.slane %v17299_v36, 2  ;;  %v17306_v37 = vadd.f32 %v17305_v28, %v17304_v55 }
 0xec0   : > { %v17301_v1 = vadd.f32 %v17300_v46, %v17299_v36  ;;  %v17307_v16 = vrot.slane %v17306_v37, 2 }
 0xec2   : > { %v17302_v20 = vrot.slane %v17301_v1, 1  ;;  %v17308_v51 = vadd.f32 %v17307_v16, %v17306_v37 }
 0xec4   : > { %v17303_v34 = vadd.f32 %v17302_v20, %v17301_v1  ;;  %v17309_v50 = vrot.slane %v17308_v51, 1 }
 0xec5   : > { %v20236_v12 = vpop.eup %20235 }
 0xec6   : > { %v17363_v41 = vmul.f32 %v20236_v12, %v25773_v39  ;;  %v17313_v15 = vmul.f32 0.5, %v17303_v34  ;;  %v17310_v62 = vadd.f32 %v17309_v50, %v17308_v51  ;;  %v25832_v39 = vsub.f32 %v17406_v19, %v25817_v42 }
 0xec7   : > { %v20238_v22 = vpop.eup %20237 }
 0xec8   : > { %v17364_v59 = vmul.f32 %v20238_v22, %v25777_v7  ;;  %v25823_v10 = vsub.f32 %v17281_v6, %v17313_v15  ;;  %v17314_v52 = vmul.f32 0.5, %v17310_v62  ;;  %v17371_v9 = vmul.f32 %v25809_v53, %v17363_v41 }
 0xec9   : > { %v25854_v47 = vand.u32 4294901760, %v25832_v39 }
 0xeca   : > { %v17321_v11 = vmul.f32 %v25823_v10, %v25823_v10  ;;  %v25836_v21 = vsub.f32 %v17282_v49, %v17314_v52  ;;  %v17372_v7 = vmul.f32 %v25809_v53, %v17364_v59  ;;  %v17379_v63 = vadd.f32 %v25820_v29, %v17371_v9 }
 0xecb   : > { %v17501_v49 = vsub.f32 %v25815_v57, %v25829_v60  ;;  %v17512_v51 = vsub.f32 %v25832_v39, %v25854_v47 }
 0xecc   : > { %v17337_v26 = vsel %vm11240_vm4, %v17321_v11, 0.0  ;;  %v17322_v38 = vmul.f32 %v25836_v21, %v25836_v21  ;;  %v17380_v30 = vadd.f32 %v25820_v29, %v17372_v7  ;;  %v17409_v33 = vsel %vm11240_vm4, %v17379_v63, 0 }
 0xecd   : > { %v17338_v6 = vrot.slane %v17337_v26, 4  ;;  %v25845_v13 = vand.u32 4294901760, %v17409_v33  ;;  %v25858_v14 = vand.u32 4294901760, %v17501_v49  ;;  %v25865_v22 = vand.u32 4294901760, %v17512_v51 }
 0xece   : > { %v17344_v0 = vsel %vm11240_vm4, %v17322_v38, 0.0  ;;  %v17412_v25 = vsel %vm11240_vm4, %v17380_v30, 0 }
 0xecf   : > { %v17339_v58 = vadd.f32 %v17338_v6, %v17337_v26  ;;  %v17345_v55 = vrot.slane %v17344_v0, 4  ;;  %v17450_v3 = vand.u32 4294901760, %v17412_v25  ;;  %v17557_v36 = vsub.f32 %v17409_v33, %v25845_v13 }
 0xed1   : > { %v17340_v28 = vrot.slane %v17339_v58, 2  ;;  %v17346_v46 = vadd.f32 %v17345_v55, %v17344_v0  ;;  %17451 = vmatprep.subr.mxu0 %v17450_v3  ;;  %v17551_v37 = vsub.f32 %v17412_v25, %v17450_v3  ;;  %v17558_v17 = vand.u32 4294901760, %v17557_v36 }
 0xed2   : > { %17453 = vmatpush1.msra.mxu0 %v25845_v13 }
 0xed3   : > { %v17341_v1 = vadd.f32 %v17340_v28, %v17339_v58  ;;  %v17347_v16 = vrot.slane %v17346_v46, 2  ;;  %17492 = vmatmul.mubr.f32.vlgmr.msra.gmra.mxu0 %v25847_v27  ;;  %17648 = vmatprep.subr.mxu0 %v17551_v37  ;;  %v17552_v20 = vand.u32 4294901760, %v17551_v37  ;;  %v17559_v19 = vsub.f32 %v17557_v36, %v17558_v17 }
 0xed4   : > { %17651 = vmatpush1.msra.mxu0 %v17557_v36  ;;  %17497 = vmatprep.mubr.f32.mxu0 %v26610_v48 }
 0xed5   : > { %v17342_v34 = vrot.slane %v17341_v1, 1  ;;  %v17348_v50 = vadd.f32 %v17347_v16, %v17346_v46  ;;  %17836 = vmatprep.subr.mxu0 %v17552_v20  ;;  %v17553_v12 = vsub.f32 %v17551_v37, %v17552_v20  ;;  %v17560_v59 = vand.u32 4294901760, %v17559_v19 }
 0xed7   : > { %v17343_v41 = vadd.f32 %v17342_v34, %v17341_v1  ;;  %v17349_v15 = vrot.slane %v17348_v50, 1  ;;  %17503 = vmatmul.mubr.f32.gmra.mxu0 %v25858_v14  ;;  %v17554_v62 = vand.u32 4294901760, %v17553_v12 }
 0xed8   : > { %17508 = vmatprep.mubr.f32.mxu0 %v26610_v48 }
 0xed9   : > { %v17353_v52 = vmul.f32 0.5, %v17343_v41  ;;  %v17350_v9 = vadd.f32 %v17349_v15, %v17348_v50  ;;  %17555 = vmatprep.subr.mxu1 %v17554_v62  ;;  %v20353_v15 = vmov 27  }
 0xeda   : > { %17561 = vmatpush1.msra.mxu1 %v17560_v59  ;;  %20137 = vset.pattern.permute.xlu1 %v20353_v15  ;;  %v20265_v59 = vld [vmem:[%s26213_s5] sm:$0x3] }
 0xedb   : > { %v17357_v56 = vadd.f32 1e-05, %v17353_v52  ;;  %v17354_v11 = vmul.f32 0.5, %v17350_v9  ;;  %17514 = vmatmul.mubr.f32.gmra.mxu0 %v25865_v22  ;;  %17596 = vmatmul.mubr.f32.vlgmr.msra.gmra.mxu1 %v25797_v40 }
 0xedc   : > { %17740 = vmatprep.subr.mxu1 %v17450_v3  ;;  %17601 = vmatprep.mubr.f32.mxu1 %v26610_v48 }
 0xedd   : > { %20239 = vrsqrt.f32 %v17357_v56  ;;  %v17358_v7 = vadd.f32 1e-05, %v17354_v11  ;;  %17742 = vmatpush1.msra.mxu1 %v25845_v13  ;;  %17684 = vmatprep.mubr.f32.mxu0 %v26610_v48 }
 0xede   : > { %17926 = vmatprep.subr.mxu1 %v17450_v3  ;;  %20138 = vset.pattern.permute.xlu0 %v20353_v15 }
 0xedf   : > { %20241 = vrsqrt.f32 %v17358_v7  ;;  %17603 = vmatmul.mubr.f32.gmra.mxu1 %v25806_v32  ;;  %17687 = vmatmul.mubr.f32.vlgmr.msra.gmra.mxu0 %v25804_v23 }
 0xee0   : > { %17840 = vmatpush1.msra.mxu0 %v17558_v17  ;;  %17608 = vmatprep.mubr.f32.mxu1 %v26610_v48 }
 0xee1   : > { %17692 = vmatprep.mubr.f32.mxu0 %v26610_v48  ;;  %19625 = vperm.xlu1 %20137, %v20265_v59  }
 0xee3   : > { %17610 = vmatmul.mubr.f32.gmra.mxu1 %v25817_v42  ;;  %17695 = vmatmul.mubr.f32.gmra.mxu0 %v25815_v57 }
 0xee4   : > { %17700 = vmatprep.mubr.f32.mxu0 %v26610_v48  ;;  %17775 = vmatprep.mubr.f32.mxu1 %v26610_v48 }
 0xee7   : > { %17703 = vmatmul.mubr.f32.gmra.mxu0 %v25832_v39  ;;  %17779 = vmatmul.mubr.f32.vlgmr.msra.gmra.mxu1 %v25812_v18 }
 0xee8   : > { %17928 = vmatpush1.msra.mxu1 %v25845_v13  ;;  %17784 = vmatprep.mubr.f32.mxu1 %v26610_v48 }
 0xee9   : > { %17873 = vmatprep.mubr.f32.mxu0 %v26610_v48 }
 0xeea   : > { %v20240_v63 = vpop.eup %20239 }
 0xeeb   : > { %v17365_v26 = vmul.f32 %v20240_v63, %v25823_v10  ;;  %17788 = vmatmul.mubr.f32.gmra.mxu1 %v25829_v60  ;;  %17875 = vmatmul.mubr.f32.vlgmr.msra.gmra.mxu0 %v25797_v40 }
 0xeec   : > { %v20242_v38 = vpop.eup %20241  ;;  %17793 = vmatprep.mubr.f32.mxu1 %v26610_v48  ;;  %17880 = vmatprep.mubr.f32.mxu0 %v26610_v48 }
 0xeed   : > { %v17366_v30 = vmul.f32 %v20242_v38, %v25836_v21  ;;  %v17373_v33 = vmul.f32 %v25809_v53, %v17365_v26 }
 0xeef   : > { %v17374_v6 = vmul.f32 %v25809_v53, %v17366_v30  ;;  %v17381_v13 = vadd.f32 %v25820_v29, %v17373_v33  ;;  %17797 = vmatmul.mubr.f32.gmra.mxu1 %v25854_v47  ;;  %17882 = vmatmul.mubr.f32.gmra.mxu0 %v25806_v32 }
 0xef0   : > { %17887 = vmatprep.mubr.f32.mxu0 %v26610_v48  ;;  %17961 = vmatprep.mubr.f32.mxu1 %v26610_v48 }
 0xef1   : > { %v17382_v10 = vadd.f32 %v25820_v29, %v17374_v6  ;;  %v17415_v0 = vsel %vm11240_vm4, %v17381_v13, 0 }
 0xef2   : > { %v18015_v25 = vand.u32 4294901760, %v17415_v0 }
 0xef3   : > { %v17418_v21 = vsel %vm11240_vm4, %v17382_v10, 0  ;;  %17889 = vmatmul.mubr.f32.gmra.mxu0 %v25817_v42  ;;  %17963 = vmatmul.mubr.f32.vlgmr.msra.gmra.mxu1 %v25797_v40 }
 0xef4   : > { %v18013_v53 = vand.u32 4294901760, %v17418_v21  ;;  %17968 = vmatprep.mubr.f32.mxu1 %v26610_v48  ;;  %18049 = vmatprep.mubr.f32.mxu0 %v26610_v48  ;;  %v18120_v49 = vsub.f32 %v17415_v0, %v18015_v25 }
 0xef6   : > { %18014 = vmatprep.subr.mxu0 %v18013_v53  ;;  %v18114_v58 = vsub.f32 %v17418_v21, %v18013_v53  ;;  %v18121_v55 = vand.u32 4294901760, %v18120_v49 }
 0xef7   : > { %18016 = vmatpush1.msra.mxu0 %v18015_v25  ;;  %17970 = vmatmul.mubr.f32.gmra.mxu1 %v25806_v32 }
 0xef8   : > { %18055 = vmatmul.mubr.f32.vlgmr.msra.gmra.mxu0 %v25847_v27  ;;  %18211 = vmatprep.subr.mxu0 %v18114_v58  ;;  %v18115_v29 = vand.u32 4294901760, %v18114_v58  ;;  %v18122_v3 = vsub.f32 %v18120_v49, %v18121_v55 }
 0xef9   : > { %18214 = vmatpush1.msra.mxu0 %v18120_v49  ;;  %17975 = vmatprep.mubr.f32.mxu1 %v26610_v48 }
 0xefa   : > { %18399 = vmatprep.subr.mxu0 %v18115_v29  ;;  %18060 = vmatprep.mubr.f32.mxu0 %v26610_v48  ;;  %v18116_v36 = vsub.f32 %v18114_v58, %v18115_v29  ;;  %v18123_v27 = vand.u32 4294901760, %v18122_v3 }
 0xefb   : > { %17977 = vmatmul.mubr.f32.gmra.mxu1 %v25817_v42 }
 0xefc   : > { %18066 = vmatmul.mubr.f32.gmra.mxu0 %v25858_v14  ;;  %v18117_v28 = vand.u32 4294901760, %v18116_v36  ;;  %18157 = vmatprep.mubr.f32.mxu1 %v26610_v48 }
 0xefd   : > { %18071 = vmatprep.mubr.f32.mxu0 %v26610_v48 }
 0xefe   : > { %18118 = vmatprep.subr.mxu1 %v18117_v28 }
 0xeff   : > { %18124 = vmatpush1.msra.mxu1 %v18123_v27 }
 0xf00   : > { %18077 = vmatmul.mubr.f32.gmra.mxu0 %v25865_v22  ;;  %18159 = vmatmul.mubr.f32.vlgmr.msra.gmra.mxu1 %v25797_v40 }
 0xf01   : > { %18303 = vmatprep.subr.mxu1 %v18013_v53  ;;  %18164 = vmatprep.mubr.f32.mxu1 %v26610_v48 }
 0xf02   : > { %18305 = vmatpush1.msra.mxu1 %v18015_v25  ;;  %18247 = vmatprep.mubr.f32.mxu0 %v26610_v48 }
 0xf03   : > { %18489 = vmatprep.subr.mxu1 %v18013_v53 }
 0xf04   : > { %18166 = vmatmul.mubr.f32.gmra.mxu1 %v25806_v32  ;;  %18250 = vmatmul.mubr.f32.vlgmr.msra.gmra.mxu0 %v25804_v23 }
 0xf05   : > { %18403 = vmatpush1.msra.mxu0 %v18121_v55  ;;  %18171 = vmatprep.mubr.f32.mxu1 %v26610_v48 }
 0xf06   : > { %18255 = vmatprep.mubr.f32.mxu0 %v26610_v48 }
 0xf08   : > { %18173 = vmatmul.mubr.f32.gmra.mxu1 %v25817_v42  ;;  %18258 = vmatmul.mubr.f32.gmra.mxu0 %v25815_v57 }
 0xf09   : > { %18338 = vmatprep.mubr.f32.mxu1 %v26610_v48  ;;  %18263 = vmatprep.mubr.f32.mxu0 %v26610_v48 }
 0xf0c   : > { %18342 = vmatmul.mubr.f32.vlgmr.msra.gmra.mxu1 %v25812_v18  ;;  %18266 = vmatmul.mubr.f32.gmra.mxu0 %v25832_v39  ;;  %v25946_v18 = vpop.permute.xlu1 %17396 }
 0xf0d   : > { %18491 = vmatpush1.msra.mxu1 %v18015_v25  ;;  %18347 = vmatprep.mubr.f32.mxu1 %v26610_v48 }
 0xf0e   : > { %18436 = vmatprep.mubr.f32.mxu0 %v26610_v48 }
 0xf10   : > { %18351 = vmatmul.mubr.f32.gmra.mxu1 %v25829_v60  ;;  %18438 = vmatmul.mubr.f32.vlgmr.msra.gmra.mxu0 %v25797_v40  ;;  %v25948_v60 = vpop.permute.xlu0 %17388  ;;  %v25951_v46 = vpop.permute.xlu1 %17392 }
 0xf11   : > { %18356 = vmatprep.mubr.f32.mxu1 %v26610_v48  ;;  %18443 = vmatprep.mubr.f32.mxu0 %v26610_v48 }
 0xf14   : > { %18360 = vmatmul.mubr.f32.gmra.mxu1 %v25854_v47  ;;  %18445 = vmatmul.mubr.f32.gmra.mxu0 %v25806_v32 }
 0xf15   : > { %18524 = vmatprep.mubr.f32.mxu1 %v26610_v48  ;;  %18450 = vmatprep.mubr.f32.mxu0 %v26610_v48 }
 0xf18   : > { %18526 = vmatmul.mubr.f32.vlgmr.msra.gmra.mxu1 %v25797_v40  ;;  %18452 = vmatmul.mubr.f32.gmra.mxu0 %v25817_v42 }
 0xf19   : > { %18531 = vmatprep.mubr.f32.mxu1 %v26610_v48  ;;  %18651 = vmatprep.mubr.f32.mxu0 %v26610_v48 }
 0xf1c   : > { %18533 = vmatmul.mubr.f32.gmra.mxu1 %v25806_v32 }
 0xf1d   : > { %18538 = vmatprep.mubr.f32.mxu1 %v26610_v48 }
 0xf20   : > { %18540 = vmatmul.mubr.f32.gmra.mxu1 %v25817_v42 }
 0xf21   : > { %18757 = vmatprep.mubr.f32.mxu1 %v26610_v48 }
 0xf93   : > { %v17493_v23 = vpop.f32.mrf.mxu0 }
 0xf94   : > { %v17494_v39 = vadd.f32 %v17493_v23, %v25948_v60 }
 0xf95   : > { %v17495_v57 = vpop.f32.mrf.mxu0 }
 0xf96   : > { %v17496_v17 = vadd.f32 %v17495_v57, %v25948_v60 }
 0xf97   : > { %v17504_v40 = vpop.f32.mrf.mxu0 }
 0xf98   : > { %v17505_v42 = vadd.f32 %v17504_v40, %v25951_v46 }
 0xf99   : > { %v17506_v47 = vpop.f32.mrf.mxu0 }
 0xf9a   : > { %v17507_v34 = vadd.f32 %v17506_v47, %v25951_v46 }
 0xf9b   : > { %v17597_v37 = vpop.f32.mrf.mxu1  ;;  %v17515_v32 = vpop.f32.mrf.mxu0 }
 0xf9c   : > { %v17598_v14 = vadd.f32 %v17597_v37, %v17494_v39  ;;  %v17516_v50 = vadd.f32 %v17515_v32, %v25946_v18 }
 0xf9d   : > { %v17599_v1 = vpop.f32.mrf.mxu1  ;;  %v17517_v16 = vpop.f32.mrf.mxu0 }
 0xf9e   : > { %v17600_v20 = vadd.f32 %v17599_v1, %v17496_v17  ;;  %v17518_v63 = vadd.f32 %v17517_v16, %v25946_v18 }
 0xf9f   : > { %v17604_v51 = vpop.f32.mrf.mxu1  ;;  %v17688_v19 = vpop.f32.mrf.mxu0 }
 0xfa0   : > { %v17689_v12 = vadd.f32 %v17688_v19, %v17598_v14  ;;  %v17605_v41 = vadd.f32 %v17604_v51, %v17505_v42 }
 0xfa1   : > { %v17606_v62 = vpop.f32.mrf.mxu1  ;;  %v17690_v22 = vpop.f32.mrf.mxu0 }
 0xfa2   : > { %v17691_v52 = vadd.f32 %v17690_v22, %v17600_v20  ;;  %v17607_v9 = vadd.f32 %v17606_v62, %v17507_v34 }
 0xfa3   : > { %v17611_v56 = vpop.f32.mrf.mxu1  ;;  %v17696_v11 = vpop.f32.mrf.mxu0 }
 0xfa4   : > { %v17612_v7 = vadd.f32 %v17611_v56, %v17516_v50  ;;  %v17697_v26 = vadd.f32 %v17696_v11, %v17605_v41 }
 0xfa5   : > { %v17613_v38 = vpop.f32.mrf.mxu1  ;;  %v17698_v30 = vpop.f32.mrf.mxu0 }
 0xfa6   : > { %v17699_v33 = vadd.f32 %v17698_v30, %v17607_v9  ;;  %v17614_v6 = vadd.f32 %v17613_v38, %v17518_v63 }
 0xfa7   : > { %v17780_v13 = vpop.f32.mrf.mxu1  ;;  %v17704_v10 = vpop.f32.mrf.mxu0 }
 0xfa8   : > { %v17705_v0 = vadd.f32 %v17704_v10, %v17612_v7  ;;  %v17781_v25 = vadd.f32 %v17780_v13, %v17689_v12 }
 0xfa9   : > { %v17782_v21 = vpop.f32.mrf.mxu1  ;;  %v17706_v53 = vpop.f32.mrf.mxu0 }
 0xfaa   : > { %v17783_v49 = vadd.f32 %v17782_v21, %v17691_v52  ;;  %v17707_v58 = vadd.f32 %v17706_v53, %v17614_v6 }
 0xfab   : > { %v17789_v55 = vpop.f32.mrf.mxu1  ;;  %v17876_v29 = vpop.f32.mrf.mxu0 }
 0xfac   : > { %v17877_v3 = vadd.f32 %v17876_v29, %v17781_v25  ;;  %v17790_v36 = vadd.f32 %v17789_v55, %v17697_v26 }
 0xfad   : > { %v17791_v28 = vpop.f32.mrf.mxu1  ;;  %v17878_v27 = vpop.f32.mrf.mxu0 }
 0xfae   : > { %v17792_v23 = vadd.f32 %v17791_v28, %v17699_v33  ;;  %v17879_v57 = vadd.f32 %v17878_v27, %v17783_v49 }
 0xfaf   : > { %v17798_v40 = vpop.f32.mrf.mxu1  ;;  %v17883_v39 = vpop.f32.mrf.mxu0 }
 0xfb0   : > { %v25961_v47 = vadd.f32 %v17798_v40, %v17705_v0  ;;  %v17884_v37 = vadd.f32 %v17883_v39, %v17790_v36 }
 0xfb1   : > { %v17800_v32 = vpop.f32.mrf.mxu1  ;;  %v17885_v17 = vpop.f32.mrf.mxu0 }
 0xfb2   : > { %v25963_v14 = vadd.f32 %v17800_v32, %v17707_v58  ;;  %v17886_v42 = vadd.f32 %v17885_v17, %v17792_v23 }
 0xfb3   : > { %v17964_v1 = vpop.f32.mrf.mxu1  ;;  %v25965_v16 = vpop.f32.mrf.mxu0 }
 0xfb4   : > { %v25967_v20 = vadd.f32 %v17964_v1, %v17877_v3 }
 0xfb5   : > { %v17966_v51 = vpop.f32.mrf.mxu1  ;;  %v25969_v19 = vpop.f32.mrf.mxu0 }
 0xfb6   : > { %v25971_v34 = vadd.f32 %v17966_v51, %v17879_v57 }
 0xfb7   : > { %v17971_v50 = vpop.f32.mrf.mxu1 }
 0xfb8   : > { %v25973_v12 = vadd.f32 %v17971_v50, %v17884_v37  ;;  %v18056_v41 = vpop.f32.mrf.mxu0 }
 0xfb9   : > { %v17973_v15 = vpop.f32.mrf.mxu1  ;;  %v18057_v55 = vadd.f32 %v18056_v41, %v25948_v60 }
 0xfba   : > { %v25975_v62 = vadd.f32 %v17973_v15, %v17886_v42  ;;  %v18058_v22 = vpop.f32.mrf.mxu0 }
 0xfbb   : > { %v25977_v59 = vpop.f32.mrf.mxu1  ;;  %v18059_v36 = vadd.f32 %v18058_v22, %v25948_v60 }
 0xfbc   : > { %v18067_v52 = vpop.f32.mrf.mxu0 }
 0xfbd   : > { %v25979_v9 = vpop.f32.mrf.mxu1  ;;  %v18068_v28 = vadd.f32 %v18067_v52, %v25951_v46  ;;  %v18571_v52 = vld [vmem:[%s26211_s3 + $0x138] sm:$0x3] }
 0xfbe   : > { %v18069_v56 = vpop.f32.mrf.mxu0 }
 0xfbf   : > { %v18070_v32 = vadd.f32 %v18069_v56, %v25951_v46 }
 0xfc0   : > { %v18160_v11 = vpop.f32.mrf.mxu1  ;;  %v18078_v7 = vpop.f32.mrf.mxu0 }
 0xfc1   : > { %v18161_v57 = vadd.f32 %v18160_v11, %v18057_v55  ;;  %v18079_v51 = vadd.f32 %v18078_v7, %v25946_v18 }
 0xfc2   : > { %v18162_v63 = vpop.f32.mrf.mxu1  ;;  %v18080_v26 = vpop.f32.mrf.mxu0 }
 0xfc3   : > { %v18163_v40 = vadd.f32 %v18162_v63, %v18059_v36  ;;  %v18081_v11 = vadd.f32 %v18080_v26, %v25946_v18 }
 0xfc4   : > { %v18167_v38 = vpop.f32.mrf.mxu1  ;;  %v18251_v30 = vpop.f32.mrf.mxu0 }
 0xfc5   : > { %v18168_v17 = vadd.f32 %v18167_v38, %v18068_v28  ;;  %v18252_v42 = vadd.f32 %v18251_v30, %v18161_v57 }
 0xfc6   : > { %v18169_v33 = vpop.f32.mrf.mxu1  ;;  %v18253_v6 = vpop.f32.mrf.mxu0 }
 0xfc7   : > { %v18254_v1 = vadd.f32 %v18253_v6, %v18163_v40  ;;  %v18170_v15 = vadd.f32 %v18169_v33, %v18070_v32  ;;  %v18573_v33 = vsel %vm597_vm1, %v18571_v52, 0 }
 0xfc8   : > { %v18174_v13 = vpop.f32.mrf.mxu1  ;;  %v18259_v10 = vpop.f32.mrf.mxu0 }
 0xfc9   : > { %v18260_v60 = vadd.f32 %v18259_v10, %v18168_v17  ;;  %v18175_v30 = vadd.f32 %v18174_v13, %v18079_v51 }
 0xfca   : > { %v18176_v0 = vpop.f32.mrf.mxu1  ;;  %v18261_v25 = vpop.f32.mrf.mxu0 }
 0xfcb   : > { %v18262_v55 = vadd.f32 %v18261_v25, %v18170_v15  ;;  %v18177_v6 = vadd.f32 %v18176_v0, %v18081_v11 }
 0xfcc   : > { %v18343_v21 = vpop.f32.mrf.mxu1  ;;  %v18267_v53 = vpop.f32.mrf.mxu0 }
 0xfcd   : > { %v18344_v35 = vadd.f32 %v18343_v21, %v18252_v42  ;;  %v18268_v57 = vadd.f32 %v18267_v53, %v18175_v30 }
 0xfce   : > { %v18345_v49 = vpop.f32.mrf.mxu1  ;;  %v18269_v58 = vpop.f32.mrf.mxu0 }
 0xfcf   : > { %v18346_v22 = vadd.f32 %v18345_v49, %v18254_v1  ;;  %v18270_v32 = vadd.f32 %v18269_v58, %v18177_v6 }
 0xfd0   : > { %v18352_v29 = vpop.f32.mrf.mxu1  ;;  %v18439_v3 = vpop.f32.mrf.mxu0 }
 0xfd1   : > { %v18353_v46 = vadd.f32 %v18352_v29, %v18260_v60  ;;  %v18440_v56 = vadd.f32 %v18439_v3, %v18344_v35  ;;  %v25991_v3 = vand.u32 4294901760, %v18573_v33 }
 0xfd2   : > { %v18354_v27 = vpop.f32.mrf.mxu1  ;;  %v18441_v23 = vpop.f32.mrf.mxu0 }
 0xfd3   : > { %v18442_v38 = vadd.f32 %v18441_v23, %v18346_v22  ;;  %v18355_v21 = vadd.f32 %v18354_v27, %v18262_v55 }
 0xfd4   : > { %v18361_v39 = vpop.f32.mrf.mxu1  ;;  %v18446_v37 = vpop.f32.mrf.mxu0 }
 0xfd5   : > { %v18447_v49 = vadd.f32 %v18446_v37, %v18353_v46  ;;  %v18362_v26 = vadd.f32 %v18361_v39, %v18268_v57  ;;  %v25996_v39 = vsub.f32 %v18573_v33, %v25991_v3 }
 0xfd6   : > { %v18363_v50 = vpop.f32.mrf.mxu1  ;;  %v18448_v41 = vpop.f32.mrf.mxu0 }
 0xfd7   : > { %v18449_v17 = vadd.f32 %v18448_v41, %v18355_v21  ;;  %v18364_v13 = vadd.f32 %v18363_v50, %v18270_v32  ;;  %v18654_v46 = vand.u32 4294901760, %v25996_v39 }
 0xfd8   : > { %v18527_v63 = vpop.f32.mrf.mxu1  ;;  %v18453_v36 = vpop.f32.mrf.mxu0 }
 0xfd9   : > { %v18528_v10 = vadd.f32 %v18527_v63, %v18440_v56  ;;  %v18454_v1 = vadd.f32 %v18453_v36, %v18362_v26  ;;  %v17893_v56 = vadd.f32 %v25969_v19, %v25963_v14 }
 0xfda   : > { %v18529_v7 = vpop.f32.mrf.mxu1  ;;  %v18455_v35 = vpop.f32.mrf.mxu0 }
 0xfdb   : > { %v18530_v28 = vadd.f32 %v18529_v7, %v18442_v38  ;;  %v18548_v0 = vmax.f32 %v18528_v10, 0.0  ;;  %v18456_v53 = vadd.f32 %v18455_v35, %v18364_v13  ;;  %v17981_v7 = vadd.f32 %v25979_v9, %v17893_v56 }
 0xfdc   : > { %v18534_v40 = vpop.f32.mrf.mxu1 }
 0xfdd   : > { %v18535_v18 = vadd.f32 %v18534_v40, %v18447_v49  ;;  %v18549_v25 = vmax.f32 %v18530_v28, 0.0  ;;  %v18560_v60 = vadd.f32 %v18548_v0, %v25693_v31  ;;  %v18555_v49 = vmax.f32 %v17981_v7, 0.0 }
 0xfde   : > { %v18536_v29 = vpop.f32.mrf.mxu1 }
 0xfdf   : > { %v18552_v23 = vmax.f32 %v18535_v18, 0.0  ;;  %v18537_v42 = vadd.f32 %v18536_v29, %v18449_v17  ;;  %v18561_v58 = vadd.f32 %v18549_v25, %v25713_v4  ;;  %v26010_v38 = vand.u32 4294901760, %v18560_v60  ;;  %v18570_v25 = vld [vmem:[%s26211_s3 + $0x130] sm:$0x3] }
 0xfe0   : > { %v18541_v27 = vpop.f32.mrf.mxu1  ;;  %v18567_v13 = vadd.f32 %v18555_v49, %v25587_v45 }
 0xfe1   : > { %v18564_v37 = vadd.f32 %v18552_v23, %v25690_v8  ;;  %v18553_v51 = vmax.f32 %v18537_v42, 0.0  ;;  %v18542_v41 = vadd.f32 %v18541_v27, %v18454_v1  ;;  %v26004_v55 = vand.u32 4294901760, %v18561_v58 }
 0xfe2   : > { %v18543_v15 = vpop.f32.mrf.mxu1  ;;  %v26036_v9 = vsub.f32 %v18560_v60, %v26010_v38  ;;  %v19099_v1 = vsel %vm597_vm1, %v18570_v25, 0  ;;  %v18551_v27 = vmax.f32 %v25975_v62, 0.0  ;;  %v19105_v62 = vsel %vm415_vm0, %v18567_v13, 0 }
 0xfe3   : > { %v18565_v50 = vadd.f32 %v18553_v51, %v25710_v2  ;;  %v18544_v22 = vadd.f32 %v18543_v15, %v18456_v53  ;;  %v18556_v52 = vmax.f32 %v18542_v41, 0.0  ;;  %v26000_v11 = vand.u32 4294901760, %v18564_v37 }
 0xfe4   : > { %v17891_v2 = vadd.f32 %v25965_v16, %v25961_v47  ;;  %v26032_v47 = vsub.f32 %v18561_v58, %v26004_v55  ;;  %v18721_v18 = vand.u32 4294901760, %v26036_v9  ;;  %v18550_v53 = vmax.f32 %v25973_v12, 0.0 }
 0xfe5   : > { %v26002_v63 = vand.u32 4294901760, %v18565_v50  ;;  %v18557_v8 = vmax.f32 %v18544_v22, 0.0  ;;  %v18568_v4 = vadd.f32 %v18556_v52, %v25687_v43  ;;  %v26021_v43 = vsub.f32 %v18564_v37, %v26000_v11 }
 0xfe6   : > { %v17979_v16 = vadd.f32 %v25977_v59, %v17891_v2  ;;  %v18715_v32 = vand.u32 4294901760, %v26032_v47  ;;  %v18722_v51 = vsub.f32 %v26036_v9, %v18721_v18  ;;  %v18547_v41 = vmax.f32 %v25971_v34, 0.0 }
 0xfe7   : > { %v18569_v31 = vadd.f32 %v18557_v8, %v25707_v24  ;;  %v18576_v30 = vsel %vm415_vm0, %v18568_v4, 0  ;;  %v26017_v6 = vsub.f32 %v18565_v50, %v26002_v63  ;;  %v18655_v24 = vsub.f32 %v25996_v39, %v18654_v46 }
 0xfe8   : > { %v26023_v36 = vand.u32 4294901760, %v18576_v30  ;;  %v18709_v28 = vand.u32 4294901760, %v26021_v43  ;;  %v18554_v17 = vmax.f32 %v17979_v16, 0.0  ;;  %v18716_v42 = vsub.f32 %v26032_v47, %v18715_v32 }
 0xfe9   : > { %v18579_v14 = vsel %vm415_vm0, %v18569_v31, 0  ;;  %v18703_v10 = vand.u32 4294901760, %v26017_v6  ;;  %v18656_v59 = vand.u32 4294901760, %v18655_v24  ;;  %v26076_v15 = vand.u32 4294901760, %v19099_v1 }
 0xfea   : > { %v26026_v19 = vand.u32 4294901760, %v18579_v14  ;;  %v26039_v33 = vsub.f32 %v18576_v30, %v26023_v36  ;;  %v18710_v0 = vsub.f32 %v26021_v43, %v18709_v28  ;;  %v18566_v37 = vadd.f32 %v18554_v17, %v25572_v54 }
 0xfeb   : > { %v18704_v35 = vsub.f32 %v26017_v6, %v18703_v10  ;;  %v18546_v60 = vmax.f32 %v25967_v20, 0.0  ;;  %v18717_v12 = vand.u32 4294901760, %v18716_v42  ;;  %v18563_v50 = vadd.f32 %v18551_v27, %v25604_v44  ;;  %v26624_v44 = vld [vmem:[#allocation40_spill] sm:$0xff] }
 0xfec   : > { %18608 = vmatprep.subr.mxu0 %v26026_v19  ;;  %v18690_v21 = vsub.f32 %v18579_v14, %v26026_v19  ;;  %v18697_v57 = vand.u32 4294901760, %v26039_v33  ;;  %v18711_v54 = vand.u32 4294901760, %v18710_v0  ;;  %v19102_v22 = vsel %vm415_vm0, %v18566_v37, 0 }
 0xfed   : > { %18610 = vmatpush1.msra.mxu0 %v26023_v36  ;;  %v18705_v58 = vand.u32 4294901760, %v18704_v35  ;;  %v18723_v34 = vand.u32 4294901760, %v18722_v51  ;;  %v18562_v52 = vadd.f32 %v18550_v53, %v25591_v5  ;;  %v26084_v8 = vand.u32 4294901760, %v19105_v62 }
 0xfee   : > { %18612 = vmatprep.subr.mxu0 %v26002_v63  ;;  %v18691_v40 = vand.u32 4294901760, %v18690_v21  ;;  %v18698_v26 = vsub.f32 %v26039_v33, %v18697_v57  ;;  %v18559_v20 = vadd.f32 %v18547_v41, %v25597_v61  ;;  %v26089_v4 = vsub.f32 %v19099_v1, %v26076_v15 }
 0xfef   : > { %18614 = vmatpush1.msra.mxu0 %v26000_v11  ;;  %v18558_v56 = vadd.f32 %v18546_v60, %v26624_v44  ;;  %v26092_v31 = vand.u32 4294901760, %v19102_v22  ;;  %v26095_v5 = vand.u32 4294901760, %v18563_v50  ;;  %v26098_v2 = vand.u32 4294901760, %v18562_v52 }
 0xff0   : > { %18616 = vmatprep.subr.mxu0 %v26004_v55  ;;  %v18692_v29 = vsub.f32 %v18690_v21, %v18691_v40  ;;  %v18699_v45 = vand.u32 4294901760, %v18698_v26  ;;  %v26104_v61 = vsub.f32 %v19105_v62, %v26084_v8  ;;  %v26106_v30 = vand.u32 4294901760, %v18559_v20 }
 0xff1   : > { %18618 = vmatpush1.msra.mxu0 %v26010_v38  ;;  %v26110_v7 = vand.u32 4294901760, %v18558_v56  ;;  %v26113_v14 = vsub.f32 %v19102_v22, %v26092_v31  ;;  %v26122_v24 = vsub.f32 %v18562_v52, %v26098_v2 }
 0xff2   : > { %18793 = vmatprep.subr.mxu0 %v18690_v21  ;;  %18657 = vmatmul.mubr.f32.vlgmr.msra.gmra.mxu0 %v18656_v59  ;;  %v18693_v23 = vand.u32 4294901760, %v18692_v29 }
 0xff3   : > { %18796 = vmatpush1.msra.mxu0 %v26039_v33  ;;  %18841 = vmatprep.mubr.f32.mxu0 %v26610_v48  ;;  %v19246_v33 = vsub.f32 %v18558_v56, %v26110_v7  ;;  %v19223_v21 = vand.u32 4294901760, %v26113_v14  ;;  %v19235_v49 = vand.u32 4294901760, %v26122_v24 }
 0xff4   : > { %18694 = vmatprep.subr.mxu1 %v18693_v23  ;;  %18799 = vmatprep.subr.mxu0 %v26017_v6  ;;  %v19180_v6 = vand.u32 4294901760, %v26089_v4 }
 0xff5   : > { %18700 = vmatpush1.msra.mxu1 %v18699_v45  ;;  %18802 = vmatpush1.msra.mxu0 %v26021_v43  ;;  %v19228_v43 = vsub.f32 %v18563_v50, %v26095_v5  ;;  %v19247_v59 = vand.u32 4294901760, %v19246_v33 }
 0xff6   : > { %18706 = vmatprep.subr.mxu1 %v18705_v58  ;;  %18805 = vmatprep.subr.mxu0 %v26032_v47  ;;  %v19217_v47 = vand.u32 4294901760, %v26104_v61  ;;  %v19181_v16 = vsub.f32 %v26089_v4, %v19180_v6 }
 0xff7   : > { %18712 = vmatpush1.msra.mxu1 %v18711_v54  ;;  %18808 = vmatpush1.msra.mxu0 %v26036_v9  ;;  %v19240_v9 = vsub.f32 %v18559_v20, %v26106_v30 }
 0xff8   : > { %18718 = vmatprep.subr.mxu1 %v18717_v12  ;;  %18959 = vmatprep.subr.mxu0 %v18691_v40 }
 0xff9   : > { %18724 = vmatpush1.msra.mxu1 %v18723_v34  ;;  %18844 = vmatmul.mubr.f32.vlgmr.msra.gmra.mxu0 %v25996_v39  ;;  %v19224_v39 = vsub.f32 %v26113_v14, %v19223_v21 }
 0xffa   : > { %18963 = vmatpush1.msra.mxu0 %v18697_v57  ;;  %18877 = vmatprep.subr.mxu1 %v26026_v19  ;;  %v19241_v57 = vand.u32 4294901760, %v19240_v9 }
 0xffb   : > { %18967 = vmatprep.subr.mxu0 %v18703_v10  ;;  %18759 = vmatmul.mubr.f32.vlgmr.msra.gmra.mxu1 %v25991_v3  ;;  %v19229_v10 = vand.u32 4294901760, %v19228_v43  ;;  %v19225_v40 = vand.u32 4294901760, %v19224_v39 }
 0xffc   : > { %18879 = vmatpush1.msra.mxu1 %v26023_v36  ;;  %18971 = vmatpush1.msra.mxu0 %v18709_v28  ;;  %v19218_v28 = vsub.f32 %v26104_v61, %v19217_v47 }
 0xffd   : > { %18881 = vmatprep.subr.mxu1 %v26002_v63  ;;  %18975 = vmatprep.subr.mxu0 %v18715_v32  ;;  %v19248_v32 = vsub.f32 %v19246_v33, %v19247_v59 }
 0xffe   : > { %18883 = vmatpush1.msra.mxu1 %v26000_v11  ;;  %18979 = vmatpush1.msra.mxu0 %v18721_v18 }
 0xfff   : > { %18885 = vmatprep.subr.mxu1 %v26004_v55  ;;  %19012 = vmatprep.mubr.f32.mxu0 %v26610_v48  ;;  %v19249_v18 = vand.u32 4294901760, %v19248_v32 }
0x1000   : > { %19134 = vmatprep.subr.mxu0 %v26084_v8  ;;  %18887 = vmatpush1.msra.mxu1 %v26010_v38 }
0x1001   : > { %19014 = vmatmul.mubr.f32.vlgmr.msra.gmra.mxu0 %v25991_v3  ;;  %18920 = vmatprep.mubr.f32.mxu1 %v26610_v48 }
0x1002   : > { %19136 = vmatpush1.msra.mxu0 %v26092_v31  ;;  %19047 = vmatprep.subr.mxu1 %v26026_v19  ;;  %v19182_v19 = vand.u32 4294901760, %v19181_v16 }
0x1003   : > { %19138 = vmatprep.subr.mxu0 %v26095_v5  ;;  %18924 = vmatmul.mubr.f32.vlgmr.msra.gmra.mxu1 %v18654_v46  ;;  %v19230_v46 = vsub.f32 %v19228_v43, %v19229_v10 }
0x1004   : > { %19049 = vmatpush1.msra.mxu1 %v26023_v36  ;;  %19140 = vmatpush1.msra.mxu0 %v26098_v2  ;;  %v19236_v36 = vsub.f32 %v26122_v24, %v19235_v49 }
0x1005   : > { %19051 = vmatprep.subr.mxu1 %v26002_v63  ;;  %19142 = vmatprep.subr.mxu0 %v26106_v30  ;;  %v19219_v63 = vand.u32 4294901760, %v19218_v28 }
0x1006   : > { %19053 = vmatpush1.msra.mxu1 %v26000_v11  ;;  %19144 = vmatpush1.msra.mxu0 %v26110_v7  ;;  %v19242_v11 = vsub.f32 %v19240_v9, %v19241_v57 }
0x1007   : > { %19055 = vmatprep.subr.mxu1 %v26004_v55  ;;  %19177 = vmatprep.mubr.f32.mxu0 %v26610_v48  ;;  %v19231_v55 = vand.u32 4294901760, %v19230_v46 }
0x1008   : > { %19319 = vmatprep.subr.mxu0 %v26104_v61  ;;  %19057 = vmatpush1.msra.mxu1 %v26010_v38  ;;  %v19237_v38 = vand.u32 4294901760, %v19236_v36  ;;  %v19243_v17 = vand.u32 4294901760, %v19242_v11 }
0x1009   : > { %19183 = vmatmul.mubr.f32.vlgmr.msra.gmra.mxu0 %v19182_v19  ;;  %19090 = vmatprep.mubr.f32.mxu1 %v26610_v48 }
0x100a   : > { %19322 = vmatpush1.msra.mxu0 %v26113_v14  ;;  %19220 = vmatprep.subr.mxu1 %v19219_v63 }
0x100b   : > { %19325 = vmatprep.subr.mxu0 %v19228_v43  ;;  %19092 = vmatmul.mubr.f32.vlgmr.msra.gmra.mxu1 %v25991_v3 }
0x100c   : > { %19226 = vmatpush1.msra.mxu1 %v19225_v40  ;;  %19328 = vmatpush1.msra.mxu0 %v26122_v24 }
0x100d   : > { %19232 = vmatprep.subr.mxu1 %v19231_v55  ;;  %19331 = vmatprep.subr.mxu0 %v19240_v9 }
0x100e   : > { %19238 = vmatpush1.msra.mxu1 %v19237_v38  ;;  %19334 = vmatpush1.msra.mxu0 %v19246_v33  ;;  %v19626_v33 = vpop.permute.xlu1 %19625 }
0x100f   : > { %19244 = vmatprep.subr.mxu1 %v19243_v17  ;;  %19367 = vmatprep.mubr.f32.mxu0 %v26610_v48 }
0x1010   : > { %19485 = vmatprep.subr.mxu0 %v19217_v47  ;;  %19250 = vmatpush1.msra.mxu1 %v19249_v18 }
0x1011   : > { %19370 = vmatmul.mubr.f32.vlgmr.msra.gmra.mxu0 %v26089_v4  ;;  %19283 = vmatprep.mubr.f32.mxu1 %v26610_v48 }
0x1012   : > { %19489 = vmatpush1.msra.mxu0 %v19223_v21  ;;  %19403 = vmatprep.subr.mxu1 %v26084_v8 }
0x1013   : > { %19493 = vmatprep.subr.mxu0 %v19229_v10  ;;  %19285 = vmatmul.mubr.f32.vlgmr.msra.gmra.mxu1 %v26076_v15 }
0x1014   : > { %19405 = vmatpush1.msra.mxu1 %v26092_v31  ;;  %19497 = vmatpush1.msra.mxu0 %v19235_v49 }
0x1015   : > { %19407 = vmatprep.subr.mxu1 %v26095_v5  ;;  %19501 = vmatprep.subr.mxu0 %v19241_v57 }
0x1016   : > { %19409 = vmatpush1.msra.mxu1 %v26098_v2  ;;  %19505 = vmatpush1.msra.mxu0 %v19247_v59 }
0x1017   : > { %19411 = vmatprep.subr.mxu1 %v26106_v30  ;;  %19446 = vmatprep.mubr.f32.mxu1 %v26610_v48 }
0x1018   : > { %19413 = vmatpush1.msra.mxu1 %v26110_v7  ;;  %19538 = vmatprep.mubr.f32.mxu0 %v26610_v48 }
0x1019   : > { %19573 = vmatprep.subr.mxu1 %v26084_v8  ;;  %19450 = vmatmul.mubr.f32.vlgmr.msra.gmra.mxu1 %v19180_v6 }
0x101a   : > { %19575 = vmatpush1.msra.mxu1 %v26092_v31  ;;  %19540 = vmatmul.mubr.f32.vlgmr.msra.gmra.mxu0 %v26076_v15 }
0x101b   : > { %19577 = vmatprep.subr.mxu1 %v26095_v5  ;;  %19616 = vmatprep.mubr.f32.mxu1 %v26610_v48 }
0x101c   : > { %19579 = vmatpush1.msra.mxu1 %v26098_v2 }
0x101d   : > { %19581 = vmatprep.subr.mxu1 %v26106_v30 }
0x101e   : > { %19583 = vmatpush1.msra.mxu1 %v26110_v7 }
0x101f   : > { %19618 = vmatmul.mubr.f32.vlgmr.msra.gmra.mxu1 %v26076_v15 }
0x10b2   : > { %v18658_v3 = vpop.f32.mrf.mxu0 }
0x10b4   : > { %v18660_v26 = vpop.f32.mrf.mxu0 }
0x10b9   : > { %v18845_v35 = vpop.f32.mrf.mxu0 }
0x10bb   : > { %v18760_v25 = vpop.f32.mrf.mxu1  ;;  %v18847_v42 = vpop.f32.mrf.mxu0 }
0x10bc   : > { %v18761_v13 = vadd.f32 %v18760_v25, %v18658_v3 }
0x10bd   : > { %v18762_v29 = vpop.f32.mrf.mxu1 }
0x10be   : > { %v18763_v23 = vadd.f32 %v18762_v29, %v18660_v26  ;;  %v18846_v1 = vadd.f32 %v18845_v35, %v18761_v13 }
0x10c0   : > { %v18848_v37 = vadd.f32 %v18847_v42, %v18763_v23 }
0x10c1   : > { %v19015_v48 = vpop.f32.mrf.mxu0 }
0x10c3   : > { %v18925_v0 = vpop.f32.mrf.mxu1  ;;  %v19017_v53 = vpop.f32.mrf.mxu0 }
0x10c4   : > { %v18926_v45 = vadd.f32 %v18925_v0, %v18846_v1 }
0x10c5   : > { %v18927_v27 = vpop.f32.mrf.mxu1 }
0x10c6   : > { %v18928_v51 = vadd.f32 %v18927_v27, %v18848_v37  ;;  %v19016_v41 = vadd.f32 %v19015_v48, %v18926_v45 }
0x10c8   : > { %v19018_v15 = vadd.f32 %v19017_v53, %v18928_v51 }
0x10c9   : > { %v19184_v54 = vpop.f32.mrf.mxu0 }
0x10cb   : > { %v19093_v58 = vpop.f32.mrf.mxu1  ;;  %v19186_v50 = vpop.f32.mrf.mxu0 }
0x10cc   : > { %v19094_v60 = vadd.f32 %v19093_v58, %v19016_v41 }
0x10cd   : > { %v19095_v62 = vpop.f32.mrf.mxu1 }
0x10ce   : > { %v19096_v12 = vadd.f32 %v19095_v62, %v19018_v15  ;;  %v19185_v22 = vadd.f32 %v19184_v54, %v19094_v60 }
0x10d0   : > { %v19187_v8 = vadd.f32 %v19186_v50, %v19096_v12 }
0x10d1   : > { %v19371_v52 = vpop.f32.mrf.mxu0 }
0x10d3   : > { %v19286_v34 = vpop.f32.mrf.mxu1  ;;  %v19373_v56 = vpop.f32.mrf.mxu0 }
0x10d4   : > { %v19287_v20 = vadd.f32 %v19286_v34, %v19185_v22 }
0x10d5   : > { %v19288_v4 = vpop.f32.mrf.mxu1 }
0x10d6   : > { %v19289_v44 = vadd.f32 %v19288_v4, %v19187_v8  ;;  %v19372_v31 = vadd.f32 %v19371_v52, %v19287_v20 }
0x10d8   : > { %v19374_v2 = vadd.f32 %v19373_v56, %v19289_v44 }
0x10d9   : > { %v19451_v5 = vpop.f32.mrf.mxu1 }
0x10da   : > { %v19452_v61 = vadd.f32 %v19451_v5, %v19372_v31  ;;  %v19541_v30 = vpop.f32.mrf.mxu0 }
0x10db   : > { %v19453_v6 = vpop.f32.mrf.mxu1 }
0x10dc   : > { %v19454_v7 = vadd.f32 %v19453_v6, %v19374_v2  ;;  %v19543_v14 = vpop.f32.mrf.mxu0  ;;  %v19542_v43 = vadd.f32 %v19541_v30, %v19452_v61 }
0x10de   : > { %v19544_v47 = vadd.f32 %v19543_v14, %v19454_v7 }
0x10df   : > { %v19619_v24 = vpop.f32.mrf.mxu1 }
0x10e0   : > { %v19620_v16 = vadd.f32 %v19619_v24, %v19542_v43 }
0x10e1   : > { %v19621_v9 = vpop.f32.mrf.mxu1 }
0x10e2   : > { %v19622_v21 = vadd.f32 %v19621_v9, %v19544_v47  ;;  %v19628_v10 = vadd.f32 %v19626_v33, %v19620_v16 }
0x10e4   : > { %v19629_v49 = vadd.f32 %v19626_v33, %v19622_v21 }
0x10e6   : > { %v19632_v28 = vcombine.low %v19628_v10, %v19629_v49 }
0x10e8   : > { %19780 = vst.sshfl [vmem:[%s357_s11] sm:$0x33 pattern:$0x76325410] %v19632_v28 }
0x10e9 PF: > { %s16_s27 = sadd.s32 1, %s20320_s27   ;;  %s26625_s21 = smov %s20300_s22 }
0x10ea   : > { %p13_p12 = scmp.ge.s32.totalorder %s16_s27, 6   ;;  %s26626_s22 = smov %s20440_s10 }
0x10eb   : > { %s26627_s23 = smov %s20312_s25  ;;  %s26628_s24 = smov %s20316_s26 }
0x10ec   : > { %s26629_s25 = smov %s26632_s28  ;;  %s26630_s26 = smov %s26636_s29 }
0x10ed   :  { %15 = sbr.rel (!%p13_p12) target bundleno = 4 (0x4), region = 110 }

</bundles_post_ra>
